<compile_context>
chip_gen: v5e
topology: v5e:2x2
jax: 0.10.0
libtpu: 0.0.40
codegen_flags: <defaults>
</compile_context>

<pallas_src>
import functools

import jax
import jax.numpy as jnp
from jax.experimental import pallas as pl
from jax.experimental.pallas import tpu as pltpu


# ----------------------------------------------------------------------------
# Static layer plan (mirrors the PyTorch Discriminator construction)
# ----------------------------------------------------------------------------

def _layer_plan(input_nc, output_nc, ndf, n_layers, H, W):
    plan = []
    h, w, cin = H, W, input_nc

    def add(cout, stride, has_in, lrelu):
        nonlocal h, w, cin
        if stride == 2:
            assert h % 2 == 0 and w % 2 == 0, "stride-2 conv needs even spatial dims"
            hp, wp = h + 4, w + 4       # pad 1 before, 3 after (trailing zeros unused)
        else:
            hp, wp = h + 2, w + 2       # symmetric pad 1 (PyTorch padding=1)
        ho = (h + 2 - 4) // stride + 1
        wo = (w + 2 - 4) // stride + 1
        plan.append(dict(h=h, w=w, cin=cin, cout=cout, stride=stride,
                         ho=ho, wo=wo, hp=hp, wp=wp, has_in=has_in, lrelu=lrelu))
        h, w, cin = ho, wo, cout

    add(ndf, 2, False, True)                                    # conv0 + LeakyReLU
    for i in range(n_layers):                                   # conv + IN + LeakyReLU
        # PyTorch rule: stride = 2, except stride = 1 for i >= 2
        add(ndf * (2 ** i) * 2, 2 if i < 2 else 1, True, True)
    add(output_nc, 1, False, False)                             # final conv (no act)
    return tuple(plan)


# ----------------------------------------------------------------------------
# Fused Pallas kernel: the whole Discriminator forward for one image per step
# ----------------------------------------------------------------------------

def _make_fused_kernel(plan):
    """Ref order: x, (w, b[, gamma, beta]) per conv, out, padded-scratch per conv."""
    n_conv = len(plan)

    def kernel(*refs):
        it = iter(refs)
        x_ref = next(it)
        layer_refs = []
        for cfg in plan:
            w_ref = next(it)
            b_ref = next(it)
            g_ref = next(it) if cfg["has_in"] else None
            t_ref = next(it) if cfg["has_in"] else None
            layer_refs.append((w_ref, b_ref, g_ref, t_ref))
        o_ref = next(it)
        pad_refs = [next(it) for _ in range(n_conv)]

        prev = None  # (H*W, C) f32 output of the previous conv (row-major h, w)

        for cfg, (w_ref, b_ref, g_ref, t_ref), pad_ref in zip(plan, layer_refs,
                                                              pad_refs):
            H, W, C = cfg["h"], cfg["w"], cfg["cin"]
            Ho, Wo, Cout = cfg["ho"], cfg["wo"], cfg["cout"]
            Hp, Wp, s = cfg["hp"], cfg["wp"], cfg["stride"]

            # ---- zero-padded copy of the layer input in VMEM (implicit im2col src)
            pad_ref[...] = jnp.zeros((Hp, Wp, C), jnp.float32)
            if prev is None:
                pad_ref[1:H + 1, 1:W + 1, :] = x_ref[0].astype(jnp.float32)
            else:
                # row-wise store: avoids a (H*W,C)->(H,W,C) relayout of the value
                for i in range(H):
                    pad_ref[i + 1, 1:W + 1, :] = prev[i * W:(i + 1) * W, :]

            # ---- implicit GEMM: 16 tap dots accumulated in f32 on the MXU
            w3 = w_ref[...]                               # (16, C, Cout), t = kh*4+kw
            acc = jnp.zeros((Ho * Wo, Cout), jnp.float32)
            if s == 2:
                Hq, Wq = Hp // 2, Wp // 2
                for pw in range(2):
                    # column phase pw of the padded input: (Hp, Wq, C)
                    col = pad_ref[:, pl.ds(pw, Wq, stride=2), :]
                    col = col.reshape(Hq, 2, Wq, C)       # split leading dim (free)
                    for ph in range(2):
                        q = col[:, ph]                    # q[a,b,:] = pad[2a+ph,2b+pw,:]
                        for oh in range(2):
                            for ow in range(2):
                                kh, kw = 2 * oh + ph, 2 * ow + pw
                                patch = q[oh:oh + Ho, ow:ow + Wo, :]
                                patch = patch.reshape(Ho * Wo, C)
                                acc = acc + jnp.dot(
                                    patch, w3[kh * 4 + kw],
                                    preferred_element_type=jnp.float32)
            else:
                xp = pad_ref[...]                         # (Hp, Wp, C)
                for kh in range(4):
                    for kw in range(4):
                        patch = xp[kh:kh + Ho, kw:kw + Wo, :].reshape(Ho * Wo, C)
                        acc = acc + jnp.dot(patch, w3[kh * 4 + kw],
                                            preferred_element_type=jnp.float32)
            acc = acc + b_ref[...]                        # conv bias, (1, Cout)

            # ---- InstanceNorm2d(affine=True, eps=1e-5, biased var) + LeakyReLU(0.2)
            if cfg["has_in"]:
                mean = jnp.mean(acc, axis=0, keepdims=True)
                cen = acc - mean
                var = jnp.mean(cen * cen, axis=0, keepdims=True)
                acc = cen * jax.lax.rsqrt(var + 1e-5) * g_ref[...] + t_ref[...]
            if cfg["lrelu"]:
                acc = jnp.where(acc >= 0.0, acc, 0.2 * acc)

            prev = acc                                    # feeds the next layer

        o_ref[0] = prev.astype(o_ref.dtype)               # (Hf*Wf, Cf)

    return kernel


# ----------------------------------------------------------------------------
# Wrapper
# ----------------------------------------------------------------------------

def discriminator_forward(params, x_nchw, *, output_nc, ndf, n_layers):
    """NCHW input -> NCHW output; matches the PyTorch Discriminator forward."""
    N, Cin, H, W = x_nchw.shape
    plan = _layer_plan(Cin, output_nc, ndf, n_layers, H, W)

    x = jnp.transpose(x_nchw, (0, 2, 3, 1)).astype(jnp.float32)   # NHWC, once

    names = ["conv0"] + [f"layer{i}" for i in range(n_layers)] + ["convf"]
    flat_args = [x]
    in_specs = [pl.BlockSpec((1, H, W, Cin), lambda n: (n, 0, 0, 0))]
    for cfg, name in zip(plan, names):
        p = params[name]
        w, b = p[0], p[1]
        cin, cout = cfg["cin"], cfg["cout"]
        # PyTorch (Cout, Cin, 4, 4) -> (16, Cin, Cout), tap index t = kh*4 + kw
        w3 = jnp.transpose(w, (2, 3, 1, 0)).reshape(16, cin, cout).astype(jnp.float32)
        flat_args += [w3, b.reshape(1, cout).astype(jnp.float32)]
        in_specs += [pl.BlockSpec((16, cin, cout), lambda n: (0, 0, 0)),
                     pl.BlockSpec((1, cout), lambda n: (0, 0))]
        if cfg["has_in"]:
            flat_args += [p[2].reshape(1, cout).astype(jnp.float32),
                          p[3].reshape(1, cout).astype(jnp.float32)]
            in_specs += [pl.BlockSpec((1, cout), lambda n: (0, 0)),
                         pl.BlockSpec((1, cout), lambda n: (0, 0))]

    last = plan[-1]
    Hf, Wf, Cf = last["ho"], last["wo"], last["cout"]
    scratch_shapes = [pltpu.VMEM((c["hp"], c["wp"], c["cin"]), jnp.float32)
                      for c in plan]

    out = pl.pallas_call(
        _make_fused_kernel(plan),
        out_shape=jax.ShapeDtypeStruct((N, Hf * Wf, Cf), jnp.float32),
        grid_spec=pltpu.PrefetchScalarGridSpec(
            num_scalar_prefetch=0,
            grid=(N,),
            in_specs=in_specs,
            out_specs=pl.BlockSpec((1, Hf * Wf, Cf), lambda n: (n, 0, 0)),
            scratch_shapes=scratch_shapes,
        ),
        compiler_params=pltpu.CompilerParams(
            dimension_semantics=("parallel",),
            vmem_limit_bytes=32 * 1024 * 1024,   # tiny footprint; safe on v5e/v6e/v7x
        ),
    )(*flat_args)

    # (N, Hf*Wf, Cf) -> NCHW at the module boundary (tiny tensor).
    return jnp.transpose(out.reshape(N, Hf, Wf, Cf), (0, 3, 1, 2))


# ----------------------------------------------------------------------------
# Params + pure-JAX reference (for correctness validation)
# ----------------------------------------------------------------------------

def init_discriminator_params(key, input_nc, output_nc, ndf, n_layers):
    params = {}
    key, k0, k0b = jax.random.split(key, 3)
    params["conv0"] = (
        0.05 * jax.random.normal(k0, (ndf, input_nc, 4, 4), jnp.float32),
        0.05 * jax.random.normal(k0b, (ndf,), jnp.float32),
    )
    for i in range(n_layers):
        mult = 2 ** i
        cin, cout = ndf * mult, ndf * mult * 2
        key, kw, kb, kg, kbt = jax.random.split(key, 5)
        params[f"layer{i}"] = (
            0.05 * jax.random.normal(kw, (cout, cin, 4, 4), jnp.float32),
            0.05 * jax.random.normal(kb, (cout,), jnp.float32),
            1.0 + 0.1 * jax.random.normal(kg, (cout,), jnp.float32),   # IN weight
            0.1 * jax.random.normal(kbt, (cout,), jnp.float32),        # IN bias
        )
    key, kf, kfb = jax.random.split(key, 3)
    cin = ndf * 2 ** n_layers
    params["convf"] = (
        0.05 * jax.random.normal(kf, (output_nc, cin, 4, 4), jnp.float32),
        0.05 * jax.random.normal(kfb, (output_nc,), jnp.float32),
    )
    return params


def _reference_forward(params, x, n_layers):
    def conv(v, w, b, stride):
        y = jax.lax.conv_general_dilated(
            v, w, (stride, stride), ((1, 1), (1, 1)),
            dimension_numbers=("NCHW", "OIHW", "NCHW"),
            precision=jax.lax.Precision.HIGHEST)
        return y + b.reshape(1, -1, 1, 1)

    def lrelu(v):
        return jnp.where(v >= 0, v, 0.2 * v)

    w, b = params["conv0"]
    x = lrelu(conv(x, w, b, 2))
    for i in range(n_layers):
        w, b, g, bt = params[f"layer{i}"]
        x = conv(x, w, b, 2 if i < 2 else 1)
        mean = x.mean(axis=(2, 3), keepdims=True)
        var = ((x - mean) ** 2).mean(axis=(2, 3), keepdims=True)
        x = (x - mean) * jax.lax.rsqrt(var + 1e-5)
        x = x * g.reshape(1, -1, 1, 1) + bt.reshape(1, -1, 1, 1)
        x = lrelu(x)
    w, b = params["convf"]
    return conv(x, w, b, 1)


# ----------------------------------------------------------------------------
# Main
# ----------------------------------------------------------------------------

if __name__ == "__main__":
    # config: D_input=3, D_output=1, D_channel=8, D_downsample=4 -> n_layers=2
    INPUT_NC, OUTPUT_NC, NDF, N_LAYERS = 3, 1, 8, 2
    N, H, W = 2, 32, 32

    key = jax.random.PRNGKey(0)
    key, kx = jax.random.split(key)
    x = jax.random.normal(kx, (N, INPUT_NC, H, W), jnp.float32)
    params = init_discriminator_params(key, INPUT_NC, OUTPUT_NC, NDF, N_LAYERS)

    fwd = jax.jit(functools.partial(discriminator_forward,
                                    output_nc=OUTPUT_NC, ndf=NDF,
                                    n_layers=N_LAYERS))
    out = fwd(params, x)
    jax.block_until_ready(out)

    # expected PatchGAN output: (2, 1, 3, 3) for 32x32 input with three stride-2 convs
    assert out.shape == (N, OUTPUT_NC, 3, 3), out.shape
    assert out.dtype == jnp.float32
    assert bool(jnp.all(jnp.isfinite(out)))

    ref = _reference_forward(params, x, N_LAYERS)
    max_err = float(jnp.max(jnp.abs(out - ref)))
    assert max_err < 3e-2, f"max abs error vs reference: {max_err}"

    print("KERNEL_OK")
</pallas_src>

<mosaic_0001>
module attributes {stable_mosaic.version = 11 : i64} {
  func.func @kernel(%arg0: i32, %arg1: memref<1x32x32x3xf32, #tpu.memory_space<vmem>>, %arg2: memref<16x3x8xf32, #tpu.memory_space<vmem>>, %arg3: memref<1x8xf32, #tpu.memory_space<vmem>>, %arg4: memref<16x8x16xf32, #tpu.memory_space<vmem>>, %arg5: memref<1x16xf32, #tpu.memory_space<vmem>>, %arg6: memref<1x16xf32, #tpu.memory_space<vmem>>, %arg7: memref<1x16xf32, #tpu.memory_space<vmem>>, %arg8: memref<16x16x32xf32, #tpu.memory_space<vmem>>, %arg9: memref<1x32xf32, #tpu.memory_space<vmem>>, %arg10: memref<1x32xf32, #tpu.memory_space<vmem>>, %arg11: memref<1x32xf32, #tpu.memory_space<vmem>>, %arg12: memref<16x32x1xf32, #tpu.memory_space<vmem>>, %arg13: memref<1x1xf32, #tpu.memory_space<vmem>>, %arg14: memref<1x9x1xf32, #tpu.memory_space<vmem>>, %arg15: memref<36x36x3xf32, #tpu.memory_space<vmem>>, %arg16: memref<20x20x8xf32, #tpu.memory_space<vmem>>, %arg17: memref<12x12x16xf32, #tpu.memory_space<vmem>>, %arg18: memref<6x6x32xf32, #tpu.memory_space<vmem>>) attributes {dimension_semantics = [#tpu.dimension_semantics<parallel>], iteration_bounds = array<i64: 2>, scalar_prefetch = 0 : i64, scratch_operands = 4 : i64, tpu.core_type = #tpu.core_type<tc>, window_params = [{transform_indices = @transform_0, window_bounds = array<i64: 1, 32, 32, 3>}, {pipeline_mode = #tpu.pipeline_mode<synchronous>, transform_indices = @transform_1, window_bounds = array<i64: 16, 3, 8>}, {pipeline_mode = #tpu.pipeline_mode<synchronous>, transform_indices = @transform_2, window_bounds = array<i64: 1, 8>}, {pipeline_mode = #tpu.pipeline_mode<synchronous>, transform_indices = @transform_3, window_bounds = array<i64: 16, 8, 16>}, {pipeline_mode = #tpu.pipeline_mode<synchronous>, transform_indices = @transform_4, window_bounds = array<i64: 1, 16>}, {pipeline_mode = #tpu.pipeline_mode<synchronous>, transform_indices = @transform_5, window_bounds = array<i64: 1, 16>}, {pipeline_mode = #tpu.pipeline_mode<synchronous>, transform_indices = @transform_6, window_bounds = array<i64: 1, 16>}, {pipeline_mode = #tpu.pipeline_mode<synchronous>, transform_indices = @transform_7, window_bounds = array<i64: 16, 16, 32>}, {pipeline_mode = #tpu.pipeline_mode<synchronous>, transform_indices = @transform_8, window_bounds = array<i64: 1, 32>}, {pipeline_mode = #tpu.pipeline_mode<synchronous>, transform_indices = @transform_9, window_bounds = array<i64: 1, 32>}, {pipeline_mode = #tpu.pipeline_mode<synchronous>, transform_indices = @transform_10, window_bounds = array<i64: 1, 32>}, {pipeline_mode = #tpu.pipeline_mode<synchronous>, transform_indices = @transform_11, window_bounds = array<i64: 16, 32, 1>}, {pipeline_mode = #tpu.pipeline_mode<synchronous>, transform_indices = @transform_12, window_bounds = array<i64: 1, 1>}, {transform_indices = @transform_13, window_bounds = array<i64: 1, 9, 1>}]} {
    %cst = arith.constant 0.000000e+00 : f32
    %0 = vector.broadcast %cst : f32 to vector<36x36x3xf32>
    %c0 = arith.constant 0 : index
    %c0_0 = arith.constant 0 : index
    %c0_1 = arith.constant 0 : index
    %1 = vector.load %arg15[%c0, %c0_0, %c0_1] : memref<36x36x3xf32, #tpu.memory_space<vmem>>, vector<36x36x3xf32>
    tpu.vector_store %arg15[%c0, %c0_0, %c0_1], %0 {strides = array<i32>} : memref<36x36x3xf32, #tpu.memory_space<vmem>>, vector<36x36x3xf32>,
    %c0_2 = arith.constant 0 : index
    %c0_3 = arith.constant 0 : index
    %c0_4 = arith.constant 0 : index
    %c0_5 = arith.constant 0 : index
    %2 = vector.load %arg1[%c0_2, %c0_3, %c0_4, %c0_5] : memref<1x32x32x3xf32, #tpu.memory_space<vmem>>, vector<1x32x32x3xf32>
    %3 = vector.shape_cast %2 : vector<1x32x32x3xf32> to vector<32x32x3xf32>
    %c1 = arith.constant 1 : index
    %c1_6 = arith.constant 1 : index
    %c0_7 = arith.constant 0 : index
    %4 = vector.load %arg15[%c1, %c1_6, %c0_7] : memref<36x36x3xf32, #tpu.memory_space<vmem>>, vector<32x32x3xf32>
    tpu.vector_store %arg15[%c1, %c1_6, %c0_7], %3 {strides = array<i32>} : memref<36x36x3xf32, #tpu.memory_space<vmem>>, vector<32x32x3xf32>,
    %c0_8 = arith.constant 0 : index
    %c0_9 = arith.constant 0 : index
    %c0_10 = arith.constant 0 : index
    %5 = vector.load %arg2[%c0_8, %c0_9, %c0_10] : memref<16x3x8xf32, #tpu.memory_space<vmem>>, vector<16x3x8xf32>
    %cst_11 = arith.constant 0.000000e+00 : f32
    %6 = vector.broadcast %cst_11 : f32 to vector<256x8xf32>
    %c0_12 = arith.constant 0 : index
    %c0_13 = arith.constant 0 : index
    %c0_14 = arith.constant 0 : index
    %7 = tpu.strided_load %arg15[%c0_12, %c0_13, %c0_14] {strides = array<i32: 1, 2, 1>} : memref<36x36x3xf32, #tpu.memory_space<vmem>>, vector<36x18x3xf32>
    %8 = vector.shape_cast %7 : vector<36x18x3xf32> to vector<18x2x18x3xf32>
    %9 = vector.extract_strided_slice %8 {offsets = [0, 0, 0, 0], sizes = [18, 1, 18, 3], strides = [1, 1, 1, 1]} : vector<18x2x18x3xf32> to vector<18x1x18x3xf32>
    %10 = vector.shape_cast %9 : vector<18x1x18x3xf32> to vector<18x18x3xf32>
    %11 = vector.extract_strided_slice %10 {offsets = [0, 0, 0], sizes = [16, 16, 3], strides = [1, 1, 1]} : vector<18x18x3xf32> to vector<16x16x3xf32>
    %12 = vector.shape_cast %11 : vector<16x16x3xf32> to vector<256x3xf32>
    %13 = vector.extract_strided_slice %5 {offsets = [0, 0, 0], sizes = [1, 3, 8], strides = [1, 1, 1]} : vector<16x3x8xf32> to vector<1x3x8xf32>
    %14 = vector.shape_cast %13 : vector<1x3x8xf32> to vector<3x8xf32>
    %cst_15 = arith.constant dense<0.000000e+00> : vector<256x8xf32>
    %15 = tpu.matmul %12, %14, %cst_15 {dimension_numbers = #tpu.dot_dimension_numbers<[1], [0], [0], [1], [0, 0, 1, 1], [], []>} : vector<256x3xf32>, vector<3x8xf32>, vector<256x8xf32> -> vector<256x8xf32>
    %16 = arith.addf %6, %15 : vector<256x8xf32>
    %17 = vector.extract_strided_slice %10 {offsets = [0, 1, 0], sizes = [16, 16, 3], strides = [1, 1, 1]} : vector<18x18x3xf32> to vector<16x16x3xf32>
    %18 = vector.shape_cast %17 : vector<16x16x3xf32> to vector<256x3xf32>
    %19 = vector.extract_strided_slice %5 {offsets = [2, 0, 0], sizes = [1, 3, 8], strides = [1, 1, 1]} : vector<16x3x8xf32> to vector<1x3x8xf32>
    %20 = vector.shape_cast %19 : vector<1x3x8xf32> to vector<3x8xf32>
    %cst_16 = arith.constant dense<0.000000e+00> : vector<256x8xf32>
    %21 = tpu.matmul %18, %20, %cst_16 {dimension_numbers = #tpu.dot_dimension_numbers<[1], [0], [0], [1], [0, 0, 1, 1], [], []>} : vector<256x3xf32>, vector<3x8xf32>, vector<256x8xf32> -> vector<256x8xf32>
    %22 = arith.addf %16, %21 : vector<256x8xf32>
    %23 = vector.extract_strided_slice %10 {offsets = [1, 0, 0], sizes = [16, 16, 3], strides = [1, 1, 1]} : vector<18x18x3xf32> to vector<16x16x3xf32>
    %24 = vector.shape_cast %23 : vector<16x16x3xf32> to vector<256x3xf32>
    %25 = vector.extract_strided_slice %5 {offsets = [8, 0, 0], sizes = [1, 3, 8], strides = [1, 1, 1]} : vector<16x3x8xf32> to vector<1x3x8xf32>
    %26 = vector.shape_cast %25 : vector<1x3x8xf32> to vector<3x8xf32>
    %cst_17 = arith.constant dense<0.000000e+00> : vector<256x8xf32>
    %27 = tpu.matmul %24, %26, %cst_17 {dimension_numbers = #tpu.dot_dimension_numbers<[1], [0], [0], [1], [0, 0, 1, 1], [], []>} : vector<256x3xf32>, vector<3x8xf32>, vector<256x8xf32> -> vector<256x8xf32>
    %28 = arith.addf %22, %27 : vector<256x8xf32>
    %29 = vector.extract_strided_slice %10 {offsets = [1, 1, 0], sizes = [16, 16, 3], strides = [1, 1, 1]} : vector<18x18x3xf32> to vector<16x16x3xf32>
    %30 = vector.shape_cast %29 : vector<16x16x3xf32> to vector<256x3xf32>
    %31 = vector.extract_strided_slice %5 {offsets = [10, 0, 0], sizes = [1, 3, 8], strides = [1, 1, 1]} : vector<16x3x8xf32> to vector<1x3x8xf32>
    %32 = vector.shape_cast %31 : vector<1x3x8xf32> to vector<3x8xf32>
    %cst_18 = arith.constant dense<0.000000e+00> : vector<256x8xf32>
    %33 = tpu.matmul %30, %32, %cst_18 {dimension_numbers = #tpu.dot_dimension_numbers<[1], [0], [0], [1], [0, 0, 1, 1], [], []>} : vector<256x3xf32>, vector<3x8xf32>, vector<256x8xf32> -> vector<256x8xf32>
    %34 = arith.addf %28, %33 : vector<256x8xf32>
    %35 = vector.extract_strided_slice %8 {offsets = [0, 1, 0, 0], sizes = [18, 1, 18, 3], strides = [1, 1, 1, 1]} : vector<18x2x18x3xf32> to vector<18x1x18x3xf32>
    %36 = vector.shape_cast %35 : vector<18x1x18x3xf32> to vector<18x18x3xf32>
    %37 = vector.extract_strided_slice %36 {offsets = [0, 0, 0], sizes = [16, 16, 3], strides = [1, 1, 1]} : vector<18x18x3xf32> to vector<16x16x3xf32>
    %38 = vector.shape_cast %37 : vector<16x16x3xf32> to vector<256x3xf32>
    %39 = vector.extract_strided_slice %5 {offsets = [4, 0, 0], sizes = [1, 3, 8], strides = [1, 1, 1]} : vector<16x3x8xf32> to vector<1x3x8xf32>
    %40 = vector.shape_cast %39 : vector<1x3x8xf32> to vector<3x8xf32>
    %cst_19 = arith.constant dense<0.000000e+00> : vector<256x8xf32>
    %41 = tpu.matmul %38, %40, %cst_19 {dimension_numbers = #tpu.dot_dimension_numbers<[1], [0], [0], [1], [0, 0, 1, 1], [], []>} : vector<256x3xf32>, vector<3x8xf32>, vector<256x8xf32> -> vector<256x8xf32>
    %42 = arith.addf %34, %41 : vector<256x8xf32>
    %43 = vector.extract_strided_slice %36 {offsets = [0, 1, 0], sizes = [16, 16, 3], strides = [1, 1, 1]} : vector<18x18x3xf32> to vector<16x16x3xf32>
    %44 = vector.shape_cast %43 : vector<16x16x3xf32> to vector<256x3xf32>
    %45 = vector.extract_strided_slice %5 {offsets = [6, 0, 0], sizes = [1, 3, 8], strides = [1, 1, 1]} : vector<16x3x8xf32> to vector<1x3x8xf32>
    %46 = vector.shape_cast %45 : vector<1x3x8xf32> to vector<3x8xf32>
    %cst_20 = arith.constant dense<0.000000e+00> : vector<256x8xf32>
    %47 = tpu.matmul %44, %46, %cst_20 {dimension_numbers = #tpu.dot_dimension_numbers<[1], [0], [0], [1], [0, 0, 1, 1], [], []>} : vector<256x3xf32>, vector<3x8xf32>, vector<256x8xf32> -> vector<256x8xf32>
    %48 = arith.addf %42, %47 : vector<256x8xf32>
    %49 = vector.extract_strided_slice %36 {offsets = [1, 0, 0], sizes = [16, 16, 3], strides = [1, 1, 1]} : vector<18x18x3xf32> to vector<16x16x3xf32>
    %50 = vector.shape_cast %49 : vector<16x16x3xf32> to vector<256x3xf32>
    %51 = vector.extract_strided_slice %5 {offsets = [12, 0, 0], sizes = [1, 3, 8], strides = [1, 1, 1]} : vector<16x3x8xf32> to vector<1x3x8xf32>
    %52 = vector.shape_cast %51 : vector<1x3x8xf32> to vector<3x8xf32>
    %cst_21 = arith.constant dense<0.000000e+00> : vector<256x8xf32>
    %53 = tpu.matmul %50, %52, %cst_21 {dimension_numbers = #tpu.dot_dimension_numbers<[1], [0], [0], [1], [0, 0, 1, 1], [], []>} : vector<256x3xf32>, vector<3x8xf32>, vector<256x8xf32> -> vector<256x8xf32>
    %54 = arith.addf %48, %53 : vector<256x8xf32>
    %55 = vector.extract_strided_slice %36 {offsets = [1, 1, 0], sizes = [16, 16, 3], strides = [1, 1, 1]} : vector<18x18x3xf32> to vector<16x16x3xf32>
    %56 = vector.shape_cast %55 : vector<16x16x3xf32> to vector<256x3xf32>
    %57 = vector.extract_strided_slice %5 {offsets = [14, 0, 0], sizes = [1, 3, 8], strides = [1, 1, 1]} : vector<16x3x8xf32> to vector<1x3x8xf32>
    %58 = vector.shape_cast %57 : vector<1x3x8xf32> to vector<3x8xf32>
    %cst_22 = arith.constant dense<0.000000e+00> : vector<256x8xf32>
    %59 = tpu.matmul %56, %58, %cst_22 {dimension_numbers = #tpu.dot_dimension_numbers<[1], [0], [0], [1], [0, 0, 1, 1], [], []>} : vector<256x3xf32>, vector<3x8xf32>, vector<256x8xf32> -> vector<256x8xf32>
    %60 = arith.addf %54, %59 : vector<256x8xf32>
    %c0_23 = arith.constant 0 : index
    %c1_24 = arith.constant 1 : index
    %c0_25 = arith.constant 0 : index
    %61 = tpu.strided_load %arg15[%c0_23, %c1_24, %c0_25] {strides = array<i32: 1, 2, 1>} : memref<36x36x3xf32, #tpu.memory_space<vmem>>, vector<36x18x3xf32>
    %62 = vector.shape_cast %61 : vector<36x18x3xf32> to vector<18x2x18x3xf32>
    %63 = vector.extract_strided_slice %62 {offsets = [0, 0, 0, 0], sizes = [18, 1, 18, 3], strides = [1, 1, 1, 1]} : vector<18x2x18x3xf32> to vector<18x1x18x3xf32>
    %64 = vector.shape_cast %63 : vector<18x1x18x3xf32> to vector<18x18x3xf32>
    %65 = vector.extract_strided_slice %64 {offsets = [0, 0, 0], sizes = [16, 16, 3], strides = [1, 1, 1]} : vector<18x18x3xf32> to vector<16x16x3xf32>
    %66 = vector.shape_cast %65 : vector<16x16x3xf32> to vector<256x3xf32>
    %67 = vector.extract_strided_slice %5 {offsets = [1, 0, 0], sizes = [1, 3, 8], strides = [1, 1, 1]} : vector<16x3x8xf32> to vector<1x3x8xf32>
    %68 = vector.shape_cast %67 : vector<1x3x8xf32> to vector<3x8xf32>
    %cst_26 = arith.constant dense<0.000000e+00> : vector<256x8xf32>
    %69 = tpu.matmul %66, %68, %cst_26 {dimension_numbers = #tpu.dot_dimension_numbers<[1], [0], [0], [1], [0, 0, 1, 1], [], []>} : vector<256x3xf32>, vector<3x8xf32>, vector<256x8xf32> -> vector<256x8xf32>
    %70 = arith.addf %60, %69 : vector<256x8xf32>
    %71 = vector.extract_strided_slice %64 {offsets = [0, 1, 0], sizes = [16, 16, 3], strides = [1, 1, 1]} : vector<18x18x3xf32> to vector<16x16x3xf32>
    %72 = vector.shape_cast %71 : vector<16x16x3xf32> to vector<256x3xf32>
    %73 = vector.extract_strided_slice %5 {offsets = [3, 0, 0], sizes = [1, 3, 8], strides = [1, 1, 1]} : vector<16x3x8xf32> to vector<1x3x8xf32>
    %74 = vector.shape_cast %73 : vector<1x3x8xf32> to vector<3x8xf32>
    %cst_27 = arith.constant dense<0.000000e+00> : vector<256x8xf32>
    %75 = tpu.matmul %72, %74, %cst_27 {dimension_numbers = #tpu.dot_dimension_numbers<[1], [0], [0], [1], [0, 0, 1, 1], [], []>} : vector<256x3xf32>, vector<3x8xf32>, vector<256x8xf32> -> vector<256x8xf32>
    %76 = arith.addf %70, %75 : vector<256x8xf32>
    %77 = vector.extract_strided_slice %64 {offsets = [1, 0, 0], sizes = [16, 16, 3], strides = [1, 1, 1]} : vector<18x18x3xf32> to vector<16x16x3xf32>
    %78 = vector.shape_cast %77 : vector<16x16x3xf32> to vector<256x3xf32>
    %79 = vector.extract_strided_slice %5 {offsets = [9, 0, 0], sizes = [1, 3, 8], strides = [1, 1, 1]} : vector<16x3x8xf32> to vector<1x3x8xf32>
    %80 = vector.shape_cast %79 : vector<1x3x8xf32> to vector<3x8xf32>
    %cst_28 = arith.constant dense<0.000000e+00> : vector<256x8xf32>
    %81 = tpu.matmul %78, %80, %cst_28 {dimension_numbers = #tpu.dot_dimension_numbers<[1], [0], [0], [1], [0, 0, 1, 1], [], []>} : vector<256x3xf32>, vector<3x8xf32>, vector<256x8xf32> -> vector<256x8xf32>
    %82 = arith.addf %76, %81 : vector<256x8xf32>
    %83 = vector.extract_strided_slice %64 {offsets = [1, 1, 0], sizes = [16, 16, 3], strides = [1, 1, 1]} : vector<18x18x3xf32> to vector<16x16x3xf32>
    %84 = vector.shape_cast %83 : vector<16x16x3xf32> to vector<256x3xf32>
    %85 = vector.extract_strided_slice %5 {offsets = [11, 0, 0], sizes = [1, 3, 8], strides = [1, 1, 1]} : vector<16x3x8xf32> to vector<1x3x8xf32>
    %86 = vector.shape_cast %85 : vector<1x3x8xf32> to vector<3x8xf32>
    %cst_29 = arith.constant dense<0.000000e+00> : vector<256x8xf32>
    %87 = tpu.matmul %84, %86, %cst_29 {dimension_numbers = #tpu.dot_dimension_numbers<[1], [0], [0], [1], [0, 0, 1, 1], [], []>} : vector<256x3xf32>, vector<3x8xf32>, vector<256x8xf32> -> vector<256x8xf32>
    %88 = arith.addf %82, %87 : vector<256x8xf32>
    %89 = vector.extract_strided_slice %62 {offsets = [0, 1, 0, 0], sizes = [18, 1, 18, 3], strides = [1, 1, 1, 1]} : vector<18x2x18x3xf32> to vector<18x1x18x3xf32>
    %90 = vector.shape_cast %89 : vector<18x1x18x3xf32> to vector<18x18x3xf32>
    %91 = vector.extract_strided_slice %90 {offsets = [0, 0, 0], sizes = [16, 16, 3], strides = [1, 1, 1]} : vector<18x18x3xf32> to vector<16x16x3xf32>
    %92 = vector.shape_cast %91 : vector<16x16x3xf32> to vector<256x3xf32>
    %93 = vector.extract_strided_slice %5 {offsets = [5, 0, 0], sizes = [1, 3, 8], strides = [1, 1, 1]} : vector<16x3x8xf32> to vector<1x3x8xf32>
    %94 = vector.shape_cast %93 : vector<1x3x8xf32> to vector<3x8xf32>
    %cst_30 = arith.constant dense<0.000000e+00> : vector<256x8xf32>
    %95 = tpu.matmul %92, %94, %cst_30 {dimension_numbers = #tpu.dot_dimension_numbers<[1], [0], [0], [1], [0, 0, 1, 1], [], []>} : vector<256x3xf32>, vector<3x8xf32>, vector<256x8xf32> -> vector<256x8xf32>
    %96 = arith.addf %88, %95 : vector<256x8xf32>
    %97 = vector.extract_strided_slice %90 {offsets = [0, 1, 0], sizes = [16, 16, 3], strides = [1, 1, 1]} : vector<18x18x3xf32> to vector<16x16x3xf32>
    %98 = vector.shape_cast %97 : vector<16x16x3xf32> to vector<256x3xf32>
    %99 = vector.extract_strided_slice %5 {offsets = [7, 0, 0], sizes = [1, 3, 8], strides = [1, 1, 1]} : vector<16x3x8xf32> to vector<1x3x8xf32>
    %100 = vector.shape_cast %99 : vector<1x3x8xf32> to vector<3x8xf32>
    %cst_31 = arith.constant dense<0.000000e+00> : vector<256x8xf32>
    %101 = tpu.matmul %98, %100, %cst_31 {dimension_numbers = #tpu.dot_dimension_numbers<[1], [0], [0], [1], [0, 0, 1, 1], [], []>} : vector<256x3xf32>, vector<3x8xf32>, vector<256x8xf32> -> vector<256x8xf32>
    %102 = arith.addf %96, %101 : vector<256x8xf32>
    %103 = vector.extract_strided_slice %90 {offsets = [1, 0, 0], sizes = [16, 16, 3], strides = [1, 1, 1]} : vector<18x18x3xf32> to vector<16x16x3xf32>
    %104 = vector.shape_cast %103 : vector<16x16x3xf32> to vector<256x3xf32>
    %105 = vector.extract_strided_slice %5 {offsets = [13, 0, 0], sizes = [1, 3, 8], strides = [1, 1, 1]} : vector<16x3x8xf32> to vector<1x3x8xf32>
    %106 = vector.shape_cast %105 : vector<1x3x8xf32> to vector<3x8xf32>
    %cst_32 = arith.constant dense<0.000000e+00> : vector<256x8xf32>
    %107 = tpu.matmul %104, %106, %cst_32 {dimension_numbers = #tpu.dot_dimension_numbers<[1], [0], [0], [1], [0, 0, 1, 1], [], []>} : vector<256x3xf32>, vector<3x8xf32>, vector<256x8xf32> -> vector<256x8xf32>
    %108 = arith.addf %102, %107 : vector<256x8xf32>
    %109 = vector.extract_strided_slice %90 {offsets = [1, 1, 0], sizes = [16, 16, 3], strides = [1, 1, 1]} : vector<18x18x3xf32> to vector<16x16x3xf32>
    %110 = vector.shape_cast %109 : vector<16x16x3xf32> to vector<256x3xf32>
    %111 = vector.extract_strided_slice %5 {offsets = [15, 0, 0], sizes = [1, 3, 8], strides = [1, 1, 1]} : vector<16x3x8xf32> to vector<1x3x8xf32>
    %112 = vector.shape_cast %111 : vector<1x3x8xf32> to vector<3x8xf32>
    %cst_33 = arith.constant dense<0.000000e+00> : vector<256x8xf32>
    %113 = tpu.matmul %110, %112, %cst_33 {dimension_numbers = #tpu.dot_dimension_numbers<[1], [0], [0], [1], [0, 0, 1, 1], [], []>} : vector<256x3xf32>, vector<3x8xf32>, vector<256x8xf32> -> vector<256x8xf32>
    %114 = arith.addf %108, %113 : vector<256x8xf32>
    %c0_34 = arith.constant 0 : index
    %c0_35 = arith.constant 0 : index
    %115 = vector.load %arg3[%c0_34, %c0_35] : memref<1x8xf32, #tpu.memory_space<vmem>>, vector<1x8xf32>
    %116 = vector.broadcast %115 : vector<1x8xf32> to vector<256x8xf32>
    %117 = arith.addf %114, %116 : vector<256x8xf32>
    %cst_36 = arith.constant 0.000000e+00 : f32
    %118 = vector.broadcast %cst_36 : f32 to vector<256x8xf32>
    %119 = arith.cmpf oge, %117, %118 : vector<256x8xf32>
    %cst_37 = arith.constant 2.000000e-01 : f32
    %120 = vector.broadcast %cst_37 : f32 to vector<256x8xf32>
    %121 = arith.mulf %120, %117 : vector<256x8xf32>
    %122 = arith.select %119, %117, %121 : vector<256x8xi1>, vector<256x8xf32>
    %cst_38 = arith.constant 0.000000e+00 : f32
    %123 = vector.broadcast %cst_38 : f32 to vector<20x20x8xf32>
    %c0_39 = arith.constant 0 : index
    %c0_40 = arith.constant 0 : index
    %c0_41 = arith.constant 0 : index
    %124 = vector.load %arg16[%c0_39, %c0_40, %c0_41] : memref<20x20x8xf32, #tpu.memory_space<vmem>>, vector<20x20x8xf32>
    tpu.vector_store %arg16[%c0_39, %c0_40, %c0_41], %123 {strides = array<i32>} : memref<20x20x8xf32, #tpu.memory_space<vmem>>, vector<20x20x8xf32>,
    %125 = vector.extract_strided_slice %122 {offsets = [0, 0], sizes = [16, 8], strides = [1, 1]} : vector<256x8xf32> to vector<16x8xf32>
    %c1_42 = arith.constant 1 : index
    %c1_43 = arith.constant 1 : index
    %c0_44 = arith.constant 0 : index
    %126 = vector.load %arg16[%c1_42, %c1_43, %c0_44] : memref<20x20x8xf32, #tpu.memory_space<vmem>>, vector<1x16x8xf32>
    %127 = vector.shape_cast %126 : vector<1x16x8xf32> to vector<16x8xf32>
    %128 = vector.shape_cast %125 : vector<16x8xf32> to vector<1x16x8xf32>
    tpu.vector_store %arg16[%c1_42, %c1_43, %c0_44], %128 {strides = array<i32>} : memref<20x20x8xf32, #tpu.memory_space<vmem>>, vector<1x16x8xf32>,
    %129 = vector.extract_strided_slice %122 {offsets = [16, 0], sizes = [16, 8], strides = [1, 1]} : vector<256x8xf32> to vector<16x8xf32>
    %c2 = arith.constant 2 : index
    %c1_45 = arith.constant 1 : index
    %c0_46 = arith.constant 0 : index
    %130 = vector.load %arg16[%c2, %c1_45, %c0_46] : memref<20x20x8xf32, #tpu.memory_space<vmem>>, vector<1x16x8xf32>
    %131 = vector.shape_cast %130 : vector<1x16x8xf32> to vector<16x8xf32>
    %132 = vector.shape_cast %129 : vector<16x8xf32> to vector<1x16x8xf32>
    tpu.vector_store %arg16[%c2, %c1_45, %c0_46], %132 {strides = array<i32>} : memref<20x20x8xf32, #tpu.memory_space<vmem>>, vector<1x16x8xf32>,
    %133 = vector.extract_strided_slice %122 {offsets = [32, 0], sizes = [16, 8], strides = [1, 1]} : vector<256x8xf32> to vector<16x8xf32>
    %c3 = arith.constant 3 : index
    %c1_47 = arith.constant 1 : index
    %c0_48 = arith.constant 0 : index
    %134 = vector.load %arg16[%c3, %c1_47, %c0_48] : memref<20x20x8xf32, #tpu.memory_space<vmem>>, vector<1x16x8xf32>
    %135 = vector.shape_cast %134 : vector<1x16x8xf32> to vector<16x8xf32>
    %136 = vector.shape_cast %133 : vector<16x8xf32> to vector<1x16x8xf32>
    tpu.vector_store %arg16[%c3, %c1_47, %c0_48], %136 {strides = array<i32>} : memref<20x20x8xf32, #tpu.memory_space<vmem>>, vector<1x16x8xf32>,
    %137 = vector.extract_strided_slice %122 {offsets = [48, 0], sizes = [16, 8], strides = [1, 1]} : vector<256x8xf32> to vector<16x8xf32>
    %c4 = arith.constant 4 : index
    %c1_49 = arith.constant 1 : index
    %c0_50 = arith.constant 0 : index
    %138 = vector.load %arg16[%c4, %c1_49, %c0_50] : memref<20x20x8xf32, #tpu.memory_space<vmem>>, vector<1x16x8xf32>
    %139 = vector.shape_cast %138 : vector<1x16x8xf32> to vector<16x8xf32>
    %140 = vector.shape_cast %137 : vector<16x8xf32> to vector<1x16x8xf32>
    tpu.vector_store %arg16[%c4, %c1_49, %c0_50], %140 {strides = array<i32>} : memref<20x20x8xf32, #tpu.memory_space<vmem>>, vector<1x16x8xf32>,
    %141 = vector.extract_strided_slice %122 {offsets = [64, 0], sizes = [16, 8], strides = [1, 1]} : vector<256x8xf32> to vector<16x8xf32>
    %c5 = arith.constant 5 : index
    %c1_51 = arith.constant 1 : index
    %c0_52 = arith.constant 0 : index
    %142 = vector.load %arg16[%c5, %c1_51, %c0_52] : memref<20x20x8xf32, #tpu.memory_space<vmem>>, vector<1x16x8xf32>
    %143 = vector.shape_cast %142 : vector<1x16x8xf32> to vector<16x8xf32>
    %144 = vector.shape_cast %141 : vector<16x8xf32> to vector<1x16x8xf32>
    tpu.vector_store %arg16[%c5, %c1_51, %c0_52], %144 {strides = array<i32>} : memref<20x20x8xf32, #tpu.memory_space<vmem>>, vector<1x16x8xf32>,
    %145 = vector.extract_strided_slice %122 {offsets = [80, 0], sizes = [16, 8], strides = [1, 1]} : vector<256x8xf32> to vector<16x8xf32>
    %c6 = arith.constant 6 : index
    %c1_53 = arith.constant 1 : index
    %c0_54 = arith.constant 0 : index
    %146 = vector.load %arg16[%c6, %c1_53, %c0_54] : memref<20x20x8xf32, #tpu.memory_space<vmem>>, vector<1x16x8xf32>
    %147 = vector.shape_cast %146 : vector<1x16x8xf32> to vector<16x8xf32>
    %148 = vector.shape_cast %145 : vector<16x8xf32> to vector<1x16x8xf32>
    tpu.vector_store %arg16[%c6, %c1_53, %c0_54], %148 {strides = array<i32>} : memref<20x20x8xf32, #tpu.memory_space<vmem>>, vector<1x16x8xf32>,
    %149 = vector.extract_strided_slice %122 {offsets = [96, 0], sizes = [16, 8], strides = [1, 1]} : vector<256x8xf32> to vector<16x8xf32>
    %c7 = arith.constant 7 : index
    %c1_55 = arith.constant 1 : index
    %c0_56 = arith.constant 0 : index
    %150 = vector.load %arg16[%c7, %c1_55, %c0_56] : memref<20x20x8xf32, #tpu.memory_space<vmem>>, vector<1x16x8xf32>
    %151 = vector.shape_cast %150 : vector<1x16x8xf32> to vector<16x8xf32>
    %152 = vector.shape_cast %149 : vector<16x8xf32> to vector<1x16x8xf32>
    tpu.vector_store %arg16[%c7, %c1_55, %c0_56], %152 {strides = array<i32>} : memref<20x20x8xf32, #tpu.memory_space<vmem>>, vector<1x16x8xf32>,
    %153 = vector.extract_strided_slice %122 {offsets = [112, 0], sizes = [16, 8], strides = [1, 1]} : vector<256x8xf32> to vector<16x8xf32>
    %c8 = arith.constant 8 : index
    %c1_57 = arith.constant 1 : index
    %c0_58 = arith.constant 0 : index
    %154 = vector.load %arg16[%c8, %c1_57, %c0_58] : memref<20x20x8xf32, #tpu.memory_space<vmem>>, vector<1x16x8xf32>
    %155 = vector.shape_cast %154 : vector<1x16x8xf32> to vector<16x8xf32>
    %156 = vector.shape_cast %153 : vector<16x8xf32> to vector<1x16x8xf32>
    tpu.vector_store %arg16[%c8, %c1_57, %c0_58], %156 {strides = array<i32>} : memref<20x20x8xf32, #tpu.memory_space<vmem>>, vector<1x16x8xf32>,
    %157 = vector.extract_strided_slice %122 {offsets = [128, 0], sizes = [16, 8], strides = [1, 1]} : vector<256x8xf32> to vector<16x8xf32>
    %c9 = arith.constant 9 : index
    %c1_59 = arith.constant 1 : index
    %c0_60 = arith.constant 0 : index
    %158 = vector.load %arg16[%c9, %c1_59, %c0_60] : memref<20x20x8xf32, #tpu.memory_space<vmem>>, vector<1x16x8xf32>
    %159 = vector.shape_cast %158 : vector<1x16x8xf32> to vector<16x8xf32>
    %160 = vector.shape_cast %157 : vector<16x8xf32> to vector<1x16x8xf32>
    tpu.vector_store %arg16[%c9, %c1_59, %c0_60], %160 {strides = array<i32>} : memref<20x20x8xf32, #tpu.memory_space<vmem>>, vector<1x16x8xf32>,
    %161 = vector.extract_strided_slice %122 {offsets = [144, 0], sizes = [16, 8], strides = [1, 1]} : vector<256x8xf32> to vector<16x8xf32>
    %c10 = arith.constant 10 : index
    %c1_61 = arith.constant 1 : index
    %c0_62 = arith.constant 0 : index
    %162 = vector.load %arg16[%c10, %c1_61, %c0_62] : memref<20x20x8xf32, #tpu.memory_space<vmem>>, vector<1x16x8xf32>
    %163 = vector.shape_cast %162 : vector<1x16x8xf32> to vector<16x8xf32>
    %164 = vector.shape_cast %161 : vector<16x8xf32> to vector<1x16x8xf32>
    tpu.vector_store %arg16[%c10, %c1_61, %c0_62], %164 {strides = array<i32>} : memref<20x20x8xf32, #tpu.memory_space<vmem>>, vector<1x16x8xf32>,
    %165 = vector.extract_strided_slice %122 {offsets = [160, 0], sizes = [16, 8], strides = [1, 1]} : vector<256x8xf32> to vector<16x8xf32>
    %c11 = arith.constant 11 : index
    %c1_63 = arith.constant 1 : index
    %c0_64 = arith.constant 0 : index
    %166 = vector.load %arg16[%c11, %c1_63, %c0_64] : memref<20x20x8xf32, #tpu.memory_space<vmem>>, vector<1x16x8xf32>
    %167 = vector.shape_cast %166 : vector<1x16x8xf32> to vector<16x8xf32>
    %168 = vector.shape_cast %165 : vector<16x8xf32> to vector<1x16x8xf32>
    tpu.vector_store %arg16[%c11, %c1_63, %c0_64], %168 {strides = array<i32>} : memref<20x20x8xf32, #tpu.memory_space<vmem>>, vector<1x16x8xf32>,
    %169 = vector.extract_strided_slice %122 {offsets = [176, 0], sizes = [16, 8], strides = [1, 1]} : vector<256x8xf32> to vector<16x8xf32>
    %c12 = arith.constant 12 : index
    %c1_65 = arith.constant 1 : index
    %c0_66 = arith.constant 0 : index
    %170 = vector.load %arg16[%c12, %c1_65, %c0_66] : memref<20x20x8xf32, #tpu.memory_space<vmem>>, vector<1x16x8xf32>
    %171 = vector.shape_cast %170 : vector<1x16x8xf32> to vector<16x8xf32>
    %172 = vector.shape_cast %169 : vector<16x8xf32> to vector<1x16x8xf32>
    tpu.vector_store %arg16[%c12, %c1_65, %c0_66], %172 {strides = array<i32>} : memref<20x20x8xf32, #tpu.memory_space<vmem>>, vector<1x16x8xf32>,
    %173 = vector.extract_strided_slice %122 {offsets = [192, 0], sizes = [16, 8], strides = [1, 1]} : vector<256x8xf32> to vector<16x8xf32>
    %c13 = arith.constant 13 : index
    %c1_67 = arith.constant 1 : index
    %c0_68 = arith.constant 0 : index
    %174 = vector.load %arg16[%c13, %c1_67, %c0_68] : memref<20x20x8xf32, #tpu.memory_space<vmem>>, vector<1x16x8xf32>
    %175 = vector.shape_cast %174 : vector<1x16x8xf32> to vector<16x8xf32>
    %176 = vector.shape_cast %173 : vector<16x8xf32> to vector<1x16x8xf32>
    tpu.vector_store %arg16[%c13, %c1_67, %c0_68], %176 {strides = array<i32>} : memref<20x20x8xf32, #tpu.memory_space<vmem>>, vector<1x16x8xf32>,
    %177 = vector.extract_strided_slice %122 {offsets = [208, 0], sizes = [16, 8], strides = [1, 1]} : vector<256x8xf32> to vector<16x8xf32>
    %c14 = arith.constant 14 : index
    %c1_69 = arith.constant 1 : index
    %c0_70 = arith.constant 0 : index
    %178 = vector.load %arg16[%c14, %c1_69, %c0_70] : memref<20x20x8xf32, #tpu.memory_space<vmem>>, vector<1x16x8xf32>
    %179 = vector.shape_cast %178 : vector<1x16x8xf32> to vector<16x8xf32>
    %180 = vector.shape_cast %177 : vector<16x8xf32> to vector<1x16x8xf32>
    tpu.vector_store %arg16[%c14, %c1_69, %c0_70], %180 {strides = array<i32>} : memref<20x20x8xf32, #tpu.memory_space<vmem>>, vector<1x16x8xf32>,
    %181 = vector.extract_strided_slice %122 {offsets = [224, 0], sizes = [16, 8], strides = [1, 1]} : vector<256x8xf32> to vector<16x8xf32>
    %c15 = arith.constant 15 : index
    %c1_71 = arith.constant 1 : index
    %c0_72 = arith.constant 0 : index
    %182 = vector.load %arg16[%c15, %c1_71, %c0_72] : memref<20x20x8xf32, #tpu.memory_space<vmem>>, vector<1x16x8xf32>
    %183 = vector.shape_cast %182 : vector<1x16x8xf32> to vector<16x8xf32>
    %184 = vector.shape_cast %181 : vector<16x8xf32> to vector<1x16x8xf32>
    tpu.vector_store %arg16[%c15, %c1_71, %c0_72], %184 {strides = array<i32>} : memref<20x20x8xf32, #tpu.memory_space<vmem>>, vector<1x16x8xf32>,
    %185 = vector.extract_strided_slice %122 {offsets = [240, 0], sizes = [16, 8], strides = [1, 1]} : vector<256x8xf32> to vector<16x8xf32>
    %c16 = arith.constant 16 : index
    %c1_73 = arith.constant 1 : index
    %c0_74 = arith.constant 0 : index
    %186 = vector.load %arg16[%c16, %c1_73, %c0_74] : memref<20x20x8xf32, #tpu.memory_space<vmem>>, vector<1x16x8xf32>
    %187 = vector.shape_cast %186 : vector<1x16x8xf32> to vector<16x8xf32>
    %188 = vector.shape_cast %185 : vector<16x8xf32> to vector<1x16x8xf32>
    tpu.vector_store %arg16[%c16, %c1_73, %c0_74], %188 {strides = array<i32>} : memref<20x20x8xf32, #tpu.memory_space<vmem>>, vector<1x16x8xf32>,
    %c0_75 = arith.constant 0 : index
    %c0_76 = arith.constant 0 : index
    %c0_77 = arith.constant 0 : index
    %189 = vector.load %arg4[%c0_75, %c0_76, %c0_77] : memref<16x8x16xf32, #tpu.memory_space<vmem>>, vector<16x8x16xf32>
    %cst_78 = arith.constant 0.000000e+00 : f32
    %190 = vector.broadcast %cst_78 : f32 to vector<64x16xf32>
    %c0_79 = arith.constant 0 : index
    %c0_80 = arith.constant 0 : index
    %c0_81 = arith.constant 0 : index
    %191 = tpu.strided_load %arg16[%c0_79, %c0_80, %c0_81] {strides = array<i32: 1, 2, 1>} : memref<20x20x8xf32, #tpu.memory_space<vmem>>, vector<20x10x8xf32>
    %192 = vector.shape_cast %191 : vector<20x10x8xf32> to vector<10x2x10x8xf32>
    %193 = vector.extract_strided_slice %192 {offsets = [0, 0, 0, 0], sizes = [10, 1, 10, 8], strides = [1, 1, 1, 1]} : vector<10x2x10x8xf32> to vector<10x1x10x8xf32>
    %194 = vector.shape_cast %193 : vector<10x1x10x8xf32> to vector<10x10x8xf32>
    %195 = vector.extract_strided_slice %194 {offsets = [0, 0, 0], sizes = [8, 8, 8], strides = [1, 1, 1]} : vector<10x10x8xf32> to vector<8x8x8xf32>
    %196 = vector.shape_cast %195 : vector<8x8x8xf32> to vector<64x8xf32>
    %197 = vector.extract_strided_slice %189 {offsets = [0, 0, 0], sizes = [1, 8, 16], strides = [1, 1, 1]} : vector<16x8x16xf32> to vector<1x8x16xf32>
    %198 = vector.shape_cast %197 : vector<1x8x16xf32> to vector<8x16xf32>
    %cst_82 = arith.constant dense<0.000000e+00> : vector<64x16xf32>
    %199 = tpu.matmul %196, %198, %cst_82 {dimension_numbers = #tpu.dot_dimension_numbers<[1], [0], [0], [1], [0, 0, 1, 1], [], []>} : vector<64x8xf32>, vector<8x16xf32>, vector<64x16xf32> -> vector<64x16xf32>
    %200 = arith.addf %190, %199 : vector<64x16xf32>
    %201 = vector.extract_strided_slice %194 {offsets = [0, 1, 0], sizes = [8, 8, 8], strides = [1, 1, 1]} : vector<10x10x8xf32> to vector<8x8x8xf32>
    %202 = vector.shape_cast %201 : vector<8x8x8xf32> to vector<64x8xf32>
    %203 = vector.extract_strided_slice %189 {offsets = [2, 0, 0], sizes = [1, 8, 16], strides = [1, 1, 1]} : vector<16x8x16xf32> to vector<1x8x16xf32>
    %204 = vector.shape_cast %203 : vector<1x8x16xf32> to vector<8x16xf32>
    %cst_83 = arith.constant dense<0.000000e+00> : vector<64x16xf32>
    %205 = tpu.matmul %202, %204, %cst_83 {dimension_numbers = #tpu.dot_dimension_numbers<[1], [0], [0], [1], [0, 0, 1, 1], [], []>} : vector<64x8xf32>, vector<8x16xf32>, vector<64x16xf32> -> vector<64x16xf32>
    %206 = arith.addf %200, %205 : vector<64x16xf32>
    %207 = vector.extract_strided_slice %194 {offsets = [1, 0, 0], sizes = [8, 8, 8], strides = [1, 1, 1]} : vector<10x10x8xf32> to vector<8x8x8xf32>
    %208 = vector.shape_cast %207 : vector<8x8x8xf32> to vector<64x8xf32>
    %209 = vector.extract_strided_slice %189 {offsets = [8, 0, 0], sizes = [1, 8, 16], strides = [1, 1, 1]} : vector<16x8x16xf32> to vector<1x8x16xf32>
    %210 = vector.shape_cast %209 : vector<1x8x16xf32> to vector<8x16xf32>
    %cst_84 = arith.constant dense<0.000000e+00> : vector<64x16xf32>
    %211 = tpu.matmul %208, %210, %cst_84 {dimension_numbers = #tpu.dot_dimension_numbers<[1], [0], [0], [1], [0, 0, 1, 1], [], []>} : vector<64x8xf32>, vector<8x16xf32>, vector<64x16xf32> -> vector<64x16xf32>
    %212 = arith.addf %206, %211 : vector<64x16xf32>
    %213 = vector.extract_strided_slice %194 {offsets = [1, 1, 0], sizes = [8, 8, 8], strides = [1, 1, 1]} : vector<10x10x8xf32> to vector<8x8x8xf32>
    %214 = vector.shape_cast %213 : vector<8x8x8xf32> to vector<64x8xf32>
    %215 = vector.extract_strided_slice %189 {offsets = [10, 0, 0], sizes = [1, 8, 16], strides = [1, 1, 1]} : vector<16x8x16xf32> to vector<1x8x16xf32>
    %216 = vector.shape_cast %215 : vector<1x8x16xf32> to vector<8x16xf32>
    %cst_85 = arith.constant dense<0.000000e+00> : vector<64x16xf32>
    %217 = tpu.matmul %214, %216, %cst_85 {dimension_numbers = #tpu.dot_dimension_numbers<[1], [0], [0], [1], [0, 0, 1, 1], [], []>} : vector<64x8xf32>, vector<8x16xf32>, vector<64x16xf32> -> vector<64x16xf32>
    %218 = arith.addf %212, %217 : vector<64x16xf32>
    %219 = vector.extract_strided_slice %192 {offsets = [0, 1, 0, 0], sizes = [10, 1, 10, 8], strides = [1, 1, 1, 1]} : vector<10x2x10x8xf32> to vector<10x1x10x8xf32>
    %220 = vector.shape_cast %219 : vector<10x1x10x8xf32> to vector<10x10x8xf32>
    %221 = vector.extract_strided_slice %220 {offsets = [0, 0, 0], sizes = [8, 8, 8], strides = [1, 1, 1]} : vector<10x10x8xf32> to vector<8x8x8xf32>
    %222 = vector.shape_cast %221 : vector<8x8x8xf32> to vector<64x8xf32>
    %223 = vector.extract_strided_slice %189 {offsets = [4, 0, 0], sizes = [1, 8, 16], strides = [1, 1, 1]} : vector<16x8x16xf32> to vector<1x8x16xf32>
    %224 = vector.shape_cast %223 : vector<1x8x16xf32> to vector<8x16xf32>
    %cst_86 = arith.constant dense<0.000000e+00> : vector<64x16xf32>
    %225 = tpu.matmul %222, %224, %cst_86 {dimension_numbers = #tpu.dot_dimension_numbers<[1], [0], [0], [1], [0, 0, 1, 1], [], []>} : vector<64x8xf32>, vector<8x16xf32>, vector<64x16xf32> -> vector<64x16xf32>
    %226 = arith.addf %218, %225 : vector<64x16xf32>
    %227 = vector.extract_strided_slice %220 {offsets = [0, 1, 0], sizes = [8, 8, 8], strides = [1, 1, 1]} : vector<10x10x8xf32> to vector<8x8x8xf32>
    %228 = vector.shape_cast %227 : vector<8x8x8xf32> to vector<64x8xf32>
    %229 = vector.extract_strided_slice %189 {offsets = [6, 0, 0], sizes = [1, 8, 16], strides = [1, 1, 1]} : vector<16x8x16xf32> to vector<1x8x16xf32>
    %230 = vector.shape_cast %229 : vector<1x8x16xf32> to vector<8x16xf32>
    %cst_87 = arith.constant dense<0.000000e+00> : vector<64x16xf32>
    %231 = tpu.matmul %228, %230, %cst_87 {dimension_numbers = #tpu.dot_dimension_numbers<[1], [0], [0], [1], [0, 0, 1, 1], [], []>} : vector<64x8xf32>, vector<8x16xf32>, vector<64x16xf32> -> vector<64x16xf32>
    %232 = arith.addf %226, %231 : vector<64x16xf32>
    %233 = vector.extract_strided_slice %220 {offsets = [1, 0, 0], sizes = [8, 8, 8], strides = [1, 1, 1]} : vector<10x10x8xf32> to vector<8x8x8xf32>
    %234 = vector.shape_cast %233 : vector<8x8x8xf32> to vector<64x8xf32>
    %235 = vector.extract_strided_slice %189 {offsets = [12, 0, 0], sizes = [1, 8, 16], strides = [1, 1, 1]} : vector<16x8x16xf32> to vector<1x8x16xf32>
    %236 = vector.shape_cast %235 : vector<1x8x16xf32> to vector<8x16xf32>
    %cst_88 = arith.constant dense<0.000000e+00> : vector<64x16xf32>
    %237 = tpu.matmul %234, %236, %cst_88 {dimension_numbers = #tpu.dot_dimension_numbers<[1], [0], [0], [1], [0, 0, 1, 1], [], []>} : vector<64x8xf32>, vector<8x16xf32>, vector<64x16xf32> -> vector<64x16xf32>
    %238 = arith.addf %232, %237 : vector<64x16xf32>
    %239 = vector.extract_strided_slice %220 {offsets = [1, 1, 0], sizes = [8, 8, 8], strides = [1, 1, 1]} : vector<10x10x8xf32> to vector<8x8x8xf32>
    %240 = vector.shape_cast %239 : vector<8x8x8xf32> to vector<64x8xf32>
    %241 = vector.extract_strided_slice %189 {offsets = [14, 0, 0], sizes = [1, 8, 16], strides = [1, 1, 1]} : vector<16x8x16xf32> to vector<1x8x16xf32>
    %242 = vector.shape_cast %241 : vector<1x8x16xf32> to vector<8x16xf32>
    %cst_89 = arith.constant dense<0.000000e+00> : vector<64x16xf32>
    %243 = tpu.matmul %240, %242, %cst_89 {dimension_numbers = #tpu.dot_dimension_numbers<[1], [0], [0], [1], [0, 0, 1, 1], [], []>} : vector<64x8xf32>, vector<8x16xf32>, vector<64x16xf32> -> vector<64x16xf32>
    %244 = arith.addf %238, %243 : vector<64x16xf32>
    %c0_90 = arith.constant 0 : index
    %c1_91 = arith.constant 1 : index
    %c0_92 = arith.constant 0 : index
    %245 = tpu.strided_load %arg16[%c0_90, %c1_91, %c0_92] {strides = array<i32: 1, 2, 1>} : memref<20x20x8xf32, #tpu.memory_space<vmem>>, vector<20x10x8xf32>
    %246 = vector.shape_cast %245 : vector<20x10x8xf32> to vector<10x2x10x8xf32>
    %247 = vector.extract_strided_slice %246 {offsets = [0, 0, 0, 0], sizes = [10, 1, 10, 8], strides = [1, 1, 1, 1]} : vector<10x2x10x8xf32> to vector<10x1x10x8xf32>
    %248 = vector.shape_cast %247 : vector<10x1x10x8xf32> to vector<10x10x8xf32>
    %249 = vector.extract_strided_slice %248 {offsets = [0, 0, 0], sizes = [8, 8, 8], strides = [1, 1, 1]} : vector<10x10x8xf32> to vector<8x8x8xf32>
    %250 = vector.shape_cast %249 : vector<8x8x8xf32> to vector<64x8xf32>
    %251 = vector.extract_strided_slice %189 {offsets = [1, 0, 0], sizes = [1, 8, 16], strides = [1, 1, 1]} : vector<16x8x16xf32> to vector<1x8x16xf32>
    %252 = vector.shape_cast %251 : vector<1x8x16xf32> to vector<8x16xf32>
    %cst_93 = arith.constant dense<0.000000e+00> : vector<64x16xf32>
    %253 = tpu.matmul %250, %252, %cst_93 {dimension_numbers = #tpu.dot_dimension_numbers<[1], [0], [0], [1], [0, 0, 1, 1], [], []>} : vector<64x8xf32>, vector<8x16xf32>, vector<64x16xf32> -> vector<64x16xf32>
    %254 = arith.addf %244, %253 : vector<64x16xf32>
    %255 = vector.extract_strided_slice %248 {offsets = [0, 1, 0], sizes = [8, 8, 8], strides = [1, 1, 1]} : vector<10x10x8xf32> to vector<8x8x8xf32>
    %256 = vector.shape_cast %255 : vector<8x8x8xf32> to vector<64x8xf32>
    %257 = vector.extract_strided_slice %189 {offsets = [3, 0, 0], sizes = [1, 8, 16], strides = [1, 1, 1]} : vector<16x8x16xf32> to vector<1x8x16xf32>
    %258 = vector.shape_cast %257 : vector<1x8x16xf32> to vector<8x16xf32>
    %cst_94 = arith.constant dense<0.000000e+00> : vector<64x16xf32>
    %259 = tpu.matmul %256, %258, %cst_94 {dimension_numbers = #tpu.dot_dimension_numbers<[1], [0], [0], [1], [0, 0, 1, 1], [], []>} : vector<64x8xf32>, vector<8x16xf32>, vector<64x16xf32> -> vector<64x16xf32>
    %260 = arith.addf %254, %259 : vector<64x16xf32>
    %261 = vector.extract_strided_slice %248 {offsets = [1, 0, 0], sizes = [8, 8, 8], strides = [1, 1, 1]} : vector<10x10x8xf32> to vector<8x8x8xf32>
    %262 = vector.shape_cast %261 : vector<8x8x8xf32> to vector<64x8xf32>
    %263 = vector.extract_strided_slice %189 {offsets = [9, 0, 0], sizes = [1, 8, 16], strides = [1, 1, 1]} : vector<16x8x16xf32> to vector<1x8x16xf32>
    %264 = vector.shape_cast %263 : vector<1x8x16xf32> to vector<8x16xf32>
    %cst_95 = arith.constant dense<0.000000e+00> : vector<64x16xf32>
    %265 = tpu.matmul %262, %264, %cst_95 {dimension_numbers = #tpu.dot_dimension_numbers<[1], [0], [0], [1], [0, 0, 1, 1], [], []>} : vector<64x8xf32>, vector<8x16xf32>, vector<64x16xf32> -> vector<64x16xf32>
    %266 = arith.addf %260, %265 : vector<64x16xf32>
    %267 = vector.extract_strided_slice %248 {offsets = [1, 1, 0], sizes = [8, 8, 8], strides = [1, 1, 1]} : vector<10x10x8xf32> to vector<8x8x8xf32>
    %268 = vector.shape_cast %267 : vector<8x8x8xf32> to vector<64x8xf32>
    %269 = vector.extract_strided_slice %189 {offsets = [11, 0, 0], sizes = [1, 8, 16], strides = [1, 1, 1]} : vector<16x8x16xf32> to vector<1x8x16xf32>
    %270 = vector.shape_cast %269 : vector<1x8x16xf32> to vector<8x16xf32>
    %cst_96 = arith.constant dense<0.000000e+00> : vector<64x16xf32>
    %271 = tpu.matmul %268, %270, %cst_96 {dimension_numbers = #tpu.dot_dimension_numbers<[1], [0], [0], [1], [0, 0, 1, 1], [], []>} : vector<64x8xf32>, vector<8x16xf32>, vector<64x16xf32> -> vector<64x16xf32>
    %272 = arith.addf %266, %271 : vector<64x16xf32>
    %273 = vector.extract_strided_slice %246 {offsets = [0, 1, 0, 0], sizes = [10, 1, 10, 8], strides = [1, 1, 1, 1]} : vector<10x2x10x8xf32> to vector<10x1x10x8xf32>
    %274 = vector.shape_cast %273 : vector<10x1x10x8xf32> to vector<10x10x8xf32>
    %275 = vector.extract_strided_slice %274 {offsets = [0, 0, 0], sizes = [8, 8, 8], strides = [1, 1, 1]} : vector<10x10x8xf32> to vector<8x8x8xf32>
    %276 = vector.shape_cast %275 : vector<8x8x8xf32> to vector<64x8xf32>
    %277 = vector.extract_strided_slice %189 {offsets = [5, 0, 0], sizes = [1, 8, 16], strides = [1, 1, 1]} : vector<16x8x16xf32> to vector<1x8x16xf32>
    %278 = vector.shape_cast %277 : vector<1x8x16xf32> to vector<8x16xf32>
    %cst_97 = arith.constant dense<0.000000e+00> : vector<64x16xf32>
    %279 = tpu.matmul %276, %278, %cst_97 {dimension_numbers = #tpu.dot_dimension_numbers<[1], [0], [0], [1], [0, 0, 1, 1], [], []>} : vector<64x8xf32>, vector<8x16xf32>, vector<64x16xf32> -> vector<64x16xf32>
    %280 = arith.addf %272, %279 : vector<64x16xf32>
    %281 = vector.extract_strided_slice %274 {offsets = [0, 1, 0], sizes = [8, 8, 8], strides = [1, 1, 1]} : vector<10x10x8xf32> to vector<8x8x8xf32>
    %282 = vector.shape_cast %281 : vector<8x8x8xf32> to vector<64x8xf32>
    %283 = vector.extract_strided_slice %189 {offsets = [7, 0, 0], sizes = [1, 8, 16], strides = [1, 1, 1]} : vector<16x8x16xf32> to vector<1x8x16xf32>
    %284 = vector.shape_cast %283 : vector<1x8x16xf32> to vector<8x16xf32>
    %cst_98 = arith.constant dense<0.000000e+00> : vector<64x16xf32>
    %285 = tpu.matmul %282, %284, %cst_98 {dimension_numbers = #tpu.dot_dimension_numbers<[1], [0], [0], [1], [0, 0, 1, 1], [], []>} : vector<64x8xf32>, vector<8x16xf32>, vector<64x16xf32> -> vector<64x16xf32>
    %286 = arith.addf %280, %285 : vector<64x16xf32>
    %287 = vector.extract_strided_slice %274 {offsets = [1, 0, 0], sizes = [8, 8, 8], strides = [1, 1, 1]} : vector<10x10x8xf32> to vector<8x8x8xf32>
    %288 = vector.shape_cast %287 : vector<8x8x8xf32> to vector<64x8xf32>
    %289 = vector.extract_strided_slice %189 {offsets = [13, 0, 0], sizes = [1, 8, 16], strides = [1, 1, 1]} : vector<16x8x16xf32> to vector<1x8x16xf32>
    %290 = vector.shape_cast %289 : vector<1x8x16xf32> to vector<8x16xf32>
    %cst_99 = arith.constant dense<0.000000e+00> : vector<64x16xf32>
    %291 = tpu.matmul %288, %290, %cst_99 {dimension_numbers = #tpu.dot_dimension_numbers<[1], [0], [0], [1], [0, 0, 1, 1], [], []>} : vector<64x8xf32>, vector<8x16xf32>, vector<64x16xf32> -> vector<64x16xf32>
    %292 = arith.addf %286, %291 : vector<64x16xf32>
    %293 = vector.extract_strided_slice %274 {offsets = [1, 1, 0], sizes = [8, 8, 8], strides = [1, 1, 1]} : vector<10x10x8xf32> to vector<8x8x8xf32>
    %294 = vector.shape_cast %293 : vector<8x8x8xf32> to vector<64x8xf32>
    %295 = vector.extract_strided_slice %189 {offsets = [15, 0, 0], sizes = [1, 8, 16], strides = [1, 1, 1]} : vector<16x8x16xf32> to vector<1x8x16xf32>
    %296 = vector.shape_cast %295 : vector<1x8x16xf32> to vector<8x16xf32>
    %cst_100 = arith.constant dense<0.000000e+00> : vector<64x16xf32>
    %297 = tpu.matmul %294, %296, %cst_100 {dimension_numbers = #tpu.dot_dimension_numbers<[1], [0], [0], [1], [0, 0, 1, 1], [], []>} : vector<64x8xf32>, vector<8x16xf32>, vector<64x16xf32> -> vector<64x16xf32>
    %298 = arith.addf %292, %297 : vector<64x16xf32>
    %c0_101 = arith.constant 0 : index
    %c0_102 = arith.constant 0 : index
    %299 = vector.load %arg5[%c0_101, %c0_102] : memref<1x16xf32, #tpu.memory_space<vmem>>, vector<1x16xf32>
    %300 = vector.broadcast %299 : vector<1x16xf32> to vector<64x16xf32>
    %301 = arith.addf %298, %300 : vector<64x16xf32>
    %cst_103 = arith.constant dense<0.000000e+00> : vector<16xf32>
    %302 = vector.multi_reduction <add>, %301, %cst_103 [0] : vector<64x16xf32> to vector<16xf32>
    %303 = vector.shape_cast %302 : vector<16xf32> to vector<1x16xf32>
    %cst_104 = arith.constant 6.400000e+01 : f32
    %304 = vector.broadcast %cst_104 : f32 to vector<1x16xf32>
    %305 = arith.divf %303, %304 : vector<1x16xf32>
    %306 = vector.broadcast %305 : vector<1x16xf32> to vector<64x16xf32>
    %307 = arith.subf %301, %306 : vector<64x16xf32>
    %308 = arith.mulf %307, %307 : vector<64x16xf32>
    %cst_105 = arith.constant dense<0.000000e+00> : vector<16xf32>
    %309 = vector.multi_reduction <add>, %308, %cst_105 [0] : vector<64x16xf32> to vector<16xf32>
    %310 = vector.shape_cast %309 : vector<16xf32> to vector<1x16xf32>
    %cst_106 = arith.constant 6.400000e+01 : f32
    %311 = vector.broadcast %cst_106 : f32 to vector<1x16xf32>
    %312 = arith.divf %310, %311 : vector<1x16xf32>
    %cst_107 = arith.constant 9.99999974E-6 : f32
    %313 = vector.broadcast %cst_107 : f32 to vector<1x16xf32>
    %314 = arith.addf %312, %313 : vector<1x16xf32>
    %315 = math.rsqrt %314 : vector<1x16xf32>
    %316 = vector.broadcast %315 : vector<1x16xf32> to vector<64x16xf32>
    %317 = arith.mulf %307, %316 : vector<64x16xf32>
    %c0_108 = arith.constant 0 : index
    %c0_109 = arith.constant 0 : index
    %318 = vector.load %arg6[%c0_108, %c0_109] : memref<1x16xf32, #tpu.memory_space<vmem>>, vector<1x16xf32>
    %319 = vector.broadcast %318 : vector<1x16xf32> to vector<64x16xf32>
    %320 = arith.mulf %317, %319 : vector<64x16xf32>
    %c0_110 = arith.constant 0 : index
    %c0_111 = arith.constant 0 : index
    %321 = vector.load %arg7[%c0_110, %c0_111] : memref<1x16xf32, #tpu.memory_space<vmem>>, vector<1x16xf32>
    %322 = vector.broadcast %321 : vector<1x16xf32> to vector<64x16xf32>
    %323 = arith.addf %320, %322 : vector<64x16xf32>
    %cst_112 = arith.constant 0.000000e+00 : f32
    %324 = vector.broadcast %cst_112 : f32 to vector<64x16xf32>
    %325 = arith.cmpf oge, %323, %324 : vector<64x16xf32>
    %cst_113 = arith.constant 2.000000e-01 : f32
    %326 = vector.broadcast %cst_113 : f32 to vector<64x16xf32>
    %327 = arith.mulf %326, %323 : vector<64x16xf32>
    %328 = arith.select %325, %323, %327 : vector<64x16xi1>, vector<64x16xf32>
    %cst_114 = arith.constant 0.000000e+00 : f32
    %329 = vector.broadcast %cst_114 : f32 to vector<12x12x16xf32>
    %c0_115 = arith.constant 0 : index
    %c0_116 = arith.constant 0 : index
    %c0_117 = arith.constant 0 : index
    %330 = vector.load %arg17[%c0_115, %c0_116, %c0_117] : memref<12x12x16xf32, #tpu.memory_space<vmem>>, vector<12x12x16xf32>
    tpu.vector_store %arg17[%c0_115, %c0_116, %c0_117], %329 {strides = array<i32>} : memref<12x12x16xf32, #tpu.memory_space<vmem>>, vector<12x12x16xf32>,
    %331 = vector.extract_strided_slice %328 {offsets = [0, 0], sizes = [8, 16], strides = [1, 1]} : vector<64x16xf32> to vector<8x16xf32>
    %c1_118 = arith.constant 1 : index
    %c1_119 = arith.constant 1 : index
    %c0_120 = arith.constant 0 : index
    %332 = vector.load %arg17[%c1_118, %c1_119, %c0_120] : memref<12x12x16xf32, #tpu.memory_space<vmem>>, vector<1x8x16xf32>
    %333 = vector.shape_cast %332 : vector<1x8x16xf32> to vector<8x16xf32>
    %334 = vector.shape_cast %331 : vector<8x16xf32> to vector<1x8x16xf32>
    tpu.vector_store %arg17[%c1_118, %c1_119, %c0_120], %334 {strides = array<i32>} : memref<12x12x16xf32, #tpu.memory_space<vmem>>, vector<1x8x16xf32>,
    %335 = vector.extract_strided_slice %328 {offsets = [8, 0], sizes = [8, 16], strides = [1, 1]} : vector<64x16xf32> to vector<8x16xf32>
    %c2_121 = arith.constant 2 : index
    %c1_122 = arith.constant 1 : index
    %c0_123 = arith.constant 0 : index
    %336 = vector.load %arg17[%c2_121, %c1_122, %c0_123] : memref<12x12x16xf32, #tpu.memory_space<vmem>>, vector<1x8x16xf32>
    %337 = vector.shape_cast %336 : vector<1x8x16xf32> to vector<8x16xf32>
    %338 = vector.shape_cast %335 : vector<8x16xf32> to vector<1x8x16xf32>
    tpu.vector_store %arg17[%c2_121, %c1_122, %c0_123], %338 {strides = array<i32>} : memref<12x12x16xf32, #tpu.memory_space<vmem>>, vector<1x8x16xf32>,
    %339 = vector.extract_strided_slice %328 {offsets = [16, 0], sizes = [8, 16], strides = [1, 1]} : vector<64x16xf32> to vector<8x16xf32>
    %c3_124 = arith.constant 3 : index
    %c1_125 = arith.constant 1 : index
    %c0_126 = arith.constant 0 : index
    %340 = vector.load %arg17[%c3_124, %c1_125, %c0_126] : memref<12x12x16xf32, #tpu.memory_space<vmem>>, vector<1x8x16xf32>
    %341 = vector.shape_cast %340 : vector<1x8x16xf32> to vector<8x16xf32>
    %342 = vector.shape_cast %339 : vector<8x16xf32> to vector<1x8x16xf32>
    tpu.vector_store %arg17[%c3_124, %c1_125, %c0_126], %342 {strides = array<i32>} : memref<12x12x16xf32, #tpu.memory_space<vmem>>, vector<1x8x16xf32>,
    %343 = vector.extract_strided_slice %328 {offsets = [24, 0], sizes = [8, 16], strides = [1, 1]} : vector<64x16xf32> to vector<8x16xf32>
    %c4_127 = arith.constant 4 : index
    %c1_128 = arith.constant 1 : index
    %c0_129 = arith.constant 0 : index
    %344 = vector.load %arg17[%c4_127, %c1_128, %c0_129] : memref<12x12x16xf32, #tpu.memory_space<vmem>>, vector<1x8x16xf32>
    %345 = vector.shape_cast %344 : vector<1x8x16xf32> to vector<8x16xf32>
    %346 = vector.shape_cast %343 : vector<8x16xf32> to vector<1x8x16xf32>
    tpu.vector_store %arg17[%c4_127, %c1_128, %c0_129], %346 {strides = array<i32>} : memref<12x12x16xf32, #tpu.memory_space<vmem>>, vector<1x8x16xf32>,
    %347 = vector.extract_strided_slice %328 {offsets = [32, 0], sizes = [8, 16], strides = [1, 1]} : vector<64x16xf32> to vector<8x16xf32>
    %c5_130 = arith.constant 5 : index
    %c1_131 = arith.constant 1 : index
    %c0_132 = arith.constant 0 : index
    %348 = vector.load %arg17[%c5_130, %c1_131, %c0_132] : memref<12x12x16xf32, #tpu.memory_space<vmem>>, vector<1x8x16xf32>
    %349 = vector.shape_cast %348 : vector<1x8x16xf32> to vector<8x16xf32>
    %350 = vector.shape_cast %347 : vector<8x16xf32> to vector<1x8x16xf32>
    tpu.vector_store %arg17[%c5_130, %c1_131, %c0_132], %350 {strides = array<i32>} : memref<12x12x16xf32, #tpu.memory_space<vmem>>, vector<1x8x16xf32>,
    %351 = vector.extract_strided_slice %328 {offsets = [40, 0], sizes = [8, 16], strides = [1, 1]} : vector<64x16xf32> to vector<8x16xf32>
    %c6_133 = arith.constant 6 : index
    %c1_134 = arith.constant 1 : index
    %c0_135 = arith.constant 0 : index
    %352 = vector.load %arg17[%c6_133, %c1_134, %c0_135] : memref<12x12x16xf32, #tpu.memory_space<vmem>>, vector<1x8x16xf32>
    %353 = vector.shape_cast %352 : vector<1x8x16xf32> to vector<8x16xf32>
    %354 = vector.shape_cast %351 : vector<8x16xf32> to vector<1x8x16xf32>
    tpu.vector_store %arg17[%c6_133, %c1_134, %c0_135], %354 {strides = array<i32>} : memref<12x12x16xf32, #tpu.memory_space<vmem>>, vector<1x8x16xf32>,
    %355 = vector.extract_strided_slice %328 {offsets = [48, 0], sizes = [8, 16], strides = [1, 1]} : vector<64x16xf32> to vector<8x16xf32>
    %c7_136 = arith.constant 7 : index
    %c1_137 = arith.constant 1 : index
    %c0_138 = arith.constant 0 : index
    %356 = vector.load %arg17[%c7_136, %c1_137, %c0_138] : memref<12x12x16xf32, #tpu.memory_space<vmem>>, vector<1x8x16xf32>
    %357 = vector.shape_cast %356 : vector<1x8x16xf32> to vector<8x16xf32>
    %358 = vector.shape_cast %355 : vector<8x16xf32> to vector<1x8x16xf32>
    tpu.vector_store %arg17[%c7_136, %c1_137, %c0_138], %358 {strides = array<i32>} : memref<12x12x16xf32, #tpu.memory_space<vmem>>, vector<1x8x16xf32>,
    %359 = vector.extract_strided_slice %328 {offsets = [56, 0], sizes = [8, 16], strides = [1, 1]} : vector<64x16xf32> to vector<8x16xf32>
    %c8_139 = arith.constant 8 : index
    %c1_140 = arith.constant 1 : index
    %c0_141 = arith.constant 0 : index
    %360 = vector.load %arg17[%c8_139, %c1_140, %c0_141] : memref<12x12x16xf32, #tpu.memory_space<vmem>>, vector<1x8x16xf32>
    %361 = vector.shape_cast %360 : vector<1x8x16xf32> to vector<8x16xf32>
    %362 = vector.shape_cast %359 : vector<8x16xf32> to vector<1x8x16xf32>
    tpu.vector_store %arg17[%c8_139, %c1_140, %c0_141], %362 {strides = array<i32>} : memref<12x12x16xf32, #tpu.memory_space<vmem>>, vector<1x8x16xf32>,
    %c0_142 = arith.constant 0 : index
    %c0_143 = arith.constant 0 : index
    %c0_144 = arith.constant 0 : index
    %363 = vector.load %arg8[%c0_142, %c0_143, %c0_144] : memref<16x16x32xf32, #tpu.memory_space<vmem>>, vector<16x16x32xf32>
    %cst_145 = arith.constant 0.000000e+00 : f32
    %364 = vector.broadcast %cst_145 : f32 to vector<16x32xf32>
    %c0_146 = arith.constant 0 : index
    %c0_147 = arith.constant 0 : index
    %c0_148 = arith.constant 0 : index
    %365 = tpu.strided_load %arg17[%c0_146, %c0_147, %c0_148] {strides = array<i32: 1, 2, 1>} : memref<12x12x16xf32, #tpu.memory_space<vmem>>, vector<12x6x16xf32>
    %366 = vector.shape_cast %365 : vector<12x6x16xf32> to vector<6x2x6x16xf32>
    %367 = vector.extract_strided_slice %366 {offsets = [0, 0, 0, 0], sizes = [6, 1, 6, 16], strides = [1, 1, 1, 1]} : vector<6x2x6x16xf32> to vector<6x1x6x16xf32>
    %368 = vector.shape_cast %367 : vector<6x1x6x16xf32> to vector<6x6x16xf32>
    %369 = vector.extract_strided_slice %368 {offsets = [0, 0, 0], sizes = [4, 4, 16], strides = [1, 1, 1]} : vector<6x6x16xf32> to vector<4x4x16xf32>
    %370 = vector.shape_cast %369 : vector<4x4x16xf32> to vector<16x16xf32>
    %371 = vector.extract_strided_slice %363 {offsets = [0, 0, 0], sizes = [1, 16, 32], strides = [1, 1, 1]} : vector<16x16x32xf32> to vector<1x16x32xf32>
    %372 = vector.shape_cast %371 : vector<1x16x32xf32> to vector<16x32xf32>
    %cst_149 = arith.constant dense<0.000000e+00> : vector<16x32xf32>
    %373 = tpu.matmul %370, %372, %cst_149 {dimension_numbers = #tpu.dot_dimension_numbers<[1], [0], [0], [1], [0, 0, 1, 1], [], []>} : vector<16x16xf32>, vector<16x32xf32>, vector<16x32xf32> -> vector<16x32xf32>
    %374 = arith.addf %364, %373 : vector<16x32xf32>
    %375 = vector.extract_strided_slice %368 {offsets = [0, 1, 0], sizes = [4, 4, 16], strides = [1, 1, 1]} : vector<6x6x16xf32> to vector<4x4x16xf32>
    %376 = vector.shape_cast %375 : vector<4x4x16xf32> to vector<16x16xf32>
    %377 = vector.extract_strided_slice %363 {offsets = [2, 0, 0], sizes = [1, 16, 32], strides = [1, 1, 1]} : vector<16x16x32xf32> to vector<1x16x32xf32>
    %378 = vector.shape_cast %377 : vector<1x16x32xf32> to vector<16x32xf32>
    %cst_150 = arith.constant dense<0.000000e+00> : vector<16x32xf32>
    %379 = tpu.matmul %376, %378, %cst_150 {dimension_numbers = #tpu.dot_dimension_numbers<[1], [0], [0], [1], [0, 0, 1, 1], [], []>} : vector<16x16xf32>, vector<16x32xf32>, vector<16x32xf32> -> vector<16x32xf32>
    %380 = arith.addf %374, %379 : vector<16x32xf32>
    %381 = vector.extract_strided_slice %368 {offsets = [1, 0, 0], sizes = [4, 4, 16], strides = [1, 1, 1]} : vector<6x6x16xf32> to vector<4x4x16xf32>
    %382 = vector.shape_cast %381 : vector<4x4x16xf32> to vector<16x16xf32>
    %383 = vector.extract_strided_slice %363 {offsets = [8, 0, 0], sizes = [1, 16, 32], strides = [1, 1, 1]} : vector<16x16x32xf32> to vector<1x16x32xf32>
    %384 = vector.shape_cast %383 : vector<1x16x32xf32> to vector<16x32xf32>
    %cst_151 = arith.constant dense<0.000000e+00> : vector<16x32xf32>
    %385 = tpu.matmul %382, %384, %cst_151 {dimension_numbers = #tpu.dot_dimension_numbers<[1], [0], [0], [1], [0, 0, 1, 1], [], []>} : vector<16x16xf32>, vector<16x32xf32>, vector<16x32xf32> -> vector<16x32xf32>
    %386 = arith.addf %380, %385 : vector<16x32xf32>
    %387 = vector.extract_strided_slice %368 {offsets = [1, 1, 0], sizes = [4, 4, 16], strides = [1, 1, 1]} : vector<6x6x16xf32> to vector<4x4x16xf32>
    %388 = vector.shape_cast %387 : vector<4x4x16xf32> to vector<16x16xf32>
    %389 = vector.extract_strided_slice %363 {offsets = [10, 0, 0], sizes = [1, 16, 32], strides = [1, 1, 1]} : vector<16x16x32xf32> to vector<1x16x32xf32>
    %390 = vector.shape_cast %389 : vector<1x16x32xf32> to vector<16x32xf32>
    %cst_152 = arith.constant dense<0.000000e+00> : vector<16x32xf32>
    %391 = tpu.matmul %388, %390, %cst_152 {dimension_numbers = #tpu.dot_dimension_numbers<[1], [0], [0], [1], [0, 0, 1, 1], [], []>} : vector<16x16xf32>, vector<16x32xf32>, vector<16x32xf32> -> vector<16x32xf32>
    %392 = arith.addf %386, %391 : vector<16x32xf32>
    %393 = vector.extract_strided_slice %366 {offsets = [0, 1, 0, 0], sizes = [6, 1, 6, 16], strides = [1, 1, 1, 1]} : vector<6x2x6x16xf32> to vector<6x1x6x16xf32>
    %394 = vector.shape_cast %393 : vector<6x1x6x16xf32> to vector<6x6x16xf32>
    %395 = vector.extract_strided_slice %394 {offsets = [0, 0, 0], sizes = [4, 4, 16], strides = [1, 1, 1]} : vector<6x6x16xf32> to vector<4x4x16xf32>
    %396 = vector.shape_cast %395 : vector<4x4x16xf32> to vector<16x16xf32>
    %397 = vector.extract_strided_slice %363 {offsets = [4, 0, 0], sizes = [1, 16, 32], strides = [1, 1, 1]} : vector<16x16x32xf32> to vector<1x16x32xf32>
    %398 = vector.shape_cast %397 : vector<1x16x32xf32> to vector<16x32xf32>
    %cst_153 = arith.constant dense<0.000000e+00> : vector<16x32xf32>
    %399 = tpu.matmul %396, %398, %cst_153 {dimension_numbers = #tpu.dot_dimension_numbers<[1], [0], [0], [1], [0, 0, 1, 1], [], []>} : vector<16x16xf32>, vector<16x32xf32>, vector<16x32xf32> -> vector<16x32xf32>
    %400 = arith.addf %392, %399 : vector<16x32xf32>
    %401 = vector.extract_strided_slice %394 {offsets = [0, 1, 0], sizes = [4, 4, 16], strides = [1, 1, 1]} : vector<6x6x16xf32> to vector<4x4x16xf32>
    %402 = vector.shape_cast %401 : vector<4x4x16xf32> to vector<16x16xf32>
    %403 = vector.extract_strided_slice %363 {offsets = [6, 0, 0], sizes = [1, 16, 32], strides = [1, 1, 1]} : vector<16x16x32xf32> to vector<1x16x32xf32>
    %404 = vector.shape_cast %403 : vector<1x16x32xf32> to vector<16x32xf32>
    %cst_154 = arith.constant dense<0.000000e+00> : vector<16x32xf32>
    %405 = tpu.matmul %402, %404, %cst_154 {dimension_numbers = #tpu.dot_dimension_numbers<[1], [0], [0], [1], [0, 0, 1, 1], [], []>} : vector<16x16xf32>, vector<16x32xf32>, vector<16x32xf32> -> vector<16x32xf32>
    %406 = arith.addf %400, %405 : vector<16x32xf32>
    %407 = vector.extract_strided_slice %394 {offsets = [1, 0, 0], sizes = [4, 4, 16], strides = [1, 1, 1]} : vector<6x6x16xf32> to vector<4x4x16xf32>
    %408 = vector.shape_cast %407 : vector<4x4x16xf32> to vector<16x16xf32>
    %409 = vector.extract_strided_slice %363 {offsets = [12, 0, 0], sizes = [1, 16, 32], strides = [1, 1, 1]} : vector<16x16x32xf32> to vector<1x16x32xf32>
    %410 = vector.shape_cast %409 : vector<1x16x32xf32> to vector<16x32xf32>
    %cst_155 = arith.constant dense<0.000000e+00> : vector<16x32xf32>
    %411 = tpu.matmul %408, %410, %cst_155 {dimension_numbers = #tpu.dot_dimension_numbers<[1], [0], [0], [1], [0, 0, 1, 1], [], []>} : vector<16x16xf32>, vector<16x32xf32>, vector<16x32xf32> -> vector<16x32xf32>
    %412 = arith.addf %406, %411 : vector<16x32xf32>
    %413 = vector.extract_strided_slice %394 {offsets = [1, 1, 0], sizes = [4, 4, 16], strides = [1, 1, 1]} : vector<6x6x16xf32> to vector<4x4x16xf32>
    %414 = vector.shape_cast %413 : vector<4x4x16xf32> to vector<16x16xf32>
    %415 = vector.extract_strided_slice %363 {offsets = [14, 0, 0], sizes = [1, 16, 32], strides = [1, 1, 1]} : vector<16x16x32xf32> to vector<1x16x32xf32>
    %416 = vector.shape_cast %415 : vector<1x16x32xf32> to vector<16x32xf32>
    %cst_156 = arith.constant dense<0.000000e+00> : vector<16x32xf32>
    %417 = tpu.matmul %414, %416, %cst_156 {dimension_numbers = #tpu.dot_dimension_numbers<[1], [0], [0], [1], [0, 0, 1, 1], [], []>} : vector<16x16xf32>, vector<16x32xf32>, vector<16x32xf32> -> vector<16x32xf32>
    %418 = arith.addf %412, %417 : vector<16x32xf32>
    %c0_157 = arith.constant 0 : index
    %c1_158 = arith.constant 1 : index
    %c0_159 = arith.constant 0 : index
    %419 = tpu.strided_load %arg17[%c0_157, %c1_158, %c0_159] {strides = array<i32: 1, 2, 1>} : memref<12x12x16xf32, #tpu.memory_space<vmem>>, vector<12x6x16xf32>
    %420 = vector.shape_cast %419 : vector<12x6x16xf32> to vector<6x2x6x16xf32>
    %421 = vector.extract_strided_slice %420 {offsets = [0, 0, 0, 0], sizes = [6, 1, 6, 16], strides = [1, 1, 1, 1]} : vector<6x2x6x16xf32> to vector<6x1x6x16xf32>
    %422 = vector.shape_cast %421 : vector<6x1x6x16xf32> to vector<6x6x16xf32>
    %423 = vector.extract_strided_slice %422 {offsets = [0, 0, 0], sizes = [4, 4, 16], strides = [1, 1, 1]} : vector<6x6x16xf32> to vector<4x4x16xf32>
    %424 = vector.shape_cast %423 : vector<4x4x16xf32> to vector<16x16xf32>
    %425 = vector.extract_strided_slice %363 {offsets = [1, 0, 0], sizes = [1, 16, 32], strides = [1, 1, 1]} : vector<16x16x32xf32> to vector<1x16x32xf32>
    %426 = vector.shape_cast %425 : vector<1x16x32xf32> to vector<16x32xf32>
    %cst_160 = arith.constant dense<0.000000e+00> : vector<16x32xf32>
    %427 = tpu.matmul %424, %426, %cst_160 {dimension_numbers = #tpu.dot_dimension_numbers<[1], [0], [0], [1], [0, 0, 1, 1], [], []>} : vector<16x16xf32>, vector<16x32xf32>, vector<16x32xf32> -> vector<16x32xf32>
    %428 = arith.addf %418, %427 : vector<16x32xf32>
    %429 = vector.extract_strided_slice %422 {offsets = [0, 1, 0], sizes = [4, 4, 16], strides = [1, 1, 1]} : vector<6x6x16xf32> to vector<4x4x16xf32>
    %430 = vector.shape_cast %429 : vector<4x4x16xf32> to vector<16x16xf32>
    %431 = vector.extract_strided_slice %363 {offsets = [3, 0, 0], sizes = [1, 16, 32], strides = [1, 1, 1]} : vector<16x16x32xf32> to vector<1x16x32xf32>
    %432 = vector.shape_cast %431 : vector<1x16x32xf32> to vector<16x32xf32>
    %cst_161 = arith.constant dense<0.000000e+00> : vector<16x32xf32>
    %433 = tpu.matmul %430, %432, %cst_161 {dimension_numbers = #tpu.dot_dimension_numbers<[1], [0], [0], [1], [0, 0, 1, 1], [], []>} : vector<16x16xf32>, vector<16x32xf32>, vector<16x32xf32> -> vector<16x32xf32>
    %434 = arith.addf %428, %433 : vector<16x32xf32>
    %435 = vector.extract_strided_slice %422 {offsets = [1, 0, 0], sizes = [4, 4, 16], strides = [1, 1, 1]} : vector<6x6x16xf32> to vector<4x4x16xf32>
    %436 = vector.shape_cast %435 : vector<4x4x16xf32> to vector<16x16xf32>
    %437 = vector.extract_strided_slice %363 {offsets = [9, 0, 0], sizes = [1, 16, 32], strides = [1, 1, 1]} : vector<16x16x32xf32> to vector<1x16x32xf32>
    %438 = vector.shape_cast %437 : vector<1x16x32xf32> to vector<16x32xf32>
    %cst_162 = arith.constant dense<0.000000e+00> : vector<16x32xf32>
    %439 = tpu.matmul %436, %438, %cst_162 {dimension_numbers = #tpu.dot_dimension_numbers<[1], [0], [0], [1], [0, 0, 1, 1], [], []>} : vector<16x16xf32>, vector<16x32xf32>, vector<16x32xf32> -> vector<16x32xf32>
    %440 = arith.addf %434, %439 : vector<16x32xf32>
    %441 = vector.extract_strided_slice %422 {offsets = [1, 1, 0], sizes = [4, 4, 16], strides = [1, 1, 1]} : vector<6x6x16xf32> to vector<4x4x16xf32>
    %442 = vector.shape_cast %441 : vector<4x4x16xf32> to vector<16x16xf32>
    %443 = vector.extract_strided_slice %363 {offsets = [11, 0, 0], sizes = [1, 16, 32], strides = [1, 1, 1]} : vector<16x16x32xf32> to vector<1x16x32xf32>
    %444 = vector.shape_cast %443 : vector<1x16x32xf32> to vector<16x32xf32>
    %cst_163 = arith.constant dense<0.000000e+00> : vector<16x32xf32>
    %445 = tpu.matmul %442, %444, %cst_163 {dimension_numbers = #tpu.dot_dimension_numbers<[1], [0], [0], [1], [0, 0, 1, 1], [], []>} : vector<16x16xf32>, vector<16x32xf32>, vector<16x32xf32> -> vector<16x32xf32>
    %446 = arith.addf %440, %445 : vector<16x32xf32>
    %447 = vector.extract_strided_slice %420 {offsets = [0, 1, 0, 0], sizes = [6, 1, 6, 16], strides = [1, 1, 1, 1]} : vector<6x2x6x16xf32> to vector<6x1x6x16xf32>
    %448 = vector.shape_cast %447 : vector<6x1x6x16xf32> to vector<6x6x16xf32>
    %449 = vector.extract_strided_slice %448 {offsets = [0, 0, 0], sizes = [4, 4, 16], strides = [1, 1, 1]} : vector<6x6x16xf32> to vector<4x4x16xf32>
    %450 = vector.shape_cast %449 : vector<4x4x16xf32> to vector<16x16xf32>
    %451 = vector.extract_strided_slice %363 {offsets = [5, 0, 0], sizes = [1, 16, 32], strides = [1, 1, 1]} : vector<16x16x32xf32> to vector<1x16x32xf32>
    %452 = vector.shape_cast %451 : vector<1x16x32xf32> to vector<16x32xf32>
    %cst_164 = arith.constant dense<0.000000e+00> : vector<16x32xf32>
    %453 = tpu.matmul %450, %452, %cst_164 {dimension_numbers = #tpu.dot_dimension_numbers<[1], [0], [0], [1], [0, 0, 1, 1], [], []>} : vector<16x16xf32>, vector<16x32xf32>, vector<16x32xf32> -> vector<16x32xf32>
    %454 = arith.addf %446, %453 : vector<16x32xf32>
    %455 = vector.extract_strided_slice %448 {offsets = [0, 1, 0], sizes = [4, 4, 16], strides = [1, 1, 1]} : vector<6x6x16xf32> to vector<4x4x16xf32>
    %456 = vector.shape_cast %455 : vector<4x4x16xf32> to vector<16x16xf32>
    %457 = vector.extract_strided_slice %363 {offsets = [7, 0, 0], sizes = [1, 16, 32], strides = [1, 1, 1]} : vector<16x16x32xf32> to vector<1x16x32xf32>
    %458 = vector.shape_cast %457 : vector<1x16x32xf32> to vector<16x32xf32>
    %cst_165 = arith.constant dense<0.000000e+00> : vector<16x32xf32>
    %459 = tpu.matmul %456, %458, %cst_165 {dimension_numbers = #tpu.dot_dimension_numbers<[1], [0], [0], [1], [0, 0, 1, 1], [], []>} : vector<16x16xf32>, vector<16x32xf32>, vector<16x32xf32> -> vector<16x32xf32>
    %460 = arith.addf %454, %459 : vector<16x32xf32>
    %461 = vector.extract_strided_slice %448 {offsets = [1, 0, 0], sizes = [4, 4, 16], strides = [1, 1, 1]} : vector<6x6x16xf32> to vector<4x4x16xf32>
    %462 = vector.shape_cast %461 : vector<4x4x16xf32> to vector<16x16xf32>
    %463 = vector.extract_strided_slice %363 {offsets = [13, 0, 0], sizes = [1, 16, 32], strides = [1, 1, 1]} : vector<16x16x32xf32> to vector<1x16x32xf32>
    %464 = vector.shape_cast %463 : vector<1x16x32xf32> to vector<16x32xf32>
    %cst_166 = arith.constant dense<0.000000e+00> : vector<16x32xf32>
    %465 = tpu.matmul %462, %464, %cst_166 {dimension_numbers = #tpu.dot_dimension_numbers<[1], [0], [0], [1], [0, 0, 1, 1], [], []>} : vector<16x16xf32>, vector<16x32xf32>, vector<16x32xf32> -> vector<16x32xf32>
    %466 = arith.addf %460, %465 : vector<16x32xf32>
    %467 = vector.extract_strided_slice %448 {offsets = [1, 1, 0], sizes = [4, 4, 16], strides = [1, 1, 1]} : vector<6x6x16xf32> to vector<4x4x16xf32>
    %468 = vector.shape_cast %467 : vector<4x4x16xf32> to vector<16x16xf32>
    %469 = vector.extract_strided_slice %363 {offsets = [15, 0, 0], sizes = [1, 16, 32], strides = [1, 1, 1]} : vector<16x16x32xf32> to vector<1x16x32xf32>
    %470 = vector.shape_cast %469 : vector<1x16x32xf32> to vector<16x32xf32>
    %cst_167 = arith.constant dense<0.000000e+00> : vector<16x32xf32>
    %471 = tpu.matmul %468, %470, %cst_167 {dimension_numbers = #tpu.dot_dimension_numbers<[1], [0], [0], [1], [0, 0, 1, 1], [], []>} : vector<16x16xf32>, vector<16x32xf32>, vector<16x32xf32> -> vector<16x32xf32>
    %472 = arith.addf %466, %471 : vector<16x32xf32>
    %c0_168 = arith.constant 0 : index
    %c0_169 = arith.constant 0 : index
    %473 = vector.load %arg9[%c0_168, %c0_169] : memref<1x32xf32, #tpu.memory_space<vmem>>, vector<1x32xf32>
    %474 = vector.broadcast %473 : vector<1x32xf32> to vector<16x32xf32>
    %475 = arith.addf %472, %474 : vector<16x32xf32>
    %cst_170 = arith.constant dense<0.000000e+00> : vector<32xf32>
    %476 = vector.multi_reduction <add>, %475, %cst_170 [0] : vector<16x32xf32> to vector<32xf32>
    %477 = vector.shape_cast %476 : vector<32xf32> to vector<1x32xf32>
    %cst_171 = arith.constant 1.600000e+01 : f32
    %478 = vector.broadcast %cst_171 : f32 to vector<1x32xf32>
    %479 = arith.divf %477, %478 : vector<1x32xf32>
    %480 = vector.broadcast %479 : vector<1x32xf32> to vector<16x32xf32>
    %481 = arith.subf %475, %480 : vector<16x32xf32>
    %482 = arith.mulf %481, %481 : vector<16x32xf32>
    %cst_172 = arith.constant dense<0.000000e+00> : vector<32xf32>
    %483 = vector.multi_reduction <add>, %482, %cst_172 [0] : vector<16x32xf32> to vector<32xf32>
    %484 = vector.shape_cast %483 : vector<32xf32> to vector<1x32xf32>
    %cst_173 = arith.constant 1.600000e+01 : f32
    %485 = vector.broadcast %cst_173 : f32 to vector<1x32xf32>
    %486 = arith.divf %484, %485 : vector<1x32xf32>
    %cst_174 = arith.constant 9.99999974E-6 : f32
    %487 = vector.broadcast %cst_174 : f32 to vector<1x32xf32>
    %488 = arith.addf %486, %487 : vector<1x32xf32>
    %489 = math.rsqrt %488 : vector<1x32xf32>
    %490 = vector.broadcast %489 : vector<1x32xf32> to vector<16x32xf32>
    %491 = arith.mulf %481, %490 : vector<16x32xf32>
    %c0_175 = arith.constant 0 : index
    %c0_176 = arith.constant 0 : index
    %492 = vector.load %arg10[%c0_175, %c0_176] : memref<1x32xf32, #tpu.memory_space<vmem>>, vector<1x32xf32>
    %493 = vector.broadcast %492 : vector<1x32xf32> to vector<16x32xf32>
    %494 = arith.mulf %491, %493 : vector<16x32xf32>
    %c0_177 = arith.constant 0 : index
    %c0_178 = arith.constant 0 : index
    %495 = vector.load %arg11[%c0_177, %c0_178] : memref<1x32xf32, #tpu.memory_space<vmem>>, vector<1x32xf32>
    %496 = vector.broadcast %495 : vector<1x32xf32> to vector<16x32xf32>
    %497 = arith.addf %494, %496 : vector<16x32xf32>
    %cst_179 = arith.constant 0.000000e+00 : f32
    %498 = vector.broadcast %cst_179 : f32 to vector<16x32xf32>
    %499 = arith.cmpf oge, %497, %498 : vector<16x32xf32>
    %cst_180 = arith.constant 2.000000e-01 : f32
    %500 = vector.broadcast %cst_180 : f32 to vector<16x32xf32>
    %501 = arith.mulf %500, %497 : vector<16x32xf32>
    %502 = arith.select %499, %497, %501 : vector<16x32xi1>, vector<16x32xf32>
    %cst_181 = arith.constant 0.000000e+00 : f32
    %503 = vector.broadcast %cst_181 : f32 to vector<6x6x32xf32>
    %c0_182 = arith.constant 0 : index
    %c0_183 = arith.constant 0 : index
    %c0_184 = arith.constant 0 : index
    %504 = vector.load %arg18[%c0_182, %c0_183, %c0_184] : memref<6x6x32xf32, #tpu.memory_space<vmem>>, vector<6x6x32xf32>
    tpu.vector_store %arg18[%c0_182, %c0_183, %c0_184], %503 {strides = array<i32>} : memref<6x6x32xf32, #tpu.memory_space<vmem>>, vector<6x6x32xf32>,
    %505 = vector.extract_strided_slice %502 {offsets = [0, 0], sizes = [4, 32], strides = [1, 1]} : vector<16x32xf32> to vector<4x32xf32>
    %c1_185 = arith.constant 1 : index
    %c1_186 = arith.constant 1 : index
    %c0_187 = arith.constant 0 : index
    %506 = vector.load %arg18[%c1_185, %c1_186, %c0_187] : memref<6x6x32xf32, #tpu.memory_space<vmem>>, vector<1x4x32xf32>
    %507 = vector.shape_cast %506 : vector<1x4x32xf32> to vector<4x32xf32>
    %508 = vector.shape_cast %505 : vector<4x32xf32> to vector<1x4x32xf32>
    tpu.vector_store %arg18[%c1_185, %c1_186, %c0_187], %508 {strides = array<i32>} : memref<6x6x32xf32, #tpu.memory_space<vmem>>, vector<1x4x32xf32>,
    %509 = vector.extract_strided_slice %502 {offsets = [4, 0], sizes = [4, 32], strides = [1, 1]} : vector<16x32xf32> to vector<4x32xf32>
    %c2_188 = arith.constant 2 : index
    %c1_189 = arith.constant 1 : index
    %c0_190 = arith.constant 0 : index
    %510 = vector.load %arg18[%c2_188, %c1_189, %c0_190] : memref<6x6x32xf32, #tpu.memory_space<vmem>>, vector<1x4x32xf32>
    %511 = vector.shape_cast %510 : vector<1x4x32xf32> to vector<4x32xf32>
    %512 = vector.shape_cast %509 : vector<4x32xf32> to vector<1x4x32xf32>
    tpu.vector_store %arg18[%c2_188, %c1_189, %c0_190], %512 {strides = array<i32>} : memref<6x6x32xf32, #tpu.memory_space<vmem>>, vector<1x4x32xf32>,
    %513 = vector.extract_strided_slice %502 {offsets = [8, 0], sizes = [4, 32], strides = [1, 1]} : vector<16x32xf32> to vector<4x32xf32>
    %c3_191 = arith.constant 3 : index
    %c1_192 = arith.constant 1 : index
    %c0_193 = arith.constant 0 : index
    %514 = vector.load %arg18[%c3_191, %c1_192, %c0_193] : memref<6x6x32xf32, #tpu.memory_space<vmem>>, vector<1x4x32xf32>
    %515 = vector.shape_cast %514 : vector<1x4x32xf32> to vector<4x32xf32>
    %516 = vector.shape_cast %513 : vector<4x32xf32> to vector<1x4x32xf32>
    tpu.vector_store %arg18[%c3_191, %c1_192, %c0_193], %516 {strides = array<i32>} : memref<6x6x32xf32, #tpu.memory_space<vmem>>, vector<1x4x32xf32>,
    %517 = vector.extract_strided_slice %502 {offsets = [12, 0], sizes = [4, 32], strides = [1, 1]} : vector<16x32xf32> to vector<4x32xf32>
    %c4_194 = arith.constant 4 : index
    %c1_195 = arith.constant 1 : index
    %c0_196 = arith.constant 0 : index
    %518 = vector.load %arg18[%c4_194, %c1_195, %c0_196] : memref<6x6x32xf32, #tpu.memory_space<vmem>>, vector<1x4x32xf32>
    %519 = vector.shape_cast %518 : vector<1x4x32xf32> to vector<4x32xf32>
    %520 = vector.shape_cast %517 : vector<4x32xf32> to vector<1x4x32xf32>
    tpu.vector_store %arg18[%c4_194, %c1_195, %c0_196], %520 {strides = array<i32>} : memref<6x6x32xf32, #tpu.memory_space<vmem>>, vector<1x4x32xf32>,
    %c0_197 = arith.constant 0 : index
    %c0_198 = arith.constant 0 : index
    %c0_199 = arith.constant 0 : index
    %521 = vector.load %arg12[%c0_197, %c0_198, %c0_199] : memref<16x32x1xf32, #tpu.memory_space<vmem>>, vector<16x32x1xf32>
    %cst_200 = arith.constant 0.000000e+00 : f32
    %522 = vector.broadcast %cst_200 : f32 to vector<9x1xf32>
    %c0_201 = arith.constant 0 : index
    %c0_202 = arith.constant 0 : index
    %c0_203 = arith.constant 0 : index
    %523 = vector.load %arg18[%c0_201, %c0_202, %c0_203] : memref<6x6x32xf32, #tpu.memory_space<vmem>>, vector<6x6x32xf32>
    %524 = vector.extract_strided_slice %523 {offsets = [0, 0, 0], sizes = [3, 3, 32], strides = [1, 1, 1]} : vector<6x6x32xf32> to vector<3x3x32xf32>
    %525 = vector.shape_cast %524 : vector<3x3x32xf32> to vector<9x32xf32>
    %526 = vector.extract_strided_slice %521 {offsets = [0, 0, 0], sizes = [1, 32, 1], strides = [1, 1, 1]} : vector<16x32x1xf32> to vector<1x32x1xf32>
    %527 = vector.shape_cast %526 : vector<1x32x1xf32> to vector<32x1xf32>
    %cst_204 = arith.constant dense<0.000000e+00> : vector<9x1xf32>
    %528 = tpu.matmul %525, %527, %cst_204 {dimension_numbers = #tpu.dot_dimension_numbers<[1], [0], [0], [1], [0, 0, 1, 1], [], []>} : vector<9x32xf32>, vector<32x1xf32>, vector<9x1xf32> -> vector<9x1xf32>
    %529 = arith.addf %522, %528 : vector<9x1xf32>
    %530 = vector.extract_strided_slice %523 {offsets = [0, 1, 0], sizes = [3, 3, 32], strides = [1, 1, 1]} : vector<6x6x32xf32> to vector<3x3x32xf32>
    %531 = vector.shape_cast %530 : vector<3x3x32xf32> to vector<9x32xf32>
    %532 = vector.extract_strided_slice %521 {offsets = [1, 0, 0], sizes = [1, 32, 1], strides = [1, 1, 1]} : vector<16x32x1xf32> to vector<1x32x1xf32>
    %533 = vector.shape_cast %532 : vector<1x32x1xf32> to vector<32x1xf32>
    %cst_205 = arith.constant dense<0.000000e+00> : vector<9x1xf32>
    %534 = tpu.matmul %531, %533, %cst_205 {dimension_numbers = #tpu.dot_dimension_numbers<[1], [0], [0], [1], [0, 0, 1, 1], [], []>} : vector<9x32xf32>, vector<32x1xf32>, vector<9x1xf32> -> vector<9x1xf32>
    %535 = arith.addf %529, %534 : vector<9x1xf32>
    %536 = vector.extract_strided_slice %523 {offsets = [0, 2, 0], sizes = [3, 3, 32], strides = [1, 1, 1]} : vector<6x6x32xf32> to vector<3x3x32xf32>
    %537 = vector.shape_cast %536 : vector<3x3x32xf32> to vector<9x32xf32>
    %538 = vector.extract_strided_slice %521 {offsets = [2, 0, 0], sizes = [1, 32, 1], strides = [1, 1, 1]} : vector<16x32x1xf32> to vector<1x32x1xf32>
    %539 = vector.shape_cast %538 : vector<1x32x1xf32> to vector<32x1xf32>
    %cst_206 = arith.constant dense<0.000000e+00> : vector<9x1xf32>
    %540 = tpu.matmul %537, %539, %cst_206 {dimension_numbers = #tpu.dot_dimension_numbers<[1], [0], [0], [1], [0, 0, 1, 1], [], []>} : vector<9x32xf32>, vector<32x1xf32>, vector<9x1xf32> -> vector<9x1xf32>
    %541 = arith.addf %535, %540 : vector<9x1xf32>
    %542 = vector.extract_strided_slice %523 {offsets = [0, 3, 0], sizes = [3, 3, 32], strides = [1, 1, 1]} : vector<6x6x32xf32> to vector<3x3x32xf32>
    %543 = vector.shape_cast %542 : vector<3x3x32xf32> to vector<9x32xf32>
    %544 = vector.extract_strided_slice %521 {offsets = [3, 0, 0], sizes = [1, 32, 1], strides = [1, 1, 1]} : vector<16x32x1xf32> to vector<1x32x1xf32>
    %545 = vector.shape_cast %544 : vector<1x32x1xf32> to vector<32x1xf32>
    %cst_207 = arith.constant dense<0.000000e+00> : vector<9x1xf32>
    %546 = tpu.matmul %543, %545, %cst_207 {dimension_numbers = #tpu.dot_dimension_numbers<[1], [0], [0], [1], [0, 0, 1, 1], [], []>} : vector<9x32xf32>, vector<32x1xf32>, vector<9x1xf32> -> vector<9x1xf32>
    %547 = arith.addf %541, %546 : vector<9x1xf32>
    %548 = vector.extract_strided_slice %523 {offsets = [1, 0, 0], sizes = [3, 3, 32], strides = [1, 1, 1]} : vector<6x6x32xf32> to vector<3x3x32xf32>
    %549 = vector.shape_cast %548 : vector<3x3x32xf32> to vector<9x32xf32>
    %550 = vector.extract_strided_slice %521 {offsets = [4, 0, 0], sizes = [1, 32, 1], strides = [1, 1, 1]} : vector<16x32x1xf32> to vector<1x32x1xf32>
    %551 = vector.shape_cast %550 : vector<1x32x1xf32> to vector<32x1xf32>
    %cst_208 = arith.constant dense<0.000000e+00> : vector<9x1xf32>
    %552 = tpu.matmul %549, %551, %cst_208 {dimension_numbers = #tpu.dot_dimension_numbers<[1], [0], [0], [1], [0, 0, 1, 1], [], []>} : vector<9x32xf32>, vector<32x1xf32>, vector<9x1xf32> -> vector<9x1xf32>
    %553 = arith.addf %547, %552 : vector<9x1xf32>
    %554 = vector.extract_strided_slice %523 {offsets = [1, 1, 0], sizes = [3, 3, 32], strides = [1, 1, 1]} : vector<6x6x32xf32> to vector<3x3x32xf32>
    %555 = vector.shape_cast %554 : vector<3x3x32xf32> to vector<9x32xf32>
    %556 = vector.extract_strided_slice %521 {offsets = [5, 0, 0], sizes = [1, 32, 1], strides = [1, 1, 1]} : vector<16x32x1xf32> to vector<1x32x1xf32>
    %557 = vector.shape_cast %556 : vector<1x32x1xf32> to vector<32x1xf32>
    %cst_209 = arith.constant dense<0.000000e+00> : vector<9x1xf32>
    %558 = tpu.matmul %555, %557, %cst_209 {dimension_numbers = #tpu.dot_dimension_numbers<[1], [0], [0], [1], [0, 0, 1, 1], [], []>} : vector<9x32xf32>, vector<32x1xf32>, vector<9x1xf32> -> vector<9x1xf32>
    %559 = arith.addf %553, %558 : vector<9x1xf32>
    %560 = vector.extract_strided_slice %523 {offsets = [1, 2, 0], sizes = [3, 3, 32], strides = [1, 1, 1]} : vector<6x6x32xf32> to vector<3x3x32xf32>
    %561 = vector.shape_cast %560 : vector<3x3x32xf32> to vector<9x32xf32>
    %562 = vector.extract_strided_slice %521 {offsets = [6, 0, 0], sizes = [1, 32, 1], strides = [1, 1, 1]} : vector<16x32x1xf32> to vector<1x32x1xf32>
    %563 = vector.shape_cast %562 : vector<1x32x1xf32> to vector<32x1xf32>
    %cst_210 = arith.constant dense<0.000000e+00> : vector<9x1xf32>
    %564 = tpu.matmul %561, %563, %cst_210 {dimension_numbers = #tpu.dot_dimension_numbers<[1], [0], [0], [1], [0, 0, 1, 1], [], []>} : vector<9x32xf32>, vector<32x1xf32>, vector<9x1xf32> -> vector<9x1xf32>
    %565 = arith.addf %559, %564 : vector<9x1xf32>
    %566 = vector.extract_strided_slice %523 {offsets = [1, 3, 0], sizes = [3, 3, 32], strides = [1, 1, 1]} : vector<6x6x32xf32> to vector<3x3x32xf32>
    %567 = vector.shape_cast %566 : vector<3x3x32xf32> to vector<9x32xf32>
    %568 = vector.extract_strided_slice %521 {offsets = [7, 0, 0], sizes = [1, 32, 1], strides = [1, 1, 1]} : vector<16x32x1xf32> to vector<1x32x1xf32>
    %569 = vector.shape_cast %568 : vector<1x32x1xf32> to vector<32x1xf32>
    %cst_211 = arith.constant dense<0.000000e+00> : vector<9x1xf32>
    %570 = tpu.matmul %567, %569, %cst_211 {dimension_numbers = #tpu.dot_dimension_numbers<[1], [0], [0], [1], [0, 0, 1, 1], [], []>} : vector<9x32xf32>, vector<32x1xf32>, vector<9x1xf32> -> vector<9x1xf32>
    %571 = arith.addf %565, %570 : vector<9x1xf32>
    %572 = vector.extract_strided_slice %523 {offsets = [2, 0, 0], sizes = [3, 3, 32], strides = [1, 1, 1]} : vector<6x6x32xf32> to vector<3x3x32xf32>
    %573 = vector.shape_cast %572 : vector<3x3x32xf32> to vector<9x32xf32>
    %574 = vector.extract_strided_slice %521 {offsets = [8, 0, 0], sizes = [1, 32, 1], strides = [1, 1, 1]} : vector<16x32x1xf32> to vector<1x32x1xf32>
    %575 = vector.shape_cast %574 : vector<1x32x1xf32> to vector<32x1xf32>
    %cst_212 = arith.constant dense<0.000000e+00> : vector<9x1xf32>
    %576 = tpu.matmul %573, %575, %cst_212 {dimension_numbers = #tpu.dot_dimension_numbers<[1], [0], [0], [1], [0, 0, 1, 1], [], []>} : vector<9x32xf32>, vector<32x1xf32>, vector<9x1xf32> -> vector<9x1xf32>
    %577 = arith.addf %571, %576 : vector<9x1xf32>
    %578 = vector.extract_strided_slice %523 {offsets = [2, 1, 0], sizes = [3, 3, 32], strides = [1, 1, 1]} : vector<6x6x32xf32> to vector<3x3x32xf32>
    %579 = vector.shape_cast %578 : vector<3x3x32xf32> to vector<9x32xf32>
    %580 = vector.extract_strided_slice %521 {offsets = [9, 0, 0], sizes = [1, 32, 1], strides = [1, 1, 1]} : vector<16x32x1xf32> to vector<1x32x1xf32>
    %581 = vector.shape_cast %580 : vector<1x32x1xf32> to vector<32x1xf32>
    %cst_213 = arith.constant dense<0.000000e+00> : vector<9x1xf32>
    %582 = tpu.matmul %579, %581, %cst_213 {dimension_numbers = #tpu.dot_dimension_numbers<[1], [0], [0], [1], [0, 0, 1, 1], [], []>} : vector<9x32xf32>, vector<32x1xf32>, vector<9x1xf32> -> vector<9x1xf32>
    %583 = arith.addf %577, %582 : vector<9x1xf32>
    %584 = vector.extract_strided_slice %523 {offsets = [2, 2, 0], sizes = [3, 3, 32], strides = [1, 1, 1]} : vector<6x6x32xf32> to vector<3x3x32xf32>
    %585 = vector.shape_cast %584 : vector<3x3x32xf32> to vector<9x32xf32>
    %586 = vector.extract_strided_slice %521 {offsets = [10, 0, 0], sizes = [1, 32, 1], strides = [1, 1, 1]} : vector<16x32x1xf32> to vector<1x32x1xf32>
    %587 = vector.shape_cast %586 : vector<1x32x1xf32> to vector<32x1xf32>
    %cst_214 = arith.constant dense<0.000000e+00> : vector<9x1xf32>
    %588 = tpu.matmul %585, %587, %cst_214 {dimension_numbers = #tpu.dot_dimension_numbers<[1], [0], [0], [1], [0, 0, 1, 1], [], []>} : vector<9x32xf32>, vector<32x1xf32>, vector<9x1xf32> -> vector<9x1xf32>
    %589 = arith.addf %583, %588 : vector<9x1xf32>
    %590 = vector.extract_strided_slice %523 {offsets = [2, 3, 0], sizes = [3, 3, 32], strides = [1, 1, 1]} : vector<6x6x32xf32> to vector<3x3x32xf32>
    %591 = vector.shape_cast %590 : vector<3x3x32xf32> to vector<9x32xf32>
    %592 = vector.extract_strided_slice %521 {offsets = [11, 0, 0], sizes = [1, 32, 1], strides = [1, 1, 1]} : vector<16x32x1xf32> to vector<1x32x1xf32>
    %593 = vector.shape_cast %592 : vector<1x32x1xf32> to vector<32x1xf32>
    %cst_215 = arith.constant dense<0.000000e+00> : vector<9x1xf32>
    %594 = tpu.matmul %591, %593, %cst_215 {dimension_numbers = #tpu.dot_dimension_numbers<[1], [0], [0], [1], [0, 0, 1, 1], [], []>} : vector<9x32xf32>, vector<32x1xf32>, vector<9x1xf32> -> vector<9x1xf32>
    %595 = arith.addf %589, %594 : vector<9x1xf32>
    %596 = vector.extract_strided_slice %523 {offsets = [3, 0, 0], sizes = [3, 3, 32], strides = [1, 1, 1]} : vector<6x6x32xf32> to vector<3x3x32xf32>
    %597 = vector.shape_cast %596 : vector<3x3x32xf32> to vector<9x32xf32>
    %598 = vector.extract_strided_slice %521 {offsets = [12, 0, 0], sizes = [1, 32, 1], strides = [1, 1, 1]} : vector<16x32x1xf32> to vector<1x32x1xf32>
    %599 = vector.shape_cast %598 : vector<1x32x1xf32> to vector<32x1xf32>
    %cst_216 = arith.constant dense<0.000000e+00> : vector<9x1xf32>
    %600 = tpu.matmul %597, %599, %cst_216 {dimension_numbers = #tpu.dot_dimension_numbers<[1], [0], [0], [1], [0, 0, 1, 1], [], []>} : vector<9x32xf32>, vector<32x1xf32>, vector<9x1xf32> -> vector<9x1xf32>
    %601 = arith.addf %595, %600 : vector<9x1xf32>
    %602 = vector.extract_strided_slice %523 {offsets = [3, 1, 0], sizes = [3, 3, 32], strides = [1, 1, 1]} : vector<6x6x32xf32> to vector<3x3x32xf32>
    %603 = vector.shape_cast %602 : vector<3x3x32xf32> to vector<9x32xf32>
    %604 = vector.extract_strided_slice %521 {offsets = [13, 0, 0], sizes = [1, 32, 1], strides = [1, 1, 1]} : vector<16x32x1xf32> to vector<1x32x1xf32>
    %605 = vector.shape_cast %604 : vector<1x32x1xf32> to vector<32x1xf32>
    %cst_217 = arith.constant dense<0.000000e+00> : vector<9x1xf32>
    %606 = tpu.matmul %603, %605, %cst_217 {dimension_numbers = #tpu.dot_dimension_numbers<[1], [0], [0], [1], [0, 0, 1, 1], [], []>} : vector<9x32xf32>, vector<32x1xf32>, vector<9x1xf32> -> vector<9x1xf32>
    %607 = arith.addf %601, %606 : vector<9x1xf32>
    %608 = vector.extract_strided_slice %523 {offsets = [3, 2, 0], sizes = [3, 3, 32], strides = [1, 1, 1]} : vector<6x6x32xf32> to vector<3x3x32xf32>
    %609 = vector.shape_cast %608 : vector<3x3x32xf32> to vector<9x32xf32>
    %610 = vector.extract_strided_slice %521 {offsets = [14, 0, 0], sizes = [1, 32, 1], strides = [1, 1, 1]} : vector<16x32x1xf32> to vector<1x32x1xf32>
    %611 = vector.shape_cast %610 : vector<1x32x1xf32> to vector<32x1xf32>
    %cst_218 = arith.constant dense<0.000000e+00> : vector<9x1xf32>
    %612 = tpu.matmul %609, %611, %cst_218 {dimension_numbers = #tpu.dot_dimension_numbers<[1], [0], [0], [1], [0, 0, 1, 1], [], []>} : vector<9x32xf32>, vector<32x1xf32>, vector<9x1xf32> -> vector<9x1xf32>
    %613 = arith.addf %607, %612 : vector<9x1xf32>
    %614 = vector.extract_strided_slice %523 {offsets = [3, 3, 0], sizes = [3, 3, 32], strides = [1, 1, 1]} : vector<6x6x32xf32> to vector<3x3x32xf32>
    %615 = vector.shape_cast %614 : vector<3x3x32xf32> to vector<9x32xf32>
    %616 = vector.extract_strided_slice %521 {offsets = [15, 0, 0], sizes = [1, 32, 1], strides = [1, 1, 1]} : vector<16x32x1xf32> to vector<1x32x1xf32>
    %617 = vector.shape_cast %616 : vector<1x32x1xf32> to vector<32x1xf32>
    %cst_219 = arith.constant dense<0.000000e+00> : vector<9x1xf32>
    %618 = tpu.matmul %615, %617, %cst_219 {dimension_numbers = #tpu.dot_dimension_numbers<[1], [0], [0], [1], [0, 0, 1, 1], [], []>} : vector<9x32xf32>, vector<32x1xf32>, vector<9x1xf32> -> vector<9x1xf32>
    %619 = arith.addf %613, %618 : vector<9x1xf32>
    %c0_220 = arith.constant 0 : index
    %c0_221 = arith.constant 0 : index
    %620 = vector.load %arg13[%c0_220, %c0_221] : memref<1x1xf32, #tpu.memory_space<vmem>>, vector<1x1xf32>
    %621 = vector.broadcast %620 : vector<1x1xf32> to vector<9x1xf32>
    %622 = arith.addf %619, %621 : vector<9x1xf32>
    %c0_222 = arith.constant 0 : index
    %c0_223 = arith.constant 0 : index
    %c0_224 = arith.constant 0 : index
    %623 = vector.load %arg14[%c0_222, %c0_223, %c0_224] : memref<1x9x1xf32, #tpu.memory_space<vmem>>, vector<1x9x1xf32>
    %624 = vector.shape_cast %623 : vector<1x9x1xf32> to vector<9x1xf32>
    %625 = vector.shape_cast %622 : vector<9x1xf32> to vector<1x9x1xf32>
    tpu.vector_store %arg14[%c0_222, %c0_223, %c0_224], %625 {strides = array<i32>} : memref<1x9x1xf32, #tpu.memory_space<vmem>>, vector<1x9x1xf32>,
    return
  }
  func.func @transform_0(%arg0: i32) -> (i32, i32, i32, i32) {
    %c0_i32 = arith.constant 0 : i32
    %c0_i32_0 = arith.constant 0 : i32
    %c0_i32_1 = arith.constant 0 : i32
    %c0_i32_2 = arith.constant 0 : i32
    return %arg0, %c0_i32, %c0_i32_0, %c0_i32_1 : i32, i32, i32, i32
  }
  func.func @transform_1(%arg0: i32) -> (i32, i32, i32) {
    %c0_i32 = arith.constant 0 : i32
    %c0_i32_0 = arith.constant 0 : i32
    %c0_i32_1 = arith.constant 0 : i32
    %c0_i32_2 = arith.constant 0 : i32
    return %c0_i32, %c0_i32_0, %c0_i32_1 : i32, i32, i32
  }
  func.func @transform_2(%arg0: i32) -> (i32, i32) {
    %c0_i32 = arith.constant 0 : i32
    %c0_i32_0 = arith.constant 0 : i32
    %c0_i32_1 = arith.constant 0 : i32
    return %c0_i32, %c0_i32_0 : i32, i32
  }
  func.func @transform_3(%arg0: i32) -> (i32, i32, i32) {
    %c0_i32 = arith.constant 0 : i32
    %c0_i32_0 = arith.constant 0 : i32
    %c0_i32_1 = arith.constant 0 : i32
    %c0_i32_2 = arith.constant 0 : i32
    return %c0_i32, %c0_i32_0, %c0_i32_1 : i32, i32, i32
  }
  func.func @transform_4(%arg0: i32) -> (i32, i32) {
    %c0_i32 = arith.constant 0 : i32
    %c0_i32_0 = arith.constant 0 : i32
    %c0_i32_1 = arith.constant 0 : i32
    return %c0_i32, %c0_i32_0 : i32, i32
  }
  func.func @transform_5(%arg0: i32) -> (i32, i32) {
    %c0_i32 = arith.constant 0 : i32
    %c0_i32_0 = arith.constant 0 : i32
    %c0_i32_1 = arith.constant 0 : i32
    return %c0_i32, %c0_i32_0 : i32, i32
  }
  func.func @transform_6(%arg0: i32) -> (i32, i32) {
    %c0_i32 = arith.constant 0 : i32
    %c0_i32_0 = arith.constant 0 : i32
    %c0_i32_1 = arith.constant 0 : i32
    return %c0_i32, %c0_i32_0 : i32, i32
  }
  func.func @transform_7(%arg0: i32) -> (i32, i32, i32) {
    %c0_i32 = arith.constant 0 : i32
    %c0_i32_0 = arith.constant 0 : i32
    %c0_i32_1 = arith.constant 0 : i32
    %c0_i32_2 = arith.constant 0 : i32
    return %c0_i32, %c0_i32_0, %c0_i32_1 : i32, i32, i32
  }
  func.func @transform_8(%arg0: i32) -> (i32, i32) {
    %c0_i32 = arith.constant 0 : i32
    %c0_i32_0 = arith.constant 0 : i32
    %c0_i32_1 = arith.constant 0 : i32
    return %c0_i32, %c0_i32_0 : i32, i32
  }
  func.func @transform_9(%arg0: i32) -> (i32, i32) {
    %c0_i32 = arith.constant 0 : i32
    %c0_i32_0 = arith.constant 0 : i32
    %c0_i32_1 = arith.constant 0 : i32
    return %c0_i32, %c0_i32_0 : i32, i32
  }
  func.func @transform_10(%arg0: i32) -> (i32, i32) {
    %c0_i32 = arith.constant 0 : i32
    %c0_i32_0 = arith.constant 0 : i32
    %c0_i32_1 = arith.constant 0 : i32
    return %c0_i32, %c0_i32_0 : i32, i32
  }
  func.func @transform_11(%arg0: i32) -> (i32, i32, i32) {
    %c0_i32 = arith.constant 0 : i32
    %c0_i32_0 = arith.constant 0 : i32
    %c0_i32_1 = arith.constant 0 : i32
    %c0_i32_2 = arith.constant 0 : i32
    return %c0_i32, %c0_i32_0, %c0_i32_1 : i32, i32, i32
  }
  func.func @transform_12(%arg0: i32) -> (i32, i32) {
    %c0_i32 = arith.constant 0 : i32
    %c0_i32_0 = arith.constant 0 : i32
    %c0_i32_1 = arith.constant 0 : i32
    return %c0_i32, %c0_i32_0 : i32, i32
  }
  func.func @transform_13(%arg0: i32) -> (i32, i32, i32) {
    %c0_i32 = arith.constant 0 : i32
    %c0_i32_0 = arith.constant 0 : i32
    %c0_i32_1 = arith.constant 0 : i32
    return %arg0, %c0_i32, %c0_i32_0 : i32, i32, i32
  }
}

</mosaic_0001>

<bundles_post_ra>
// kernel: discriminator_forward.1
= control target key start
LH: loop header
LB: loop body
LE: loop exit
PB: predicated region body
PF: predicated region fallthrough
CT: control target
= control target key end

     0   :  { %s9229_s27 = smov 0   ;;  %s12221_s0 = inlined_call_operand.vmem [shape: f32[2,32,32,3], index: 0, kind: input, shape index: {}]   ;;  %s12222_s1 = inlined_call_operand.vmem [shape: f32[16,3,8], index: 1, kind: input, shape index: {}]   ;;  %s12223_s2 = inlined_call_operand.vmem [shape: f32[1,8], index: 2, kind: input, shape index: {}]   ;;  %s12224_s3 = inlined_call_operand.vmem [shape: f32[16,8,16], index: 3, kind: input, shape index: {}]   ;;  %s12225_s4 = inlined_call_operand.vmem [shape: f32[1,16], index: 4, kind: input, shape index: {}]   ;;  %s12226_s5 = inlined_call_operand.vmem [shape: f32[1,16], index: 5, kind: input, shape index: {}]   ;;  %s12227_s6 = inlined_call_operand.vmem [shape: f32[1,16], index: 6, kind: input, shape index: {}]   ;;  %s12228_s7 = inlined_call_operand.vmem [shape: f32[16,16,32], index: 7, kind: input, shape index: {}]   ;;  %s12229_s8 = inlined_call_operand.vmem [shape: f32[1,32], index: 8, kind: input, shape index: {}]   ;;  %s12230_s9 = inlined_call_operand.vmem [shape: f32[1,32], index: 9, kind: input, shape index: {}]   ;;  %s12231_s10 = inlined_call_operand.vmem [shape: f32[1,32], index: 10, kind: input, shape index: {}]   ;;  %s12232_s11 = inlined_call_operand.vmem [shape: f32[16,32,1], index: 11, kind: input, shape index: {}]   ;;  %s12233_s12 = inlined_call_operand.<no memory space> [shape: f32[1,1], index: 12, kind: input, shape index: {}]   ;;  %s12234_s13 = inlined_call_operand.vmem [shape: f32[2,9,1], index: 13, kind: output, shape index: {}]  }
   0x1   :  { %v18_v0 = vstv %s12233_s12 }
   0x2   :  { %19 = vst [vmem:[#allocation6] sm:$0x1] %v18_v0 }
   0x3 LB: > { %s8344_s28 = sadd.s32 4294967295, %s9151_s27   ;;  %p8348_p0 = scmp.ge.s32.totalorder %s9151_s27, 1  ;;  %s9151_s27 = sphi %s9229_s27, %s25_s27  }
   0x4   : > { %p389_p1 = scmp.lt.s32.totalorder %s9151_s27, 3 }
   0x6   : > { %p390_p2 = pnand %p8348_p0, %p389_p1 }
   0x8   : > { %393 = sbr.rel (%p390_p2) target bundleno = 2905 (0xb59), region = 72 }
   0xd   : > { %v882_v1 = vld [vmem:[%s12222_s1] sm:$0x7]  ;;  %vm1294_vm0 = vcmask 1042432   ;;  %vm443_vm1 = vcmask 23552   ;;  %v12235_v2 = vmov 0.0   ;;  %vm1149_vm2 = vcmask 1046528  }
   0xe   : > { %8386 = vmatpush.msk.msra.mxu1 %vm1294_vm0, %v882_v1  ;;  %444 = vst.msk [vmem:[#allocation2] sm:$0xff] %vm443_vm1, %v12235_v2  ;;  %v884_v3 = vld [vmem:[%s12222_s1 + $0x8] sm:$0x7]  ;;  %v890_v4 = vld [vmem:[%s12222_s1 + $0x20] sm:$0x7]  ;;  %p433_p3 = scmp.lt.s32.totalorder %s8344_s28, 1 }
   0xf   : > { %445 = vst.msk [vmem:[#allocation2 + $0x8] sm:$0xff] %vm443_vm1, %v12235_v2  ;;  %8353 = vmatpush.msk.msra.mxu0 %vm1294_vm0, %v884_v3  ;;  %8419 = vmatpush.msk.msra.mxu2 %vm1294_vm0, %v890_v4  ;;  %v894_v10 = vld [vmem:[%s12222_s1 + $0x30] sm:$0x7]  ;;  %v892_v11 = vld [vmem:[%s12222_s1 + $0x28] sm:$0x7]  ;;  %vm448_vm3 = vcmask 19456  }
  0x10   : > { %446 = vst.msk [vmem:[#allocation2 + $0x10] sm:$0xff] %vm443_vm1, %v12235_v2  ;;  %8452 = vmatpush.msk.msra.mxu3 %vm1294_vm0, %v892_v11  ;;  %s12327_s28 = smov (!%p433_p3, %s8344_s28), 1  ;;  %v886_v16 = vld [vmem:[%s12222_s1 + $0x10] sm:$0x7]  ;;  %v896_v17 = vld [vmem:[%s12222_s1 + $0x38] sm:$0x7] }
  0x11   : > { %447 = vst.msk [vmem:[#allocation2 + $0x18] sm:$0xff] %vm443_vm1, %v12235_v2  ;;  %8551 = vmatpush.msk.msrb.mxu2 %vm1294_vm0, %v894_v10  ;;  %s9115_s21 = sshll.u32 %s12327_s28, 10  ;;  %8485 = vmatpush.msk.msrb.mxu0 %vm1294_vm0, %v886_v16  ;;  %v888_v19 = vld [vmem:[%s12222_s1 + $0x18] sm:$0x7]  ;;  %vm4831_vm4 = vcmask 64512   ;;  %vm4834_vm7 = vcmask 60416  }
  0x12   : > { %450 = vst.msk [vmem:[#allocation2 + $0x28] sm:$0xff] %vm443_vm1, %v12235_v2  ;;  %s9549_s24 = scalar_lea.vmem %s12221_s0, %s9115_s21  ;;  %8584 = vmatpush.msk.msrb.mxu3 %vm1294_vm0, %v896_v17  ;;  %8518 = vmatpush.msk.msrb.mxu1 %vm1294_vm0, %v888_v19  ;;  %s9116_s15 = sshll.u32 %s12327_s28, 4 }
  0x13   : > { %451 = vst.msk [vmem:[#allocation2 + $0x30] sm:$0xff] %vm443_vm1, %v12235_v2  ;;  %v629_v12 = vld [vmem:[%s9549_s24 + $0x20] sm:$0xff]  ;;  %v630_v13 = vld [vmem:[%s9549_s24 + $0x28] sm:$0xff]  ;;  %v631_v14 = vld [vmem:[%s9549_s24 + $0x30] sm:$0xff]  ;;  %s442_s18 = scalar_lea.vmem %s12234_s13, %s9116_s15 }
  0x14   : > { %452 = vst.msk [vmem:[#allocation2 + $0x38] sm:$0xff] %vm443_vm1, %v12235_v2  ;;  %v632_v15 = vld [vmem:[%s9549_s24 + $0x38] sm:$0xff]  ;;  %v637_v30 = vld [vmem:[%s9549_s24 + $0x60] sm:$0xff]  ;;  %v638_v31 = vld [vmem:[%s9549_s24 + $0x68] sm:$0xff] }
  0x15   : > { %453 = vst.msk [vmem:[#allocation2 + $0x40] sm:$0xff] %vm443_vm1, %v12235_v2  ;;  %v639_v32 = vld [vmem:[%s9549_s24 + $0x70] sm:$0xff]  ;;  %v640_v33 = vld [vmem:[%s9549_s24 + $0x78] sm:$0xff]  ;;  %v645_v34 = vld [vmem:[%s9549_s24 + $0xa0] sm:$0xff] }
  0x16   : > { %v898_v5 = vld [vmem:[#allocation2] ss:$2 sm:$0xff]  ;;  %455 = vst.msk [vmem:[#allocation2 + $0x50] sm:$0xff] %vm443_vm1, %v12235_v2  ;;  %v648_v37 = vld [vmem:[%s9549_s24 + $0xb8] sm:$0xff]  ;;  %v653_v38 = vld [vmem:[%s9549_s24 + $0xe0] sm:$0xff] }
  0x17   : > { %v1150_v6 = vrot.slane %v898_v5, 1  ;;  %8387 = vmatmul.msk.f32.vlgmr.msra.gmra.mxu1 %vm443_vm1, %v898_v5  ;;  %456 = vst.msk [vmem:[#allocation2 + $0x58] sm:$0xff] %vm443_vm1, %v12235_v2  ;;  %v646_v35 = vld [vmem:[%s9549_s24 + $0xa8] sm:$0xff]  ;;  %v647_v36 = vld [vmem:[%s9549_s24 + $0xb0] sm:$0xff]  ;;  %v656_v42 = vld [vmem:[%s9549_s24 + $0xf8] sm:$0xff] }
  0x18   : > { %457 = vst.msk [vmem:[#allocation2 + $0x60] sm:$0xff] %vm443_vm1, %v12235_v2  ;;  %v9272_v7 = vld [vmem:[#allocation2 + $0x10] ss:$2 sm:$0xff]  ;;  %v654_v39 = vld [vmem:[%s9549_s24 + $0xe8] sm:$0xff]  ;;  %v655_v40 = vld [vmem:[%s9549_s24 + $0xf0] sm:$0xff] }
  0x19   : > { %458 = vst.msk [vmem:[#allocation2 + $0x68] sm:$0xff] %vm443_vm1, %v12235_v2  ;;  %v1151_v8 = vrot.slane %v9272_v7, 1  ;;  %v661_v49 = vld [vmem:[%s9549_s24 + $0x120] sm:$0xff]  ;;  %v662_v51 = vld [vmem:[%s9549_s24 + $0x128] sm:$0xff]  ;;  %v663_v52 = vld [vmem:[%s9549_s24 + $0x130] sm:$0xff] }
  0x1a   : > { %460 = vst.msk [vmem:[#allocation2 + $0x78] sm:$0xff] %vm443_vm1, %v12235_v2  ;;  %v664_v53 = vld [vmem:[%s9549_s24 + $0x138] sm:$0xff]  ;;  %v669_v61 = vld [vmem:[%s9549_s24 + $0x160] sm:$0xff]  ;;  %v670_v62 = vld [vmem:[%s9549_s24 + $0x168] sm:$0xff] }
  0x1b   : > { %461 = vst.msk [vmem:[#allocation2 + $0x80] sm:$0xff] %vm443_vm1, %v12235_v2  ;;  %v1152_v9 = vsel %vm1149_vm2, %v1150_v6, %v1151_v8  ;;  %v671_v63 = vld [vmem:[%s9549_s24 + $0x170] sm:$0xff]  ;;  %v672_v1 = vld [vmem:[%s9549_s24 + $0x178] sm:$0xff]  ;;  %v677_v10 = vld [vmem:[%s9549_s24 + $0x1a0] sm:$0xff] }
  0x1c   : > { %462 = vst.msk [vmem:[#allocation2 + $0x88] sm:$0xff] %vm443_vm1, %v12235_v2  ;;  %8354 = vmatmul.msk.f32.vlgmr.msra.gmra.mxu0 %vm443_vm1, %v1152_v9  ;;  %v678_v11 = vld [vmem:[%s9549_s24 + $0x1a8] sm:$0xff] }
  0x1d   : > { %463 = vst.msk [vmem:[#allocation2 + $0x90] sm:$0xff] %vm443_vm1, %v12235_v2 }
  0x1e   : > { %465 = vst.msk [vmem:[#allocation2 + $0xa0] sm:$0xff] %vm443_vm1, %v12235_v2 }
  0x1f   : > { %466 = vst.msk [vmem:[#allocation2 + $0xa8] sm:$0xff] %vm443_vm1, %v12235_v2  ;;  %8388 = vmatmul.msk.f32.gmra.mxu1 %vm443_vm1, %v9272_v7 }
  0x20   : > { %467 = vst.msk [vmem:[#allocation2 + $0xb0] sm:$0xff] %vm443_vm1, %v12235_v2 }
  0x21   : > { %468 = vst.msk [vmem:[#allocation2 + $0xb8] sm:$0xff] %vm443_vm1, %v12235_v2 }
  0x22   : > { %470 = vst.msk [vmem:[#allocation2 + $0xc8] sm:$0xff] %vm443_vm1, %v12235_v2 }
  0x23   : > { %471 = vst.msk [vmem:[#allocation2 + $0xd0] sm:$0xff] %vm443_vm1, %v12235_v2 }
  0x24   : > { %472 = vst.msk [vmem:[#allocation2 + $0xd8] sm:$0xff] %vm443_vm1, %v12235_v2 }
  0x25   : > { %473 = vst.msk [vmem:[#allocation2 + $0xe0] sm:$0xff] %vm443_vm1, %v12235_v2 }
  0x26   : > { %475 = vst.msk [vmem:[#allocation2 + $0xf0] sm:$0xff] %vm443_vm1, %v12235_v2 }
  0x27   : > { %476 = vst.msk [vmem:[#allocation2 + $0xf8] sm:$0xff] %vm443_vm1, %v12235_v2 }
  0x28   : > { %477 = vst.msk [vmem:[#allocation2 + $0x100] sm:$0xff] %vm443_vm1, %v12235_v2 }
  0x29   : > { %478 = vst.msk [vmem:[#allocation2 + $0x108] sm:$0xff] %vm443_vm1, %v12235_v2 }
  0x2a   : > { %480 = vst.msk [vmem:[#allocation2 + $0x118] sm:$0xff] %vm443_vm1, %v12235_v2 }
  0x2b   : > { %481 = vst.msk [vmem:[#allocation2 + $0x120] sm:$0xff] %vm443_vm1, %v12235_v2 }
  0x2c   : > { %482 = vst.msk [vmem:[#allocation2 + $0x128] sm:$0xff] %vm443_vm1, %v12235_v2 }
  0x2d   : > { %483 = vst.msk [vmem:[#allocation2 + $0x130] sm:$0xff] %vm443_vm1, %v12235_v2 }
  0x2e   : > { %485 = vst.msk [vmem:[#allocation2 + $0x140] sm:$0xff] %vm443_vm1, %v12235_v2 }
  0x2f   : > { %486 = vst.msk [vmem:[#allocation2 + $0x148] sm:$0xff] %vm443_vm1, %v12235_v2 }
  0x30   : > { %487 = vst.msk [vmem:[#allocation2 + $0x150] sm:$0xff] %vm443_vm1, %v12235_v2 }
  0x31   : > { %488 = vst.msk [vmem:[#allocation2 + $0x158] sm:$0xff] %vm443_vm1, %v12235_v2 }
  0x32   : > { %490 = vst.msk [vmem:[#allocation2 + $0x168] sm:$0xff] %vm443_vm1, %v12235_v2 }
  0x33   : > { %491 = vst.msk [vmem:[#allocation2 + $0x170] sm:$0xff] %vm443_vm1, %v12235_v2 }
  0x34   : > { %492 = vst.msk [vmem:[#allocation2 + $0x178] sm:$0xff] %vm443_vm1, %v12235_v2 }
  0x35   : > { %493 = vst.msk [vmem:[#allocation2 + $0x180] sm:$0xff] %vm443_vm1, %v12235_v2 }
  0x36   : > { %495 = vst.msk [vmem:[#allocation2 + $0x190] sm:$0xff] %vm443_vm1, %v12235_v2 }
  0x37   : > { %496 = vst.msk [vmem:[#allocation2 + $0x198] sm:$0xff] %vm443_vm1, %v12235_v2 }
  0x38   : > { %497 = vst.msk [vmem:[#allocation2 + $0x1a0] sm:$0xff] %vm443_vm1, %v12235_v2 }
  0x39   : > { %498 = vst.msk [vmem:[#allocation2 + $0x1a8] sm:$0xff] %vm443_vm1, %v12235_v2 }
  0x3a   : > { %500 = vst.msk [vmem:[#allocation2 + $0x1b8] sm:$0xff] %vm443_vm1, %v12235_v2 }
  0x3b   : > { %501 = vst.msk [vmem:[#allocation2 + $0x1c0] sm:$0xff] %vm443_vm1, %v12235_v2 }
  0x3c   : > { %502 = vst.msk [vmem:[#allocation2 + $0x1c8] sm:$0xff] %vm443_vm1, %v12235_v2 }
  0x3d   : > { %503 = vst.msk [vmem:[#allocation2 + $0x1d0] sm:$0xff] %vm443_vm1, %v12235_v2 }
  0x3e   : > { %505 = vst.msk [vmem:[#allocation2 + $0x1e0] sm:$0xff] %vm443_vm1, %v12235_v2 }
  0x3f   : > { %506 = vst.msk [vmem:[#allocation2 + $0x1e8] sm:$0xff] %vm443_vm1, %v12235_v2 }
  0x40   : > { %507 = vst.msk [vmem:[#allocation2 + $0x1f0] sm:$0xff] %vm443_vm1, %v12235_v2 }
  0x41   : > { %508 = vst.msk [vmem:[#allocation2 + $0x1f8] sm:$0xff] %vm443_vm1, %v12235_v2 }
  0x42   : > { %510 = vst.msk [vmem:[#allocation2 + $0x208] sm:$0xff] %vm443_vm1, %v12235_v2 }
  0x43   : > { %511 = vst.msk [vmem:[#allocation2 + $0x210] sm:$0xff] %vm443_vm1, %v12235_v2 }
  0x44   : > { %512 = vst.msk [vmem:[#allocation2 + $0x218] sm:$0xff] %vm443_vm1, %v12235_v2 }
  0x45   : > { %513 = vst.msk [vmem:[#allocation2 + $0x220] sm:$0xff] %vm443_vm1, %v12235_v2 }
  0x46   : > { %515 = vst.msk [vmem:[#allocation2 + $0x230] sm:$0xff] %vm443_vm1, %v12235_v2 }
  0x47   : > { %516 = vst.msk [vmem:[#allocation2 + $0x238] sm:$0xff] %vm443_vm1, %v12235_v2 }
  0x48   : > { %517 = vst.msk [vmem:[#allocation2 + $0x240] sm:$0xff] %vm443_vm1, %v12235_v2 }
  0x49   : > { %518 = vst.msk [vmem:[#allocation2 + $0x248] sm:$0xff] %vm443_vm1, %v12235_v2 }
  0x4a   : > { %520 = vst.msk [vmem:[#allocation2 + $0x258] sm:$0xff] %vm443_vm1, %v12235_v2 }
  0x4b   : > { %521 = vst.msk [vmem:[#allocation2 + $0x260] sm:$0xff] %vm443_vm1, %v12235_v2 }
  0x4c   : > { %522 = vst.msk [vmem:[#allocation2 + $0x268] sm:$0xff] %vm443_vm1, %v12235_v2 }
  0x4d   : > { %523 = vst.msk [vmem:[#allocation2 + $0x270] sm:$0xff] %vm443_vm1, %v12235_v2 }
  0x4e   : > { %525 = vst.msk [vmem:[#allocation2 + $0x280] sm:$0xff] %vm443_vm1, %v12235_v2 }
  0x4f   : > { %526 = vst.msk [vmem:[#allocation2 + $0x288] sm:$0xff] %vm443_vm1, %v12235_v2 }
  0x50   : > { %527 = vst.msk [vmem:[#allocation2 + $0x290] sm:$0xff] %vm443_vm1, %v12235_v2 }
  0x51   : > { %528 = vst.msk [vmem:[#allocation2 + $0x298] sm:$0xff] %vm443_vm1, %v12235_v2 }
  0x52   : > { %530 = vst.msk [vmem:[#allocation2 + $0x2a8] sm:$0xff] %vm443_vm1, %v12235_v2 }
  0x53   : > { %531 = vst.msk [vmem:[#allocation2 + $0x2b0] sm:$0xff] %vm443_vm1, %v12235_v2 }
  0x54   : > { %532 = vst.msk [vmem:[#allocation2 + $0x2b8] sm:$0xff] %vm443_vm1, %v12235_v2 }
  0x55   : > { %533 = vst.msk [vmem:[#allocation2 + $0x2c0] sm:$0xff] %vm443_vm1, %v12235_v2 }
  0x56   : > { %535 = vst.msk [vmem:[#allocation2 + $0x2d0] sm:$0xff] %vm443_vm1, %v12235_v2 }
  0x57   : > { %536 = vst.msk [vmem:[#allocation2 + $0x2d8] sm:$0xff] %vm443_vm1, %v12235_v2 }
  0x58   : > { %537 = vst.msk [vmem:[#allocation2 + $0x2e0] sm:$0xff] %vm443_vm1, %v12235_v2 }
  0x59   : > { %538 = vst.msk [vmem:[#allocation2 + $0x2e8] sm:$0xff] %vm443_vm1, %v12235_v2 }
  0x5a   : > { %540 = vst.msk [vmem:[#allocation2 + $0x2f8] sm:$0xff] %vm443_vm1, %v12235_v2 }
  0x5b   : > { %541 = vst.msk [vmem:[#allocation2 + $0x300] sm:$0xff] %vm443_vm1, %v12235_v2 }
  0x5c   : > { %542 = vst.msk [vmem:[#allocation2 + $0x308] sm:$0xff] %vm443_vm1, %v12235_v2 }
  0x5d   : > { %543 = vst.msk [vmem:[#allocation2 + $0x310] sm:$0xff] %vm443_vm1, %v12235_v2 }
  0x5e   : > { %545 = vst.msk [vmem:[#allocation2 + $0x320] sm:$0xff] %vm443_vm1, %v12235_v2 }
  0x5f   : > { %546 = vst.msk [vmem:[#allocation2 + $0x328] sm:$0xff] %vm443_vm1, %v12235_v2 }
  0x60   : > { %547 = vst.msk [vmem:[#allocation2 + $0x330] sm:$0xff] %vm443_vm1, %v12235_v2 }
  0x61   : > { %548 = vst.msk [vmem:[#allocation2 + $0x338] sm:$0xff] %vm443_vm1, %v12235_v2 }
  0x62   : > { %550 = vst.msk [vmem:[#allocation2 + $0x348] sm:$0xff] %vm443_vm1, %v12235_v2 }
  0x63   : > { %551 = vst.msk [vmem:[#allocation2 + $0x350] sm:$0xff] %vm443_vm1, %v12235_v2 }
  0x64   : > { %552 = vst.msk [vmem:[#allocation2 + $0x358] sm:$0xff] %vm443_vm1, %v12235_v2 }
  0x65   : > { %553 = vst.msk [vmem:[#allocation2 + $0x360] sm:$0xff] %vm443_vm1, %v12235_v2 }
  0x66   : > { %555 = vst.msk [vmem:[#allocation2 + $0x370] sm:$0xff] %vm443_vm1, %v12235_v2 }
  0x67   : > { %556 = vst.msk [vmem:[#allocation2 + $0x378] sm:$0xff] %vm443_vm1, %v12235_v2 }
  0x68   : > { %557 = vst.msk [vmem:[#allocation2 + $0x380] sm:$0xff] %vm443_vm1, %v12235_v2 }
  0x69   : > { %558 = vst.msk [vmem:[#allocation2 + $0x388] sm:$0xff] %vm443_vm1, %v12235_v2 }
  0x6a   : > { %560 = vst.msk [vmem:[#allocation2 + $0x398] sm:$0xff] %vm443_vm1, %v12235_v2 }
  0x6b   : > { %561 = vst.msk [vmem:[#allocation2 + $0x3a0] sm:$0xff] %vm443_vm1, %v12235_v2 }
  0x6c   : > { %562 = vst.msk [vmem:[#allocation2 + $0x3a8] sm:$0xff] %vm443_vm1, %v12235_v2 }
  0x6d   : > { %563 = vst.msk [vmem:[#allocation2 + $0x3b0] sm:$0xff] %vm443_vm1, %v12235_v2 }
  0x6e   : > { %565 = vst.msk [vmem:[#allocation2 + $0x3c0] sm:$0xff] %vm443_vm1, %v12235_v2 }
  0x6f   : > { %566 = vst.msk [vmem:[#allocation2 + $0x3c8] sm:$0xff] %vm443_vm1, %v12235_v2 }
  0x70   : > { %567 = vst.msk [vmem:[#allocation2 + $0x3d0] sm:$0xff] %vm443_vm1, %v12235_v2 }
  0x71   : > { %568 = vst.msk [vmem:[#allocation2 + $0x3d8] sm:$0xff] %vm443_vm1, %v12235_v2 }
  0x72   : > { %570 = vst.msk [vmem:[#allocation2 + $0x3e8] sm:$0xff] %vm443_vm1, %v12235_v2 }
  0x73   : > { %571 = vst.msk [vmem:[#allocation2 + $0x3f0] sm:$0xff] %vm443_vm1, %v12235_v2 }
  0x74   : > { %572 = vst.msk [vmem:[#allocation2 + $0x3f8] sm:$0xff] %vm443_vm1, %v12235_v2 }
  0x75   : > { %573 = vst.msk [vmem:[#allocation2 + $0x400] sm:$0xff] %vm443_vm1, %v12235_v2 }
  0x76   : > { %575 = vst.msk [vmem:[#allocation2 + $0x410] sm:$0xff] %vm443_vm1, %v12235_v2 }
  0x77   : > { %576 = vst.msk [vmem:[#allocation2 + $0x418] sm:$0xff] %vm443_vm1, %v12235_v2 }
  0x78   : > { %577 = vst.msk [vmem:[#allocation2 + $0x420] sm:$0xff] %vm443_vm1, %v12235_v2 }
  0x79   : > { %578 = vst.msk [vmem:[#allocation2 + $0x428] sm:$0xff] %vm443_vm1, %v12235_v2 }
  0x7a   : > { %580 = vst.msk [vmem:[#allocation2 + $0x438] sm:$0xff] %vm443_vm1, %v12235_v2 }
  0x7b   : > { %581 = vst.msk [vmem:[#allocation2 + $0x440] sm:$0xff] %vm443_vm1, %v12235_v2 }
  0x7c   : > { %582 = vst.msk [vmem:[#allocation2 + $0x448] sm:$0xff] %vm443_vm1, %v12235_v2 }
  0x7d   : > { %583 = vst.msk [vmem:[#allocation2 + $0x450] sm:$0xff] %vm443_vm1, %v12235_v2 }
  0x7e   : > { %585 = vst.msk [vmem:[#allocation2 + $0x460] sm:$0xff] %vm443_vm1, %v12235_v2 }
  0x7f   : > { %586 = vst.msk [vmem:[#allocation2 + $0x468] sm:$0xff] %vm443_vm1, %v12235_v2 }
  0x80   : > { %587 = vst.msk [vmem:[#allocation2 + $0x470] sm:$0xff] %vm443_vm1, %v12235_v2 }
  0x81   : > { %588 = vst.msk [vmem:[#allocation2 + $0x478] sm:$0xff] %vm443_vm1, %v12235_v2 }
  0x82   : > { %590 = vst.msk [vmem:[#allocation2 + $0x488] sm:$0xff] %vm443_vm1, %v12235_v2 }
  0x83   : > { %591 = vst.msk [vmem:[#allocation2 + $0x490] sm:$0xff] %vm443_vm1, %v12235_v2 }
  0x84   : > { %592 = vst.msk [vmem:[#allocation2 + $0x498] sm:$0xff] %vm443_vm1, %v12235_v2 }
  0x85   : > { %593 = vst.msk [vmem:[#allocation2 + $0x4a0] sm:$0xff] %vm443_vm1, %v12235_v2 }
  0x86   : > { %595 = vst.msk [vmem:[#allocation2 + $0x4b0] sm:$0xff] %vm443_vm1, %v12235_v2 }
  0x87   : > { %596 = vst.msk [vmem:[#allocation2 + $0x4b8] sm:$0xff] %vm443_vm1, %v12235_v2 }
  0x88   : > { %597 = vst.msk [vmem:[#allocation2 + $0x4c0] sm:$0xff] %vm443_vm1, %v12235_v2 }
  0x89   : > { %598 = vst.msk [vmem:[#allocation2 + $0x4c8] sm:$0xff] %vm443_vm1, %v12235_v2 }
  0x8a   : > { %600 = vst.msk [vmem:[#allocation2 + $0x4d8] sm:$0xff] %vm443_vm1, %v12235_v2 }
  0x8b   : > { %601 = vst.msk [vmem:[#allocation2 + $0x4e0] sm:$0xff] %vm443_vm1, %v12235_v2 }
  0x8c   : > { %602 = vst.msk [vmem:[#allocation2 + $0x4e8] sm:$0xff] %vm443_vm1, %v12235_v2 }
  0x8d   : > { %603 = vst.msk [vmem:[#allocation2 + $0x4f0] sm:$0xff] %vm443_vm1, %v12235_v2 }
  0x8e   : > { %605 = vst.msk [vmem:[#allocation2 + $0x500] sm:$0xff] %vm443_vm1, %v12235_v2 }
  0x8f   : > { %606 = vst.msk [vmem:[#allocation2 + $0x508] sm:$0xff] %vm443_vm1, %v12235_v2 }
  0x90   : > { %607 = vst.msk [vmem:[#allocation2 + $0x510] sm:$0xff] %vm443_vm1, %v12235_v2 }
  0x91   : > { %608 = vst.msk [vmem:[#allocation2 + $0x518] sm:$0xff] %vm443_vm1, %v12235_v2 }
  0x92   : > { %610 = vst.msk [vmem:[#allocation2 + $0x528] sm:$0xff] %vm443_vm1, %v12235_v2 }
  0x93   : > { %611 = vst.msk [vmem:[#allocation2 + $0x530] sm:$0xff] %vm443_vm1, %v12235_v2 }
  0x94   : > { %612 = vst.msk [vmem:[#allocation2 + $0x538] sm:$0xff] %vm443_vm1, %v12235_v2 }
  0x95   : > { %613 = vst.msk [vmem:[#allocation2 + $0x540] sm:$0xff] %vm443_vm1, %v12235_v2 }
  0x96   : > { %758 = vst.msk [vmem:[#allocation2 + $0x51] sm:$0xff] %vm443_vm1, %v629_v12  ;;  %v679_v12 = vld [vmem:[%s9549_s24 + $0x1b0] sm:$0xff] }
  0x97   : > { %759 = vst.msk [vmem:[#allocation2 + $0x59] sm:$0xff] %vm443_vm1, %v630_v13 }
  0x98   : > { %459 = vst.msk [vmem:[#allocation2 + $0x70] sm:$0xf] %vm448_vm3, %v12235_v2 }
  0x99   : > { %760 = vst.msk [vmem:[#allocation2 + $0x61] sm:$0xff] %vm443_vm1, %v631_v14  ;;  %v680_v14 = vld [vmem:[%s9549_s24 + $0x1b8] sm:$0xff] }
  0x9a   : > { %761 = vst.msk [vmem:[#allocation2 + $0x69] sm:$0xff] %vm443_vm1, %v632_v15 }
  0x9b   : > { %449 = vst.msk [vmem:[#allocation2 + $0x20] sm:$0xf] %vm448_vm3, %v12235_v2 }
  0x9c   : > { %454 = vst.msk [vmem:[#allocation2 + $0x48] sm:$0xf] %vm448_vm3, %v12235_v2 }
  0x9d   : > { %464 = vst.msk [vmem:[#allocation2 + $0x98] sm:$0xf] %vm448_vm3, %v12235_v2 }
  0x9e   : > { %v910_v18 = vld [vmem:[#allocation2 + $0x50] ss:$2 sm:$0xff]  ;;  %469 = vst.msk [vmem:[#allocation2 + $0xc0] sm:$0xf] %vm448_vm3, %v12235_v2 }
  0x9f   : > { %8420 = vmatmul.msk.f32.vlgmr.msra.gmra.mxu2 %vm443_vm1, %v910_v18  ;;  %474 = vst.msk [vmem:[#allocation2 + $0xe8] sm:$0xf] %vm448_vm3, %v12235_v2  ;;  %v1155_v20 = vrot.slane %v910_v18, 1  ;;  %8389 = vmatmul.msk.f32.gmra.mxu1 %vm443_vm1, %v910_v18 }
  0xa0   : > { %479 = vst.msk [vmem:[#allocation2 + $0x110] sm:$0xf] %vm448_vm3, %v12235_v2 }
  0xa1   : > { %v912_v21 = vld [vmem:[#allocation2 + $0x60] ss:$2 sm:$0xff]  ;;  %484 = vst.msk [vmem:[#allocation2 + $0x138] sm:$0xf] %vm448_vm3, %v12235_v2 }
  0xa2   : > { %v1156_v22 = vrot.slane %v912_v21, 1  ;;  %489 = vst.msk [vmem:[#allocation2 + $0x160] sm:$0xf] %vm448_vm3, %v12235_v2  ;;  %v902_v23 = vld [vmem:[#allocation2 + $0x20] ss:$2 sm:$0x3] }
  0xa3   : > { %494 = vst.msk [vmem:[#allocation2 + $0x188] sm:$0xf] %vm448_vm3, %v12235_v2  ;;  %v1153_v24 = vrot.slane %v902_v23, 1  ;;  %v914_v25 = vld [vmem:[#allocation2 + $0x70] ss:$2 sm:$0x3] }
  0xa4   : > { %v1157_v26 = vsel %vm1149_vm2, %v1155_v20, %v1156_v22  ;;  %499 = vst.msk [vmem:[#allocation2 + $0x1b0] sm:$0xf] %vm448_vm3, %v12235_v2  ;;  %v1158_v28 = vrot.slane %v914_v25, 1  ;;  %v686_v23 = vld [vmem:[%s9549_s24 + $0x1e8] sm:$0xff] }
  0xa5   : > { %8453 = vmatmul.msk.f32.vlgmr.msra.gmra.mxu3 %vm443_vm1, %v1157_v26  ;;  %504 = vst.msk [vmem:[#allocation2 + $0x1d8] sm:$0xf] %vm448_vm3, %v12235_v2  ;;  %v1154_v27 = vsel %vm1149_vm2, %v1151_v8, %v1153_v24  ;;  %v687_v24 = vld [vmem:[%s9549_s24 + $0x1f0] sm:$0xff] }
  0xa6   : > { %509 = vst.msk [vmem:[#allocation2 + $0x200] sm:$0xf] %vm448_vm3, %v12235_v2  ;;  %8355 = vmatmul.msk.f32.gmra.mxu0 %vm443_vm1, %v1154_v27  ;;  %v1159_v29 = vsel %vm1149_vm2, %v1156_v22, %v1158_v28  ;;  %v685_v22 = vld [vmem:[%s9549_s24 + $0x1e0] sm:$0xff] }
  0xa7   : > { %514 = vst.msk [vmem:[#allocation2 + $0x228] sm:$0xf] %vm448_vm3, %v12235_v2  ;;  %8421 = vmatmul.msk.f32.gmra.mxu2 %vm443_vm1, %v912_v21  ;;  %8390 = vmatmul.msk.f32.gmra.mxu1 %vm443_vm1, %v912_v21 }
  0xa8   : > { %519 = vst.msk [vmem:[#allocation2 + $0x250] sm:$0xf] %vm448_vm3, %v12235_v2 }
  0xa9   : > { %524 = vst.msk [vmem:[#allocation2 + $0x278] sm:$0xf] %vm448_vm3, %v12235_v2 }
  0xaa   : > { %529 = vst.msk [vmem:[#allocation2 + $0x2a0] sm:$0xf] %vm448_vm3, %v12235_v2 }
  0xab   : > { %534 = vst.msk [vmem:[#allocation2 + $0x2c8] sm:$0xf] %vm448_vm3, %v12235_v2 }
  0xac   : > { %539 = vst.msk [vmem:[#allocation2 + $0x2f0] sm:$0xf] %vm448_vm3, %v12235_v2 }
  0xad   : > { %544 = vst.msk [vmem:[#allocation2 + $0x318] sm:$0xf] %vm448_vm3, %v12235_v2  ;;  %8454 = vmatmul.msk.f32.gmra.mxu3 %vm443_vm1, %v1159_v29 }
  0xae   : > { %549 = vst.msk [vmem:[#allocation2 + $0x340] sm:$0xf] %vm448_vm3, %v12235_v2  ;;  %8356 = vmatmul.msk.f32.gmra.mxu0 %vm443_vm1, %v1157_v26  ;;  %v688_v26 = vld [vmem:[%s9549_s24 + $0x1f8] sm:$0xff] }
  0xaf   : > { %554 = vst.msk [vmem:[#allocation2 + $0x368] sm:$0xf] %vm448_vm3, %v12235_v2 }
  0xb0   : > { %559 = vst.msk [vmem:[#allocation2 + $0x390] sm:$0xf] %vm448_vm3, %v12235_v2 }
  0xb1   : > { %564 = vst.msk [vmem:[#allocation2 + $0x3b8] sm:$0xf] %vm448_vm3, %v12235_v2 }
  0xb2   : > { %569 = vst.msk [vmem:[#allocation2 + $0x3e0] sm:$0xf] %vm448_vm3, %v12235_v2 }
  0xb3   : > { %574 = vst.msk [vmem:[#allocation2 + $0x408] sm:$0xf] %vm448_vm3, %v12235_v2 }
  0xb4   : > { %579 = vst.msk [vmem:[#allocation2 + $0x430] sm:$0xf] %vm448_vm3, %v12235_v2 }
  0xb5   : > { %584 = vst.msk [vmem:[#allocation2 + $0x458] sm:$0xf] %vm448_vm3, %v12235_v2 }
  0xb6   : > { %589 = vst.msk [vmem:[#allocation2 + $0x480] sm:$0xf] %vm448_vm3, %v12235_v2  ;;  %8357 = vmatmul.msk.f32.gmra.mxu0 %vm443_vm1, %v1159_v29 }
  0xb7   : > { %594 = vst.msk [vmem:[#allocation2 + $0x4a8] sm:$0xf] %vm448_vm3, %v12235_v2 }
  0xb8   : > { %599 = vst.msk [vmem:[#allocation2 + $0x4d0] sm:$0xf] %vm448_vm3, %v12235_v2 }
  0xb9   : > { %604 = vst.msk [vmem:[#allocation2 + $0x4f8] sm:$0xf] %vm448_vm3, %v12235_v2 }
  0xba   : > { %609 = vst.msk [vmem:[#allocation2 + $0x520] sm:$0xf] %vm448_vm3, %v12235_v2 }
  0xbb   : > { %614 = vst.msk [vmem:[#allocation2 + $0x548] sm:$0xf] %vm448_vm3, %v12235_v2 }
  0xbc   : > { %766 = vst.msk [vmem:[#allocation2 + $0xa1] sm:$0xff] %vm443_vm1, %v637_v30 }
  0xbd   : > { %767 = vst.msk [vmem:[#allocation2 + $0xa9] sm:$0xff] %vm443_vm1, %v638_v31 }
  0xbe   : > { %768 = vst.msk [vmem:[#allocation2 + $0xb1] sm:$0xff] %vm443_vm1, %v639_v32 }
  0xbf   : > { %769 = vst.msk [vmem:[#allocation2 + $0xb9] sm:$0xff] %vm443_vm1, %v640_v33 }
  0xc0   : > { %774 = vst.msk [vmem:[#allocation2 + $0xf1] sm:$0xff] %vm443_vm1, %v645_v34  ;;  %v693_v34 = vld [vmem:[%s9549_s24 + $0x220] sm:$0xff] }
  0xc1   : > { %775 = vst.msk [vmem:[#allocation2 + $0xf9] sm:$0xff] %vm443_vm1, %v646_v35  ;;  %v694_v35 = vld [vmem:[%s9549_s24 + $0x228] sm:$0xff] }
  0xc2   : > { %776 = vst.msk [vmem:[#allocation2 + $0x101] sm:$0xff] %vm443_vm1, %v647_v36  ;;  %v695_v36 = vld [vmem:[%s9549_s24 + $0x230] sm:$0xff] }
  0xc3   : > { %777 = vst.msk [vmem:[#allocation2 + $0x109] sm:$0xff] %vm443_vm1, %v648_v37 }
  0xc4   : > { %v922_v41 = vld [vmem:[#allocation2 + $0xa0] ss:$2 sm:$0xff]  ;;  %782 = vst.msk [vmem:[#allocation2 + $0x141] sm:$0xff] %vm443_vm1, %v653_v38  ;;  %v696_v38 = vld [vmem:[%s9549_s24 + $0x238] sm:$0xff] }
  0xc5   : > { %v1160_v43 = vrot.slane %v922_v41, 1  ;;  %8422 = vmatmul.msk.f32.gmra.mxu2 %vm443_vm1, %v922_v41  ;;  %8391 = vmatmul.msk.f32.gmra.mxu1 %vm443_vm1, %v922_v41  ;;  %783 = vst.msk [vmem:[#allocation2 + $0x149] sm:$0xff] %vm443_vm1, %v654_v39 }
  0xc6   : > { %v924_v44 = vld [vmem:[#allocation2 + $0xb0] ss:$2 sm:$0xff]  ;;  %784 = vst.msk [vmem:[#allocation2 + $0x151] sm:$0xff] %vm443_vm1, %v655_v40  ;;  %v926_v46 = vld [vmem:[#allocation2 + $0xc0] ss:$2 sm:$0x3] }
  0xc7   : > { %v1161_v45 = vrot.slane %v924_v44, 1  ;;  %785 = vst.msk [vmem:[#allocation2 + $0x159] sm:$0xff] %vm443_vm1, %v656_v42  ;;  %v1163_v48 = vrot.slane %v926_v46, 1 }
  0xc8   : > { %790 = vst.msk [vmem:[#allocation2 + $0x191] sm:$0xff] %vm443_vm1, %v661_v49  ;;  %v934_v54 = vld [vmem:[#allocation2 + $0xf0] ss:$2 sm:$0xff]  ;;  %v703_v49 = vld [vmem:[%s9549_s24 + $0x270] sm:$0xff] }
  0xc9   : > { %v1162_v47 = vsel %vm1149_vm2, %v1160_v43, %v1161_v45  ;;  %v1164_v50 = vsel %vm1149_vm2, %v1161_v45, %v1163_v48  ;;  %791 = vst.msk [vmem:[#allocation2 + $0x199] sm:$0xff] %vm443_vm1, %v662_v51  ;;  %v1165_v56 = vrot.slane %v934_v54, 1  ;;  %v9772_v45 = vpop.f32.mrf.mxu1  ;;  %v702_v48 = vld [vmem:[%s9549_s24 + $0x268] sm:$0xff]  ;;  %v9780_v51 = vpop.f32.mrf.mxu0 }
  0xca   : > { %8455 = vmatmul.msk.f32.gmra.mxu3 %vm443_vm1, %v1162_v47  ;;  %8358 = vmatmul.msk.f32.gmra.mxu0 %vm443_vm1, %v1162_v47  ;;  %v936_v55 = vld [vmem:[#allocation2 + $0x100] ss:$2 sm:$0xff]  ;;  %792 = vst.msk [vmem:[#allocation2 + $0x1a1] sm:$0xff] %vm443_vm1, %v663_v52  ;;  %v938_v59 = vld [vmem:[#allocation2 + $0x110] ss:$2 sm:$0x3] }
  0xcb   : > { %793 = vst.msk [vmem:[#allocation2 + $0x1a9] sm:$0xff] %vm443_vm1, %v664_v53  ;;  %v1166_v57 = vrot.slane %v936_v55, 1  ;;  %v1168_v60 = vrot.slane %v938_v59, 1  ;;  %v701_v47 = vld [vmem:[%s9549_s24 + $0x260] sm:$0xff]  ;;  %v704_v52 = vld [vmem:[%s9549_s24 + $0x278] sm:$0xff] }
  0xcc   : > { %798 = vst.msk [vmem:[#allocation2 + $0x1e1] sm:$0xff] %vm443_vm1, %v669_v61  ;;  %v946_v3 = vld [vmem:[#allocation2 + $0x140] ss:$2 sm:$0xff] }
  0xcd   : > { %8423 = vmatmul.msk.f32.gmra.mxu2 %vm443_vm1, %v924_v44  ;;  %8392 = vmatmul.msk.f32.gmra.mxu1 %vm443_vm1, %v924_v44  ;;  %v1167_v58 = vsel %vm1149_vm2, %v1165_v56, %v1166_v57  ;;  %v1169_v0 = vsel %vm1149_vm2, %v1166_v57, %v1168_v60  ;;  %799 = vst.msk [vmem:[#allocation2 + $0x1e9] sm:$0xff] %vm443_vm1, %v670_v62  ;;  %v1170_v5 = vrot.slane %v946_v3, 1 }
  0xce   : > { %v948_v4 = vld [vmem:[#allocation2 + $0x150] ss:$2 sm:$0xff]  ;;  %800 = vst.msk [vmem:[#allocation2 + $0x1f1] sm:$0xff] %vm443_vm1, %v671_v63  ;;  %v950_v8 = vld [vmem:[#allocation2 + $0x160] ss:$2 sm:$0x3] }
  0xcf   : > { %801 = vst.msk [vmem:[#allocation2 + $0x1f9] sm:$0xff] %vm443_vm1, %v672_v1  ;;  %v1171_v6 = vrot.slane %v948_v4, 1  ;;  %v1173_v9 = vrot.slane %v950_v8, 1  ;;  %v709_v63 = vld [vmem:[%s9549_s24 + $0x2a0] sm:$0xff] }
  0xd0   : > { %806 = vst.msk [vmem:[#allocation2 + $0x231] sm:$0xff] %vm443_vm1, %v677_v10  ;;  %v958_v15 = vld [vmem:[#allocation2 + $0x190] ss:$2 sm:$0xff] }
  0xd1   : > { %v1172_v7 = vsel %vm1149_vm2, %v1170_v5, %v1171_v6  ;;  %v1174_v13 = vsel %vm1149_vm2, %v1171_v6, %v1173_v9  ;;  %807 = vst.msk [vmem:[#allocation2 + $0x239] sm:$0xff] %vm443_vm1, %v678_v11  ;;  %v1175_v17 = vrot.slane %v958_v15, 1  ;;  %v9789_v57 = vpop.f32.mrf.mxu1 }
  0xd2   : > { %8456 = vmatmul.msk.f32.gmra.mxu3 %vm443_vm1, %v1164_v50  ;;  %8359 = vmatmul.msk.f32.gmra.mxu0 %vm443_vm1, %v1164_v50  ;;  %v960_v16 = vld [vmem:[#allocation2 + $0x1a0] ss:$2 sm:$0xff]  ;;  %808 = vst.msk [vmem:[#allocation2 + $0x241] sm:$0xff] %vm443_vm1, %v679_v12  ;;  %v962_v20 = vld [vmem:[#allocation2 + $0x1b0] ss:$2 sm:$0x3] }
  0xd3   : > { %809 = vst.msk [vmem:[#allocation2 + $0x249] sm:$0xff] %vm443_vm1, %v680_v14  ;;  %v1176_v18 = vrot.slane %v960_v16, 1  ;;  %v1178_v21 = vrot.slane %v962_v20, 1 }
  0xd4   : > { %814 = vst.msk [vmem:[#allocation2 + $0x281] sm:$0xff] %vm443_vm1, %v685_v22  ;;  %v970_v27 = vld [vmem:[#allocation2 + $0x1e0] ss:$2 sm:$0xff]  ;;  %v720_v22 = vld [vmem:[%s9549_s24 + $0x2f8] sm:$0xff] }
  0xd5   : > { %8424 = vmatmul.msk.f32.gmra.mxu2 %vm443_vm1, %v934_v54  ;;  %8393 = vmatmul.msk.f32.gmra.mxu1 %vm443_vm1, %v934_v54  ;;  %v1177_v19 = vsel %vm1149_vm2, %v1175_v17, %v1176_v18  ;;  %v1179_v25 = vsel %vm1149_vm2, %v1176_v18, %v1178_v21  ;;  %815 = vst.msk [vmem:[#allocation2 + $0x289] sm:$0xff] %vm443_vm1, %v686_v23  ;;  %v1180_v29 = vrot.slane %v970_v27, 1  ;;  %v717_v18 = vld [vmem:[%s9549_s24 + $0x2e0] sm:$0xff]  ;;  %v719_v21 = vld [vmem:[%s9549_s24 + $0x2f0] sm:$0xff] }
  0xd6   : > { %v972_v28 = vld [vmem:[#allocation2 + $0x1f0] ss:$2 sm:$0xff]  ;;  %816 = vst.msk [vmem:[#allocation2 + $0x291] sm:$0xff] %vm443_vm1, %v687_v24  ;;  %v974_v32 = vld [vmem:[#allocation2 + $0x200] ss:$2 sm:$0x3] }
  0xd7   : > { %817 = vst.msk [vmem:[#allocation2 + $0x299] sm:$0xff] %vm443_vm1, %v688_v26  ;;  %v1181_v30 = vrot.slane %v972_v28, 1  ;;  %v1183_v33 = vrot.slane %v974_v32, 1 }
  0xd8   : > { %822 = vst.msk [vmem:[#allocation2 + $0x2d1] sm:$0xff] %vm443_vm1, %v693_v34  ;;  %v982_v39 = vld [vmem:[#allocation2 + $0x230] ss:$2 sm:$0xff] }
  0xd9   : > { %v1182_v31 = vsel %vm1149_vm2, %v1180_v29, %v1181_v30  ;;  %v1184_v37 = vsel %vm1149_vm2, %v1181_v30, %v1183_v33  ;;  %823 = vst.msk [vmem:[#allocation2 + $0x2d9] sm:$0xff] %vm443_vm1, %v694_v35  ;;  %v1185_v41 = vrot.slane %v982_v39, 1 }
  0xda   : > { %8457 = vmatmul.msk.f32.gmra.mxu3 %vm443_vm1, %v1167_v58  ;;  %8360 = vmatmul.msk.f32.gmra.mxu0 %vm443_vm1, %v1167_v58  ;;  %v984_v40 = vld [vmem:[#allocation2 + $0x240] ss:$2 sm:$0xff]  ;;  %824 = vst.msk [vmem:[#allocation2 + $0x2e1] sm:$0xff] %vm443_vm1, %v695_v36  ;;  %v986_v44 = vld [vmem:[#allocation2 + $0x250] ss:$2 sm:$0x3] }
  0xdb   : > { %825 = vst.msk [vmem:[#allocation2 + $0x2e9] sm:$0xff] %vm443_vm1, %v696_v38  ;;  %v1186_v42 = vrot.slane %v984_v40, 1  ;;  %v1188_v46 = vrot.slane %v986_v44, 1  ;;  %v727_v44 = vld [vmem:[%s9549_s24 + $0x330] sm:$0xff] }
  0xdc   : > { %830 = vst.msk [vmem:[#allocation2 + $0x321] sm:$0xff] %vm443_vm1, %v701_v47  ;;  %v994_v53 = vld [vmem:[#allocation2 + $0x280] ss:$2 sm:$0xff] }
  0xdd   : > { %8425 = vmatmul.msk.f32.gmra.mxu2 %vm443_vm1, %v936_v55  ;;  %8394 = vmatmul.msk.f32.gmra.mxu1 %vm443_vm1, %v936_v55  ;;  %v1187_v43 = vsel %vm1149_vm2, %v1185_v41, %v1186_v42  ;;  %v1189_v50 = vsel %vm1149_vm2, %v1186_v42, %v1188_v46  ;;  %831 = vst.msk [vmem:[#allocation2 + $0x329] sm:$0xff] %vm443_vm1, %v702_v48  ;;  %v1190_v55 = vrot.slane %v994_v53, 1  ;;  %v726_v41 = vld [vmem:[%s9549_s24 + $0x328] sm:$0xff]  ;;  %v728_v46 = vld [vmem:[%s9549_s24 + $0x338] sm:$0xff] }
  0xde   : > { %v996_v54 = vld [vmem:[#allocation2 + $0x290] ss:$2 sm:$0xff]  ;;  %832 = vst.msk [vmem:[#allocation2 + $0x331] sm:$0xff] %vm443_vm1, %v703_v49  ;;  %v998_v59 = vld [vmem:[#allocation2 + $0x2a0] ss:$2 sm:$0x3] }
  0xdf   : > { %833 = vst.msk [vmem:[#allocation2 + $0x339] sm:$0xff] %vm443_vm1, %v704_v52  ;;  %v1191_v56 = vrot.slane %v996_v54, 1  ;;  %v1193_v61 = vrot.slane %v998_v59, 1 }
  0xe0   : > { %838 = vst.msk [vmem:[#allocation2 + $0x371] sm:$0xff] %vm443_vm1, %v709_v63  ;;  %v1006_v5 = vld [vmem:[#allocation2 + $0x2d0] ss:$2 sm:$0xff] }
  0xe1   : > { %v1192_v58 = vsel %vm1149_vm2, %v1190_v55, %v1191_v56  ;;  %v1194_v1 = vsel %vm1149_vm2, %v1191_v56, %v1193_v61  ;;  %846 = vst.msk [vmem:[#allocation2 + $0x3c1] sm:$0xff] %vm443_vm1, %v717_v18 }
  0xe2   : > { %8458 = vmatmul.msk.f32.gmra.mxu3 %vm443_vm1, %v1169_v0  ;;  %8361 = vmatmul.msk.f32.gmra.mxu0 %vm443_vm1, %v1169_v0  ;;  %v710_v0 = vld [vmem:[%s9549_s24 + $0x2a8] sm:$0xff]  ;;  %v1010_v12 = vld [vmem:[#allocation2 + $0x2f0] ss:$2 sm:$0x3]  ;;  %848 = vst.msk [vmem:[#allocation2 + $0x3d1] sm:$0xff] %vm443_vm1, %v719_v21 }
  0xe3   : > { %v1008_v6 = vld [vmem:[#allocation2 + $0x2e0] ss:$2 sm:$0xff]  ;;  %839 = vst.msk [vmem:[#allocation2 + $0x379] sm:$0xff] %vm443_vm1, %v710_v0 }
  0xe4   : > { %v1196_v8 = vrot.slane %v1008_v6, 1  ;;  %v1018_v23 = vld [vmem:[#allocation2 + $0x320] ss:$2 sm:$0xff]  ;;  %849 = vst.msk [vmem:[#allocation2 + $0x3d9] sm:$0xff] %vm443_vm1, %v720_v22 }
  0xe5   : > { %8426 = vmatmul.msk.f32.gmra.mxu2 %vm443_vm1, %v946_v3  ;;  %8395 = vmatmul.msk.f32.gmra.mxu1 %vm443_vm1, %v946_v3  ;;  %v711_v3 = vld [vmem:[%s9549_s24 + $0x2b0] sm:$0xff]  ;;  %855 = vst.msk [vmem:[#allocation2 + $0x419] sm:$0xff] %vm443_vm1, %v726_v41 }
  0xe6   : > { %840 = vst.msk [vmem:[#allocation2 + $0x381] sm:$0xff] %vm443_vm1, %v711_v3  ;;  %v1020_v24 = vld [vmem:[#allocation2 + $0x330] ss:$2 sm:$0xff]  ;;  %v1022_v33 = vld [vmem:[#allocation2 + $0x340] ss:$2 sm:$0x3] }
  0xe7   : > { %v1203_v36 = vrot.slane %v1022_v33, 1  ;;  %856 = vst.msk [vmem:[#allocation2 + $0x421] sm:$0xff] %vm443_vm1, %v727_v44 }
  0xe8   : > { %857 = vst.msk [vmem:[#allocation2 + $0x429] sm:$0xff] %vm443_vm1, %v728_v46 }
  0xe9   : > { %4836 = vst.msk [vmem:[#allocation3 + $0x18] sm:$0xff] %vm4831_vm4, %v12235_v2 }
  0xea   : > { %8459 = vmatmul.msk.f32.gmra.mxu3 %vm443_vm1, %v1172_v7  ;;  %8362 = vmatmul.msk.f32.gmra.mxu0 %vm443_vm1, %v1172_v7  ;;  %v1195_v7 = vrot.slane %v1006_v5, 1  ;;  %v1030_v48 = vld [vmem:[#allocation2 + $0x370] ss:$2 sm:$0xff]  ;;  %4837 = vst.msk [vmem:[#allocation3 + $0x20] sm:$0xff] %vm4831_vm4, %v12235_v2 }
  0xeb   : > { %4832 = vst.msk [vmem:[#allocation3] sm:$0xff] %vm4831_vm4, %v12235_v2 }
  0xec   : > { %v1197_v11 = vsel %vm1149_vm2, %v1195_v7, %v1196_v8  ;;  %v733_v7 = vld [vmem:[%s9549_s24 + $0x360] sm:$0xff]  ;;  %4833 = vst.msk [vmem:[#allocation3 + $0x8] sm:$0xff] %vm4831_vm4, %v12235_v2 }
  0xed   : > { %8427 = vmatmul.msk.f32.gmra.mxu2 %vm443_vm1, %v948_v4  ;;  %8396 = vmatmul.msk.f32.gmra.mxu1 %vm443_vm1, %v948_v4  ;;  %v712_v4 = vld [vmem:[%s9549_s24 + $0x2b8] sm:$0xff]  ;;  %862 = vst.msk [vmem:[#allocation2 + $0x461] sm:$0xff] %vm443_vm1, %v733_v7  ;;  %v749_v7 = vld [vmem:[%s9549_s24 + $0x3e0] sm:$0xff] }
  0xee   : > { %841 = vst.msk [vmem:[#allocation2 + $0x389] sm:$0xff] %vm443_vm1, %v712_v4 }
  0xef   : > { %878 = vst.msk [vmem:[#allocation2 + $0x501] sm:$0xff] %vm443_vm1, %v749_v7 }
  0xf0   : > { %4839 = vst.msk [vmem:[#allocation3 + $0x30] sm:$0xff] %vm4831_vm4, %v12235_v2 }
  0xf1   : > { %4840 = vst.msk [vmem:[#allocation3 + $0x38] sm:$0xff] %vm4831_vm4, %v12235_v2 }
  0xf2   : > { %8460 = vmatmul.msk.f32.gmra.mxu3 %vm443_vm1, %v1174_v13  ;;  %8363 = vmatmul.msk.f32.gmra.mxu0 %vm443_vm1, %v1174_v13  ;;  %4842 = vst.msk [vmem:[#allocation3 + $0x48] sm:$0xff] %vm4831_vm4, %v12235_v2 }
  0xf3   : > { %4843 = vst.msk [vmem:[#allocation3 + $0x50] sm:$0xff] %vm4831_vm4, %v12235_v2 }
  0xf4   : > { %4845 = vst.msk [vmem:[#allocation3 + $0x60] sm:$0xff] %vm4831_vm4, %v12235_v2 }
  0xf5   : > { %8428 = vmatmul.msk.f32.gmra.mxu2 %vm443_vm1, %v958_v15  ;;  %8397 = vmatmul.msk.f32.gmra.mxu1 %vm443_vm1, %v958_v15  ;;  %v1198_v15 = vrot.slane %v1010_v12, 1  ;;  %v1032_v49 = vld [vmem:[#allocation2 + $0x380] ss:$2 sm:$0xff]  ;;  %v1034_v63 = vld [vmem:[#allocation2 + $0x390] ss:$2 sm:$0x3] }
  0xf6   : > { %v1208_v3 = vrot.slane %v1034_v63, 1  ;;  %v735_v12 = vld [vmem:[%s9549_s24 + $0x370] sm:$0xff]  ;;  %4846 = vst.msk [vmem:[#allocation3 + $0x68] sm:$0xff] %vm4831_vm4, %v12235_v2 }
  0xf7   : > { %v1199_v20 = vsel %vm1149_vm2, %v1196_v8, %v1198_v15  ;;  %v734_v8 = vld [vmem:[%s9549_s24 + $0x368] sm:$0xff]  ;;  %864 = vst.msk [vmem:[#allocation2 + $0x471] sm:$0xff] %vm443_vm1, %v735_v12  ;;  %v751_v12 = vld [vmem:[%s9549_s24 + $0x3f0] sm:$0xff] }
  0xf8   : > { %863 = vst.msk [vmem:[#allocation2 + $0x469] sm:$0xff] %vm443_vm1, %v734_v8  ;;  %v750_v8 = vld [vmem:[%s9549_s24 + $0x3e8] sm:$0xff] }
  0xf9   : > { %879 = vst.msk [vmem:[#allocation2 + $0x509] sm:$0xff] %vm443_vm1, %v750_v8 }
  0xfa   : > { %8461 = vmatmul.msk.f32.gmra.mxu3 %vm443_vm1, %v1177_v19  ;;  %8364 = vmatmul.msk.f32.gmra.mxu0 %vm443_vm1, %v1177_v19  ;;  %v718_v19 = vld [vmem:[%s9549_s24 + $0x2e8] sm:$0xff]  ;;  %880 = vst.msk [vmem:[#allocation2 + $0x511] sm:$0xff] %vm443_vm1, %v751_v12 }
  0xfb   : > { %847 = vst.msk [vmem:[#allocation2 + $0x3c9] sm:$0xff] %vm443_vm1, %v718_v19 }
  0xfc   : > { %4848 = vst.msk [vmem:[#allocation3 + $0x78] sm:$0xff] %vm4831_vm4, %v12235_v2 }
  0xfd   : > { %8429 = vmatmul.msk.f32.gmra.mxu2 %vm443_vm1, %v960_v16  ;;  %8398 = vmatmul.msk.f32.gmra.mxu1 %vm443_vm1, %v960_v16  ;;  %4849 = vst.msk [vmem:[#allocation3 + $0x80] sm:$0xff] %vm4831_vm4, %v12235_v2 }
  0xfe   : > { %4851 = vst.msk [vmem:[#allocation3 + $0x90] sm:$0xff] %vm4831_vm4, %v12235_v2 }
  0xff   : > { %4852 = vst.msk [vmem:[#allocation3 + $0x98] sm:$0xff] %vm4831_vm4, %v12235_v2 }
 0x100   : > { %4854 = vst.msk [vmem:[#allocation3 + $0xa8] sm:$0xff] %vm4831_vm4, %v12235_v2 }
 0x101   : > { %4855 = vst.msk [vmem:[#allocation3 + $0xb0] sm:$0xff] %vm4831_vm4, %v12235_v2 }
 0x102   : > { %8462 = vmatmul.msk.f32.gmra.mxu3 %vm443_vm1, %v1179_v25  ;;  %8365 = vmatmul.msk.f32.gmra.mxu0 %vm443_vm1, %v1179_v25  ;;  %v1044_v18 = vld [vmem:[#allocation2 + $0x3d0] ss:$2 sm:$0xff]  ;;  %4857 = vst.msk [vmem:[#allocation3 + $0xc0] sm:$0xff] %vm4831_vm4, %v12235_v2 }
 0x103   : > { %v1211_v22 = vrot.slane %v1044_v18, 1  ;;  %4858 = vst.msk [vmem:[#allocation3 + $0xc8] sm:$0xff] %vm4831_vm4, %v12235_v2 }
 0x104   : > { %4860 = vst.msk [vmem:[#allocation3 + $0xd8] sm:$0xff] %vm4831_vm4, %v12235_v2 }
 0x105   : > { %8430 = vmatmul.msk.f32.gmra.mxu2 %vm443_vm1, %v970_v27  ;;  %8399 = vmatmul.msk.f32.gmra.mxu1 %vm443_vm1, %v970_v27  ;;  %v1200_v27 = vrot.slane %v1018_v23, 1  ;;  %4861 = vst.msk [vmem:[#allocation3 + $0xe0] sm:$0xff] %vm4831_vm4, %v12235_v2 }
 0x106   : > { %4863 = vst.msk [vmem:[#allocation3 + $0xf0] sm:$0xff] %vm4831_vm4, %v12235_v2 }
 0x107   : > { %4864 = vst.msk [vmem:[#allocation3 + $0xf8] sm:$0xff] %vm4831_vm4, %v12235_v2 }
 0x108   : > { %4866 = vst.msk [vmem:[#allocation3 + $0x108] sm:$0xff] %vm4831_vm4, %v12235_v2 }
 0x109   : > { %4867 = vst.msk [vmem:[#allocation3 + $0x110] sm:$0xff] %vm4831_vm4, %v12235_v2 }
 0x10a   : > { %8463 = vmatmul.msk.f32.gmra.mxu3 %vm443_vm1, %v1182_v31  ;;  %8366 = vmatmul.msk.f32.gmra.mxu0 %vm443_vm1, %v1182_v31  ;;  %4869 = vst.msk [vmem:[#allocation3 + $0x120] sm:$0xff] %vm4831_vm4, %v12235_v2 }
 0x10b   : > { %4870 = vst.msk [vmem:[#allocation3 + $0x128] sm:$0xff] %vm4831_vm4, %v12235_v2 }
 0x10c   : > { %4872 = vst.msk [vmem:[#allocation3 + $0x138] sm:$0xff] %vm4831_vm4, %v12235_v2 }
 0x10d   : > { %8431 = vmatmul.msk.f32.gmra.mxu2 %vm443_vm1, %v972_v28  ;;  %8400 = vmatmul.msk.f32.gmra.mxu1 %vm443_vm1, %v972_v28  ;;  %v1201_v28 = vrot.slane %v1020_v24, 1  ;;  %4873 = vst.msk [vmem:[#allocation3 + $0x140] sm:$0xff] %vm4831_vm4, %v12235_v2 }
 0x10e   : > { %4875 = vst.msk [vmem:[#allocation3 + $0x150] sm:$0xff] %vm4831_vm4, %v12235_v2 }
 0x10f   : > { %v1202_v30 = vsel %vm1149_vm2, %v1200_v27, %v1201_v28  ;;  %v1204_v42 = vsel %vm1149_vm2, %v1201_v28, %v1203_v36  ;;  %4876 = vst.msk [vmem:[#allocation3 + $0x158] sm:$0xff] %vm4831_vm4, %v12235_v2 }
 0x110   : > { %4878 = vst.msk [vmem:[#allocation3 + $0x168] sm:$0xff] %vm4831_vm4, %v12235_v2 }
 0x111   : > { %4879 = vst.msk [vmem:[#allocation3 + $0x170] sm:$0xff] %vm4831_vm4, %v12235_v2 }
 0x112   : > { %8464 = vmatmul.msk.f32.gmra.mxu3 %vm443_vm1, %v1184_v37  ;;  %8367 = vmatmul.msk.f32.gmra.mxu0 %vm443_vm1, %v1184_v37  ;;  %4881 = vst.msk [vmem:[#allocation3 + $0x180] sm:$0xff] %vm4831_vm4, %v12235_v2 }
 0x113   : > { %4882 = vst.msk [vmem:[#allocation3 + $0x188] sm:$0xff] %vm4831_vm4, %v12235_v2 }
 0x114   : > { %4884 = vst.msk [vmem:[#allocation3 + $0x198] sm:$0xff] %vm4831_vm4, %v12235_v2 }
 0x115   : > { %8432 = vmatmul.msk.f32.gmra.mxu2 %vm443_vm1, %v982_v39  ;;  %8401 = vmatmul.msk.f32.gmra.mxu1 %vm443_vm1, %v982_v39  ;;  %4885 = vst.msk [vmem:[#allocation3 + $0x1a0] sm:$0xff] %vm4831_vm4, %v12235_v2 }
 0x116   : > { %4838 = vst.msk [vmem:[#allocation3 + $0x28] sm:$0xf] %vm4834_vm7, %v12235_v2 }
 0x117   : > { %4835 = vst.msk [vmem:[#allocation3 + $0x10] sm:$0xf] %vm4834_vm7, %v12235_v2 }
 0x118   : > { %4841 = vst.msk [vmem:[#allocation3 + $0x40] sm:$0xf] %vm4834_vm7, %v12235_v2 }
 0x119   : > { %4844 = vst.msk [vmem:[#allocation3 + $0x58] sm:$0xf] %vm4834_vm7, %v12235_v2 }
 0x11a   : > { %8465 = vmatmul.msk.f32.gmra.mxu3 %vm443_vm1, %v1187_v43  ;;  %8368 = vmatmul.msk.f32.gmra.mxu0 %vm443_vm1, %v1187_v43  ;;  %4847 = vst.msk [vmem:[#allocation3 + $0x70] sm:$0xf] %vm4834_vm7, %v12235_v2 }
 0x11b   : > { %4850 = vst.msk [vmem:[#allocation3 + $0x88] sm:$0xf] %vm4834_vm7, %v12235_v2 }
 0x11c   : > { %v1501_v62 = vpop.f32.mrf.mxu1  ;;  %4853 = vst.msk [vmem:[#allocation3 + $0xa0] sm:$0xf] %vm4834_vm7, %v12235_v2 }
 0x11d   : > { %8433 = vmatmul.msk.f32.gmra.mxu2 %vm443_vm1, %v984_v40  ;;  %8402 = vmatmul.msk.f32.gmra.mxu1 %vm443_vm1, %v984_v40  ;;  %v725_v40 = vld [vmem:[%s9549_s24 + $0x320] sm:$0xff]  ;;  %4856 = vst.msk [vmem:[#allocation3 + $0xb8] sm:$0xf] %vm4834_vm7, %v12235_v2 }
 0x11e   : > { %854 = vst.msk [vmem:[#allocation2 + $0x411] sm:$0xff] %vm443_vm1, %v725_v40 }
 0x11f   : > { %4859 = vst.msk [vmem:[#allocation3 + $0xd0] sm:$0xf] %vm4834_vm7, %v12235_v2 }
 0x120   : > { %4862 = vst.msk [vmem:[#allocation3 + $0xe8] sm:$0xf] %vm4834_vm7, %v12235_v2 }
 0x121   : > { %4865 = vst.msk [vmem:[#allocation3 + $0x100] sm:$0xf] %vm4834_vm7, %v12235_v2 }
 0x122   : > { %8466 = vmatmul.msk.f32.gmra.mxu3 %vm443_vm1, %v1189_v50  ;;  %8369 = vmatmul.msk.f32.gmra.mxu0 %vm443_vm1, %v1189_v50  ;;  %v9811_v10 = vpop.f32.mrf.mxu2  ;;  %4868 = vst.msk [vmem:[#allocation3 + $0x118] sm:$0xf] %vm4834_vm7, %v12235_v2 }
 0x123   : > { %v9794_v60 = vpop.f32.mrf.mxu0  ;;  %4871 = vst.msk [vmem:[#allocation3 + $0x130] sm:$0xf] %vm4834_vm7, %v12235_v2 }
 0x124   : > { %v1504_v13 = vpop.f32.mrf.mxu1  ;;  %4874 = vst.msk [vmem:[#allocation3 + $0x148] sm:$0xf] %vm4834_vm7, %v12235_v2 }
 0x125   : > { %8434 = vmatmul.msk.f32.gmra.mxu2 %vm443_vm1, %v994_v53  ;;  %8403 = vmatmul.msk.f32.gmra.mxu1 %vm443_vm1, %v994_v53  ;;  %v1205_v53 = vrot.slane %v1030_v48, 1  ;;  %v1054_v46 = vld [vmem:[#allocation2 + $0x410] ss:$2 sm:$0xff]  ;;  %4877 = vst.msk [vmem:[#allocation3 + $0x160] sm:$0xf] %vm4834_vm7, %v12235_v2 }
 0x126   : > { %4880 = vst.msk [vmem:[#allocation3 + $0x178] sm:$0xf] %vm4834_vm7, %v12235_v2 }
 0x127   : > { %4883 = vst.msk [vmem:[#allocation3 + $0x190] sm:$0xf] %vm4834_vm7, %v12235_v2 }
 0x128   : > { %v9816_v14 = vpop.f32.mrf.mxu3  ;;  %4886 = vst.msk [vmem:[#allocation3 + $0x1a8] sm:$0xf] %vm4834_vm7, %v12235_v2 }
 0x12a   : > { %8467 = vmatmul.msk.f32.gmra.mxu3 %vm443_vm1, %v1192_v58  ;;  %8370 = vmatmul.msk.f32.gmra.mxu0 %vm443_vm1, %v1192_v58  ;;  %v9822_v17 = vpop.f32.mrf.mxu2 }
 0x12b   : > { %v1321_v9 = vpop.f32.mrf.mxu0 }
 0x12c   : > { %v1502_v29 = vadd.f32 %v1501_v62, %v1321_v9 }
 0x12d   : > { %8435 = vmatmul.msk.f32.gmra.mxu2 %vm443_vm1, %v996_v54  ;;  %8404 = vmatmul.msk.f32.gmra.mxu1 %vm443_vm1, %v996_v54  ;;  %v1206_v54 = vrot.slane %v1032_v49, 1 }
 0x12f   : > { %v1207_v59 = vsel %vm1149_vm2, %v1205_v53, %v1206_v54  ;;  %v1209_v9 = vsel %vm1149_vm2, %v1206_v54, %v1208_v3 }
 0x130   : > { %v9835_v26 = vpop.f32.mrf.mxu3 }
 0x132   : > { %8468 = vmatmul.msk.f32.gmra.mxu3 %vm443_vm1, %v1194_v1  ;;  %8371 = vmatmul.msk.f32.gmra.mxu0 %vm443_vm1, %v1194_v1 }
 0x133   : > { %v1324_v16 = vpop.f32.mrf.mxu0 }
 0x134   : > { %v1505_v38 = vadd.f32 %v1504_v13, %v1324_v16  ;;  %v736_v13 = vld [vmem:[%s9549_s24 + $0x378] sm:$0xff]  ;;  %v1042_v16 = vld [vmem:[#allocation2 + $0x3c0] ss:$2 sm:$0xff] }
 0x135   : > { %8436 = vmatmul.msk.f32.gmra.mxu2 %vm443_vm1, %v1006_v5  ;;  %8405 = vmatmul.msk.f32.gmra.mxu1 %vm443_vm1, %v1006_v5  ;;  %865 = vst.msk [vmem:[#allocation2 + $0x479] sm:$0xff] %vm443_vm1, %v736_v13  ;;  %v1210_v21 = vrot.slane %v1042_v16, 1  ;;  %v752_v13 = vld [vmem:[%s9549_s24 + $0x3f8] sm:$0xff] }
 0x136   : > { %881 = vst.msk [vmem:[#allocation2 + $0x519] sm:$0xff] %vm443_vm1, %v752_v13 }
 0x137   : > { %v1212_v27 = vsel %vm1149_vm2, %v1210_v21, %v1211_v22 }
 0x13a   : > { %8469 = vmatmul.msk.f32.gmra.mxu3 %vm443_vm1, %v1197_v11  ;;  %8372 = vmatmul.msk.f32.gmra.mxu0 %vm443_vm1, %v1197_v11 }
 0x13d   : > { %8437 = vmatmul.msk.f32.gmra.mxu2 %vm443_vm1, %v1008_v6  ;;  %8406 = vmatmul.msk.f32.gmra.mxu1 %vm443_vm1, %v1008_v6 }
 0x142   : > { %8470 = vmatmul.msk.f32.gmra.mxu3 %vm443_vm1, %v1199_v20  ;;  %8373 = vmatmul.msk.f32.gmra.mxu0 %vm443_vm1, %v1199_v20  ;;  %v1507_v25 = vpop.f32.mrf.mxu1 }
 0x145   : > { %8438 = vmatmul.msk.f32.gmra.mxu2 %vm443_vm1, %v1018_v23  ;;  %8407 = vmatmul.msk.f32.gmra.mxu1 %vm443_vm1, %v1018_v23 }
 0x147   : > { %v1327_v31 = vpop.f32.mrf.mxu0 }
 0x148   : > { %v1623_v32 = vpop.f32.mrf.mxu2  ;;  %v1508_v55 = vadd.f32 %v1507_v25, %v1327_v31 }
 0x149   : > { %v1715_v34 = vadd.f32 %v1623_v32, %v1502_v29 }
 0x14a   : > { %8471 = vmatmul.msk.f32.gmra.mxu3 %vm443_vm1, %v1202_v30  ;;  %8374 = vmatmul.msk.f32.gmra.mxu0 %vm443_vm1, %v1202_v30  ;;  %v1510_v35 = vpop.f32.mrf.mxu1  ;;  %v1046_v30 = vld [vmem:[#allocation2 + $0x3e0] ss:$2 sm:$0x3] }
 0x14b   : > { %v1213_v33 = vrot.slane %v1046_v30, 1 }
 0x14d   : > { %v1781_v37 = vpop.f32.mrf.mxu3  ;;  %8439 = vmatmul.msk.f32.gmra.mxu2 %vm443_vm1, %v1020_v24  ;;  %8408 = vmatmul.msk.f32.gmra.mxu1 %vm443_vm1, %v1020_v24  ;;  %v1214_v40 = vsel %vm1149_vm2, %v1211_v22, %v1213_v33 }
 0x14e   : > { %v9844_v39 = vadd.f32 %v1781_v37, %v1715_v34  ;;  %v741_v37 = vld [vmem:[%s9549_s24 + $0x3a0] sm:$0xff] }
 0x14f   : > { %v1330_v43 = vpop.f32.mrf.mxu0  ;;  %870 = vst.msk [vmem:[#allocation2 + $0x4b1] sm:$0xff] %vm443_vm1, %v741_v37 }
 0x150   : > { %v1626_v47 = vpop.f32.mrf.mxu2  ;;  %v1511_v4 = vadd.f32 %v1510_v35, %v1330_v43  ;;  %v744_v43 = vld [vmem:[%s9549_s24 + $0x3b8] sm:$0xff] }
 0x151   : > { %v1716_v50 = vadd.f32 %v1626_v47, %v1505_v38  ;;  %v742_v38 = vld [vmem:[%s9549_s24 + $0x3a8] sm:$0xff]  ;;  %873 = vst.msk [vmem:[#allocation2 + $0x4c9] sm:$0xff] %vm443_vm1, %v744_v43 }
 0x152   : > { %8472 = vmatmul.msk.f32.gmra.mxu3 %vm443_vm1, %v1204_v42  ;;  %8375 = vmatmul.msk.f32.gmra.mxu0 %vm443_vm1, %v1204_v42  ;;  %v1513_v52 = vpop.f32.mrf.mxu1  ;;  %v743_v42 = vld [vmem:[%s9549_s24 + $0x3b0] sm:$0xff]  ;;  %871 = vst.msk [vmem:[#allocation2 + $0x4b9] sm:$0xff] %vm443_vm1, %v742_v38 }
 0x153   : > { %v1056_v47 = vld [vmem:[#allocation2 + $0x420] ss:$2 sm:$0xff]  ;;  %872 = vst.msk [vmem:[#allocation2 + $0x4c1] sm:$0xff] %vm443_vm1, %v743_v42 }
 0x155   : > { %v1784_v56 = vpop.f32.mrf.mxu3  ;;  %8440 = vmatmul.msk.f32.gmra.mxu2 %vm443_vm1, %v1030_v48  ;;  %8409 = vmatmul.msk.f32.gmra.mxu1 %vm443_vm1, %v1030_v48 }
 0x156   : > { %v9859_v58 = vadd.f32 %v1784_v56, %v1716_v50  ;;  %v1215_v50 = vrot.slane %v1054_v46, 1 }
 0x157   : > { %v1333_v61 = vpop.f32.mrf.mxu0 }
 0x158   : > { %v1629_v62 = vpop.f32.mrf.mxu2  ;;  %v1514_v23 = vadd.f32 %v1513_v52, %v1333_v61  ;;  %v1216_v52 = vrot.slane %v1056_v47, 1  ;;  %v1082_v8 = vld [vmem:[#allocation2 + $0x4d0] ss:$2 sm:$0x3] }
 0x159   : > { %v1717_v0 = vadd.f32 %v1629_v62, %v1508_v55  ;;  %v1058_v62 = vld [vmem:[#allocation2 + $0x430] ss:$2 sm:$0x3]  ;;  %v1228_v12 = vrot.slane %v1082_v8, 1 }
 0x15a   : > { %8473 = vmatmul.msk.f32.gmra.mxu3 %vm443_vm1, %v1207_v59  ;;  %8376 = vmatmul.msk.f32.gmra.mxu0 %vm443_vm1, %v1207_v59  ;;  %v1516_v1 = vpop.f32.mrf.mxu1  ;;  %v1217_v56 = vsel %vm1149_vm2, %v1215_v50, %v1216_v52  ;;  %v636_v50 = vld [vmem:[%s9549_s24 + $0x58] sm:$0xff] }
 0x15b   : > { %765 = vst.msk [vmem:[#allocation2 + $0x91] sm:$0xff] %vm443_vm1, %v636_v50 }
 0x15d   : > { %v1787_v5 = vpop.f32.mrf.mxu3  ;;  %8441 = vmatmul.msk.f32.gmra.mxu2 %vm443_vm1, %v1032_v49  ;;  %8410 = vmatmul.msk.f32.gmra.mxu1 %vm443_vm1, %v1032_v49 }
 0x15e   : > { %v9866_v6 = vadd.f32 %v1787_v5, %v1717_v0 }
 0x15f   : > { %v1336_v11 = vpop.f32.mrf.mxu0 }
 0x160   : > { %v1632_v15 = vpop.f32.mrf.mxu2  ;;  %v1517_v34 = vadd.f32 %v1516_v1, %v1336_v11  ;;  %v1218_v1 = vrot.slane %v1058_v62, 1 }
 0x161   : > { %v1718_v19 = vadd.f32 %v1632_v15, %v1511_v4 }
 0x162   : > { %8474 = vmatmul.msk.f32.gmra.mxu3 %vm443_vm1, %v1209_v9  ;;  %8377 = vmatmul.msk.f32.gmra.mxu0 %vm443_vm1, %v1209_v9  ;;  %v1519_v20 = vpop.f32.mrf.mxu1  ;;  %v1219_v9 = vsel %vm1149_vm2, %v1216_v52, %v1218_v1 }
 0x165   : > { %v1790_v24 = vpop.f32.mrf.mxu3  ;;  %8442 = vmatmul.msk.f32.gmra.mxu2 %vm443_vm1, %v1042_v16  ;;  %8411 = vmatmul.msk.f32.gmra.mxu1 %vm443_vm1, %v1042_v16  ;;  %v1066_v16 = vld [vmem:[#allocation2 + $0x460] ss:$2 sm:$0xff] }
 0x166   : > { %v9881_v25 = vadd.f32 %v1790_v24, %v1718_v19  ;;  %v1220_v21 = vrot.slane %v1066_v16, 1 }
 0x167   : > { %v1339_v28 = vpop.f32.mrf.mxu0 }
 0x168   : > { %v1635_v29 = vpop.f32.mrf.mxu2  ;;  %v1520_v53 = vadd.f32 %v1519_v20, %v1339_v28  ;;  %v626_v28 = vld [vmem:[%s9549_s24 + $0x8] sm:$0xff] }
 0x169   : > { %v1719_v31 = vadd.f32 %v1635_v29, %v1514_v23  ;;  %v627_v29 = vld [vmem:[%s9549_s24 + $0x10] sm:$0xff]  ;;  %755 = vst.msk [vmem:[#allocation2 + $0x31] sm:$0xff] %vm443_vm1, %v626_v28  ;;  %v641_v28 = vld [vmem:[%s9549_s24 + $0x80] sm:$0xff] }
 0x16a   : > { %8475 = vmatmul.msk.f32.gmra.mxu3 %vm443_vm1, %v1212_v27  ;;  %8378 = vmatmul.msk.f32.gmra.mxu0 %vm443_vm1, %v1212_v27  ;;  %v1522_v32 = vpop.f32.mrf.mxu1  ;;  %v625_v27 = vld [vmem:[%s9549_s24] sm:$0xff]  ;;  %756 = vst.msk [vmem:[#allocation2 + $0x39] sm:$0xff] %vm443_vm1, %v627_v29  ;;  %v642_v29 = vld [vmem:[%s9549_s24 + $0x88] sm:$0xff] }
 0x16b   : > { %754 = vst.msk [vmem:[#allocation2 + $0x29] sm:$0xff] %vm443_vm1, %v625_v27 }
 0x16c   : > { %770 = vst.msk [vmem:[#allocation2 + $0xc9] sm:$0xff] %vm443_vm1, %v641_v28 }
 0x16d   : > { %v1793_v35 = vpop.f32.mrf.mxu3  ;;  %8443 = vmatmul.msk.f32.gmra.mxu2 %vm443_vm1, %v1044_v18  ;;  %8412 = vmatmul.msk.f32.gmra.mxu1 %vm443_vm1, %v1044_v18  ;;  %v1068_v18 = vld [vmem:[#allocation2 + $0x470] ss:$2 sm:$0xff]  ;;  %771 = vst.msk [vmem:[#allocation2 + $0xd1] sm:$0xff] %vm443_vm1, %v642_v29 }
 0x16e   : > { %v9888_v36 = vadd.f32 %v1793_v35, %v1719_v31  ;;  %v1221_v22 = vrot.slane %v1068_v18, 1  ;;  %v628_v31 = vld [vmem:[%s9549_s24 + $0x18] sm:$0xff]  ;;  %v1070_v35 = vld [vmem:[#allocation2 + $0x480] ss:$2 sm:$0x3] }
 0x16f   : > { %v1342_v41 = vpop.f32.mrf.mxu0  ;;  %757 = vst.msk [vmem:[#allocation2 + $0x41] sm:$0xff] %vm443_vm1, %v628_v31 }
 0x170   : > { %v1638_v44 = vpop.f32.mrf.mxu2  ;;  %v1523_v3 = vadd.f32 %v1522_v32, %v1342_v41  ;;  %v1222_v32 = vsel %vm1149_vm2, %v1220_v21, %v1221_v22 }
 0x171   : > { %v1720_v48 = vadd.f32 %v1638_v44, %v1517_v34  ;;  %v633_v44 = vld [vmem:[%s9549_s24 + $0x40] sm:$0xff] }
 0x172   : > { %8476 = vmatmul.msk.f32.gmra.mxu3 %vm443_vm1, %v1214_v40  ;;  %8379 = vmatmul.msk.f32.gmra.mxu0 %vm443_vm1, %v1214_v40  ;;  %v1525_v49 = vpop.f32.mrf.mxu1  ;;  %v1223_v40 = vrot.slane %v1070_v35, 1  ;;  %762 = vst.msk [vmem:[#allocation2 + $0x79] sm:$0xff] %vm443_vm1, %v633_v44 }
 0x175   : > { %v1796_v54 = vpop.f32.mrf.mxu3  ;;  %8444 = vmatmul.msk.f32.gmra.mxu2 %vm443_vm1, %v1054_v46  ;;  %8413 = vmatmul.msk.f32.gmra.mxu1 %vm443_vm1, %v1054_v46  ;;  %v1224_v46 = vsel %vm1149_vm2, %v1221_v22, %v1223_v40 }
 0x176   : > { %v9903_v55 = vadd.f32 %v1796_v54, %v1720_v48  ;;  %v634_v48 = vld [vmem:[%s9549_s24 + $0x48] sm:$0xff] }
 0x177   : > { %v1345_v59 = vpop.f32.mrf.mxu0  ;;  %v1080_v54 = vld [vmem:[#allocation2 + $0x4c0] ss:$2 sm:$0xff]  ;;  %763 = vst.msk [vmem:[#allocation2 + $0x81] sm:$0xff] %vm443_vm1, %v634_v48 }
 0x178   : > { %v1641_v61 = vpop.f32.mrf.mxu2  ;;  %v1526_v23 = vadd.f32 %v1525_v49, %v1345_v59  ;;  %v635_v49 = vld [vmem:[%s9549_s24 + $0x50] sm:$0xff]  ;;  %v1226_v62 = vrot.slane %v1080_v54, 1 }
 0x179   : > { %v1721_v63 = vadd.f32 %v1641_v61, %v1520_v53  ;;  %v1078_v53 = vld [vmem:[#allocation2 + $0x4b0] ss:$2 sm:$0xff]  ;;  %764 = vst.msk [vmem:[#allocation2 + $0x89] sm:$0xff] %vm443_vm1, %v635_v49 }
 0x17a   : > { %8477 = vmatmul.msk.f32.gmra.mxu3 %vm443_vm1, %v1217_v56  ;;  %8380 = vmatmul.msk.f32.gmra.mxu0 %vm443_vm1, %v1217_v56  ;;  %v1528_v0 = vpop.f32.mrf.mxu1  ;;  %v1225_v61 = vrot.slane %v1078_v53, 1  ;;  %v1229_v31 = vsel %vm1149_vm2, %v1226_v62, %v1228_v12  ;;  %v650_v12 = vld [vmem:[%s9549_s24 + $0xc8] sm:$0xff] }
 0x17b   : > { %779 = vst.msk [vmem:[#allocation2 + $0x121] sm:$0xff] %vm443_vm1, %v650_v12 }
 0x17d   : > { %v1799_v4 = vpop.f32.mrf.mxu3  ;;  %8445 = vmatmul.msk.f32.gmra.mxu2 %vm443_vm1, %v1056_v47  ;;  %8414 = vmatmul.msk.f32.gmra.mxu1 %vm443_vm1, %v1056_v47 }
 0x17e   : > { %v9910_v5 = vadd.f32 %v1799_v4, %v1721_v63  ;;  %v1227_v4 = vsel %vm1149_vm2, %v1225_v61, %v1226_v62  ;;  %v1094_v61 = vld [vmem:[#allocation2 + $0x520] ss:$2 sm:$0x3] }
 0x17f   : > { %v1348_v11 = vpop.f32.mrf.mxu0 }
 0x180   : > { %v1644_v15 = vpop.f32.mrf.mxu2  ;;  %v1529_v41 = vadd.f32 %v1528_v0, %v1348_v11  ;;  %v918_v8 = vld [vmem:[#allocation2 + $0x88] ss:$2 sm:$0xff] }
 0x181   : > { %v1722_v19 = vadd.f32 %v1644_v15, %v1523_v3  ;;  %v891_v3 = vld [vmem:[%s12222_s1 + $0x24] sm:$0x7] }
 0x182   : > { %8478 = vmatmul.msk.f32.gmra.mxu3 %vm443_vm1, %v1219_v9  ;;  %8381 = vmatmul.msk.f32.gmra.mxu0 %vm443_vm1, %v1219_v9  ;;  %v1531_v20 = vpop.f32.mrf.mxu1  ;;  %v883_v15 = vld [vmem:[%s12222_s1 + $0x4] sm:$0x7] }
 0x183   : > { %8683 = vmatpush.msk.msra.mxu2 %vm1294_vm0, %v891_v3  ;;  %8617 = vmatpush.msk.msra.mxu0 %vm1294_vm0, %v883_v15 }
 0x185   : > { %v1802_v24 = vpop.f32.mrf.mxu3  ;;  %8446 = vmatmul.msk.f32.gmra.mxu2 %vm443_vm1, %v1066_v16  ;;  %8415 = vmatmul.msk.f32.gmra.mxu1 %vm443_vm1, %v1066_v16  ;;  %v893_v16 = vld [vmem:[%s12222_s1 + $0x2c] sm:$0x7] }
 0x186   : > { %v9928_v30 = vadd.f32 %v1802_v24, %v1722_v19  ;;  %v9970_v19 = vld [vmem:[#allocation2 + $0x38] ss:$2 sm:$0xff]  ;;  %8716 = vmatpush.msk.msra.mxu3 %vm1294_vm0, %v893_v16 }
 0x187   : > { %v1351_v33 = vpop.f32.mrf.mxu0  ;;  %v2164_v27 = vrot.slane %v9970_v19, 1 }
 0x188   : > { %v1647_v34 = vpop.f32.mrf.mxu2  ;;  %v1532_v63 = vadd.f32 %v1531_v20, %v1351_v33  ;;  %v885_v20 = vld [vmem:[%s12222_s1 + $0xc] sm:$0x7]  ;;  %v643_v33 = vld [vmem:[%s9549_s24 + $0x90] sm:$0xff] }
 0x189   : > { %v1723_v37 = vadd.f32 %v1647_v34, %v1526_v23  ;;  %8650 = vmatpush.msk.msra.mxu1 %vm1294_vm0, %v885_v20  ;;  %v644_v34 = vld [vmem:[%s9549_s24 + $0x98] sm:$0xff]  ;;  %772 = vst.msk [vmem:[#allocation2 + $0xd9] sm:$0xff] %vm443_vm1, %v643_v33 }
 0x18a   : > { %8479 = vmatmul.msk.f32.gmra.mxu3 %vm443_vm1, %v1222_v32  ;;  %8382 = vmatmul.msk.f32.gmra.mxu0 %vm443_vm1, %v1222_v32  ;;  %v1534_v38 = vpop.f32.mrf.mxu1  ;;  %773 = vst.msk [vmem:[#allocation2 + $0xe1] sm:$0xff] %vm443_vm1, %v644_v34  ;;  %v652_v20 = vld [vmem:[%s9549_s24 + $0xd8] sm:$0xff] }
 0x18b   : > { %781 = vst.msk [vmem:[#allocation2 + $0x131] sm:$0xff] %vm443_vm1, %v652_v20 }
 0x18d   : > { %v1805_v42 = vpop.f32.mrf.mxu3  ;;  %8447 = vmatmul.msk.f32.gmra.mxu2 %vm443_vm1, %v1068_v18  ;;  %8416 = vmatmul.msk.f32.gmra.mxu1 %vm443_vm1, %v1068_v18  ;;  %v904_v18 = vld [vmem:[#allocation2 + $0x28] ss:$2 sm:$0xff] }
 0x18e   : > { %v9940_v43 = vadd.f32 %v1805_v42, %v1723_v37  ;;  %v2163_v24 = vrot.slane %v904_v18, 1  ;;  %v1090_v37 = vld [vmem:[#allocation2 + $0x500] ss:$2 sm:$0xff] }
 0x18f   : > { %v1354_v47 = vpop.f32.mrf.mxu0  ;;  %v1746_v44 = vrot.slane %v1090_v37, 1 }
 0x190   : > { %v1650_v52 = vpop.f32.mrf.mxu2  ;;  %v1535_v21 = vadd.f32 %v1534_v38, %v1354_v47  ;;  %v1092_v38 = vld [vmem:[#allocation2 + $0x510] ss:$2 sm:$0xff]  ;;  %v2165_v42 = vsel %vm1149_vm2, %v2163_v24, %v2164_v27  ;;  %v908_v47 = vld [vmem:[#allocation2 + $0x48] ss:$2 sm:$0x3] }
 0x191   : > { %v1724_v56 = vadd.f32 %v1650_v52, %v1529_v41  ;;  %v2166_v52 = vrot.slane %v908_v47, 1 }
 0x192   : > { %8480 = vmatmul.msk.f32.gmra.mxu3 %vm443_vm1, %v1224_v46  ;;  %8383 = vmatmul.msk.f32.gmra.mxu0 %vm443_vm1, %v1224_v46  ;;  %v1537_v59 = vpop.f32.mrf.mxu1  ;;  %v1747_v46 = vrot.slane %v1092_v38, 1 }
 0x195   : > { %v1808_v0 = vpop.f32.mrf.mxu3  ;;  %8448 = vmatmul.msk.f32.gmra.mxu2 %vm443_vm1, %v1078_v53  ;;  %8417 = vmatmul.msk.f32.gmra.mxu1 %vm443_vm1, %v1078_v53  ;;  %v1748_v53 = vsel %vm1149_vm2, %v1746_v44, %v1747_v46  ;;  %v928_v44 = vld [vmem:[#allocation2 + $0xc8] ss:$2 sm:$0xff] }
 0x196   : > { %v9955_v1 = vadd.f32 %v1808_v0, %v1724_v56  ;;  %v1749_v0 = vrot.slane %v1094_v61, 1  ;;  %v2173_v61 = vrot.slane %v928_v44, 1 }
 0x197   : > { %v1357_v7 = vpop.f32.mrf.mxu0 }
 0x198   : > { %v1653_v9 = vpop.f32.mrf.mxu2  ;;  %v1538_v48 = vadd.f32 %v1537_v59, %v1357_v7  ;;  %v916_v7 = vld [vmem:[#allocation2 + $0x78] ss:$2 sm:$0xff]  ;;  %v1750_v15 = vsel %vm1149_vm2, %v1747_v46, %v1749_v0 }
 0x199   : > { %v1725_v11 = vadd.f32 %v1653_v9, %v1532_v63  ;;  %v2167_v63 = vsel %vm1149_vm2, %v2164_v27, %v2166_v52  ;;  %v930_v46 = vld [vmem:[#allocation2 + $0xd8] ss:$2 sm:$0xff] }
 0x19a   : > { %8481 = vmatmul.msk.f32.gmra.mxu3 %vm443_vm1, %v1227_v4  ;;  %8384 = vmatmul.msk.f32.gmra.mxu0 %vm443_vm1, %v1227_v4  ;;  %v1540_v13 = vpop.f32.mrf.mxu1 }
 0x19d   : > { %v1811_v22 = vpop.f32.mrf.mxu3  ;;  %8449 = vmatmul.msk.f32.gmra.mxu2 %vm443_vm1, %v1080_v54  ;;  %8418 = vmatmul.msk.f32.gmra.mxu1 %vm443_vm1, %v1080_v54 }
 0x19e   : > { %v9980_v23 = vadd.f32 %v1811_v22, %v1725_v11  ;;  %v649_v11 = vld [vmem:[%s9549_s24 + $0xc0] sm:$0xff]  ;;  %v2169_v22 = vrot.slane %v918_v8, 1 }
 0x19f   : > { %v1360_v32 = vpop.f32.mrf.mxu0  ;;  %778 = vst.msk [vmem:[#allocation2 + $0x119] sm:$0xff] %vm443_vm1, %v649_v11 }
 0x1a0   : > { %v1656_v35 = vpop.f32.mrf.mxu2  ;;  %v1541_v3 = vadd.f32 %v1540_v13, %v1360_v32  ;;  %v2168_v13 = vrot.slane %v916_v7, 1  ;;  %v920_v32 = vld [vmem:[#allocation2 + $0x98] ss:$2 sm:$0x3] }
 0x1a1   : > { %v1726_v40 = vadd.f32 %v1656_v35, %v1535_v21 }
 0x1a2   : > { %8482 = vmatmul.msk.f32.gmra.mxu3 %vm443_vm1, %v1229_v31  ;;  %8385 = vmatmul.msk.f32.gmra.mxu0 %vm443_vm1, %v1229_v31  ;;  %v1543_v41 = vpop.f32.mrf.mxu1  ;;  %v2170_v28 = vsel %vm1149_vm2, %v2168_v13, %v2169_v22 }
 0x1a5   : > { %v1814_v49 = vpop.f32.mrf.mxu3  ;;  %8450 = vmatmul.msk.f32.gmra.mxu2 %vm443_vm1, %v1090_v37  ;;  %8519 = vmatmul.msk.f32.vlgmr.msrb.gmra.mxu1 %vm443_vm1, %v2165_v42  ;;  %v2171_v37 = vrot.slane %v920_v32, 1  ;;  %v667_v32 = vld [vmem:[%s9549_s24 + $0x150] sm:$0xff] }
 0x1a6   : > { %v9997_v50 = vadd.f32 %v1814_v49, %v1726_v40  ;;  %v658_v49 = vld [vmem:[%s9549_s24 + $0x108] sm:$0xff]  ;;  %796 = vst.msk [vmem:[#allocation2 + $0x1c9] sm:$0xff] %vm443_vm1, %v667_v32 }
 0x1a7   : > { %v1363_v54 = vpop.f32.mrf.mxu0  ;;  %v2172_v40 = vsel %vm1149_vm2, %v2169_v22, %v2171_v37  ;;  %787 = vst.msk [vmem:[#allocation2 + $0x171] sm:$0xff] %vm443_vm1, %v658_v49  ;;  %v940_v22 = vld [vmem:[#allocation2 + $0x118] ss:$2 sm:$0xff] }
 0x1a8   : > { %v1659_v56 = vpop.f32.mrf.mxu2  ;;  %v1544_v29 = vadd.f32 %v1543_v41, %v1363_v54  ;;  %v660_v54 = vld [vmem:[%s9549_s24 + $0x118] sm:$0xff]  ;;  %v2178_v37 = vrot.slane %v940_v22, 1 }
 0x1a9   : > { %v1727_v62 = vadd.f32 %v1659_v56, %v1538_v48  ;;  %v657_v48 = vld [vmem:[%s9549_s24 + $0x100] sm:$0xff]  ;;  %789 = vst.msk [vmem:[#allocation2 + $0x181] sm:$0xff] %vm443_vm1, %v660_v54 }
 0x1aa   : > { %8483 = vmatmul.msk.f32.gmra.mxu3 %vm443_vm1, %v1748_v53  ;;  %8486 = vmatmul.msk.f32.vlgmr.msrb.gmra.mxu0 %vm443_vm1, %v904_v18  ;;  %v1546_v59 = vpop.f32.mrf.mxu1  ;;  %v651_v18 = vld [vmem:[%s9549_s24 + $0xd0] sm:$0xff]  ;;  %786 = vst.msk [vmem:[#allocation2 + $0x169] sm:$0xff] %vm443_vm1, %v657_v48  ;;  %v944_v48 = vld [vmem:[#allocation2 + $0x138] ss:$2 sm:$0x3] }
 0x1ab   : > { %780 = vst.msk [vmem:[#allocation2 + $0x129] sm:$0xff] %vm443_vm1, %v651_v18  ;;  %v659_v53 = vld [vmem:[%s9549_s24 + $0x110] sm:$0xff]  ;;  %v2181_v54 = vrot.slane %v944_v48, 1 }
 0x1ac   : > { %788 = vst.msk [vmem:[#allocation2 + $0x179] sm:$0xff] %vm443_vm1, %v659_v53 }
 0x1ad   : > { %v1817_v4 = vpop.f32.mrf.mxu3  ;;  %8451 = vmatmul.msk.f32.gmra.mxu2 %vm443_vm1, %v1092_v38  ;;  %8520 = vmatmul.msk.f32.gmra.mxu1 %vm443_vm1, %v2167_v63 }
 0x1ae   : > { %v10005_v9 = vadd.f32 %v1817_v4, %v1727_v62  ;;  %v2174_v62 = vrot.slane %v930_v46, 1 }
 0x1af   : > { %v1366_v16 = vpop.f32.mrf.mxu0 }
 0x1b0   : > { %v1662_v21 = vpop.f32.mrf.mxu2  ;;  %v1547_v41 = vadd.f32 %v1546_v59, %v1366_v16  ;;  %v2175_v0 = vsel %vm1149_vm2, %v2173_v61, %v2174_v62 }
 0x1b1   : > { %v1728_v24 = vadd.f32 %v1662_v21, %v1541_v3 }
 0x1b2   : > { %8484 = vmatmul.msk.f32.gmra.mxu3 %vm443_vm1, %v1750_v15  ;;  %8487 = vmatmul.msk.f32.gmra.mxu0 %vm443_vm1, %v9970_v19  ;;  %v1549_v27 = vpop.f32.mrf.mxu1 }
 0x1b5   : > { %v1820_v31 = vpop.f32.mrf.mxu3  ;;  %8552 = vmatmul.msk.f32.vlgmr.msrb.gmra.mxu2 %vm443_vm1, %v916_v7  ;;  %8521 = vmatmul.msk.f32.gmra.mxu1 %vm443_vm1, %v2170_v28 }
 0x1b6   : > { %v10022_v33 = vadd.f32 %v1820_v31, %v1728_v24  ;;  %v942_v24 = vld [vmem:[#allocation2 + $0x128] ss:$2 sm:$0xff] }
 0x1b7   : > { %v1369_v34 = vpop.f32.mrf.mxu0 }
 0x1b8   : > { %v1665_v35 = vpop.f32.mrf.mxu2  ;;  %v1550_v3 = vadd.f32 %v1549_v27, %v1369_v34  ;;  %v668_v34 = vld [vmem:[%s9549_s24 + $0x158] sm:$0xff] }
 0x1b9   : > { %v1729_v19 = vadd.f32 %v1665_v35, %v1544_v29  ;;  %v666_v29 = vld [vmem:[%s9549_s24 + $0x148] sm:$0xff]  ;;  %797 = vst.msk [vmem:[#allocation2 + $0x1d1] sm:$0xff] %vm443_vm1, %v668_v34 }
 0x1ba   : > { %8585 = vmatmul.msk.f32.vlgmr.msrb.gmra.mxu3 %vm443_vm1, %v2170_v28  ;;  %8488 = vmatmul.msk.f32.gmra.mxu0 %vm443_vm1, %v916_v7  ;;  %v1552_v38 = vpop.f32.mrf.mxu1  ;;  %v932_v7 = vld [vmem:[#allocation2 + $0xe8] ss:$2 sm:$0x3]  ;;  %v665_v28 = vld [vmem:[%s9549_s24 + $0x140] sm:$0xff]  ;;  %795 = vst.msk [vmem:[#allocation2 + $0x1c1] sm:$0xff] %vm443_vm1, %v666_v29 }
 0x1bb   : > { %v2176_v16 = vrot.slane %v932_v7, 1  ;;  %794 = vst.msk [vmem:[#allocation2 + $0x1b9] sm:$0xff] %vm443_vm1, %v665_v28  ;;  %v674_v7 = vld [vmem:[%s9549_s24 + $0x188] sm:$0xff] }
 0x1bc   : > { %803 = vst.msk [vmem:[#allocation2 + $0x211] sm:$0xff] %vm443_vm1, %v674_v7 }
 0x1bd   : > { %v1823_v42 = vpop.f32.mrf.mxu3  ;;  %8553 = vmatmul.msk.f32.gmra.mxu2 %vm443_vm1, %v918_v8  ;;  %8522 = vmatmul.msk.f32.gmra.mxu1 %vm443_vm1, %v2172_v40  ;;  %v2177_v20 = vsel %vm1149_vm2, %v2174_v62, %v2176_v16  ;;  %v676_v16 = vld [vmem:[%s9549_s24 + $0x198] sm:$0xff] }
 0x1be   : > { %v10029_v47 = vadd.f32 %v1823_v42, %v1729_v19  ;;  %v2179_v19 = vrot.slane %v942_v24, 1  ;;  %805 = vst.msk [vmem:[#allocation2 + $0x221] sm:$0xff] %vm443_vm1, %v676_v16 }
 0x1bf   : > { %v1372_v52 = vpop.f32.mrf.mxu0 }
 0x1c0   : > { %v1668_v56 = vpop.f32.mrf.mxu2  ;;  %v1553_v21 = vadd.f32 %v1552_v38, %v1372_v52  ;;  %v2182_v61 = vsel %vm1149_vm2, %v2179_v19, %v2181_v54  ;;  %v968_v16 = vld [vmem:[#allocation2 + $0x1d8] ss:$2 sm:$0x3] }
 0x1c1   : > { %v1730_v59 = vadd.f32 %v1668_v56, %v1547_v41  ;;  %v2180_v41 = vsel %vm1149_vm2, %v2178_v37, %v2179_v19 }
 0x1c2   : > { %8586 = vmatmul.msk.f32.gmra.mxu3 %vm443_vm1, %v2172_v40  ;;  %8489 = vmatmul.msk.f32.gmra.mxu0 %vm443_vm1, %v918_v8  ;;  %v1555_v63 = vpop.f32.mrf.mxu1 }
 0x1c5   : > { %v1826_v4 = vpop.f32.mrf.mxu3  ;;  %8554 = vmatmul.msk.f32.gmra.mxu2 %vm443_vm1, %v928_v44  ;;  %8523 = vmatmul.msk.f32.gmra.mxu1 %vm443_vm1, %v2175_v0 }
 0x1c6   : > { %v10044_v11 = vadd.f32 %v1826_v4, %v1730_v59  ;;  %v673_v4 = vld [vmem:[%s9549_s24 + $0x180] sm:$0xff] }
 0x1c7   : > { %v1375_v12 = vpop.f32.mrf.mxu0  ;;  %802 = vst.msk [vmem:[#allocation2 + $0x209] sm:$0xff] %vm443_vm1, %v673_v4 }
 0x1c8   : > { %v1671_v15 = vpop.f32.mrf.mxu2  ;;  %v1556_v42 = vadd.f32 %v1555_v63, %v1375_v12  ;;  %v952_v63 = vld [vmem:[#allocation2 + $0x168] ss:$2 sm:$0xff] }
 0x1c9   : > { %v1731_v8 = vadd.f32 %v1671_v15, %v1550_v3  ;;  %v675_v15 = vld [vmem:[%s9549_s24 + $0x190] sm:$0xff] }
 0x1ca   : > { %8587 = vmatmul.msk.f32.gmra.mxu3 %vm443_vm1, %v2175_v0  ;;  %8490 = vmatmul.msk.f32.gmra.mxu0 %vm443_vm1, %v928_v44  ;;  %v1558_v18 = vpop.f32.mrf.mxu1  ;;  %v954_v0 = vld [vmem:[#allocation2 + $0x178] ss:$2 sm:$0xff]  ;;  %804 = vst.msk [vmem:[#allocation2 + $0x219] sm:$0xff] %vm443_vm1, %v675_v15 }
 0x1cd   : > { %v1829_v13 = vpop.f32.mrf.mxu3  ;;  %8555 = vmatmul.msk.f32.gmra.mxu2 %vm443_vm1, %v930_v46  ;;  %8524 = vmatmul.msk.f32.gmra.mxu1 %vm443_vm1, %v2177_v20 }
 0x1ce   : > { %v10051_v27 = vadd.f32 %v1829_v13, %v1731_v8 }
 0x1cf   : > { %v1378_v31 = vpop.f32.mrf.mxu0 }
 0x1d0   : > { %v1674_v35 = vpop.f32.mrf.mxu2  ;;  %v1559_v62 = vadd.f32 %v1558_v18, %v1378_v31  ;;  %v956_v31 = vld [vmem:[#allocation2 + $0x188] ss:$2 sm:$0x3] }
 0x1d1   : > { %v1732_v38 = vadd.f32 %v1674_v35, %v1553_v21  ;;  %v2184_v21 = vrot.slane %v954_v0, 1  ;;  %v2186_v37 = vrot.slane %v956_v31, 1  ;;  %v976_v31 = vld [vmem:[#allocation2 + $0x208] ss:$2 sm:$0xff] }
 0x1d2   : > { %8588 = vmatmul.msk.f32.gmra.mxu3 %vm443_vm1, %v2177_v20  ;;  %8491 = vmatmul.msk.f32.gmra.mxu0 %vm443_vm1, %v930_v46  ;;  %v1561_v40 = vpop.f32.mrf.mxu1  ;;  %v2183_v20 = vrot.slane %v952_v63, 1 }
 0x1d5   : > { %v1832_v44 = vpop.f32.mrf.mxu3  ;;  %8556 = vmatmul.msk.f32.gmra.mxu2 %vm443_vm1, %v940_v22  ;;  %8525 = vmatmul.msk.f32.gmra.mxu1 %vm443_vm1, %v2180_v41 }
 0x1d6   : > { %v10066_v49 = vadd.f32 %v1832_v44, %v1732_v38  ;;  %v2187_v38 = vsel %vm1149_vm2, %v2184_v21, %v2186_v37  ;;  %v966_v44 = vld [vmem:[#allocation2 + $0x1c8] ss:$2 sm:$0xff]  ;;  %v689_v37 = vld [vmem:[%s9549_s24 + $0x200] sm:$0xff] }
 0x1d7   : > { %v1381_v52 = vpop.f32.mrf.mxu0  ;;  %818 = vst.msk [vmem:[#allocation2 + $0x2a9] sm:$0xff] %vm443_vm1, %v689_v37  ;;  %v699_v37 = vld [vmem:[%s9549_s24 + $0x250] sm:$0xff] }
 0x1d8   : > { %v1677_v53 = vpop.f32.mrf.mxu2  ;;  %v1562_v28 = vadd.f32 %v1561_v40, %v1381_v52  ;;  %v681_v52 = vld [vmem:[%s9549_s24 + $0x1c0] sm:$0xff]  ;;  %828 = vst.msk [vmem:[#allocation2 + $0x309] sm:$0xff] %vm443_vm1, %v699_v37  ;;  %v707_v37 = vld [vmem:[%s9549_s24 + $0x290] sm:$0xff] }
 0x1d9   : > { %v1733_v46 = vadd.f32 %v1677_v53, %v1556_v42  ;;  %v964_v42 = vld [vmem:[#allocation2 + $0x1b8] ss:$2 sm:$0xff]  ;;  %810 = vst.msk [vmem:[#allocation2 + $0x259] sm:$0xff] %vm443_vm1, %v681_v52  ;;  %v2193_v52 = vrot.slane %v976_v31, 1 }
 0x1da   : > { %8589 = vmatmul.msk.f32.gmra.mxu3 %vm443_vm1, %v2180_v41  ;;  %8492 = vmatmul.msk.f32.gmra.mxu0 %vm443_vm1, %v940_v22  ;;  %v1564_v56 = vpop.f32.mrf.mxu1  ;;  %v2185_v22 = vsel %vm1149_vm2, %v2183_v20, %v2184_v21  ;;  %v682_v53 = vld [vmem:[%s9549_s24 + $0x1c8] sm:$0xff]  ;;  %836 = vst.msk [vmem:[#allocation2 + $0x359] sm:$0xff] %vm443_vm1, %v707_v37 }
 0x1db   : > { %811 = vst.msk [vmem:[#allocation2 + $0x261] sm:$0xff] %vm443_vm1, %v682_v53  ;;  %v714_v37 = vld [vmem:[%s9549_s24 + $0x2c8] sm:$0xff] }
 0x1dc   : > { %843 = vst.msk [vmem:[#allocation2 + $0x3a1] sm:$0xff] %vm443_vm1, %v714_v37  ;;  %v721_v37 = vld [vmem:[%s9549_s24 + $0x300] sm:$0xff] }
 0x1dd   : > { %v1835_v59 = vpop.f32.mrf.mxu3  ;;  %8557 = vmatmul.msk.f32.gmra.mxu2 %vm443_vm1, %v942_v24  ;;  %8526 = vmatmul.msk.f32.gmra.mxu1 %vm443_vm1, %v2182_v61  ;;  %850 = vst.msk [vmem:[#allocation2 + $0x3e9] sm:$0xff] %vm443_vm1, %v721_v37 }
 0x1de   : > { %v10073_v3 = vadd.f32 %v1835_v59, %v1733_v46  ;;  %v683_v46 = vld [vmem:[%s9549_s24 + $0x1d0] sm:$0xff]  ;;  %v2188_v59 = vrot.slane %v964_v42, 1 }
 0x1df   : > { %v1384_v12 = vpop.f32.mrf.mxu0  ;;  %812 = vst.msk [vmem:[#allocation2 + $0x269] sm:$0xff] %vm443_vm1, %v683_v46 }
 0x1e0   : > { %v1680_v8 = vpop.f32.mrf.mxu2  ;;  %v1565_v40 = vadd.f32 %v1564_v56, %v1384_v12 }
 0x1e1   : > { %v1734_v18 = vadd.f32 %v1680_v8, %v1559_v62 }
 0x1e2   : > { %8590 = vmatmul.msk.f32.gmra.mxu3 %vm443_vm1, %v2182_v61  ;;  %8493 = vmatmul.msk.f32.gmra.mxu0 %vm443_vm1, %v942_v24  ;;  %v1567_v13 = vpop.f32.mrf.mxu1  ;;  %v684_v61 = vld [vmem:[%s9549_s24 + $0x1d8] sm:$0xff] }
 0x1e3   : > { %813 = vst.msk [vmem:[#allocation2 + $0x271] sm:$0xff] %vm443_vm1, %v684_v61 }
 0x1e5   : > { %v1838_v29 = vpop.f32.mrf.mxu3  ;;  %8558 = vmatmul.msk.f32.gmra.mxu2 %vm443_vm1, %v952_v63  ;;  %8527 = vmatmul.msk.f32.gmra.mxu1 %vm443_vm1, %v2185_v22 }
 0x1e6   : > { %v10088_v32 = vadd.f32 %v1838_v29, %v1734_v18  ;;  %v2191_v18 = vrot.slane %v968_v16, 1 }
 0x1e7   : > { %v1387_v34 = vpop.f32.mrf.mxu0 }
 0x1e8   : > { %v1683_v35 = vpop.f32.mrf.mxu2  ;;  %v1568_v12 = vadd.f32 %v1567_v13, %v1387_v34  ;;  %v978_v34 = vld [vmem:[#allocation2 + $0x218] ss:$2 sm:$0xff] }
 0x1e9   : > { %v1735_v24 = vadd.f32 %v1683_v35, %v1562_v28  ;;  %v2194_v53 = vrot.slane %v978_v34, 1 }
 0x1ea   : > { %8591 = vmatmul.msk.f32.gmra.mxu3 %vm443_vm1, %v2185_v22  ;;  %8494 = vmatmul.msk.f32.gmra.mxu0 %vm443_vm1, %v952_v63  ;;  %v1570_v19 = vpop.f32.mrf.mxu1  ;;  %v2189_v63 = vrot.slane %v966_v44, 1 }
 0x1eb   : > { %v2195_v46 = vsel %vm1149_vm2, %v2193_v52, %v2194_v53 }
 0x1ec   : > { %v2190_v7 = vsel %vm1149_vm2, %v2188_v59, %v2189_v63  ;;  %v2192_v22 = vsel %vm1149_vm2, %v2189_v63, %v2191_v18  ;;  %v980_v59 = vld [vmem:[#allocation2 + $0x228] ss:$2 sm:$0x3] }
 0x1ed   : > { %v1841_v41 = vpop.f32.mrf.mxu3  ;;  %8559 = vmatmul.msk.f32.gmra.mxu2 %vm443_vm1, %v954_v0  ;;  %8528 = vmatmul.msk.f32.gmra.mxu1 %vm443_vm1, %v2187_v38  ;;  %v990_v18 = vld [vmem:[#allocation2 + $0x268] ss:$2 sm:$0xff] }
 0x1ee   : > { %v10095_v48 = vadd.f32 %v1841_v41, %v1735_v24  ;;  %v690_v24 = vld [vmem:[%s9549_s24 + $0x208] sm:$0xff]  ;;  %v692_v41 = vld [vmem:[%s9549_s24 + $0x218] sm:$0xff] }
 0x1ef   : > { %v1390_v54 = vpop.f32.mrf.mxu0  ;;  %819 = vst.msk [vmem:[#allocation2 + $0x2b1] sm:$0xff] %vm443_vm1, %v690_v24 }
 0x1f0   : > { %v1686_v62 = vpop.f32.mrf.mxu2  ;;  %v1571_v28 = vadd.f32 %v1570_v19, %v1390_v54  ;;  %821 = vst.msk [vmem:[#allocation2 + $0x2c1] sm:$0xff] %vm443_vm1, %v692_v41  ;;  %v2199_v41 = vrot.slane %v990_v18, 1 }
 0x1f1   : > { %v1736_v56 = vadd.f32 %v1686_v62, %v1565_v40  ;;  %v691_v40 = vld [vmem:[%s9549_s24 + $0x210] sm:$0xff] }
 0x1f2   : > { %8592 = vmatmul.msk.f32.gmra.mxu3 %vm443_vm1, %v2187_v38  ;;  %8495 = vmatmul.msk.f32.gmra.mxu0 %vm443_vm1, %v954_v0  ;;  %v1573_v4 = vpop.f32.mrf.mxu1  ;;  %820 = vst.msk [vmem:[#allocation2 + $0x2b9] sm:$0xff] %vm443_vm1, %v691_v40 }
 0x1f5   : > { %v1844_v15 = vpop.f32.mrf.mxu3  ;;  %8560 = vmatmul.msk.f32.gmra.mxu2 %vm443_vm1, %v964_v42  ;;  %8529 = vmatmul.msk.f32.gmra.mxu1 %vm443_vm1, %v2190_v7 }
 0x1f6   : > { %v10110_v8 = vadd.f32 %v1844_v15, %v1736_v56 }
 0x1f7   : > { %v1393_v20 = vpop.f32.mrf.mxu0 }
 0x1f8   : > { %v1689_v21 = vpop.f32.mrf.mxu2  ;;  %v1574_v61 = vadd.f32 %v1573_v4, %v1393_v20 }
 0x1f9   : > { %v1737_v0 = vadd.f32 %v1689_v21, %v1568_v12  ;;  %v2196_v12 = vrot.slane %v980_v59, 1  ;;  %v988_v21 = vld [vmem:[#allocation2 + $0x258] ss:$2 sm:$0xff] }
 0x1fa   : > { %8593 = vmatmul.msk.f32.gmra.mxu3 %vm443_vm1, %v2190_v7  ;;  %8496 = vmatmul.msk.f32.gmra.mxu0 %vm443_vm1, %v964_v42  ;;  %v1576_v13 = vpop.f32.mrf.mxu1  ;;  %v2198_v40 = vrot.slane %v988_v21, 1 }
 0x1fb   : > { %v2197_v15 = vsel %vm1149_vm2, %v2194_v53, %v2196_v12 }
 0x1fd   : > { %v1847_v29 = vpop.f32.mrf.mxu3  ;;  %8561 = vmatmul.msk.f32.gmra.mxu2 %vm443_vm1, %v966_v44  ;;  %8530 = vmatmul.msk.f32.gmra.mxu1 %vm443_vm1, %v2192_v22 }
 0x1fe   : > { %v10117_v35 = vadd.f32 %v1847_v29, %v1737_v0 }
 0x1ff   : > { %v1396_v38 = vpop.f32.mrf.mxu0 }
 0x200   : > { %v1692_v42 = vpop.f32.mrf.mxu2  ;;  %v1577_v16 = vadd.f32 %v1576_v13, %v1396_v38 }
 0x201   : > { %v1738_v19 = vadd.f32 %v1692_v42, %v1571_v28  ;;  %v698_v28 = vld [vmem:[%s9549_s24 + $0x248] sm:$0xff]  ;;  %v2200_v42 = vsel %vm1149_vm2, %v2198_v40, %v2199_v41 }
 0x202   : > { %8594 = vmatmul.msk.f32.gmra.mxu3 %vm443_vm1, %v2192_v22  ;;  %8497 = vmatmul.msk.f32.gmra.mxu0 %vm443_vm1, %v966_v44  ;;  %v1579_v54 = vpop.f32.mrf.mxu1  ;;  %v697_v22 = vld [vmem:[%s9549_s24 + $0x240] sm:$0xff]  ;;  %827 = vst.msk [vmem:[#allocation2 + $0x301] sm:$0xff] %vm443_vm1, %v698_v28 }
 0x203   : > { %826 = vst.msk [vmem:[#allocation2 + $0x2f9] sm:$0xff] %vm443_vm1, %v697_v22  ;;  %v706_v22 = vld [vmem:[%s9549_s24 + $0x288] sm:$0xff] }
 0x204   : > { %835 = vst.msk [vmem:[#allocation2 + $0x351] sm:$0xff] %vm443_vm1, %v706_v22  ;;  %v713_v22 = vld [vmem:[%s9549_s24 + $0x2c0] sm:$0xff] }
 0x205   : > { %v1850_v62 = vpop.f32.mrf.mxu3  ;;  %8562 = vmatmul.msk.f32.gmra.mxu2 %vm443_vm1, %v976_v31  ;;  %8531 = vmatmul.msk.f32.gmra.mxu1 %vm443_vm1, %v2195_v46  ;;  %842 = vst.msk [vmem:[#allocation2 + $0x399] sm:$0xff] %vm443_vm1, %v713_v22 }
 0x206   : > { %v10132_v63 = vadd.f32 %v1850_v62, %v1738_v19  ;;  %v992_v19 = vld [vmem:[#allocation2 + $0x278] ss:$2 sm:$0x3] }
 0x207   : > { %v1399_v56 = vpop.f32.mrf.mxu0  ;;  %v2201_v59 = vrot.slane %v992_v19, 1 }
 0x208   : > { %v1695_v7 = vpop.f32.mrf.mxu2  ;;  %v1580_v52 = vadd.f32 %v1579_v54, %v1399_v56 }
 0x209   : > { %v1739_v44 = vadd.f32 %v1695_v7, %v1574_v61  ;;  %v2202_v56 = vsel %vm1149_vm2, %v2199_v41, %v2201_v59 }
 0x20a   : > { %8595 = vmatmul.msk.f32.gmra.mxu3 %vm443_vm1, %v2195_v46  ;;  %8498 = vmatmul.msk.f32.gmra.mxu0 %vm443_vm1, %v976_v31  ;;  %v1582_v4 = vpop.f32.mrf.mxu1  ;;  %v700_v31 = vld [vmem:[%s9549_s24 + $0x258] sm:$0xff] }
 0x20b   : > { %829 = vst.msk [vmem:[#allocation2 + $0x311] sm:$0xff] %vm443_vm1, %v700_v31 }
 0x20d   : > { %v1853_v20 = vpop.f32.mrf.mxu3  ;;  %8563 = vmatmul.msk.f32.gmra.mxu2 %vm443_vm1, %v978_v34  ;;  %8532 = vmatmul.msk.f32.gmra.mxu1 %vm443_vm1, %v2197_v15 }
 0x20e   : > { %v10139_v0 = vadd.f32 %v1853_v20, %v1739_v44  ;;  %v1000_v44 = vld [vmem:[#allocation2 + $0x2a8] ss:$2 sm:$0xff]  ;;  %v705_v20 = vld [vmem:[%s9549_s24 + $0x280] sm:$0xff] }
 0x20f   : > { %v1402_v29 = vpop.f32.mrf.mxu0  ;;  %834 = vst.msk [vmem:[#allocation2 + $0x349] sm:$0xff] %vm443_vm1, %v705_v20  ;;  %v1012_v20 = vld [vmem:[#allocation2 + $0x2f8] ss:$2 sm:$0xff] }
 0x210   : > { %v1698_v24 = vpop.f32.mrf.mxu2  ;;  %v1583_v7 = vadd.f32 %v1582_v4, %v1402_v29 }
 0x211   : > { %v1740_v13 = vadd.f32 %v1698_v24, %v1577_v16  ;;  %v2203_v24 = vrot.slane %v1000_v44, 1 }
 0x212   : > { %8596 = vmatmul.msk.f32.gmra.mxu3 %vm443_vm1, %v2197_v15  ;;  %8499 = vmatmul.msk.f32.gmra.mxu0 %vm443_vm1, %v978_v34  ;;  %v1585_v38 = vpop.f32.mrf.mxu1  ;;  %v1002_v15 = vld [vmem:[#allocation2 + $0x2b8] ss:$2 sm:$0xff] }
 0x213   : > { %v2204_v40 = vrot.slane %v1002_v15, 1 }
 0x215   : > { %v1856_v53 = vpop.f32.mrf.mxu3  ;;  %8564 = vmatmul.msk.f32.gmra.mxu2 %vm443_vm1, %v988_v21  ;;  %8533 = vmatmul.msk.f32.gmra.mxu1 %vm443_vm1, %v2200_v42  ;;  %v2205_v41 = vsel %vm1149_vm2, %v2203_v24, %v2204_v40 }
 0x216   : > { %v10154_v46 = vadd.f32 %v1856_v53, %v1740_v13 }
 0x217   : > { %v1405_v61 = vpop.f32.mrf.mxu0 }
 0x218   : > { %v1701_v62 = vpop.f32.mrf.mxu2  ;;  %v1586_v13 = vadd.f32 %v1585_v38, %v1405_v61 }
 0x219   : > { %v1741_v34 = vadd.f32 %v1701_v62, %v1580_v52  ;;  %v1004_v52 = vld [vmem:[#allocation2 + $0x2c8] ss:$2 sm:$0x3] }
 0x21a   : > { %8597 = vmatmul.msk.f32.gmra.mxu3 %vm443_vm1, %v2200_v42  ;;  %8500 = vmatmul.msk.f32.gmra.mxu0 %vm443_vm1, %v988_v21  ;;  %v1588_v54 = vpop.f32.mrf.mxu1  ;;  %v708_v21 = vld [vmem:[%s9549_s24 + $0x298] sm:$0xff]  ;;  %v2206_v59 = vrot.slane %v1004_v52, 1 }
 0x21b   : > { %837 = vst.msk [vmem:[#allocation2 + $0x361] sm:$0xff] %vm443_vm1, %v708_v21 }
 0x21c   : > { %v2207_v61 = vsel %vm1149_vm2, %v2204_v40, %v2206_v59  ;;  %v2208_v40 = vrot.slane %v1012_v20, 1 }
 0x21d   : > { %v1859_v12 = vpop.f32.mrf.mxu3  ;;  %8565 = vmatmul.msk.f32.gmra.mxu2 %vm443_vm1, %v990_v18  ;;  %8534 = vmatmul.msk.f32.gmra.mxu1 %vm443_vm1, %v2202_v56 }
 0x21e   : > { %v10161_v16 = vadd.f32 %v1859_v12, %v1741_v34 }
 0x21f   : > { %v1408_v28 = vpop.f32.mrf.mxu0 }
 0x220   : > { %v1704_v31 = vpop.f32.mrf.mxu2 }
 0x221   : > { %v1742_v4 = vadd.f32 %v1704_v31, %v1583_v7  ;;  %v1589_v7 = vadd.f32 %v1588_v54, %v1408_v28  ;;  %v716_v31 = vld [vmem:[%s9549_s24 + $0x2d8] sm:$0xff]  ;;  %v1499_v54 = vadd.f32 %v9789_v57, %v9794_v60  ;;  %v1016_v57 = vld [vmem:[#allocation2 + $0x318] ss:$2 sm:$0x3] }
 0x222   : > { %8598 = vmatmul.msk.f32.gmra.mxu3 %vm443_vm1, %v2202_v56  ;;  %8501 = vmatmul.msk.f32.gmra.mxu0 %vm443_vm1, %v990_v18  ;;  %v2327_v29 = vpop.f32.mrf.mxu1  ;;  %v1496_v18 = vadd.f32 %v9772_v45, %v9780_v51  ;;  %v1014_v45 = vld [vmem:[#allocation2 + $0x308] ss:$2 sm:$0xff]  ;;  %845 = vst.msk [vmem:[#allocation2 + $0x3b1] sm:$0xff] %vm443_vm1, %v716_v31  ;;  %v1026_v22 = vld [vmem:[#allocation2 + $0x358] ss:$2 sm:$0xff] }
 0x223   : > { %v1714_v52 = vadd.f32 %v9822_v17, %v1499_v54 }
 0x224   : > { %v1713_v56 = vadd.f32 %v9811_v10, %v1496_v18  ;;  %v2209_v10 = vrot.slane %v1014_v45, 1 }
 0x225   : > { %v1862_v42 = vpop.f32.mrf.mxu3  ;;  %8566 = vmatmul.msk.f32.gmra.mxu2 %vm443_vm1, %v1000_v44  ;;  %8535 = vmatmul.msk.f32.gmra.mxu1 %vm443_vm1, %v2205_v41 }
 0x226   : > { %v10176_v53 = vadd.f32 %v1862_v42, %v1742_v4  ;;  %v1871_v28 = vadd.f32 %v9816_v14, %v1713_v56  ;;  %v2210_v42 = vsel %vm1149_vm2, %v2208_v40, %v2209_v10  ;;  %v724_v40 = vld [vmem:[%s9549_s24 + $0x318] sm:$0xff] }
 0x227   : > { %v2019_v19 = vpop.f32.mrf.mxu0  ;;  %853 = vst.msk [vmem:[#allocation2 + $0x401] sm:$0xff] %vm443_vm1, %v724_v40 }
 0x228   : > { %v1707_v62 = vpop.f32.mrf.mxu2 }
 0x229   : > { %v1743_v34 = vadd.f32 %v1707_v62, %v1586_v13  ;;  %v2115_v13 = vadd.f32 %v2019_v19, %v1871_v28  ;;  %v1872_v19 = vadd.f32 %v9835_v26, %v1714_v52  ;;  %v2214_v28 = vrot.slane %v1026_v22, 1 }
 0x22a   : > { %8599 = vmatmul.msk.f32.gmra.mxu3 %vm443_vm1, %v2205_v41  ;;  %8502 = vmatmul.msk.f32.gmra.mxu0 %vm443_vm1, %v1000_v44  ;;  %v2330_v38 = vpop.f32.mrf.mxu1  ;;  %v715_v44 = vld [vmem:[%s9549_s24 + $0x2d0] sm:$0xff] }
 0x22b   : > { %844 = vst.msk [vmem:[#allocation2 + $0x3a9] sm:$0xff] %vm443_vm1, %v715_v44  ;;  %v2423_v14 = vadd.f32 %v2327_v29, %v2115_v13  ;;  %v722_v44 = vld [vmem:[%s9549_s24 + $0x308] sm:$0xff] }
 0x22c   : > { %851 = vst.msk [vmem:[#allocation2 + $0x3f1] sm:$0xff] %vm443_vm1, %v722_v44 }
 0x22d   : > { %v1865_v12 = vpop.f32.mrf.mxu3  ;;  %8567 = vmatmul.msk.f32.gmra.mxu2 %vm443_vm1, %v1002_v15  ;;  %8536 = vmatmul.msk.f32.gmra.mxu1 %vm443_vm1, %v2207_v61 }
 0x22e   : > { %v10186_v51 = vadd.f32 %v1865_v12, %v1743_v34  ;;  %v2211_v34 = vrot.slane %v1016_v57, 1 }
 0x22f   : > { %v2022_v21 = vpop.f32.mrf.mxu0 }
 0x230   : > { %v1710_v24 = vpop.f32.mrf.mxu2  ;;  %v2212_v29 = vsel %vm1149_vm2, %v2209_v10, %v2211_v34 }
 0x231   : > { %v1744_v4 = vadd.f32 %v1710_v24, %v1589_v7  ;;  %v2116_v7 = vadd.f32 %v2022_v21, %v1872_v19  ;;  %v723_v24 = vld [vmem:[%s9549_s24 + $0x310] sm:$0xff] }
 0x232   : > { %8600 = vmatmul.msk.f32.gmra.mxu3 %vm443_vm1, %v2207_v61  ;;  %8503 = vmatmul.msk.f32.gmra.mxu0 %vm443_vm1, %v1002_v15  ;;  %v2333_v41 = vpop.f32.mrf.mxu1  ;;  %852 = vst.msk [vmem:[#allocation2 + $0x3f9] sm:$0xff] %vm443_vm1, %v723_v24 }
 0x233   : > { %v2424_v31 = vadd.f32 %v2330_v38, %v2116_v7  ;;  %v730_v7 = vld [vmem:[%s9549_s24 + $0x348] sm:$0xff] }
 0x234   : > { %859 = vst.msk [vmem:[#allocation2 + $0x441] sm:$0xff] %vm443_vm1, %v730_v7 }
 0x235   : > { %v1868_v62 = vpop.f32.mrf.mxu3  ;;  %8568 = vmatmul.msk.f32.gmra.mxu2 %vm443_vm1, %v1012_v20  ;;  %8537 = vmatmul.msk.f32.gmra.mxu1 %vm443_vm1, %v2210_v42 }
 0x236   : > { %v10205_v60 = vadd.f32 %v1868_v62, %v1744_v4 }
 0x237   : > { %v2025_v59 = vpop.f32.mrf.mxu0 }
 0x238   : > { %v2481_v18 = vpop.f32.mrf.mxu2  ;;  %v2117_v15 = vadd.f32 %v2025_v59, %v9844_v39  ;;  %v1024_v39 = vld [vmem:[#allocation2 + $0x348] ss:$2 sm:$0xff] }
 0x239   : > { %v2577_v61 = vadd.f32 %v2481_v18, %v2423_v14  ;;  %v2213_v54 = vrot.slane %v1024_v39, 1 }
 0x23a   : > { %8601 = vmatmul.msk.f32.gmra.mxu3 %vm443_vm1, %v2210_v42  ;;  %8504 = vmatmul.msk.f32.gmra.mxu0 %vm443_vm1, %v1012_v20  ;;  %v2336_v17 = vpop.f32.mrf.mxu1  ;;  %v2425_v56 = vadd.f32 %v2333_v41, %v2117_v15 }
 0x23b   : > { %v2215_v13 = vsel %vm1149_vm2, %v2213_v54, %v2214_v28 }
 0x23d   : > { %v2639_v12 = vpop.f32.mrf.mxu3  ;;  %8569 = vmatmul.msk.f32.gmra.mxu2 %vm443_vm1, %v1014_v45  ;;  %8538 = vmatmul.msk.f32.gmra.mxu1 %vm443_vm1, %v2212_v29 }
 0x23e   : > { %v10214_v26 = vadd.f32 %v2639_v12, %v2577_v61  ;;  %v1036_v61 = vld [vmem:[#allocation2 + $0x398] ss:$2 sm:$0xff]  ;;  %v731_v12 = vld [vmem:[%s9549_s24 + $0x350] sm:$0xff] }
 0x23f   : > { %v2028_v20 = vpop.f32.mrf.mxu0  ;;  %v2218_v44 = vrot.slane %v1036_v61, 1  ;;  %860 = vst.msk [vmem:[#allocation2 + $0x449] sm:$0xff] %vm443_vm1, %v731_v12 }
 0x240   : > { %v2484_v21 = vpop.f32.mrf.mxu2  ;;  %v2118_v10 = vadd.f32 %v2028_v20, %v9859_v58  ;;  %v1028_v58 = vld [vmem:[#allocation2 + $0x368] ss:$2 sm:$0x3] }
 0x241   : > { %v2578_v4 = vadd.f32 %v2484_v21, %v2424_v31  ;;  %v2216_v14 = vrot.slane %v1028_v58, 1 }
 0x242   : > { %8602 = vmatmul.msk.f32.gmra.mxu3 %vm443_vm1, %v2212_v29  ;;  %8505 = vmatmul.msk.f32.gmra.mxu0 %vm443_vm1, %v1014_v45  ;;  %v2339_v38 = vpop.f32.mrf.mxu1  ;;  %v2426_v41 = vadd.f32 %v2336_v17, %v2118_v10  ;;  %v1038_v17 = vld [vmem:[#allocation2 + $0x3a8] ss:$2 sm:$0xff] }
 0x243   : > { %v2217_v34 = vsel %vm1149_vm2, %v2214_v28, %v2216_v14  ;;  %v2219_v20 = vrot.slane %v1038_v17, 1  ;;  %v1050_v14 = vld [vmem:[#allocation2 + $0x3f8] ss:$2 sm:$0xff] }
 0x245   : > { %v2642_v42 = vpop.f32.mrf.mxu3  ;;  %8570 = vmatmul.msk.f32.gmra.mxu2 %vm443_vm1, %v1024_v39  ;;  %8539 = vmatmul.msk.f32.gmra.mxu1 %vm443_vm1, %v2215_v13  ;;  %v2220_v54 = vsel %vm1149_vm2, %v2218_v44, %v2219_v20 }
 0x246   : > { %v10230_v52 = vadd.f32 %v2642_v42, %v2578_v4 }
 0x247   : > { %v2031_v62 = vpop.f32.mrf.mxu0 }
 0x248   : > { %v2487_v57 = vpop.f32.mrf.mxu2  ;;  %v2119_v45 = vadd.f32 %v2031_v62, %v9866_v6 }
 0x249   : > { %v2579_v59 = vadd.f32 %v2487_v57, %v2425_v56  ;;  %v729_v56 = vld [vmem:[%s9549_s24 + $0x340] sm:$0xff] }
 0x24a   : > { %8603 = vmatmul.msk.f32.gmra.mxu3 %vm443_vm1, %v2215_v13  ;;  %8506 = vmatmul.msk.f32.gmra.mxu0 %vm443_vm1, %v1024_v39  ;;  %v2342_v18 = vpop.f32.mrf.mxu1  ;;  %v2427_v15 = vadd.f32 %v2339_v38, %v2119_v45  ;;  %858 = vst.msk [vmem:[#allocation2 + $0x439] sm:$0xff] %vm443_vm1, %v729_v56  ;;  %v732_v39 = vld [vmem:[%s9549_s24 + $0x358] sm:$0xff] }
 0x24b   : > { %861 = vst.msk [vmem:[#allocation2 + $0x451] sm:$0xff] %vm443_vm1, %v732_v39  ;;  %v1048_v45 = vld [vmem:[#allocation2 + $0x3e8] ss:$2 sm:$0xff] }
 0x24c   : > { %v2223_v56 = vrot.slane %v1048_v45, 1 }
 0x24d   : > { %v2645_v19 = vpop.f32.mrf.mxu3  ;;  %8571 = vmatmul.msk.f32.gmra.mxu2 %vm443_vm1, %v1026_v22  ;;  %8540 = vmatmul.msk.f32.gmra.mxu1 %vm443_vm1, %v2217_v34 }
 0x24e   : > { %v10238_v6 = vadd.f32 %v2645_v19, %v2579_v59  ;;  %v737_v59 = vld [vmem:[%s9549_s24 + $0x380] sm:$0xff]  ;;  %v740_v19 = vld [vmem:[%s9549_s24 + $0x398] sm:$0xff] }
 0x24f   : > { %v2034_v29 = vpop.f32.mrf.mxu0  ;;  %866 = vst.msk [vmem:[#allocation2 + $0x489] sm:$0xff] %vm443_vm1, %v737_v59 }
 0x250   : > { %v2490_v37 = vpop.f32.mrf.mxu2  ;;  %v2120_v31 = vadd.f32 %v2034_v29, %v9881_v25  ;;  %v1040_v25 = vld [vmem:[#allocation2 + $0x3b8] ss:$2 sm:$0x3]  ;;  %v2224_v29 = vrot.slane %v1050_v14, 1  ;;  %869 = vst.msk [vmem:[#allocation2 + $0x4a1] sm:$0xff] %vm443_vm1, %v740_v19 }
 0x251   : > { %v2580_v24 = vadd.f32 %v2490_v37, %v2426_v41  ;;  %v2221_v41 = vrot.slane %v1040_v25, 1 }
 0x252   : > { %8604 = vmatmul.msk.f32.gmra.mxu3 %vm443_vm1, %v2217_v34  ;;  %8507 = vmatmul.msk.f32.gmra.mxu0 %vm443_vm1, %v1026_v22  ;;  %v2345_v40 = vpop.f32.mrf.mxu1  ;;  %v2428_v21 = vadd.f32 %v2342_v18, %v2120_v31  ;;  %v738_v18 = vld [vmem:[%s9549_s24 + $0x388] sm:$0xff]  ;;  %v739_v34 = vld [vmem:[%s9549_s24 + $0x390] sm:$0xff]  ;;  %v2225_v44 = vsel %vm1149_vm2, %v2223_v56, %v2224_v29 }
 0x253   : > { %v2222_v62 = vsel %vm1149_vm2, %v2219_v20, %v2221_v41  ;;  %867 = vst.msk [vmem:[#allocation2 + $0x491] sm:$0xff] %vm443_vm1, %v738_v18  ;;  %v1062_v41 = vld [vmem:[#allocation2 + $0x448] ss:$2 sm:$0xff] }
 0x254   : > { %868 = vst.msk [vmem:[#allocation2 + $0x499] sm:$0xff] %vm443_vm1, %v739_v34 }
 0x255   : > { %v2648_v10 = vpop.f32.mrf.mxu3  ;;  %8572 = vmatmul.msk.f32.gmra.mxu2 %vm443_vm1, %v1036_v61  ;;  %8541 = vmatmul.msk.f32.gmra.mxu1 %vm443_vm1, %v2220_v54 }
 0x256   : > { %v10254_v28 = vadd.f32 %v2648_v10, %v2580_v24 }
 0x257   : > { %v2037_v4 = vpop.f32.mrf.mxu0 }
 0x258   : > { %v2493_v38 = vpop.f32.mrf.mxu2  ;;  %v2121_v22 = vadd.f32 %v2037_v4, %v9888_v36 }
 0x259   : > { %v2581_v13 = vadd.f32 %v2493_v38, %v2427_v15 }
 0x25a   : > { %8605 = vmatmul.msk.f32.gmra.mxu3 %vm443_vm1, %v2220_v54  ;;  %8508 = vmatmul.msk.f32.gmra.mxu0 %vm443_vm1, %v1036_v61  ;;  %v2348_v42 = vpop.f32.mrf.mxu1  ;;  %v2429_v58 = vadd.f32 %v2345_v40, %v2121_v22  ;;  %v1060_v22 = vld [vmem:[#allocation2 + $0x438] ss:$2 sm:$0xff] }
 0x25b   : > { %v2228_v59 = vrot.slane %v1060_v22, 1 }
 0x25d   : > { %v2651_v57 = vpop.f32.mrf.mxu3  ;;  %8573 = vmatmul.msk.f32.gmra.mxu2 %vm443_vm1, %v1038_v17  ;;  %8542 = vmatmul.msk.f32.gmra.mxu1 %vm443_vm1, %v2222_v62 }
 0x25e   : > { %v10262_v36 = vadd.f32 %v2651_v57, %v2581_v13  ;;  %v745_v13 = vld [vmem:[%s9549_s24 + $0x3c0] sm:$0xff]  ;;  %v748_v57 = vld [vmem:[%s9549_s24 + $0x3d8] sm:$0xff] }
 0x25f   : > { %v2040_v15 = vpop.f32.mrf.mxu0  ;;  %874 = vst.msk [vmem:[#allocation2 + $0x4d9] sm:$0xff] %vm443_vm1, %v745_v13 }
 0x260   : > { %v2496_v61 = vpop.f32.mrf.mxu2  ;;  %v2122_v7 = vadd.f32 %v2040_v15, %v9903_v55  ;;  %v1052_v55 = vld [vmem:[#allocation2 + $0x408] ss:$2 sm:$0x3]  ;;  %v2229_v15 = vrot.slane %v1062_v41, 1  ;;  %877 = vst.msk [vmem:[#allocation2 + $0x4f1] sm:$0xff] %vm443_vm1, %v748_v57 }
 0x261   : > { %v2582_v12 = vadd.f32 %v2496_v61, %v2428_v21  ;;  %v2226_v21 = vrot.slane %v1052_v55, 1  ;;  %v1076_v57 = vld [vmem:[#allocation2 + $0x4a8] ss:$2 sm:$0x3] }
 0x262   : > { %8606 = vmatmul.msk.f32.gmra.mxu3 %vm443_vm1, %v2222_v62  ;;  %8509 = vmatmul.msk.f32.gmra.mxu0 %vm443_vm1, %v1038_v17  ;;  %v2351_v39 = vpop.f32.mrf.mxu1  ;;  %v2430_v37 = vadd.f32 %v2348_v42, %v2122_v7  ;;  %v746_v42 = vld [vmem:[%s9549_s24 + $0x3c8] sm:$0xff]  ;;  %v747_v62 = vld [vmem:[%s9549_s24 + $0x3d0] sm:$0xff]  ;;  %v2230_v56 = vsel %vm1149_vm2, %v2228_v59, %v2229_v15 }
 0x263   : > { %v2227_v4 = vsel %vm1149_vm2, %v2224_v29, %v2226_v21  ;;  %875 = vst.msk [vmem:[#allocation2 + $0x4e1] sm:$0xff] %vm443_vm1, %v746_v42  ;;  %v1074_v21 = vld [vmem:[#allocation2 + $0x498] ss:$2 sm:$0xff] }
 0x264   : > { %876 = vst.msk [vmem:[#allocation2 + $0x4e9] sm:$0xff] %vm443_vm1, %v747_v62 }
 0x265   : > { %v2654_v31 = vpop.f32.mrf.mxu3  ;;  %8574 = vmatmul.msk.f32.gmra.mxu2 %vm443_vm1, %v1048_v45  ;;  %8543 = vmatmul.msk.f32.gmra.mxu1 %vm443_vm1, %v2225_v44 }
 0x266   : > { %v10278_v20 = vadd.f32 %v2654_v31, %v2582_v12 }
 0x267   : > { %v2043_v24 = vpop.f32.mrf.mxu0 }
 0x268   : > { %v2499_v40 = vpop.f32.mrf.mxu2  ;;  %v2123_v17 = vadd.f32 %v2043_v24, %v9910_v5 }
 0x269   : > { %v2583_v54 = vadd.f32 %v2499_v40, %v2429_v58 }
 0x26a   : > { %8607 = vmatmul.msk.f32.gmra.mxu3 %vm443_vm1, %v2225_v44  ;;  %8510 = vmatmul.msk.f32.gmra.mxu0 %vm443_vm1, %v1048_v45  ;;  %v2354_v10 = vpop.f32.mrf.mxu1  ;;  %v2431_v25 = vadd.f32 %v2351_v39, %v2123_v17  ;;  %v1072_v17 = vld [vmem:[#allocation2 + $0x488] ss:$2 sm:$0xff] }
 0x26d   : > { %v2657_v38 = vpop.f32.mrf.mxu3  ;;  %8575 = vmatmul.msk.f32.gmra.mxu2 %vm443_vm1, %v1050_v14  ;;  %8544 = vmatmul.msk.f32.gmra.mxu1 %vm443_vm1, %v2227_v4 }
 0x26e   : > { %v10286_v5 = vadd.f32 %v2657_v38, %v2583_v54  ;;  %v2234_v38 = vrot.slane %v1074_v21, 1 }
 0x26f   : > { %v2046_v58 = vpop.f32.mrf.mxu0 }
 0x270   : > { %v2502_v45 = vpop.f32.mrf.mxu2  ;;  %v2124_v18 = vadd.f32 %v2046_v58, %v9928_v30  ;;  %v1064_v30 = vld [vmem:[#allocation2 + $0x458] ss:$2 sm:$0x3] }
 0x271   : > { %v2584_v34 = vadd.f32 %v2502_v45, %v2430_v37  ;;  %v2231_v44 = vrot.slane %v1064_v30, 1  ;;  %v1086_v30 = vld [vmem:[#allocation2 + $0x4e8] ss:$2 sm:$0xff] }
 0x272   : > { %8608 = vmatmul.msk.f32.gmra.mxu3 %vm443_vm1, %v2227_v4  ;;  %8511 = vmatmul.msk.f32.gmra.mxu0 %vm443_vm1, %v1050_v14  ;;  %v2357_v19 = vpop.f32.mrf.mxu1  ;;  %v2432_v61 = vadd.f32 %v2354_v10, %v2124_v18 }
 0x273   : > { %v2232_v24 = vsel %vm1149_vm2, %v2229_v15, %v2231_v44  ;;  %v2236_v15 = vrot.slane %v1076_v57, 1  ;;  %v2768_v57 = vld [vmem:[#allocation2 + $0x1] ss:$2 sm:$0xff] }
 0x275   : > { %v2660_v7 = vpop.f32.mrf.mxu3  ;;  %8576 = vmatmul.msk.f32.gmra.mxu2 %vm443_vm1, %v1060_v22  ;;  %8545 = vmatmul.msk.f32.gmra.mxu1 %vm443_vm1, %v2230_v56 }
 0x276   : > { %v10302_v29 = vadd.f32 %v2660_v7, %v2584_v34  ;;  %v1084_v7 = vld [vmem:[#allocation2 + $0x4d8] ss:$2 sm:$0xff] }
 0x277   : > { %v2049_v12 = vpop.f32.mrf.mxu0 }
 0x278   : > { %v2505_v39 = vpop.f32.mrf.mxu2  ;;  %v2125_v37 = vadd.f32 %v2049_v12, %v9940_v43 }
 0x279   : > { %v2585_v14 = vadd.f32 %v2505_v39, %v2431_v25  ;;  %v2233_v25 = vrot.slane %v1072_v17, 1 }
 0x27a   : > { %8609 = vmatmul.msk.f32.gmra.mxu3 %vm443_vm1, %v2230_v56  ;;  %8512 = vmatmul.msk.f32.gmra.mxu0 %vm443_vm1, %v1060_v22  ;;  %v2360_v31 = vpop.f32.mrf.mxu1  ;;  %v2433_v55 = vadd.f32 %v2357_v19, %v2125_v37  ;;  %v2238_v37 = vrot.slane %v1084_v7, 1 }
 0x27b   : > { %v2235_v58 = vsel %vm1149_vm2, %v2233_v25, %v2234_v38 }
 0x27d   : > { %v2663_v40 = vpop.f32.mrf.mxu3  ;;  %8577 = vmatmul.msk.f32.gmra.mxu2 %vm443_vm1, %v1062_v41  ;;  %8546 = vmatmul.msk.f32.gmra.mxu1 %vm443_vm1, %v2232_v24 }
 0x27e   : > { %v10310_v54 = vadd.f32 %v2663_v40, %v2585_v14  ;;  %v2239_v14 = vrot.slane %v1086_v30, 1 }
 0x27f   : > { %v2052_v43 = vpop.f32.mrf.mxu0 }
 0x280   : > { %v2508_v10 = vpop.f32.mrf.mxu2  ;;  %v2126_v4 = vadd.f32 %v2052_v43, %v9955_v1  ;;  %v2240_v40 = vsel %vm1149_vm2, %v2238_v37, %v2239_v14  ;;  %v1088_v43 = vld [vmem:[#allocation2 + $0x4f8] ss:$2 sm:$0x3] }
 0x281   : > { %v2586_v22 = vadd.f32 %v2508_v10, %v2432_v61  ;;  %v2237_v61 = vsel %vm1149_vm2, %v2234_v38, %v2236_v15  ;;  %v2241_v38 = vrot.slane %v1088_v43, 1 }
 0x282   : > { %8610 = vmatmul.msk.f32.gmra.mxu3 %vm443_vm1, %v2232_v24  ;;  %8513 = vmatmul.msk.f32.gmra.mxu0 %vm443_vm1, %v1062_v41  ;;  %v2363_v13 = vpop.f32.mrf.mxu1  ;;  %v2434_v42 = vadd.f32 %v2360_v31, %v2126_v4 }
 0x285   : > { %v2666_v62 = vpop.f32.mrf.mxu3  ;;  %8578 = vmatmul.msk.f32.gmra.mxu2 %vm443_vm1, %v1072_v17  ;;  %8547 = vmatmul.msk.f32.gmra.mxu1 %vm443_vm1, %v2235_v58 }
 0x286   : > { %v10318_v45 = vadd.f32 %v2666_v62, %v2586_v22  ;;  %v897_v62 = vld [vmem:[%s12222_s1 + $0x3c] sm:$0x7] }
 0x287   : > { %v2055_v59 = vpop.f32.mrf.mxu0  ;;  %8848 = vmatpush.msk.msrb.mxu3 %vm1294_vm0, %v897_v62 }
 0x288   : > { %v2511_v1 = vpop.f32.mrf.mxu2  ;;  %v2127_v18 = vadd.f32 %v2055_v59, %v9980_v23  ;;  %v2770_v59 = vld [vmem:[#allocation2 + $0x11] ss:$2 sm:$0xff] }
 0x289   : > { %v2587_v34 = vadd.f32 %v2511_v1, %v2433_v55  ;;  %v2242_v1 = vsel %vm1149_vm2, %v2239_v14, %v2241_v38 }
 0x28a   : > { %8611 = vmatmul.msk.f32.gmra.mxu3 %vm443_vm1, %v2235_v58  ;;  %8514 = vmatmul.msk.f32.gmra.mxu0 %vm443_vm1, %v1072_v17  ;;  %v2366_v41 = vpop.f32.mrf.mxu1  ;;  %v2435_v19 = vadd.f32 %v2363_v13, %v2127_v18  ;;  %v887_v58 = vld [vmem:[%s12222_s1 + $0x14] sm:$0x7] }
 0x28b   : > { %8749 = vmatpush.msk.msrb.mxu0 %vm1294_vm0, %v887_v58 }
 0x28d   : > { %v2669_v56 = vpop.f32.mrf.mxu3  ;;  %8579 = vmatmul.msk.f32.gmra.mxu2 %vm443_vm1, %v1074_v21  ;;  %8548 = vmatmul.msk.f32.gmra.mxu1 %vm443_vm1, %v2237_v61 }
 0x28e   : > { %v10326_v12 = vadd.f32 %v2669_v56, %v2587_v34  ;;  %v3231_v34 = vrot.slane %v2768_v57, 1  ;;  %v1096_v56 = vld [vmem:[#allocation2 + $0x528] ss:$2 sm:$0xff] }
 0x28f   : > { %v2058_v23 = vpop.f32.mrf.mxu0 }
 0x290   : > { %v2514_v39 = vpop.f32.mrf.mxu2  ;;  %v2128_v44 = vadd.f32 %v2058_v23, %v9997_v50  ;;  %v895_v50 = vld [vmem:[%s12222_s1 + $0x34] sm:$0x7]  ;;  %v1098_v23 = vld [vmem:[#allocation2 + $0x538] ss:$2 sm:$0xff] }
 0x291   : > { %v2588_v31 = vadd.f32 %v2514_v39, %v2434_v42  ;;  %8815 = vmatpush.msk.msrb.mxu2 %vm1294_vm0, %v895_v50 }
 0x292   : > { %8612 = vmatmul.msk.f32.gmra.mxu3 %vm443_vm1, %v2237_v61  ;;  %8515 = vmatmul.msk.f32.gmra.mxu0 %vm443_vm1, %v1074_v21  ;;  %v2369_v55 = vpop.f32.mrf.mxu1  ;;  %v2436_v24 = vadd.f32 %v2366_v41, %v2128_v44  ;;  %v3232_v41 = vrot.slane %v2770_v59, 1 }
 0x294   : > { %v3233_v44 = vsel %vm1149_vm2, %v3231_v34, %v3232_v41 }
 0x295   : > { %v2672_v17 = vpop.f32.mrf.mxu3  ;;  %8580 = vmatmul.msk.f32.gmra.mxu2 %vm443_vm1, %v1084_v7  ;;  %8549 = vmatmul.msk.f32.gmra.mxu1 %vm443_vm1, %v2240_v40 }
 0x296   : > { %v10334_v10 = vadd.f32 %v2672_v17, %v2588_v31  ;;  %v2610_v31 = vrot.slane %v1096_v56, 1 }
 0x297   : > { %v2061_v25 = vpop.f32.mrf.mxu0 }
 0x298   : > { %v2517_v21 = vpop.f32.mrf.mxu2  ;;  %v2129_v4 = vadd.f32 %v2061_v25, %v10005_v9  ;;  %v889_v9 = vld [vmem:[%s12222_s1 + $0x1c] sm:$0x7] }
 0x299   : > { %v2589_v22 = vadd.f32 %v2517_v21, %v2435_v19  ;;  %8782 = vmatpush.msk.msrb.mxu1 %vm1294_vm0, %v889_v9  ;;  %v1100_v21 = vld [vmem:[#allocation2 + $0x548] ss:$2 sm:$0x3]  ;;  %v2780_v9 = vld [vmem:[#allocation2 + $0x51] ss:$2 sm:$0xff] }
 0x29a   : > { %8613 = vmatmul.msk.f32.gmra.mxu3 %vm443_vm1, %v2240_v40  ;;  %8516 = vmatmul.msk.f32.gmra.mxu0 %vm443_vm1, %v1084_v7  ;;  %v2372_v13 = vpop.f32.mrf.mxu1  ;;  %v2437_v42 = vadd.f32 %v2369_v55, %v2129_v4  ;;  %v2611_v55 = vrot.slane %v1098_v23, 1  ;;  %v2772_v40 = vld [vmem:[#allocation2 + $0x21] ss:$2 sm:$0x3]  ;;  %v2613_v58 = vrot.slane %v1100_v21, 1 }
 0x29d   : > { %v2675_v18 = vpop.f32.mrf.mxu3  ;;  %8581 = vmatmul.msk.f32.gmra.mxu2 %vm443_vm1, %v1086_v30  ;;  %8550 = vmatmul.msk.f32.gmra.mxu1 %vm443_vm1, %v2242_v1 }
 0x29e   : > { %v10358_v15 = vadd.f32 %v2675_v18, %v2589_v22 }
 0x29f   : > { %v2064_v19 = vpop.f32.mrf.mxu0 }
 0x2a0   : > { %v2520_v61 = vpop.f32.mrf.mxu2  ;;  %v2130_v7 = vadd.f32 %v2064_v19, %v10022_v33  ;;  %v3234_v33 = vrot.slane %v2772_v40, 1  ;;  %v3236_v19 = vrot.slane %v2780_v9, 1 }
 0x2a1   : > { %v2590_v39 = vadd.f32 %v2520_v61, %v2436_v24  ;;  %v2612_v24 = vsel %vm1149_vm2, %v2610_v31, %v2611_v55 }
 0x2a2   : > { %8614 = vmatmul.msk.f32.gmra.mxu3 %vm443_vm1, %v2242_v1  ;;  %8517 = vmatmul.msk.f32.gmra.mxu0 %vm443_vm1, %v1086_v30  ;;  %v2375_v37 = vpop.f32.mrf.mxu1  ;;  %v2438_v14 = vadd.f32 %v2372_v13, %v2130_v7  ;;  %v3235_v22 = vsel %vm1149_vm2, %v3232_v41, %v3234_v33  ;;  %v2782_v1 = vld [vmem:[#allocation2 + $0x61] ss:$2 sm:$0xff] }
 0x2a3   : > { %v3237_v61 = vrot.slane %v2782_v1, 1 }
 0x2a5   : > { %v2678_v17 = vpop.f32.mrf.mxu3  ;;  %8582 = vmatmul.msk.f32.gmra.mxu2 %vm443_vm1, %v1096_v56  ;;  %8651 = vmatmul.msk.f32.vlgmr.msra.gmra.mxu1 %vm443_vm1, %v3233_v44 }
 0x2a6   : > { %v10366_v43 = vadd.f32 %v2678_v17, %v2590_v39 }
 0x2a7   : > { %v2067_v50 = vpop.f32.mrf.mxu0 }
 0x2a8   : > { %v2523_v25 = vpop.f32.mrf.mxu2  ;;  %v2131_v30 = vadd.f32 %v2067_v50, %v10029_v47  ;;  %v2614_v47 = vsel %vm1149_vm2, %v2611_v55, %v2613_v58  ;;  %v2792_v50 = vld [vmem:[#allocation2 + $0xa1] ss:$2 sm:$0xff] }
 0x2a9   : > { %v2591_v4 = vadd.f32 %v2523_v25, %v2437_v42  ;;  %v2794_v25 = vld [vmem:[#allocation2 + $0xb1] ss:$2 sm:$0xff] }
 0x2aa   : > { %8615 = vmatmul.msk.f32.gmra.mxu3 %vm443_vm1, %v2612_v24  ;;  %8618 = vmatmul.msk.f32.vlgmr.msra.gmra.mxu0 %vm443_vm1, %v2768_v57  ;;  %v2378_v38 = vpop.f32.mrf.mxu1  ;;  %v2439_v13 = vadd.f32 %v2375_v37, %v2131_v30  ;;  %v2784_v37 = vld [vmem:[#allocation2 + $0x71] ss:$2 sm:$0x3] }
 0x2ab   : > { %v3239_v55 = vrot.slane %v2784_v37, 1  ;;  %v2806_v37 = vld [vmem:[#allocation2 + $0x101] ss:$2 sm:$0xff] }
 0x2ad   : > { %v2681_v62 = vpop.f32.mrf.mxu3  ;;  %8583 = vmatmul.msk.f32.gmra.mxu2 %vm443_vm1, %v1098_v23  ;;  %8652 = vmatmul.msk.f32.gmra.mxu1 %vm443_vm1, %v3235_v22  ;;  %v3238_v23 = vsel %vm1149_vm2, %v3236_v19, %v3237_v61  ;;  %v3240_v33 = vsel %vm1149_vm2, %v3237_v61, %v3239_v55  ;;  %v3242_v22 = vrot.slane %v2794_v25, 1 }
 0x2ae   : > { %v10375_v18 = vadd.f32 %v2681_v62, %v2591_v4  ;;  %v3241_v4 = vrot.slane %v2792_v50, 1 }
 0x2af   : > { %v2070_v42 = vpop.f32.mrf.mxu0 }
 0x2b0   : > { %v2526_v34 = vpop.f32.mrf.mxu2  ;;  %v2132_v57 = vadd.f32 %v2070_v42, %v10044_v11  ;;  %v2796_v42 = vld [vmem:[#allocation2 + $0xc1] ss:$2 sm:$0x3] }
 0x2b1   : > { %v2592_v41 = vadd.f32 %v2526_v34, %v2438_v14  ;;  %v3244_v61 = vrot.slane %v2796_v42, 1  ;;  %v2818_v42 = vld [vmem:[#allocation2 + $0x151] ss:$2 sm:$0xff] }
 0x2b2   : > { %8616 = vmatmul.msk.f32.gmra.mxu3 %vm443_vm1, %v2614_v47  ;;  %8619 = vmatmul.msk.f32.gmra.mxu0 %vm443_vm1, %v2770_v59  ;;  %v2381_v56 = vpop.f32.mrf.mxu1  ;;  %v2440_v7 = vadd.f32 %v2378_v38, %v2132_v57 }
 0x2b5   : > { %v2684_v39 = vpop.f32.mrf.mxu3  ;;  %8684 = vmatmul.msk.f32.vlgmr.msra.gmra.mxu2 %vm443_vm1, %v2780_v9  ;;  %8653 = vmatmul.msk.f32.gmra.mxu1 %vm443_vm1, %v3238_v23 }
 0x2b6   : > { %v10384_v44 = vadd.f32 %v2684_v39, %v2592_v41  ;;  %v2804_v39 = vld [vmem:[#allocation2 + $0xf1] ss:$2 sm:$0xff] }
 0x2b7   : > { %v2073_v31 = vpop.f32.mrf.mxu0 }
 0x2b8   : > { %v2529_v11 = vpop.f32.mrf.mxu2  ;;  %v2133_v14 = vadd.f32 %v2073_v31, %v10051_v27 }
 0x2b9   : > { %v2593_v40 = vadd.f32 %v2529_v11, %v2439_v13 }
 0x2ba   : > { %8717 = vmatmul.msk.f32.vlgmr.msra.gmra.mxu3 %vm443_vm1, %v3238_v23  ;;  %8620 = vmatmul.msk.f32.gmra.mxu0 %vm443_vm1, %v2780_v9  ;;  %v2384_v59 = vpop.f32.mrf.mxu1  ;;  %v2441_v17 = vadd.f32 %v2381_v56, %v2133_v14  ;;  %v3243_v9 = vsel %vm1149_vm2, %v3241_v4, %v3242_v22  ;;  %v3246_v14 = vrot.slane %v2804_v39, 1 }
 0x2bd   : > { %v2687_v24 = vpop.f32.mrf.mxu3  ;;  %8685 = vmatmul.msk.f32.gmra.mxu2 %vm443_vm1, %v2782_v1  ;;  %8654 = vmatmul.msk.f32.gmra.mxu1 %vm443_vm1, %v3240_v33 }
 0x2be   : > { %v10392_v30 = vadd.f32 %v2687_v24, %v2593_v40  ;;  %v3247_v40 = vrot.slane %v2806_v37, 1 }
 0x2bf   : > { %v2076_v27 = vpop.f32.mrf.mxu0 }
 0x2c0   : > { %v2532_v21 = vpop.f32.mrf.mxu2  ;;  %v2134_v38 = vadd.f32 %v2076_v27, %v10066_v49  ;;  %v3248_v24 = vsel %vm1149_vm2, %v3246_v14, %v3247_v40  ;;  %v2808_v27 = vld [vmem:[#allocation2 + $0x111] ss:$2 sm:$0x3] }
 0x2c1   : > { %v2594_v13 = vadd.f32 %v2532_v21, %v2440_v7  ;;  %v3245_v7 = vsel %vm1149_vm2, %v3242_v22, %v3244_v61  ;;  %v3249_v22 = vrot.slane %v2808_v27, 1  ;;  %v2830_v27 = vld [vmem:[#allocation2 + $0x1a1] ss:$2 sm:$0xff] }
 0x2c2   : > { %8718 = vmatmul.msk.f32.gmra.mxu3 %vm443_vm1, %v3240_v33  ;;  %8621 = vmatmul.msk.f32.gmra.mxu0 %vm443_vm1, %v2782_v1  ;;  %v2387_v58 = vpop.f32.mrf.mxu1  ;;  %v2442_v62 = vadd.f32 %v2384_v59, %v2134_v38 }
 0x2c5   : > { %v2690_v47 = vpop.f32.mrf.mxu3  ;;  %8686 = vmatmul.msk.f32.gmra.mxu2 %vm443_vm1, %v2792_v50  ;;  %8655 = vmatmul.msk.f32.gmra.mxu1 %vm443_vm1, %v3243_v9 }
 0x2c6   : > { %v10400_v34 = vadd.f32 %v2690_v47, %v2594_v13  ;;  %v2816_v47 = vld [vmem:[#allocation2 + $0x141] ss:$2 sm:$0xff] }
 0x2c7   : > { %v2079_v19 = vpop.f32.mrf.mxu0 }
 0x2c8   : > { %v2535_v49 = vpop.f32.mrf.mxu2  ;;  %v2135_v57 = vadd.f32 %v2079_v19, %v10073_v3 }
 0x2c9   : > { %v2595_v41 = vadd.f32 %v2535_v49, %v2441_v17 }
 0x2ca   : > { %8719 = vmatmul.msk.f32.gmra.mxu3 %vm443_vm1, %v3243_v9  ;;  %8622 = vmatmul.msk.f32.gmra.mxu0 %vm443_vm1, %v2792_v50  ;;  %v2390_v1 = vpop.f32.mrf.mxu1  ;;  %v2443_v56 = vadd.f32 %v2387_v58, %v2135_v57  ;;  %v3251_v57 = vrot.slane %v2816_v47, 1 }
 0x2cd   : > { %v2693_v23 = vpop.f32.mrf.mxu3  ;;  %8687 = vmatmul.msk.f32.gmra.mxu2 %vm443_vm1, %v2794_v25  ;;  %8656 = vmatmul.msk.f32.gmra.mxu1 %vm443_vm1, %v3245_v7 }
 0x2ce   : > { %v10408_v31 = vadd.f32 %v2693_v23, %v2595_v41  ;;  %v3252_v41 = vrot.slane %v2818_v42, 1 }
 0x2cf   : > { %v2082_v3 = vpop.f32.mrf.mxu0 }
 0x2d0   : > { %v2538_v11 = vpop.f32.mrf.mxu2  ;;  %v2136_v55 = vadd.f32 %v2082_v3, %v10088_v32  ;;  %v3253_v23 = vsel %vm1149_vm2, %v3251_v57, %v3252_v41  ;;  %v2820_v3 = vld [vmem:[#allocation2 + $0x161] ss:$2 sm:$0x3] }
 0x2d1   : > { %v2596_v59 = vadd.f32 %v2538_v11, %v2442_v62  ;;  %v3250_v62 = vsel %vm1149_vm2, %v3247_v40, %v3249_v22  ;;  %v3254_v40 = vrot.slane %v2820_v3, 1  ;;  %v2842_v3 = vld [vmem:[#allocation2 + $0x1f1] ss:$2 sm:$0xff] }
 0x2d2   : > { %8720 = vmatmul.msk.f32.gmra.mxu3 %vm443_vm1, %v3245_v7  ;;  %8623 = vmatmul.msk.f32.gmra.mxu0 %vm443_vm1, %v2794_v25  ;;  %v2393_v17 = vpop.f32.mrf.mxu1  ;;  %v2444_v33 = vadd.f32 %v2390_v1, %v2136_v55 }
 0x2d5   : > { %v2696_v50 = vpop.f32.mrf.mxu3  ;;  %8688 = vmatmul.msk.f32.gmra.mxu2 %vm443_vm1, %v2804_v39  ;;  %8657 = vmatmul.msk.f32.gmra.mxu1 %vm443_vm1, %v3248_v24 }
 0x2d6   : > { %v10416_v21 = vadd.f32 %v2696_v50, %v2596_v59  ;;  %v2828_v50 = vld [vmem:[#allocation2 + $0x191] ss:$2 sm:$0xff] }
 0x2d7   : > { %v2085_v4 = vpop.f32.mrf.mxu0 }
 0x2d8   : > { %v2541_v32 = vpop.f32.mrf.mxu2  ;;  %v2137_v38 = vadd.f32 %v2085_v4, %v10095_v48 }
 0x2d9   : > { %v2597_v13 = vadd.f32 %v2541_v32, %v2443_v56 }
 0x2da   : > { %8721 = vmatmul.msk.f32.gmra.mxu3 %vm443_vm1, %v3248_v24  ;;  %8624 = vmatmul.msk.f32.gmra.mxu0 %vm443_vm1, %v2804_v39  ;;  %v2396_v25 = vpop.f32.mrf.mxu1  ;;  %v2445_v58 = vadd.f32 %v2393_v17, %v2137_v38  ;;  %v3256_v38 = vrot.slane %v2828_v50, 1 }
 0x2dd   : > { %v2699_v9 = vpop.f32.mrf.mxu3  ;;  %8689 = vmatmul.msk.f32.gmra.mxu2 %vm443_vm1, %v2806_v37  ;;  %8658 = vmatmul.msk.f32.gmra.mxu1 %vm443_vm1, %v3250_v62 }
 0x2de   : > { %v10424_v19 = vadd.f32 %v2699_v9, %v2597_v13  ;;  %v3257_v13 = vrot.slane %v2830_v27, 1 }
 0x2df   : > { %v2088_v48 = vpop.f32.mrf.mxu0 }
 0x2e0   : > { %v2544_v49 = vpop.f32.mrf.mxu2  ;;  %v2138_v61 = vadd.f32 %v2088_v48, %v10110_v8  ;;  %v3258_v9 = vsel %vm1149_vm2, %v3256_v38, %v3257_v13  ;;  %v2832_v48 = vld [vmem:[#allocation2 + $0x1b1] ss:$2 sm:$0x3] }
 0x2e1   : > { %v2598_v1 = vadd.f32 %v2544_v49, %v2444_v33  ;;  %v3255_v33 = vsel %vm1149_vm2, %v3252_v41, %v3254_v40  ;;  %v3259_v41 = vrot.slane %v2832_v48, 1  ;;  %v2854_v48 = vld [vmem:[#allocation2 + $0x241] ss:$2 sm:$0xff] }
 0x2e2   : > { %8722 = vmatmul.msk.f32.gmra.mxu3 %vm443_vm1, %v3250_v62  ;;  %8625 = vmatmul.msk.f32.gmra.mxu0 %vm443_vm1, %v2806_v37  ;;  %v2399_v56 = vpop.f32.mrf.mxu1  ;;  %v2446_v7 = vadd.f32 %v2396_v25, %v2138_v61 }
 0x2e5   : > { %v2702_v39 = vpop.f32.mrf.mxu3  ;;  %8690 = vmatmul.msk.f32.gmra.mxu2 %vm443_vm1, %v2816_v47  ;;  %8659 = vmatmul.msk.f32.gmra.mxu1 %vm443_vm1, %v3253_v23 }
 0x2e6   : > { %v10432_v11 = vadd.f32 %v2702_v39, %v2598_v1  ;;  %v2840_v39 = vld [vmem:[#allocation2 + $0x1e1] ss:$2 sm:$0xff] }
 0x2e7   : > { %v2091_v14 = vpop.f32.mrf.mxu0 }
 0x2e8   : > { %v2547_v8 = vpop.f32.mrf.mxu2  ;;  %v2139_v55 = vadd.f32 %v2091_v14, %v10117_v35 }
 0x2e9   : > { %v2599_v59 = vadd.f32 %v2547_v8, %v2445_v58 }
 0x2ea   : > { %8723 = vmatmul.msk.f32.gmra.mxu3 %vm443_vm1, %v3253_v23  ;;  %8626 = vmatmul.msk.f32.gmra.mxu0 %vm443_vm1, %v2816_v47  ;;  %v2402_v37 = vpop.f32.mrf.mxu1  ;;  %v2447_v17 = vadd.f32 %v2399_v56, %v2139_v55  ;;  %v3261_v55 = vrot.slane %v2840_v39, 1 }
 0x2ed   : > { %v2705_v24 = vpop.f32.mrf.mxu3  ;;  %8691 = vmatmul.msk.f32.gmra.mxu2 %vm443_vm1, %v2818_v42  ;;  %8660 = vmatmul.msk.f32.gmra.mxu1 %vm443_vm1, %v3255_v33 }
 0x2ee   : > { %v10440_v4 = vadd.f32 %v2705_v24, %v2599_v59  ;;  %v3262_v59 = vrot.slane %v2842_v3, 1 }
 0x2ef   : > { %v2094_v35 = vpop.f32.mrf.mxu0 }
 0x2f0   : > { %v2550_v32 = vpop.f32.mrf.mxu2  ;;  %v2140_v22 = vadd.f32 %v2094_v35, %v10132_v63  ;;  %v3263_v24 = vsel %vm1149_vm2, %v3261_v55, %v3262_v59  ;;  %v2844_v35 = vld [vmem:[#allocation2 + $0x201] ss:$2 sm:$0x3] }
 0x2f1   : > { %v2600_v25 = vadd.f32 %v2550_v32, %v2446_v7  ;;  %v3260_v7 = vsel %vm1149_vm2, %v3257_v13, %v3259_v41  ;;  %v3264_v13 = vrot.slane %v2844_v35, 1  ;;  %v2866_v35 = vld [vmem:[#allocation2 + $0x291] ss:$2 sm:$0xff] }
 0x2f2   : > { %8724 = vmatmul.msk.f32.gmra.mxu3 %vm443_vm1, %v3255_v33  ;;  %8627 = vmatmul.msk.f32.gmra.mxu0 %vm443_vm1, %v2818_v42  ;;  %v2405_v58 = vpop.f32.mrf.mxu1  ;;  %v2448_v62 = vadd.f32 %v2402_v37, %v2140_v22 }
 0x2f5   : > { %v2708_v47 = vpop.f32.mrf.mxu3  ;;  %8692 = vmatmul.msk.f32.gmra.mxu2 %vm443_vm1, %v2828_v50  ;;  %8661 = vmatmul.msk.f32.gmra.mxu1 %vm443_vm1, %v3258_v9 }
 0x2f6   : > { %v10448_v49 = vadd.f32 %v2708_v47, %v2600_v25  ;;  %v2852_v47 = vld [vmem:[#allocation2 + $0x231] ss:$2 sm:$0xff] }
 0x2f7   : > { %v2097_v57 = vpop.f32.mrf.mxu0 }
 0x2f8   : > { %v2553_v63 = vpop.f32.mrf.mxu2  ;;  %v2141_v61 = vadd.f32 %v2097_v57, %v10139_v0 }
 0x2f9   : > { %v2601_v1 = vadd.f32 %v2553_v63, %v2447_v17 }
 0x2fa   : > { %8725 = vmatmul.msk.f32.gmra.mxu3 %vm443_vm1, %v3258_v9  ;;  %8628 = vmatmul.msk.f32.gmra.mxu0 %vm443_vm1, %v2828_v50  ;;  %v2408_v42 = vpop.f32.mrf.mxu1  ;;  %v2449_v56 = vadd.f32 %v2405_v58, %v2141_v61  ;;  %v3266_v61 = vrot.slane %v2852_v47, 1 }
 0x2fd   : > { %v2711_v23 = vpop.f32.mrf.mxu3  ;;  %8693 = vmatmul.msk.f32.gmra.mxu2 %vm443_vm1, %v2830_v27  ;;  %8662 = vmatmul.msk.f32.gmra.mxu1 %vm443_vm1, %v3260_v7 }
 0x2fe   : > { %v10456_v14 = vadd.f32 %v2711_v23, %v2601_v1  ;;  %v3267_v1 = vrot.slane %v2854_v48, 1 }
 0x2ff   : > { %v2100_v0 = vpop.f32.mrf.mxu0 }
 0x300   : > { %v2556_v8 = vpop.f32.mrf.mxu2  ;;  %v2142_v40 = vadd.f32 %v2100_v0, %v10154_v46  ;;  %v3268_v23 = vsel %vm1149_vm2, %v3266_v61, %v3267_v1  ;;  %v2856_v0 = vld [vmem:[#allocation2 + $0x251] ss:$2 sm:$0x3] }
 0x301   : > { %v2602_v37 = vadd.f32 %v2556_v8, %v2448_v62  ;;  %v3265_v62 = vsel %vm1149_vm2, %v3262_v59, %v3264_v13  ;;  %v3269_v59 = vrot.slane %v2856_v0, 1  ;;  %v2878_v0 = vld [vmem:[#allocation2 + $0x2e1] ss:$2 sm:$0xff] }
 0x302   : > { %8726 = vmatmul.msk.f32.gmra.mxu3 %vm443_vm1, %v3260_v7  ;;  %8629 = vmatmul.msk.f32.gmra.mxu0 %vm443_vm1, %v2830_v27  ;;  %v2411_v17 = vpop.f32.mrf.mxu1  ;;  %v2450_v33 = vadd.f32 %v2408_v42, %v2142_v40 }
 0x305   : > { %v2714_v50 = vpop.f32.mrf.mxu3  ;;  %8694 = vmatmul.msk.f32.gmra.mxu2 %vm443_vm1, %v2840_v39  ;;  %8663 = vmatmul.msk.f32.gmra.mxu1 %vm443_vm1, %v3263_v24 }
 0x306   : > { %v10464_v32 = vadd.f32 %v2714_v50, %v2602_v37  ;;  %v2864_v50 = vld [vmem:[#allocation2 + $0x281] ss:$2 sm:$0xff] }
 0x307   : > { %v2103_v38 = vpop.f32.mrf.mxu0 }
 0x308   : > { %v2559_v46 = vpop.f32.mrf.mxu2  ;;  %v2143_v22 = vadd.f32 %v2103_v38, %v10161_v16 }
 0x309   : > { %v2603_v25 = vadd.f32 %v2559_v46, %v2449_v56 }
 0x30a   : > { %8727 = vmatmul.msk.f32.gmra.mxu3 %vm443_vm1, %v3263_v24  ;;  %8630 = vmatmul.msk.f32.gmra.mxu0 %vm443_vm1, %v2840_v39  ;;  %v2414_v27 = vpop.f32.mrf.mxu1  ;;  %v2451_v58 = vadd.f32 %v2411_v17, %v2143_v22  ;;  %v3271_v22 = vrot.slane %v2864_v50, 1 }
 0x30d   : > { %v2717_v9 = vpop.f32.mrf.mxu3  ;;  %8695 = vmatmul.msk.f32.gmra.mxu2 %vm443_vm1, %v2842_v3  ;;  %8664 = vmatmul.msk.f32.gmra.mxu1 %vm443_vm1, %v3265_v62 }
 0x30e   : > { %v10472_v57 = vadd.f32 %v2717_v9, %v2603_v25  ;;  %v3272_v25 = vrot.slane %v2866_v35, 1 }
 0x30f   : > { %v2106_v16 = vpop.f32.mrf.mxu0 }
 0x310   : > { %v2562_v63 = vpop.f32.mrf.mxu2  ;;  %v2144_v41 = vadd.f32 %v2106_v16, %v10176_v53  ;;  %v3273_v9 = vsel %vm1149_vm2, %v3271_v22, %v3272_v25  ;;  %v2868_v16 = vld [vmem:[#allocation2 + $0x2a1] ss:$2 sm:$0x3] }
 0x311   : > { %v2604_v42 = vadd.f32 %v2562_v63, %v2450_v33  ;;  %v3270_v33 = vsel %vm1149_vm2, %v3267_v1, %v3269_v59  ;;  %v3274_v1 = vrot.slane %v2868_v16, 1  ;;  %v2890_v16 = vld [vmem:[#allocation2 + $0x331] ss:$2 sm:$0xff] }
 0x312   : > { %8728 = vmatmul.msk.f32.gmra.mxu3 %vm443_vm1, %v3265_v62  ;;  %8631 = vmatmul.msk.f32.gmra.mxu0 %vm443_vm1, %v2842_v3  ;;  %v2417_v56 = vpop.f32.mrf.mxu1  ;;  %v2452_v7 = vadd.f32 %v2414_v27, %v2144_v41 }
 0x315   : > { %v2720_v39 = vpop.f32.mrf.mxu3  ;;  %8696 = vmatmul.msk.f32.gmra.mxu2 %vm443_vm1, %v2852_v47  ;;  %8665 = vmatmul.msk.f32.gmra.mxu1 %vm443_vm1, %v3268_v23 }
 0x316   : > { %v10480_v8 = vadd.f32 %v2720_v39, %v2604_v42  ;;  %v2876_v39 = vld [vmem:[#allocation2 + $0x2d1] ss:$2 sm:$0xff] }
 0x317   : > { %v2109_v55 = vpop.f32.mrf.mxu0 }
 0x318   : > { %v2565_v53 = vpop.f32.mrf.mxu2  ;;  %v2145_v40 = vadd.f32 %v2109_v55, %v10186_v51 }
 0x319   : > { %v2605_v37 = vadd.f32 %v2565_v53, %v2451_v58 }
 0x31a   : > { %8729 = vmatmul.msk.f32.gmra.mxu3 %vm443_vm1, %v3268_v23  ;;  %8632 = vmatmul.msk.f32.gmra.mxu0 %vm443_vm1, %v2852_v47  ;;  %v2420_v3 = vpop.f32.mrf.mxu1  ;;  %v2453_v17 = vadd.f32 %v2417_v56, %v2145_v40  ;;  %v3276_v40 = vrot.slane %v2876_v39, 1 }
 0x31d   : > { %v2723_v24 = vpop.f32.mrf.mxu3  ;;  %8697 = vmatmul.msk.f32.gmra.mxu2 %vm443_vm1, %v2854_v48  ;;  %8666 = vmatmul.msk.f32.gmra.mxu1 %vm443_vm1, %v3270_v33 }
 0x31e   : > { %v10488_v38 = vadd.f32 %v2723_v24, %v2605_v37  ;;  %v3277_v37 = vrot.slane %v2878_v0, 1 }
 0x31f   : > { %v2112_v51 = vpop.f32.mrf.mxu0 }
 0x320   : > { %v2568_v46 = vpop.f32.mrf.mxu2  ;;  %v2146_v13 = vadd.f32 %v2112_v51, %v10205_v60  ;;  %v3278_v24 = vsel %vm1149_vm2, %v3276_v40, %v3277_v37  ;;  %v2880_v51 = vld [vmem:[#allocation2 + $0x2f1] ss:$2 sm:$0x3] }
 0x321   : > { %v2606_v27 = vadd.f32 %v2568_v46, %v2452_v7  ;;  %v3275_v7 = vsel %vm1149_vm2, %v3272_v25, %v3274_v1  ;;  %v3279_v25 = vrot.slane %v2880_v51, 1  ;;  %v2902_v51 = vld [vmem:[#allocation2 + $0x381] ss:$2 sm:$0xff] }
 0x322   : > { %8730 = vmatmul.msk.f32.gmra.mxu3 %vm443_vm1, %v3270_v33  ;;  %8633 = vmatmul.msk.f32.gmra.mxu0 %vm443_vm1, %v2854_v48  ;;  %v3395_v58 = vpop.f32.mrf.mxu1  ;;  %v2454_v62 = vadd.f32 %v2420_v3, %v2146_v13 }
 0x325   : > { %v2726_v47 = vpop.f32.mrf.mxu3  ;;  %8698 = vmatmul.msk.f32.gmra.mxu2 %vm443_vm1, %v2864_v50  ;;  %8667 = vmatmul.msk.f32.gmra.mxu1 %vm443_vm1, %v3273_v9 }
 0x326   : > { %v10496_v63 = vadd.f32 %v2726_v47, %v2606_v27  ;;  %v2888_v47 = vld [vmem:[#allocation2 + $0x321] ss:$2 sm:$0xff] }
 0x327   : > { %v3087_v61 = vpop.f32.mrf.mxu0 }
 0x328   : > { %v2571_v60 = vpop.f32.mrf.mxu2  ;;  %v3183_v41 = vadd.f32 %v3087_v61, %v10214_v26 }
 0x329   : > { %v2607_v42 = vadd.f32 %v2571_v60, %v2453_v17 }
 0x32a   : > { %8731 = vmatmul.msk.f32.gmra.mxu3 %vm443_vm1, %v3273_v9  ;;  %8634 = vmatmul.msk.f32.gmra.mxu0 %vm443_vm1, %v2864_v50  ;;  %v3398_v48 = vpop.f32.mrf.mxu1  ;;  %v3491_v56 = vadd.f32 %v3395_v58, %v3183_v41  ;;  %v3281_v41 = vrot.slane %v2888_v47, 1 }
 0x32d   : > { %v2729_v23 = vpop.f32.mrf.mxu3  ;;  %8699 = vmatmul.msk.f32.gmra.mxu2 %vm443_vm1, %v2866_v35  ;;  %8668 = vmatmul.msk.f32.gmra.mxu1 %vm443_vm1, %v3275_v7 }
 0x32e   : > { %v10504_v55 = vadd.f32 %v2729_v23, %v2607_v42  ;;  %v3282_v42 = vrot.slane %v2890_v16, 1 }
 0x32f   : > { %v3090_v26 = vpop.f32.mrf.mxu0 }
 0x330   : > { %v2574_v53 = vpop.f32.mrf.mxu2  ;;  %v3184_v59 = vadd.f32 %v3090_v26, %v10230_v52  ;;  %v3283_v23 = vsel %vm1149_vm2, %v3281_v41, %v3282_v42  ;;  %v2892_v26 = vld [vmem:[#allocation2 + $0x341] ss:$2 sm:$0x3] }
 0x331   : > { %v2608_v3 = vadd.f32 %v2574_v53, %v2454_v62  ;;  %v3280_v62 = vsel %vm1149_vm2, %v3277_v37, %v3279_v25  ;;  %v3284_v37 = vrot.slane %v2892_v26, 1  ;;  %v2914_v26 = vld [vmem:[#allocation2 + $0x3d1] ss:$2 sm:$0xff] }
 0x332   : > { %8732 = vmatmul.msk.f32.gmra.mxu3 %vm443_vm1, %v3275_v7  ;;  %8635 = vmatmul.msk.f32.gmra.mxu0 %vm443_vm1, %v2866_v35  ;;  %v3401_v17 = vpop.f32.mrf.mxu1  ;;  %v3492_v33 = vadd.f32 %v3398_v48, %v3184_v59 }
 0x335   : > { %v2732_v50 = vpop.f32.mrf.mxu3  ;;  %8700 = vmatmul.msk.f32.gmra.mxu2 %vm443_vm1, %v2876_v39  ;;  %8669 = vmatmul.msk.f32.gmra.mxu1 %vm443_vm1, %v3278_v24 }
 0x336   : > { %v10512_v46 = vadd.f32 %v2732_v50, %v2608_v3  ;;  %v2900_v50 = vld [vmem:[#allocation2 + $0x371] ss:$2 sm:$0xff] }
 0x337   : > { %v3093_v22 = vpop.f32.mrf.mxu0 }
 0x338   : > { %v3549_v52 = vpop.f32.mrf.mxu2  ;;  %v3185_v13 = vadd.f32 %v3093_v22, %v10238_v6 }
 0x339   : > { %v3645_v27 = vadd.f32 %v3549_v52, %v3491_v56 }
 0x33a   : > { %8733 = vmatmul.msk.f32.gmra.mxu3 %vm443_vm1, %v3278_v24  ;;  %8636 = vmatmul.msk.f32.gmra.mxu0 %vm443_vm1, %v2876_v39  ;;  %v3404_v35 = vpop.f32.mrf.mxu1  ;;  %v3493_v58 = vadd.f32 %v3401_v17, %v3185_v13  ;;  %v3286_v13 = vrot.slane %v2900_v50, 1 }
 0x33d   : > { %v3707_v9 = vpop.f32.mrf.mxu3  ;;  %8701 = vmatmul.msk.f32.gmra.mxu2 %vm443_vm1, %v2878_v0  ;;  %8670 = vmatmul.msk.f32.gmra.mxu1 %vm443_vm1, %v3280_v62 }
 0x33e   : > { %v10520_v61 = vadd.f32 %v3707_v9, %v3645_v27  ;;  %v3287_v27 = vrot.slane %v2902_v51, 1 }
 0x33f   : > { %v3096_v6 = vpop.f32.mrf.mxu0 }
 0x340   : > { %v3552_v60 = vpop.f32.mrf.mxu2  ;;  %v3186_v1 = vadd.f32 %v3096_v6, %v10254_v28  ;;  %v3288_v9 = vsel %vm1149_vm2, %v3286_v13, %v3287_v27  ;;  %v2904_v6 = vld [vmem:[#allocation2 + $0x391] ss:$2 sm:$0x3] }
 0x341   : > { %v3646_v48 = vadd.f32 %v3552_v60, %v3492_v33  ;;  %v3285_v33 = vsel %vm1149_vm2, %v3282_v42, %v3284_v37  ;;  %v3289_v42 = vrot.slane %v2904_v6, 1  ;;  %v2926_v6 = vld [vmem:[#allocation2 + $0x421] ss:$2 sm:$0xff] }
 0x342   : > { %8734 = vmatmul.msk.f32.gmra.mxu3 %vm443_vm1, %v3280_v62  ;;  %8637 = vmatmul.msk.f32.gmra.mxu0 %vm443_vm1, %v2878_v0  ;;  %v3407_v56 = vpop.f32.mrf.mxu1  ;;  %v3494_v7 = vadd.f32 %v3404_v35, %v3186_v1 }
 0x345   : > { %v3710_v39 = vpop.f32.mrf.mxu3  ;;  %8702 = vmatmul.msk.f32.gmra.mxu2 %vm443_vm1, %v2888_v47  ;;  %8671 = vmatmul.msk.f32.gmra.mxu1 %vm443_vm1, %v3283_v23 }
 0x346   : > { %v10528_v53 = vadd.f32 %v3710_v39, %v3646_v48  ;;  %v2912_v39 = vld [vmem:[#allocation2 + $0x3c1] ss:$2 sm:$0xff] }
 0x347   : > { %v3099_v40 = vpop.f32.mrf.mxu0 }
 0x348   : > { %v3555_v28 = vpop.f32.mrf.mxu2  ;;  %v3187_v59 = vadd.f32 %v3099_v40, %v10262_v36 }
 0x349   : > { %v3647_v3 = vadd.f32 %v3555_v28, %v3493_v58 }
 0x34a   : > { %8735 = vmatmul.msk.f32.gmra.mxu3 %vm443_vm1, %v3283_v23  ;;  %8638 = vmatmul.msk.f32.gmra.mxu0 %vm443_vm1, %v2888_v47  ;;  %v3410_v0 = vpop.f32.mrf.mxu1  ;;  %v3495_v17 = vadd.f32 %v3407_v56, %v3187_v59  ;;  %v3291_v59 = vrot.slane %v2912_v39, 1 }
 0x34d   : > { %v3713_v24 = vpop.f32.mrf.mxu3  ;;  %8703 = vmatmul.msk.f32.gmra.mxu2 %vm443_vm1, %v2890_v16  ;;  %8672 = vmatmul.msk.f32.gmra.mxu1 %vm443_vm1, %v3285_v33 }
 0x34e   : > { %v10536_v22 = vadd.f32 %v3713_v24, %v3647_v3  ;;  %v3292_v3 = vrot.slane %v2914_v26, 1 }
 0x34f   : > { %v3102_v36 = vpop.f32.mrf.mxu0 }
 0x350   : > { %v3558_v52 = vpop.f32.mrf.mxu2  ;;  %v3188_v25 = vadd.f32 %v3102_v36, %v10278_v20  ;;  %v3293_v24 = vsel %vm1149_vm2, %v3291_v59, %v3292_v3  ;;  %v2916_v36 = vld [vmem:[#allocation2 + $0x3e1] ss:$2 sm:$0x3] }
 0x351   : > { %v3648_v35 = vadd.f32 %v3558_v52, %v3494_v7  ;;  %v3290_v7 = vsel %vm1149_vm2, %v3287_v27, %v3289_v42  ;;  %v3294_v27 = vrot.slane %v2916_v36, 1  ;;  %v2938_v36 = vld [vmem:[#allocation2 + $0x471] ss:$2 sm:$0xff] }
 0x352   : > { %8736 = vmatmul.msk.f32.gmra.mxu3 %vm443_vm1, %v3285_v33  ;;  %8639 = vmatmul.msk.f32.gmra.mxu0 %vm443_vm1, %v2890_v16  ;;  %v3413_v58 = vpop.f32.mrf.mxu1  ;;  %v3496_v62 = vadd.f32 %v3410_v0, %v3188_v25 }
 0x355   : > { %v3716_v47 = vpop.f32.mrf.mxu3  ;;  %8704 = vmatmul.msk.f32.gmra.mxu2 %vm443_vm1, %v2900_v50  ;;  %8673 = vmatmul.msk.f32.gmra.mxu1 %vm443_vm1, %v3288_v9 }
 0x356   : > { %v10544_v60 = vadd.f32 %v3716_v47, %v3648_v35  ;;  %v2924_v47 = vld [vmem:[#allocation2 + $0x411] ss:$2 sm:$0xff] }
 0x357   : > { %v3105_v41 = vpop.f32.mrf.mxu0 }
 0x358   : > { %v3561_v20 = vpop.f32.mrf.mxu2  ;;  %v3189_v1 = vadd.f32 %v3105_v41, %v10286_v5 }
 0x359   : > { %v3649_v48 = vadd.f32 %v3561_v20, %v3495_v17 }
 0x35a   : > { %8737 = vmatmul.msk.f32.gmra.mxu3 %vm443_vm1, %v3288_v9  ;;  %8640 = vmatmul.msk.f32.gmra.mxu0 %vm443_vm1, %v2900_v50  ;;  %v3416_v16 = vpop.f32.mrf.mxu1  ;;  %v3497_v56 = vadd.f32 %v3413_v58, %v3189_v1  ;;  %v3296_v1 = vrot.slane %v2924_v47, 1 }
 0x35d   : > { %v3719_v23 = vpop.f32.mrf.mxu3  ;;  %8705 = vmatmul.msk.f32.gmra.mxu2 %vm443_vm1, %v2902_v51  ;;  %8674 = vmatmul.msk.f32.gmra.mxu1 %vm443_vm1, %v3290_v7 }
 0x35e   : > { %v10552_v40 = vadd.f32 %v3719_v23, %v3649_v48  ;;  %v3297_v48 = vrot.slane %v2926_v6, 1 }
 0x35f   : > { %v3108_v5 = vpop.f32.mrf.mxu0 }
 0x360   : > { %v3564_v28 = vpop.f32.mrf.mxu2  ;;  %v3190_v37 = vadd.f32 %v3108_v5, %v10302_v29  ;;  %v3298_v23 = vsel %vm1149_vm2, %v3296_v1, %v3297_v48  ;;  %v2928_v5 = vld [vmem:[#allocation2 + $0x431] ss:$2 sm:$0x3] }
 0x361   : > { %v3650_v0 = vadd.f32 %v3564_v28, %v3496_v62  ;;  %v3295_v62 = vsel %vm1149_vm2, %v3292_v3, %v3294_v27  ;;  %v3299_v3 = vrot.slane %v2928_v5, 1  ;;  %v2950_v5 = vld [vmem:[#allocation2 + $0x4c1] ss:$2 sm:$0xff] }
 0x362   : > { %8738 = vmatmul.msk.f32.gmra.mxu3 %vm443_vm1, %v3290_v7  ;;  %8641 = vmatmul.msk.f32.gmra.mxu0 %vm443_vm1, %v2902_v51  ;;  %v3419_v17 = vpop.f32.mrf.mxu1  ;;  %v3498_v33 = vadd.f32 %v3416_v16, %v3190_v37 }
 0x365   : > { %v3722_v50 = vpop.f32.mrf.mxu3  ;;  %8706 = vmatmul.msk.f32.gmra.mxu2 %vm443_vm1, %v2912_v39  ;;  %8675 = vmatmul.msk.f32.gmra.mxu1 %vm443_vm1, %v3293_v24 }
 0x366   : > { %v10560_v52 = vadd.f32 %v3722_v50, %v3650_v0  ;;  %v2936_v50 = vld [vmem:[#allocation2 + $0x461] ss:$2 sm:$0xff] }
 0x367   : > { %v3111_v13 = vpop.f32.mrf.mxu0 }
 0x368   : > { %v3567_v29 = vpop.f32.mrf.mxu2  ;;  %v3191_v25 = vadd.f32 %v3111_v13, %v10310_v54 }
 0x369   : > { %v3651_v35 = vadd.f32 %v3567_v29, %v3497_v56 }
 0x36a   : > { %8739 = vmatmul.msk.f32.gmra.mxu3 %vm443_vm1, %v3293_v24  ;;  %8642 = vmatmul.msk.f32.gmra.mxu0 %vm443_vm1, %v2912_v39  ;;  %v3422_v51 = vpop.f32.mrf.mxu1  ;;  %v3499_v58 = vadd.f32 %v3419_v17, %v3191_v25  ;;  %v3301_v25 = vrot.slane %v2936_v50, 1 }
 0x36d   : > { %v3725_v9 = vpop.f32.mrf.mxu3  ;;  %8707 = vmatmul.msk.f32.gmra.mxu2 %vm443_vm1, %v2914_v26  ;;  %8676 = vmatmul.msk.f32.gmra.mxu1 %vm443_vm1, %v3295_v62 }
 0x36e   : > { %v10568_v41 = vadd.f32 %v3725_v9, %v3651_v35  ;;  %v3302_v35 = vrot.slane %v2938_v36, 1 }
 0x36f   : > { %v3114_v54 = vpop.f32.mrf.mxu0 }
 0x370   : > { %v3570_v20 = vpop.f32.mrf.mxu2  ;;  %v3192_v42 = vadd.f32 %v3114_v54, %v10318_v45  ;;  %v3303_v9 = vsel %vm1149_vm2, %v3301_v25, %v3302_v35  ;;  %v2940_v54 = vld [vmem:[#allocation2 + $0x481] ss:$2 sm:$0x3] }
 0x371   : > { %v3652_v16 = vadd.f32 %v3570_v20, %v3498_v33  ;;  %v3300_v33 = vsel %vm1149_vm2, %v3297_v48, %v3299_v3  ;;  %v3304_v48 = vrot.slane %v2940_v54, 1 }
 0x372   : > { %8740 = vmatmul.msk.f32.gmra.mxu3 %vm443_vm1, %v3295_v62  ;;  %8643 = vmatmul.msk.f32.gmra.mxu0 %vm443_vm1, %v2914_v26  ;;  %v3425_v56 = vpop.f32.mrf.mxu1  ;;  %v3500_v7 = vadd.f32 %v3422_v51, %v3192_v42 }
 0x375   : > { %v3728_v39 = vpop.f32.mrf.mxu3  ;;  %8708 = vmatmul.msk.f32.gmra.mxu2 %vm443_vm1, %v2924_v47  ;;  %8677 = vmatmul.msk.f32.gmra.mxu1 %vm443_vm1, %v3298_v23 }
 0x376   : > { %v10576_v28 = vadd.f32 %v3728_v39, %v3652_v16  ;;  %v2948_v39 = vld [vmem:[#allocation2 + $0x4b1] ss:$2 sm:$0xff] }
 0x377   : > { %v3117_v59 = vpop.f32.mrf.mxu0 }
 0x378   : > { %v3573_v45 = vpop.f32.mrf.mxu2  ;;  %v3193_v37 = vadd.f32 %v3117_v59, %v10326_v12 }
 0x379   : > { %v3653_v0 = vadd.f32 %v3573_v45, %v3499_v58 }
 0x37a   : > { %8741 = vmatmul.msk.f32.gmra.mxu3 %vm443_vm1, %v3298_v23  ;;  %8644 = vmatmul.msk.f32.gmra.mxu0 %vm443_vm1, %v2924_v47  ;;  %v3428_v26 = vpop.f32.mrf.mxu1  ;;  %v3501_v17 = vadd.f32 %v3425_v56, %v3193_v37  ;;  %v3306_v37 = vrot.slane %v2948_v39, 1 }
 0x37d   : > { %v3731_v24 = vpop.f32.mrf.mxu3  ;;  %8709 = vmatmul.msk.f32.gmra.mxu2 %vm443_vm1, %v2926_v6  ;;  %8678 = vmatmul.msk.f32.gmra.mxu1 %vm443_vm1, %v3300_v33 }
 0x37e   : > { %v10584_v13 = vadd.f32 %v3731_v24, %v3653_v0  ;;  %v3307_v0 = vrot.slane %v2950_v5, 1 }
 0x37f   : > { %v3120_v12 = vpop.f32.mrf.mxu0 }
 0x380   : > { %v3576_v29 = vpop.f32.mrf.mxu2  ;;  %v3194_v27 = vadd.f32 %v3120_v12, %v10334_v10  ;;  %v3308_v24 = vsel %vm1149_vm2, %v3306_v37, %v3307_v0  ;;  %v2952_v12 = vld [vmem:[#allocation2 + $0x4d1] ss:$2 sm:$0x3] }
 0x381   : > { %v3654_v51 = vadd.f32 %v3576_v29, %v3500_v7  ;;  %v3305_v7 = vsel %vm1149_vm2, %v3302_v35, %v3304_v48  ;;  %v3309_v35 = vrot.slane %v2952_v12, 1 }
 0x382   : > { %8742 = vmatmul.msk.f32.gmra.mxu3 %vm443_vm1, %v3300_v33  ;;  %8645 = vmatmul.msk.f32.gmra.mxu0 %vm443_vm1, %v2926_v6  ;;  %v3431_v58 = vpop.f32.mrf.mxu1  ;;  %v3502_v62 = vadd.f32 %v3428_v26, %v3194_v27 }
 0x385   : > { %v3734_v47 = vpop.f32.mrf.mxu3  ;;  %8710 = vmatmul.msk.f32.gmra.mxu2 %vm443_vm1, %v2936_v50  ;;  %8679 = vmatmul.msk.f32.gmra.mxu1 %vm443_vm1, %v3303_v9 }
 0x386   : > { %v10592_v20 = vadd.f32 %v3734_v47, %v3654_v51  ;;  %v3310_v47 = vsel %vm1149_vm2, %v3307_v0, %v3309_v35 }
 0x387   : > { %v3123_v1 = vpop.f32.mrf.mxu0 }
 0x388   : > { %v3579_v10 = vpop.f32.mrf.mxu2  ;;  %v3195_v42 = vadd.f32 %v3123_v1, %v10358_v15 }
 0x389   : > { %v3655_v16 = vadd.f32 %v3579_v10, %v3501_v17 }
 0x38a   : > { %8743 = vmatmul.msk.f32.gmra.mxu3 %vm443_vm1, %v3303_v9  ;;  %8646 = vmatmul.msk.f32.gmra.mxu0 %vm443_vm1, %v2936_v50  ;;  %v3434_v6 = vpop.f32.mrf.mxu1  ;;  %v3503_v56 = vadd.f32 %v3431_v58, %v3195_v42  ;;  %v2776_v9 = vld [vmem:[#allocation2 + $0x39] ss:$2 sm:$0xff] }
 0x38b   : > { %v4096_v10 = vrot.slane %v2776_v9, 1 }
 0x38d   : > { %v3737_v23 = vpop.f32.mrf.mxu3  ;;  %8711 = vmatmul.msk.f32.gmra.mxu2 %vm443_vm1, %v2938_v36  ;;  %8680 = vmatmul.msk.f32.gmra.mxu1 %vm443_vm1, %v3305_v7 }
 0x38e   : > { %v10600_v59 = vadd.f32 %v3737_v23, %v3655_v16  ;;  %v2960_v16 = vld [vmem:[#allocation2 + $0x501] ss:$2 sm:$0xff] }
 0x38f   : > { %v3126_v15 = vpop.f32.mrf.mxu0 }
 0x390   : > { %v3582_v45 = vpop.f32.mrf.mxu2  ;;  %v3196_v3 = vadd.f32 %v3126_v15, %v10366_v43 }
 0x391   : > { %v3656_v26 = vadd.f32 %v3582_v45, %v3502_v62  ;;  %v2774_v62 = vld [vmem:[#allocation2 + $0x29] ss:$2 sm:$0xff]  ;;  %v3678_v45 = vrot.slane %v2960_v16, 1 }
 0x392   : > { %8744 = vmatmul.msk.f32.gmra.mxu3 %vm443_vm1, %v3305_v7  ;;  %8647 = vmatmul.msk.f32.gmra.mxu0 %vm443_vm1, %v2938_v36  ;;  %v3437_v17 = vpop.f32.mrf.mxu1  ;;  %v3504_v33 = vadd.f32 %v3434_v6, %v3196_v3  ;;  %v2778_v3 = vld [vmem:[#allocation2 + $0x49] ss:$2 sm:$0x3] }
 0x395   : > { %v3740_v50 = vpop.f32.mrf.mxu3  ;;  %8712 = vmatmul.msk.f32.gmra.mxu2 %vm443_vm1, %v2948_v39  ;;  %8681 = vmatmul.msk.f32.gmra.mxu1 %vm443_vm1, %v3308_v24 }
 0x396   : > { %v10608_v29 = vadd.f32 %v3740_v50, %v3656_v26  ;;  %v2964_v50 = vld [vmem:[#allocation2 + $0x521] ss:$2 sm:$0x3] }
 0x397   : > { %v3129_v25 = vpop.f32.mrf.mxu0  ;;  %v3681_v35 = vrot.slane %v2964_v50, 1 }
 0x398   : > { %v3585_v43 = vpop.f32.mrf.mxu2  ;;  %v3197_v27 = vadd.f32 %v3129_v25, %v10375_v18  ;;  %v4095_v18 = vrot.slane %v2774_v62, 1 }
 0x399   : > { %v3657_v51 = vadd.f32 %v3585_v43, %v3503_v56  ;;  %v2962_v56 = vld [vmem:[#allocation2 + $0x511] ss:$2 sm:$0xff] }
 0x39a   : > { %8745 = vmatmul.msk.f32.gmra.mxu3 %vm443_vm1, %v3308_v24  ;;  %8648 = vmatmul.msk.f32.gmra.mxu0 %vm443_vm1, %v2948_v39  ;;  %v3440_v36 = vpop.f32.mrf.mxu1  ;;  %v3505_v58 = vadd.f32 %v3437_v17, %v3197_v27  ;;  %v4097_v39 = vsel %vm1149_vm2, %v4095_v18, %v4096_v10  ;;  %v3679_v37 = vrot.slane %v2962_v56, 1 }
 0x39c   : > { %v3680_v17 = vsel %vm1149_vm2, %v3678_v45, %v3679_v37 }
 0x39d   : > { %v3743_v54 = vpop.f32.mrf.mxu3  ;;  %8713 = vmatmul.msk.f32.gmra.mxu2 %vm443_vm1, %v2950_v5  ;;  %8682 = vmatmul.msk.f32.gmra.mxu1 %vm443_vm1, %v3310_v47 }
 0x39e   : > { %v10616_v1 = vadd.f32 %v3743_v54, %v3657_v51 }
 0x39f   : > { %v3132_v42 = vpop.f32.mrf.mxu0 }
 0x3a0   : > { %v3588_v48 = vpop.f32.mrf.mxu2  ;;  %v3198_v6 = vadd.f32 %v3132_v42, %v10384_v44  ;;  %v4098_v44 = vrot.slane %v2778_v3, 1 }
 0x3a1   : > { %v3658_v7 = vadd.f32 %v3588_v48, %v3504_v33 }
 0x3a2   : > { %8746 = vmatmul.msk.f32.gmra.mxu3 %vm443_vm1, %v3310_v47  ;;  %8649 = vmatmul.msk.f32.gmra.mxu0 %vm443_vm1, %v2950_v5  ;;  %v3443_v23 = vpop.f32.mrf.mxu1  ;;  %v3506_v15 = vadd.f32 %v3440_v36, %v3198_v6  ;;  %v4099_v43 = vsel %vm1149_vm2, %v4096_v10, %v4098_v44  ;;  %v2786_v36 = vld [vmem:[#allocation2 + $0x79] ss:$2 sm:$0xff]  ;;  %v2788_v47 = vld [vmem:[#allocation2 + $0x89] ss:$2 sm:$0xff] }
 0x3a3   : > { %v4100_v42 = vrot.slane %v2786_v36, 1  ;;  %v4101_v48 = vrot.slane %v2788_v47, 1 }
 0x3a5   : > { %v3746_v0 = vpop.f32.mrf.mxu3  ;;  %8714 = vmatmul.msk.f32.gmra.mxu2 %vm443_vm1, %v2960_v16  ;;  %8783 = vmatmul.msk.f32.vlgmr.msrb.gmra.mxu1 %vm443_vm1, %v4097_v39 }
 0x3a6   : > { %v10624_v26 = vadd.f32 %v3746_v0, %v3658_v7 }
 0x3a7   : > { %v3135_v33 = vpop.f32.mrf.mxu0 }
 0x3a8   : > { %v3591_v24 = vpop.f32.mrf.mxu2  ;;  %v3199_v5 = vadd.f32 %v3135_v33, %v10392_v30  ;;  %v3682_v30 = vsel %vm1149_vm2, %v3679_v37, %v3681_v35  ;;  %v2798_v33 = vld [vmem:[#allocation2 + $0xc9] ss:$2 sm:$0xff] }
 0x3a9   : > { %v3659_v12 = vadd.f32 %v3591_v24, %v3505_v58  ;;  %v2800_v24 = vld [vmem:[#allocation2 + $0xd9] ss:$2 sm:$0xff] }
 0x3aa   : > { %8747 = vmatmul.msk.f32.gmra.mxu3 %vm443_vm1, %v3680_v17  ;;  %8750 = vmatmul.msk.f32.vlgmr.msrb.gmra.mxu0 %vm443_vm1, %v2774_v62  ;;  %v3446_v25 = vpop.f32.mrf.mxu1  ;;  %v3507_v27 = vadd.f32 %v3443_v23, %v3199_v5  ;;  %v2790_v23 = vld [vmem:[#allocation2 + $0x99] ss:$2 sm:$0x3] }
 0x3ab   : > { %v4103_v37 = vrot.slane %v2790_v23, 1  ;;  %v2812_v23 = vld [vmem:[#allocation2 + $0x129] ss:$2 sm:$0xff] }
 0x3ad   : > { %v3749_v51 = vpop.f32.mrf.mxu3  ;;  %8715 = vmatmul.msk.f32.gmra.mxu2 %vm443_vm1, %v2962_v56  ;;  %8784 = vmatmul.msk.f32.gmra.mxu1 %vm443_vm1, %v4099_v43  ;;  %v4102_v56 = vsel %vm1149_vm2, %v4100_v42, %v4101_v48  ;;  %v4104_v44 = vsel %vm1149_vm2, %v4101_v48, %v4103_v37  ;;  %v4106_v43 = vrot.slane %v2800_v24, 1 }
 0x3ae   : > { %v10633_v54 = vadd.f32 %v3749_v51, %v3659_v12  ;;  %v4105_v12 = vrot.slane %v2798_v33, 1 }
 0x3af   : > { %v3138_v58 = vpop.f32.mrf.mxu0 }
 0x3b0   : > { %v3594_v18 = vpop.f32.mrf.mxu2  ;;  %v3200_v62 = vadd.f32 %v3138_v58, %v10400_v34  ;;  %v2802_v58 = vld [vmem:[#allocation2 + $0xe9] ss:$2 sm:$0x3] }
 0x3b1   : > { %v3660_v10 = vadd.f32 %v3594_v18, %v3506_v15  ;;  %v4108_v48 = vrot.slane %v2802_v58, 1  ;;  %v2824_v58 = vld [vmem:[#allocation2 + $0x179] ss:$2 sm:$0xff] }
 0x3b2   : > { %8748 = vmatmul.msk.f32.gmra.mxu3 %vm443_vm1, %v3682_v30  ;;  %8751 = vmatmul.msk.f32.gmra.mxu0 %vm443_vm1, %v2776_v9  ;;  %v3449_v16 = vpop.f32.mrf.mxu1  ;;  %v3508_v6 = vadd.f32 %v3446_v25, %v3200_v62 }
 0x3b5   : > { %v3752_v7 = vpop.f32.mrf.mxu3  ;;  %8816 = vmatmul.msk.f32.vlgmr.msrb.gmra.mxu2 %vm443_vm1, %v2786_v36  ;;  %8785 = vmatmul.msk.f32.gmra.mxu1 %vm443_vm1, %v4102_v56 }
 0x3b6   : > { %v10642_v39 = vadd.f32 %v3752_v7, %v3660_v10  ;;  %v2810_v7 = vld [vmem:[#allocation2 + $0x119] ss:$2 sm:$0xff] }
 0x3b7   : > { %v3141_v45 = vpop.f32.mrf.mxu0 }
 0x3b8   : > { %v3597_v34 = vpop.f32.mrf.mxu2  ;;  %v3201_v15 = vadd.f32 %v3141_v45, %v10408_v31 }
 0x3b9   : > { %v3661_v3 = vadd.f32 %v3597_v34, %v3507_v27 }
 0x3ba   : > { %8849 = vmatmul.msk.f32.vlgmr.msrb.gmra.mxu3 %vm443_vm1, %v4102_v56  ;;  %8752 = vmatmul.msk.f32.gmra.mxu0 %vm443_vm1, %v2786_v36  ;;  %v3452_v9 = vpop.f32.mrf.mxu1  ;;  %v3509_v0 = vadd.f32 %v3449_v16, %v3201_v15  ;;  %v4107_v36 = vsel %vm1149_vm2, %v4105_v12, %v4106_v43  ;;  %v4110_v15 = vrot.slane %v2810_v7, 1 }
 0x3bd   : > { %v3755_v17 = vpop.f32.mrf.mxu3  ;;  %8817 = vmatmul.msk.f32.gmra.mxu2 %vm443_vm1, %v2788_v47  ;;  %8786 = vmatmul.msk.f32.gmra.mxu1 %vm443_vm1, %v4104_v44 }
 0x3be   : > { %v10650_v5 = vadd.f32 %v3755_v17, %v3661_v3  ;;  %v4111_v3 = vrot.slane %v2812_v23, 1 }
 0x3bf   : > { %v3144_v31 = vpop.f32.mrf.mxu0 }
 0x3c0   : > { %v3600_v50 = vpop.f32.mrf.mxu2  ;;  %v3202_v25 = vadd.f32 %v3144_v31, %v10416_v21  ;;  %v4112_v17 = vsel %vm1149_vm2, %v4110_v15, %v4111_v3  ;;  %v2814_v31 = vld [vmem:[#allocation2 + $0x139] ss:$2 sm:$0x3] }
 0x3c1   : > { %v3662_v27 = vadd.f32 %v3600_v50, %v3508_v6  ;;  %v4109_v6 = vsel %vm1149_vm2, %v4106_v43, %v4108_v48  ;;  %v4113_v43 = vrot.slane %v2814_v31, 1  ;;  %v2836_v31 = vld [vmem:[#allocation2 + $0x1c9] ss:$2 sm:$0xff] }
 0x3c2   : > { %8850 = vmatmul.msk.f32.gmra.mxu3 %vm443_vm1, %v4104_v44  ;;  %8753 = vmatmul.msk.f32.gmra.mxu0 %vm443_vm1, %v2788_v47  ;;  %v3455_v35 = vpop.f32.mrf.mxu1  ;;  %v3510_v51 = vadd.f32 %v3452_v9, %v3202_v25 }
 0x3c5   : > { %v3758_v30 = vpop.f32.mrf.mxu3  ;;  %8818 = vmatmul.msk.f32.gmra.mxu2 %vm443_vm1, %v2798_v33  ;;  %8787 = vmatmul.msk.f32.gmra.mxu1 %vm443_vm1, %v4107_v36 }
 0x3c6   : > { %v10658_v18 = vadd.f32 %v3758_v30, %v3662_v27  ;;  %v2822_v30 = vld [vmem:[#allocation2 + $0x169] ss:$2 sm:$0xff] }
 0x3c7   : > { %v3147_v42 = vpop.f32.mrf.mxu0 }
 0x3c8   : > { %v3603_v21 = vpop.f32.mrf.mxu2  ;;  %v3203_v62 = vadd.f32 %v3147_v42, %v10424_v19 }
 0x3c9   : > { %v3663_v10 = vadd.f32 %v3603_v21, %v3509_v0 }
 0x3ca   : > { %8851 = vmatmul.msk.f32.gmra.mxu3 %vm443_vm1, %v4107_v36  ;;  %8754 = vmatmul.msk.f32.gmra.mxu0 %vm443_vm1, %v2798_v33  ;;  %v3458_v47 = vpop.f32.mrf.mxu1  ;;  %v3511_v16 = vadd.f32 %v3455_v35, %v3203_v62  ;;  %v4115_v62 = vrot.slane %v2822_v30, 1 }
 0x3cd   : > { %v3761_v56 = vpop.f32.mrf.mxu3  ;;  %8819 = vmatmul.msk.f32.gmra.mxu2 %vm443_vm1, %v2800_v24  ;;  %8788 = vmatmul.msk.f32.gmra.mxu1 %vm443_vm1, %v4109_v6 }
 0x3ce   : > { %v10666_v45 = vadd.f32 %v3761_v56, %v3663_v10  ;;  %v4116_v10 = vrot.slane %v2824_v58, 1 }
 0x3cf   : > { %v3150_v19 = vpop.f32.mrf.mxu0 }
 0x3d0   : > { %v3606_v34 = vpop.f32.mrf.mxu2  ;;  %v3204_v37 = vadd.f32 %v3150_v19, %v10432_v11  ;;  %v4117_v56 = vsel %vm1149_vm2, %v4115_v62, %v4116_v10  ;;  %v2826_v19 = vld [vmem:[#allocation2 + $0x189] ss:$2 sm:$0x3] }
 0x3d1   : > { %v3664_v9 = vadd.f32 %v3606_v34, %v3510_v51  ;;  %v4114_v51 = vsel %vm1149_vm2, %v4111_v3, %v4113_v43  ;;  %v4118_v3 = vrot.slane %v2826_v19, 1 }
 0x3d2   : > { %8852 = vmatmul.msk.f32.gmra.mxu3 %vm443_vm1, %v4109_v6  ;;  %8755 = vmatmul.msk.f32.gmra.mxu0 %vm443_vm1, %v2800_v24  ;;  %v3461_v0 = vpop.f32.mrf.mxu1  ;;  %v3512_v44 = vadd.f32 %v3458_v47, %v3204_v37 }
 0x3d5   : > { %v3764_v33 = vpop.f32.mrf.mxu3  ;;  %8820 = vmatmul.msk.f32.gmra.mxu2 %vm443_vm1, %v2810_v7  ;;  %8789 = vmatmul.msk.f32.gmra.mxu1 %vm443_vm1, %v4112_v17 }
 0x3d6   : > { %v10674_v50 = vadd.f32 %v3764_v33, %v3664_v9  ;;  %v2834_v33 = vld [vmem:[#allocation2 + $0x1b9] ss:$2 sm:$0xff] }
 0x3d7   : > { %v3153_v12 = vpop.f32.mrf.mxu0 }
 0x3d8   : > { %v3609_v11 = vpop.f32.mrf.mxu2  ;;  %v3205_v25 = vadd.f32 %v3153_v12, %v10440_v4 }
 0x3d9   : > { %v3665_v27 = vadd.f32 %v3609_v11, %v3511_v16  ;;  %v4943_v11 = vld [vmem:[%s12224_s3 + $0x10] sm:$0xff] }
 0x3da   : > { %8853 = vmatmul.msk.f32.gmra.mxu3 %vm443_vm1, %v4112_v17  ;;  %8756 = vmatmul.msk.f32.gmra.mxu0 %vm443_vm1, %v2810_v7  ;;  %v3464_v24 = vpop.f32.mrf.mxu1  ;;  %v3513_v35 = vadd.f32 %v3461_v0, %v3205_v25  ;;  %v4951_v25 = vld [vmem:[%s12224_s3 + $0x50] sm:$0xff] }
 0x3db   : > { %5099 = vmatpush.msra.mxu0 %v4943_v11  ;;  %5255 = vmatpush.msra.mxu3 %v4951_v25 }
 0x3dd   : > { %v3767_v36 = vpop.f32.mrf.mxu3  ;;  %8821 = vmatmul.msk.f32.gmra.mxu2 %vm443_vm1, %v2812_v23  ;;  %8790 = vmatmul.msk.f32.gmra.mxu1 %vm443_vm1, %v4114_v51 }
 0x3de   : > { %v10682_v42 = vadd.f32 %v3767_v36, %v3665_v27 }
 0x3df   : > { %v3156_v4 = vpop.f32.mrf.mxu0 }
 0x3e0   : > { %v3612_v21 = vpop.f32.mrf.mxu2  ;;  %v3206_v48 = vadd.f32 %v3156_v4, %v10448_v49 }
 0x3e1   : > { %v3666_v47 = vadd.f32 %v3612_v21, %v3512_v44  ;;  %v4119_v44 = vsel %vm1149_vm2, %v4116_v10, %v4118_v3  ;;  %v4941_v21 = vld [vmem:[%s12224_s3] sm:$0xff] }
 0x3e2   : > { %8854 = vmatmul.msk.f32.gmra.mxu3 %vm443_vm1, %v4114_v51  ;;  %8757 = vmatmul.msk.f32.gmra.mxu0 %vm443_vm1, %v2812_v23  ;;  %v3467_v16 = vpop.f32.mrf.mxu1  ;;  %v3514_v6 = vadd.f32 %v3464_v24, %v3206_v48  ;;  %v4120_v24 = vrot.slane %v2834_v33, 1  ;;  %v4121_v51 = vrot.slane %v2836_v31, 1  ;;  %v2848_v3 = vld [vmem:[#allocation2 + $0x219] ss:$2 sm:$0xff] }
 0x3e3   : > { %5156 = vmatpush.msra.mxu1 %v4941_v21 }
 0x3e4   : > { %v4122_v62 = vsel %vm1149_vm2, %v4120_v24, %v4121_v51 }
 0x3e5   : > { %v3770_v7 = vpop.f32.mrf.mxu3  ;;  %8822 = vmatmul.msk.f32.gmra.mxu2 %vm443_vm1, %v2822_v30  ;;  %8791 = vmatmul.msk.f32.gmra.mxu1 %vm443_vm1, %v4117_v56 }
 0x3e6   : > { %v10690_v34 = vadd.f32 %v3770_v7, %v3666_v47 }
 0x3e7   : > { %v3159_v15 = vpop.f32.mrf.mxu0 }
 0x3e8   : > { %v3615_v49 = vpop.f32.mrf.mxu2  ;;  %v3207_v37 = vadd.f32 %v3159_v15, %v10456_v14  ;;  %v4949_v14 = vld [vmem:[%s12224_s3 + $0x40] sm:$0xff] }
 0x3e9   : > { %v3667_v9 = vadd.f32 %v3615_v49, %v3513_v35  ;;  %5200 = vmatpush.msra.mxu2 %v4949_v14 }
 0x3ea   : > { %8855 = vmatmul.msk.f32.gmra.mxu3 %vm443_vm1, %v4117_v56  ;;  %8758 = vmatmul.msk.f32.gmra.mxu0 %vm443_vm1, %v2822_v30  ;;  %v3470_v23 = vpop.f32.mrf.mxu1  ;;  %v3515_v0 = vadd.f32 %v3467_v16, %v3207_v37  ;;  %v2846_v37 = vld [vmem:[#allocation2 + $0x209] ss:$2 sm:$0xff] }
 0x3ed   : > { %v3773_v17 = vpop.f32.mrf.mxu3  ;;  %8823 = vmatmul.msk.f32.gmra.mxu2 %vm443_vm1, %v2824_v58  ;;  %8792 = vmatmul.msk.f32.gmra.mxu1 %vm443_vm1, %v4119_v44 }
 0x3ee   : > { %v10698_v12 = vadd.f32 %v3773_v17, %v3667_v9  ;;  %v4126_v17 = vrot.slane %v2848_v3, 1 }
 0x3ef   : > { %v3162_v43 = vpop.f32.mrf.mxu0 }
 0x3f0   : > { %v3618_v27 = vpop.f32.mrf.mxu2  ;;  %v3208_v35 = vadd.f32 %v3162_v43, %v10464_v32  ;;  %v2838_v32 = vld [vmem:[#allocation2 + $0x1d9] ss:$2 sm:$0x3] }
 0x3f1   : > { %v3668_v36 = vadd.f32 %v3618_v27, %v3514_v6  ;;  %v4123_v6 = vrot.slane %v2838_v32, 1  ;;  %v2850_v27 = vld [vmem:[#allocation2 + $0x229] ss:$2 sm:$0x3] }
 0x3f2   : > { %8856 = vmatmul.msk.f32.gmra.mxu3 %vm443_vm1, %v4119_v44  ;;  %8759 = vmatmul.msk.f32.gmra.mxu0 %vm443_vm1, %v2824_v58  ;;  %v3473_v30 = vpop.f32.mrf.mxu1  ;;  %v3516_v4 = vadd.f32 %v3470_v23, %v3208_v35  ;;  %v2860_v32 = vld [vmem:[#allocation2 + $0x269] ss:$2 sm:$0xff] }
 0x3f3   : > { %v4124_v15 = vsel %vm1149_vm2, %v4121_v51, %v4123_v6 }
 0x3f5   : > { %v3776_v48 = vpop.f32.mrf.mxu3  ;;  %8824 = vmatmul.msk.f32.gmra.mxu2 %vm443_vm1, %v2834_v33  ;;  %8793 = vmatmul.msk.f32.gmra.mxu1 %vm443_vm1, %v4122_v62 }
 0x3f6   : > { %v10718_v10 = vadd.f32 %v3776_v48, %v3668_v36  ;;  %v4128_v36 = vrot.slane %v2850_v27, 1  ;;  %v2858_v48 = vld [vmem:[#allocation2 + $0x259] ss:$2 sm:$0xff] }
 0x3f7   : > { %v3165_v47 = vpop.f32.mrf.mxu0  ;;  %v2872_v27 = vld [vmem:[#allocation2 + $0x2b9] ss:$2 sm:$0xff] }
 0x3f8   : > { %v3621_v16 = vpop.f32.mrf.mxu2  ;;  %v3209_v58 = vadd.f32 %v3165_v47, %v10472_v57  ;;  %v4129_v21 = vsel %vm1149_vm2, %v4126_v17, %v4128_v36 }
 0x3f9   : > { %v3669_v56 = vadd.f32 %v3621_v16, %v3515_v0  ;;  %v4125_v0 = vrot.slane %v2846_v37, 1 }
 0x3fa   : > { %8857 = vmatmul.msk.f32.gmra.mxu3 %vm443_vm1, %v4122_v62  ;;  %8760 = vmatmul.msk.f32.gmra.mxu0 %vm443_vm1, %v2834_v33  ;;  %v3476_v7 = vpop.f32.mrf.mxu1  ;;  %v3517_v19 = vadd.f32 %v3473_v30, %v3209_v58  ;;  %v4130_v58 = vrot.slane %v2858_v48, 1 }
 0x3fb   : > { %v4127_v25 = vsel %vm1149_vm2, %v4125_v0, %v4126_v17 }
 0x3fd   : > { %v3779_v49 = vpop.f32.mrf.mxu3  ;;  %8825 = vmatmul.msk.f32.gmra.mxu2 %vm443_vm1, %v2836_v31  ;;  %8794 = vmatmul.msk.f32.gmra.mxu1 %vm443_vm1, %v4124_v15 }
 0x3fe   : > { %v10726_v9 = vadd.f32 %v3779_v49, %v3669_v56  ;;  %v4131_v56 = vrot.slane %v2860_v32, 1 }
 0x3ff   : > { %v3168_v57 = vpop.f32.mrf.mxu0 }
 0x400   : > { %v3624_v23 = vpop.f32.mrf.mxu2  ;;  %v3210_v44 = vadd.f32 %v3168_v57, %v10480_v8  ;;  %v4132_v49 = vsel %vm1149_vm2, %v4130_v58, %v4131_v56  ;;  %v2862_v57 = vld [vmem:[#allocation2 + $0x279] ss:$2 sm:$0x3] }
 0x401   : > { %v3670_v33 = vadd.f32 %v3624_v23, %v3516_v4  ;;  %v4133_v17 = vrot.slane %v2862_v57, 1 }
 0x402   : > { %8858 = vmatmul.msk.f32.gmra.mxu3 %vm443_vm1, %v4124_v15  ;;  %8761 = vmatmul.msk.f32.gmra.mxu0 %vm443_vm1, %v2836_v31  ;;  %v3479_v14 = vpop.f32.mrf.mxu1  ;;  %v3518_v11 = vadd.f32 %v3476_v7, %v3210_v44 }
 0x405   : > { %v3782_v43 = vpop.f32.mrf.mxu3  ;;  %8826 = vmatmul.msk.f32.gmra.mxu2 %vm443_vm1, %v2846_v37  ;;  %8795 = vmatmul.msk.f32.gmra.mxu1 %vm443_vm1, %v4127_v25 }
 0x406   : > { %v10734_v24 = vadd.f32 %v3782_v43, %v3670_v33  ;;  %v2870_v43 = vld [vmem:[#allocation2 + $0x2a9] ss:$2 sm:$0xff] }
 0x407   : > { %v3171_v35 = vpop.f32.mrf.mxu0 }
 0x408   : > { %v3627_v8 = vpop.f32.mrf.mxu2  ;;  %v3211_v51 = vadd.f32 %v3171_v35, %v10488_v38 }
 0x409   : > { %v3671_v30 = vadd.f32 %v3627_v8, %v3517_v19 }
 0x40a   : > { %8859 = vmatmul.msk.f32.gmra.mxu3 %vm443_vm1, %v4127_v25  ;;  %8762 = vmatmul.msk.f32.gmra.mxu0 %vm443_vm1, %v2846_v37  ;;  %v3482_v31 = vpop.f32.mrf.mxu1  ;;  %v3519_v4 = vadd.f32 %v3479_v14, %v3211_v51  ;;  %v4135_v51 = vrot.slane %v2870_v43, 1 }
 0x40d   : > { %v3785_v62 = vpop.f32.mrf.mxu3  ;;  %8827 = vmatmul.msk.f32.gmra.mxu2 %vm443_vm1, %v2848_v3  ;;  %8796 = vmatmul.msk.f32.gmra.mxu1 %vm443_vm1, %v4129_v21 }
 0x40e   : > { %v10742_v47 = vadd.f32 %v3785_v62, %v3671_v30  ;;  %v4136_v30 = vrot.slane %v2872_v27, 1 }
 0x40f   : > { %v3174_v38 = vpop.f32.mrf.mxu0 }
 0x410   : > { %v3630_v16 = vpop.f32.mrf.mxu2  ;;  %v3212_v6 = vadd.f32 %v3174_v38, %v10496_v63  ;;  %v4137_v62 = vsel %vm1149_vm2, %v4135_v51, %v4136_v30 }
 0x411   : > { %v3672_v7 = vadd.f32 %v3630_v16, %v3518_v11  ;;  %v4134_v11 = vsel %vm1149_vm2, %v4131_v56, %v4133_v17 }
 0x412   : > { %8860 = vmatmul.msk.f32.gmra.mxu3 %vm443_vm1, %v4129_v21  ;;  %8763 = vmatmul.msk.f32.gmra.mxu0 %vm443_vm1, %v2848_v3  ;;  %v3485_v19 = vpop.f32.mrf.mxu1  ;;  %v3520_v15 = vadd.f32 %v3482_v31, %v3212_v6 }
 0x415   : > { %v3788_v37 = vpop.f32.mrf.mxu3  ;;  %8828 = vmatmul.msk.f32.gmra.mxu2 %vm443_vm1, %v2858_v48  ;;  %8797 = vmatmul.msk.f32.gmra.mxu1 %vm443_vm1, %v4132_v49 }
 0x416   : > { %v10750_v23 = vadd.f32 %v3788_v37, %v3672_v7 }
 0x417   : > { %v3177_v0 = vpop.f32.mrf.mxu0 }
 0x418   : > { %v3633_v63 = vpop.f32.mrf.mxu2  ;;  %v3213_v44 = vadd.f32 %v3177_v0, %v10504_v55 }
 0x419   : > { %v3673_v33 = vadd.f32 %v3633_v63, %v3519_v4 }
 0x41a   : > { %8861 = vmatmul.msk.f32.gmra.mxu3 %vm443_vm1, %v4132_v49  ;;  %8764 = vmatmul.msk.f32.gmra.mxu0 %vm443_vm1, %v2858_v48  ;;  %v3488_v3 = vpop.f32.mrf.mxu1  ;;  %v3521_v14 = vadd.f32 %v3485_v19, %v3213_v44  ;;  %v10793_v49 = vld [vmem:[#allocation2 + $0x309] ss:$2 sm:$0xff] }
 0x41b   : > { %v4141_v44 = vrot.slane %v10793_v49, 1 }
 0x41d   : > { %v3791_v25 = vpop.f32.mrf.mxu3  ;;  %8829 = vmatmul.msk.f32.gmra.mxu2 %vm443_vm1, %v2860_v32  ;;  %8798 = vmatmul.msk.f32.gmra.mxu1 %vm443_vm1, %v4134_v11 }
 0x41e   : > { %v10758_v35 = vadd.f32 %v3791_v25, %v3673_v33  ;;  %v2886_v25 = vld [vmem:[#allocation2 + $0x319] ss:$2 sm:$0x3] }
 0x41f   : > { %v3180_v55 = vpop.f32.mrf.mxu0 }
 0x420   : > { %v3636_v8 = vpop.f32.mrf.mxu2  ;;  %v3214_v36 = vadd.f32 %v3180_v55, %v10512_v46  ;;  %v2874_v46 = vld [vmem:[#allocation2 + $0x2c9] ss:$2 sm:$0x3] }
 0x421   : > { %v3674_v31 = vadd.f32 %v3636_v8, %v3520_v15  ;;  %v4138_v58 = vrot.slane %v2874_v46, 1  ;;  %v2882_v15 = vld [vmem:[#allocation2 + $0x2f9] ss:$2 sm:$0xff]  ;;  %v4143_v8 = vrot.slane %v2886_v25, 1 }
 0x422   : > { %8862 = vmatmul.msk.f32.gmra.mxu3 %vm443_vm1, %v4134_v11  ;;  %8765 = vmatmul.msk.f32.gmra.mxu0 %vm443_vm1, %v2860_v32  ;;  %v4259_v4 = vpop.f32.mrf.mxu1  ;;  %v3522_v21 = vadd.f32 %v3488_v3, %v3214_v36  ;;  %v4140_v63 = vrot.slane %v2882_v15, 1 }
 0x423   : > { %v4139_v7 = vsel %vm1149_vm2, %v4136_v30, %v4138_v58 }
 0x425   : > { %v3794_v48 = vpop.f32.mrf.mxu3  ;;  %8830 = vmatmul.msk.f32.gmra.mxu2 %vm443_vm1, %v2870_v43  ;;  %8799 = vmatmul.msk.f32.gmra.mxu1 %vm443_vm1, %v4137_v62 }
 0x426   : > { %v10770_v38 = vadd.f32 %v3794_v48, %v3674_v31  ;;  %v10846_v31 = vld [vmem:[%s12223_s2] ss:$0 sm:$0xff] }
 0x427   : > { %v3951_v32 = vpop.f32.mrf.mxu0 }
 0x428   : > { %v3639_v16 = vpop.f32.mrf.mxu2  ;;  %v4047_v3 = vadd.f32 %v3951_v32, %v10520_v61 }
 0x429   : > { %v3675_v6 = vadd.f32 %v3639_v16, %v3521_v14  ;;  %v4142_v14 = vsel %vm1149_vm2, %v4140_v63, %v4141_v44 }
 0x42a   : > { %8863 = vmatmul.msk.f32.gmra.mxu3 %vm443_vm1, %v4137_v62  ;;  %8766 = vmatmul.msk.f32.gmra.mxu0 %vm443_vm1, %v2870_v43  ;;  %v10782_v56 = vpop.f32.mrf.mxu1  ;;  %v2894_v62 = vld [vmem:[#allocation2 + $0x349] ss:$2 sm:$0xff] }
 0x42d   : > { %v3797_v19 = vpop.f32.mrf.mxu3  ;;  %8831 = vmatmul.msk.f32.gmra.mxu2 %vm443_vm1, %v2872_v27  ;;  %8800 = vmatmul.msk.f32.gmra.mxu1 %vm443_vm1, %v4139_v7 }
 0x42e   : > { %v10797_v37 = vadd.f32 %v3797_v19, %v3675_v6  ;;  %v4145_v6 = vrot.slane %v2894_v62, 1 }
 0x42f   : > { %v3954_v57 = vpop.f32.mrf.mxu0 }
 0x430   : > { %v3642_v0 = vpop.f32.mrf.mxu2  ;;  %v4048_v30 = vadd.f32 %v3954_v57, %v10528_v53  ;;  %v10856_v53 = vld [vmem:[#allocation2 + $0x359] ss:$2 sm:$0xff] }
 0x431   : > { %v3676_v17 = vadd.f32 %v3642_v0, %v3522_v21 }
 0x432   : > { %8864 = vmatmul.msk.f32.gmra.mxu3 %vm443_vm1, %v4139_v7  ;;  %8767 = vmatmul.msk.f32.gmra.mxu0 %vm443_vm1, %v2872_v27  ;;  %v10812_v33 = vpop.f32.mrf.mxu1  ;;  %v4355_v27 = vadd.f32 %v4259_v4, %v4047_v3  ;;  %v4144_v4 = vsel %vm1149_vm2, %v4141_v44, %v4143_v8  ;;  %v4356_v16 = vadd.f32 %v10782_v56, %v4048_v30  ;;  %v4146_v7 = vrot.slane %v10856_v53, 1  ;;  %v2898_v44 = vld [vmem:[#allocation2 + $0x369] ss:$2 sm:$0x3] }
 0x434   : > { %v4147_v0 = vsel %vm1149_vm2, %v4145_v6, %v4146_v7 }
 0x435   : > { %v3800_v11 = vpop.f32.mrf.mxu3  ;;  %8832 = vmatmul.msk.f32.gmra.mxu2 %vm443_vm1, %v2882_v15  ;;  %8801 = vmatmul.msk.f32.gmra.mxu1 %vm443_vm1, %v4142_v14 }
 0x436   : > { %v10824_v43 = vadd.f32 %v3800_v11, %v3676_v17  ;;  %v4148_v11 = vrot.slane %v2898_v44, 1 }
 0x437   : > { %v3957_v61 = vpop.f32.mrf.mxu0 }
 0x438   : > { %v4413_v55 = vpop.f32.mrf.mxu2  ;;  %v4049_v25 = vadd.f32 %v3957_v61, %v10536_v22  ;;  %v4149_v30 = vsel %vm1149_vm2, %v4146_v7, %v4148_v11  ;;  %v2906_v61 = vld [vmem:[#allocation2 + $0x399] ss:$2 sm:$0xff] }
 0x439   : > { %v4509_v51 = vadd.f32 %v4413_v55, %v4355_v27 }
 0x43a   : > { %8865 = vmatmul.msk.f32.gmra.mxu3 %vm443_vm1, %v4142_v14  ;;  %8768 = vmatmul.msk.f32.gmra.mxu0 %vm443_vm1, %v2882_v15  ;;  %v10838_v36 = vpop.f32.mrf.mxu1 }
 0x43d   : > { %v4571_v21 = vpop.f32.mrf.mxu3  ;;  %8833 = vmatmul.msk.f32.gmra.mxu2 %vm443_vm1, %v10793_v49  ;;  %8802 = vmatmul.msk.f32.gmra.mxu1 %vm443_vm1, %v4144_v4 }
 0x43e   : > { %v4667_v48 = vadd.f32 %v4571_v21, %v4509_v51  ;;  %v10904_v21 = vld [vmem:[#allocation2 + $0x3a9] ss:$2 sm:$0xff] }
 0x43f   : > { %v3960_v46 = vpop.f32.mrf.mxu0 }
 0x440   : > { %v4703_v32 = vadd.f32 %v10846_v31, %v4667_v48  ;;  %v4416_v58 = vpop.f32.mrf.mxu2  ;;  %v4050_v51 = vadd.f32 %v3960_v46, %v10544_v60  ;;  %v4150_v46 = vrot.slane %v2906_v61, 1 }
 0x441   : > { %v4510_v15 = vadd.f32 %v4416_v58, %v4356_v16 }
 0x442   : > { %vm4735_vm5 = vcmp.ge.f32.partialorder %v4703_v32, 0.0  ;;  %v4767_v19 = vmul.f32 0.2, %v4703_v32  ;;  %8866 = vmatmul.msk.f32.gmra.mxu3 %vm443_vm1, %v4144_v4  ;;  %8769 = vmatmul.msk.f32.gmra.mxu0 %vm443_vm1, %v10793_v49  ;;  %v10874_v57 = vpop.f32.mrf.mxu1  ;;  %v4357_v4 = vadd.f32 %v10812_v33, %v4049_v25  ;;  %v4358_v33 = vadd.f32 %v10838_v36, %v4050_v51  ;;  %v2920_v51 = vld [vmem:[#allocation2 + $0x3f9] ss:$2 sm:$0xff] }
 0x444   : > { %v4799_v56 = vsel %vm4735_vm5, %v4703_v32, %v4767_v19  ;;  %v4151_v32 = vrot.slane %v10904_v21, 1 }
 0x445   : > { %4894 = vst.msk [vmem:[#allocation3 + $0x19] sm:$0xff] %vm4831_vm4, %v4799_v56  ;;  %v4574_v63 = vpop.f32.mrf.mxu3  ;;  %8834 = vmatmul.msk.f32.gmra.mxu2 %vm443_vm1, %v2894_v62  ;;  %8803 = vmatmul.msk.f32.gmra.mxu1 %vm443_vm1, %v4147_v0 }
 0x446   : > { %v4668_v49 = vadd.f32 %v4574_v63, %v4510_v15  ;;  %v4152_v7 = vsel %vm1149_vm2, %v4150_v46, %v4151_v32 }
 0x447   : > { %v3963_v17 = vpop.f32.mrf.mxu0 }
 0x448   : > { %v4704_v3 = vadd.f32 %v10846_v31, %v4668_v49  ;;  %v4419_v14 = vpop.f32.mrf.mxu2  ;;  %v4051_v6 = vadd.f32 %v3963_v17, %v10552_v40 }
 0x449   : > { %v4511_v60 = vadd.f32 %v4419_v14, %v4357_v4 }
 0x44a   : > { %vm4736_vm6 = vcmp.ge.f32.partialorder %v4704_v3, 0.0  ;;  %v4768_v27 = vmul.f32 0.2, %v4704_v3  ;;  %8867 = vmatmul.msk.f32.gmra.mxu3 %vm443_vm1, %v4147_v0  ;;  %8770 = vmatmul.msk.f32.gmra.mxu0 %vm443_vm1, %v2894_v62  ;;  %v10894_v55 = vpop.f32.mrf.mxu1  ;;  %v4359_v63 = vadd.f32 %v10874_v57, %v4051_v6  ;;  %v2918_v57 = vld [vmem:[#allocation2 + $0x3e9] ss:$2 sm:$0xff] }
 0x44b   : > { %v4155_v4 = vrot.slane %v2918_v57, 1 }
 0x44c   : > { %v4800_v8 = vsel %vm4736_vm6, %v4704_v3, %v4768_v27 }
 0x44d   : > { %v4577_v22 = vpop.f32.mrf.mxu3  ;;  %8835 = vmatmul.msk.f32.gmra.mxu2 %vm443_vm1, %v10856_v53  ;;  %8804 = vmatmul.msk.f32.gmra.mxu1 %vm443_vm1, %v4149_v30  ;;  %4895 = vst.msk [vmem:[#allocation3 + $0x21] sm:$0xff] %vm4831_vm4, %v4800_v8 }
 0x44e   : > { %v4669_v36 = vadd.f32 %v4577_v22, %v4511_v60 }
 0x44f   : > { %v3966_v62 = vpop.f32.mrf.mxu0 }
 0x450   : > { %v4422_v48 = vpop.f32.mrf.mxu2  ;;  %v4705_v40 = vadd.f32 %v10846_v31, %v4669_v36  ;;  %v4052_v25 = vadd.f32 %v3966_v62, %v10560_v52 }
 0x451   : > { %v4512_v16 = vadd.f32 %v4422_v48, %v4358_v33  ;;  %v4156_v48 = vrot.slane %v2920_v51, 1 }
 0x452   : > { %8868 = vmatmul.msk.f32.gmra.mxu3 %vm443_vm1, %v4149_v30  ;;  %8771 = vmatmul.msk.f32.gmra.mxu0 %vm443_vm1, %v10856_v53  ;;  %v10920_v58 = vpop.f32.mrf.mxu1  ;;  %v2910_v53 = vld [vmem:[#allocation2 + $0x3b9] ss:$2 sm:$0x3]  ;;  %v4769_v14 = vmul.f32 0.2, %v4705_v40  ;;  %vm4737_vm8 = vcmp.ge.f32.partialorder %v4705_v40, 0.0  ;;  %v4360_v62 = vadd.f32 %v10894_v55, %v4052_v25 }
 0x453   : > { %v4153_v49 = vrot.slane %v2910_v53, 1  ;;  %v4157_v55 = vsel %vm1149_vm2, %v4155_v4, %v4156_v48  ;;  %v2932_v25 = vld [vmem:[#allocation2 + $0x449] ss:$2 sm:$0xff] }
 0x454   : > { %v4801_v52 = vsel %vm4737_vm8, %v4705_v40, %v4769_v14 }
 0x455   : > { %v4580_v19 = vpop.f32.mrf.mxu3  ;;  %8836 = vmatmul.msk.f32.gmra.mxu2 %vm443_vm1, %v2906_v61  ;;  %8805 = vmatmul.msk.f32.gmra.mxu1 %vm443_vm1, %v4152_v7  ;;  %v4154_v27 = vsel %vm1149_vm2, %v4151_v32, %v4153_v49  ;;  %4897 = vst.msk [vmem:[#allocation3 + $0x31] sm:$0xff] %vm4831_vm4, %v4801_v52 }
 0x456   : > { %v4670_v15 = vadd.f32 %v4580_v19, %v4512_v16  ;;  %v2922_v19 = vld [vmem:[#allocation2 + $0x409] ss:$2 sm:$0x3] }
 0x457   : > { %v3969_v56 = vpop.f32.mrf.mxu0 }
 0x458   : > { %v4706_v0 = vadd.f32 %v10846_v31, %v4670_v15  ;;  %v4425_v44 = vpop.f32.mrf.mxu2  ;;  %v4053_v6 = vadd.f32 %v3969_v56, %v10568_v41 }
 0x459   : > { %v4513_v17 = vadd.f32 %v4425_v44, %v4359_v63  ;;  %v4158_v63 = vrot.slane %v2922_v19, 1 }
 0x45a   : > { %8869 = vmatmul.msk.f32.gmra.mxu3 %vm443_vm1, %v4152_v7  ;;  %8772 = vmatmul.msk.f32.gmra.mxu0 %vm443_vm1, %v2906_v61  ;;  %v10947_v3 = vpop.f32.mrf.mxu1  ;;  %v4770_v11 = vmul.f32 0.2, %v4706_v0  ;;  %vm4738_vm9 = vcmp.ge.f32.partialorder %v4706_v0, 0.0  ;;  %v4361_v40 = vadd.f32 %v10920_v58, %v4053_v6  ;;  %v2930_v58 = vld [vmem:[#allocation2 + $0x439] ss:$2 sm:$0xff] }
 0x45b   : > { %v4159_v14 = vsel %vm1149_vm2, %v4156_v48, %v4158_v63  ;;  %v4160_v4 = vrot.slane %v2930_v58, 1  ;;  %v2944_v63 = vld [vmem:[#allocation2 + $0x499] ss:$2 sm:$0xff] }
 0x45c   : > { %v4802_v61 = vsel %vm4738_vm9, %v4706_v0, %v4770_v11 }
 0x45d   : > { %v4583_v8 = vpop.f32.mrf.mxu3  ;;  %8837 = vmatmul.msk.f32.gmra.mxu2 %vm443_vm1, %v10904_v21  ;;  %8806 = vmatmul.msk.f32.gmra.mxu1 %vm443_vm1, %v4154_v27  ;;  %4898 = vst.msk [vmem:[#allocation3 + $0x39] sm:$0xff] %vm4831_vm4, %v4802_v61 }
 0x45e   : > { %v4671_v30 = vadd.f32 %v4583_v8, %v4513_v17 }
 0x45f   : > { %v3972_v22 = vpop.f32.mrf.mxu0 }
 0x460   : > { %v4707_v60 = vadd.f32 %v10846_v31, %v4671_v30  ;;  %v4428_v33 = vpop.f32.mrf.mxu2  ;;  %v4054_v17 = vadd.f32 %v3972_v22, %v10576_v28  ;;  %v4161_v28 = vrot.slane %v2932_v25, 1 }
 0x461   : > { %v4514_v32 = vadd.f32 %v4428_v33, %v4360_v62 }
 0x462   : > { %vm4739_vm10 = vcmp.ge.f32.partialorder %v4707_v60, 0.0  ;;  %v4771_v46 = vmul.f32 0.2, %v4707_v60  ;;  %8870 = vmatmul.msk.f32.gmra.mxu3 %vm443_vm1, %v4154_v27  ;;  %8773 = vmatmul.msk.f32.gmra.mxu0 %vm443_vm1, %v10904_v21  ;;  %v4283_v16 = vpop.f32.mrf.mxu1  ;;  %v4162_v48 = vsel %vm1149_vm2, %v4160_v4, %v4161_v28 }
 0x464   : > { %v4803_v36 = vsel %vm4739_vm10, %v4707_v60, %v4771_v46 }
 0x465   : > { %4900 = vst.msk [vmem:[#allocation3 + $0x49] sm:$0xff] %vm4831_vm4, %v4803_v36  ;;  %v4586_v7 = vpop.f32.mrf.mxu3  ;;  %8838 = vmatmul.msk.f32.gmra.mxu2 %vm443_vm1, %v2918_v57  ;;  %8807 = vmatmul.msk.f32.gmra.mxu1 %vm443_vm1, %v4157_v55 }
 0x466   : > { %v4672_v53 = vadd.f32 %v4586_v7, %v4514_v32 }
 0x467   : > { %v3975_v15 = vpop.f32.mrf.mxu0 }
 0x468   : > { %v4708_v21 = vadd.f32 %v10846_v31, %v4672_v53  ;;  %v4431_v0 = vpop.f32.mrf.mxu2  ;;  %v4055_v33 = vadd.f32 %v3975_v15, %v10584_v13 }
 0x469   : > { %v4515_v56 = vadd.f32 %v4431_v0, %v4361_v40 }
 0x46a   : > { %vm4740_vm11 = vcmp.ge.f32.partialorder %v4708_v21, 0.0  ;;  %v4772_v41 = vmul.f32 0.2, %v4708_v21  ;;  %8871 = vmatmul.msk.f32.gmra.mxu3 %vm443_vm1, %v4157_v55  ;;  %8774 = vmatmul.msk.f32.gmra.mxu0 %vm443_vm1, %v2918_v57  ;;  %v4286_v44 = vpop.f32.mrf.mxu1  ;;  %v4362_v57 = vadd.f32 %v10947_v3, %v4054_v17  ;;  %v2934_v3 = vld [vmem:[#allocation2 + $0x459] ss:$2 sm:$0x3]  ;;  %v4363_v55 = vadd.f32 %v4283_v16, %v4055_v33 }
 0x46b   : > { %v4163_v7 = vrot.slane %v2934_v3, 1  ;;  %v2942_v16 = vld [vmem:[#allocation2 + $0x489] ss:$2 sm:$0xff] }
 0x46c   : > { %v4804_v49 = vsel %vm4740_vm11, %v4708_v21, %v4772_v41 }
 0x46d   : > { %4901 = vst.msk [vmem:[#allocation3 + $0x51] sm:$0xff] %vm4831_vm4, %v4804_v49  ;;  %v4589_v11 = vpop.f32.mrf.mxu3  ;;  %8839 = vmatmul.msk.f32.gmra.mxu2 %vm443_vm1, %v2920_v51  ;;  %8808 = vmatmul.msk.f32.gmra.mxu1 %vm443_vm1, %v4159_v14  ;;  %v4164_v40 = vsel %vm1149_vm2, %v4161_v28, %v4163_v7 }
 0x46e   : > { %v4673_v27 = vadd.f32 %v4589_v11, %v4515_v56  ;;  %v4165_v11 = vrot.slane %v2942_v16, 1 }
 0x46f   : > { %v3978_v8 = vpop.f32.mrf.mxu0 }
 0x470   : > { %v4709_v30 = vadd.f32 %v10846_v31, %v4673_v27  ;;  %v4434_v52 = vpop.f32.mrf.mxu2  ;;  %v4056_v21 = vadd.f32 %v3978_v8, %v10592_v20 }
 0x471   : > { %v4516_v61 = vadd.f32 %v4434_v52, %v4362_v57 }
 0x472   : > { %vm4741_vm12 = vcmp.ge.f32.partialorder %v4709_v30, 0.0  ;;  %v4773_v22 = vmul.f32 0.2, %v4709_v30  ;;  %8872 = vmatmul.msk.f32.gmra.mxu3 %vm443_vm1, %v4159_v14  ;;  %8775 = vmatmul.msk.f32.gmra.mxu0 %vm443_vm1, %v2920_v51  ;;  %v4289_v60 = vpop.f32.mrf.mxu1  ;;  %v4364_v17 = vadd.f32 %v4286_v44, %v4056_v21  ;;  %v2946_v44 = vld [vmem:[#allocation2 + $0x4a9] ss:$2 sm:$0x3] }
 0x473   : > { %v4168_v33 = vrot.slane %v2946_v44, 1 }
 0x474   : > { %v4805_v62 = vsel %vm4741_vm12, %v4709_v30, %v4773_v22 }
 0x475   : > { %4903 = vst.msk [vmem:[#allocation3 + $0x61] sm:$0xff] %vm4831_vm4, %v4805_v62  ;;  %v4592_v46 = vpop.f32.mrf.mxu3  ;;  %8840 = vmatmul.msk.f32.gmra.mxu2 %vm443_vm1, %v2930_v58  ;;  %8809 = vmatmul.msk.f32.gmra.mxu1 %vm443_vm1, %v4162_v48 }
 0x476   : > { %v4674_v32 = vadd.f32 %v4592_v46, %v4516_v61 }
 0x477   : > { %v3981_v36 = vpop.f32.mrf.mxu0 }
 0x478   : > { %v4710_v6 = vadd.f32 %v10846_v31, %v4674_v32  ;;  %v4437_v51 = vpop.f32.mrf.mxu2  ;;  %v4057_v57 = vadd.f32 %v3981_v36, %v10600_v59 }
 0x479   : > { %v4517_v13 = vadd.f32 %v4437_v51, %v4363_v55  ;;  %v2956_v55 = vld [vmem:[#allocation2 + $0x4e9] ss:$2 sm:$0xff] }
 0x47a   : > { %vm4742_vm13 = vcmp.ge.f32.partialorder %v4710_v6, 0.0  ;;  %v4774_v19 = vmul.f32 0.2, %v4710_v6  ;;  %8873 = vmatmul.msk.f32.gmra.mxu3 %vm443_vm1, %v4162_v48  ;;  %8776 = vmatmul.msk.f32.gmra.mxu0 %vm443_vm1, %v2930_v58  ;;  %v4292_v53 = vpop.f32.mrf.mxu1  ;;  %v4166_v58 = vrot.slane %v2944_v63, 1  ;;  %v4365_v62 = vadd.f32 %v4289_v60, %v4057_v57  ;;  %v2954_v60 = vld [vmem:[#allocation2 + $0x4d9] ss:$2 sm:$0xff] }
 0x47b   : > { %v4170_v21 = vrot.slane %v2954_v60, 1 }
 0x47c   : > { %v4806_v15 = vsel %vm4742_vm13, %v4710_v6, %v4774_v19  ;;  %v4167_v52 = vsel %vm1149_vm2, %v4165_v11, %v4166_v58  ;;  %v4169_v36 = vsel %vm1149_vm2, %v4166_v58, %v4168_v33 }
 0x47d   : > { %4904 = vst.msk [vmem:[#allocation3 + $0x69] sm:$0xff] %vm4831_vm4, %v4806_v15  ;;  %v4595_v0 = vpop.f32.mrf.mxu3  ;;  %8841 = vmatmul.msk.f32.gmra.mxu2 %vm443_vm1, %v2932_v25  ;;  %8810 = vmatmul.msk.f32.gmra.mxu1 %vm443_vm1, %v4164_v40 }
 0x47e   : > { %v4675_v41 = vadd.f32 %v4595_v0, %v4517_v13 }
 0x47f   : > { %v3984_v56 = vpop.f32.mrf.mxu0 }
 0x480   : > { %v4711_v49 = vadd.f32 %v10846_v31, %v4675_v41  ;;  %v4440_v14 = vpop.f32.mrf.mxu2  ;;  %v4058_v32 = vadd.f32 %v3984_v56, %v10608_v29 }
 0x481   : > { %v4518_v27 = vadd.f32 %v4440_v14, %v4364_v17 }
 0x482   : > { %vm4743_vm14 = vcmp.ge.f32.partialorder %v4711_v49, 0.0  ;;  %v4775_v20 = vmul.f32 0.2, %v4711_v49  ;;  %8874 = vmatmul.msk.f32.gmra.mxu3 %vm443_vm1, %v4164_v40  ;;  %8777 = vmatmul.msk.f32.gmra.mxu0 %vm443_vm1, %v2932_v25  ;;  %v4295_v8 = vpop.f32.mrf.mxu1  ;;  %v4366_v13 = vadd.f32 %v4292_v53, %v4058_v32  ;;  %v4171_v40 = vrot.slane %v2956_v55, 1 }
 0x483   : > { %v2958_v53 = vld [vmem:[#allocation2 + $0x4f9] ss:$2 sm:$0x3] }
 0x484   : > { %v4807_v30 = vsel %vm4743_vm14, %v4711_v49, %v4775_v20  ;;  %v4172_v49 = vsel %vm1149_vm2, %v4170_v21, %v4171_v40 }
 0x485   : > { %4906 = vst.msk [vmem:[#allocation3 + $0x79] sm:$0xff] %vm4831_vm4, %v4807_v30  ;;  %v4598_v4 = vpop.f32.mrf.mxu3  ;;  %8842 = vmatmul.msk.f32.gmra.mxu2 %vm443_vm1, %v2942_v16  ;;  %8811 = vmatmul.msk.f32.gmra.mxu1 %vm443_vm1, %v4167_v52 }
 0x486   : > { %v4676_v28 = vadd.f32 %v4598_v4, %v4518_v27  ;;  %v4173_v27 = vrot.slane %v2958_v53, 1 }
 0x487   : > { %v3987_v22 = vpop.f32.mrf.mxu0 }
 0x488   : > { %v4712_v61 = vadd.f32 %v10846_v31, %v4676_v28  ;;  %v4443_v25 = vpop.f32.mrf.mxu2  ;;  %v4059_v56 = vadd.f32 %v3987_v22, %v10616_v1  ;;  %v4174_v44 = vsel %vm1149_vm2, %v4171_v40, %v4173_v27  ;;  %v2966_v22 = vld [vmem:[#allocation2 + $0x529] ss:$2 sm:$0xff] }
 0x489   : > { %v4519_v59 = vadd.f32 %v4443_v25, %v4365_v62  ;;  %v2968_v62 = vld [vmem:[#allocation2 + $0x539] ss:$2 sm:$0xff] }
 0x48a   : > { %vm4744_vm15 = vcmp.ge.f32.partialorder %v4712_v61, 0.0  ;;  %v4776_v48 = vmul.f32 0.2, %v4712_v61  ;;  %8875 = vmatmul.msk.f32.gmra.mxu3 %vm443_vm1, %v4167_v52  ;;  %8778 = vmatmul.msk.f32.gmra.mxu0 %vm443_vm1, %v2942_v16  ;;  %v4298_v46 = vpop.f32.mrf.mxu1  ;;  %v4367_v20 = vadd.f32 %v4295_v8, %v4059_v56  ;;  %v2970_v56 = vld [vmem:[#allocation2 + $0x549] ss:$2 sm:$0x3] }
 0x48c   : > { %v4808_v3 = vsel %vm4744_vm15, %v4712_v61, %v4776_v48 }
 0x48d   : > { %4907 = vst.msk [vmem:[#allocation3 + $0x81] sm:$0xff] %vm4831_vm4, %v4808_v3  ;;  %v4601_v6 = vpop.f32.mrf.mxu3  ;;  %8843 = vmatmul.msk.f32.gmra.mxu2 %vm443_vm1, %v2944_v63  ;;  %8812 = vmatmul.msk.f32.gmra.mxu1 %vm443_vm1, %v4169_v36  ;;  %v4959_v3 = vld [vmem:[#allocation3 + $0x10] ss:$2 sm:$0x3] }
 0x48e   : > { %v4677_v51 = vadd.f32 %v4601_v6, %v4519_v59  ;;  %v4957_v59 = vld [vmem:[#allocation3] ss:$2 sm:$0xff]  ;;  %v4542_v6 = vrot.slane %v2966_v22, 1 }
 0x48f   : > { %v3990_v7 = vpop.f32.mrf.mxu0 }
 0x490   : > { %v4713_v19 = vadd.f32 %v10846_v31, %v4677_v51  ;;  %v4446_v15 = vpop.f32.mrf.mxu2  ;;  %v4060_v4 = vadd.f32 %v3990_v7, %v10624_v26  ;;  %v5044_v51 = vrot.slane %v4957_v59, 1  ;;  %v5045_v7 = vrot.slane %v4959_v3, 1 }
 0x491   : > { %v4520_v0 = vadd.f32 %v4446_v15, %v4366_v13 }
 0x492   : > { %vm4745_vm0 = vcmp.ge.f32.partialorder %v4713_v19, 0.0  ;;  %v4777_v29 = vmul.f32 0.2, %v4713_v19  ;;  %8876 = vmatmul.msk.f32.gmra.mxu3 %vm443_vm1, %v4169_v36  ;;  %8779 = vmatmul.msk.f32.gmra.mxu0 %vm443_vm1, %v2944_v63  ;;  %v4301_v16 = vpop.f32.mrf.mxu1  ;;  %v4368_v33 = vadd.f32 %v4298_v46, %v4060_v4 }
 0x494   : > { %v4809_v41 = vsel %vm4745_vm0, %v4713_v19, %v4777_v29 }
 0x495   : > { %4909 = vst.msk [vmem:[#allocation3 + $0x91] sm:$0xff] %vm4831_vm4, %v4809_v41  ;;  %v4604_v17 = vpop.f32.mrf.mxu3  ;;  %8844 = vmatmul.msk.f32.gmra.mxu2 %vm443_vm1, %v2954_v60  ;;  %8813 = vmatmul.msk.f32.gmra.mxu1 %vm443_vm1, %v4172_v49 }
 0x496   : > { %v4678_v14 = vadd.f32 %v4604_v17, %v4520_v0 }
 0x497   : > { %v3993_v11 = vpop.f32.mrf.mxu0 }
 0x498   : > { %v4714_v58 = vadd.f32 %v10846_v31, %v4678_v14  ;;  %v4449_v63 = vpop.f32.mrf.mxu2  ;;  %v4061_v13 = vadd.f32 %v3993_v11, %v10633_v54  ;;  %v4967_v14 = vld [vmem:[#allocation3 + $0x40] ss:$2 sm:$0x3]  ;;  %v4545_v11 = vrot.slane %v2970_v56, 1 }
 0x499   : > { %v4521_v1 = vadd.f32 %v4449_v63, %v4367_v20  ;;  %v5048_v27 = vrot.slane %v4967_v14, 1 }
 0x49a   : > { %vm4746_vm3 = vcmp.ge.f32.partialorder %v4714_v58, 0.0  ;;  %v4778_v30 = vmul.f32 0.2, %v4714_v58  ;;  %8877 = vmatmul.msk.f32.gmra.mxu3 %vm443_vm1, %v4172_v49  ;;  %8780 = vmatmul.msk.f32.gmra.mxu0 %vm443_vm1, %v2954_v60  ;;  %v4304_v57 = vpop.f32.mrf.mxu1  ;;  %v4543_v60 = vrot.slane %v2968_v62, 1  ;;  %v4369_v0 = vadd.f32 %v4301_v16, %v4061_v13  ;;  %v4965_v49 = vld [vmem:[#allocation3 + $0x30] ss:$2 sm:$0xff] }
 0x49b   : > { %v5047_v16 = vrot.slane %v4965_v49, 1 }
 0x49c   : > { %v4810_v52 = vsel %vm4746_vm3, %v4714_v58, %v4778_v30  ;;  %v4544_v21 = vsel %vm1149_vm2, %v4542_v6, %v4543_v60 }
 0x49d   : > { %4910 = vst.msk [vmem:[#allocation3 + $0x99] sm:$0xff] %vm4831_vm4, %v4810_v52  ;;  %v4607_v28 = vpop.f32.mrf.mxu3  ;;  %8845 = vmatmul.msk.f32.gmra.mxu2 %vm443_vm1, %v2956_v55  ;;  %8814 = vmatmul.msk.f32.gmra.mxu1 %vm443_vm1, %v4174_v44 }
 0x49e   : > { %v4679_v8 = vadd.f32 %v4607_v28, %v4521_v1  ;;  %v4546_v1 = vsel %vm1149_vm2, %v4543_v60, %v4545_v11 }
 0x49f   : > { %v3996_v61 = vpop.f32.mrf.mxu0 }
 0x4a0   : > { %v4715_v25 = vadd.f32 %v10846_v31, %v4679_v8  ;;  %v4452_v48 = vpop.f32.mrf.mxu2  ;;  %v4062_v20 = vadd.f32 %v3996_v61, %v10642_v39  ;;  %v5049_v8 = vsel %vm1149_vm2, %v5047_v16, %v5048_v27  ;;  %v4973_v39 = vld [vmem:[#allocation3 + $0x60] ss:$2 sm:$0xff] }
 0x4a1   : > { %v4522_v32 = vadd.f32 %v4452_v48, %v4368_v33 }
 0x4a2   : > { %vm4747_vm5 = vcmp.ge.f32.partialorder %v4715_v25, 0.0  ;;  %v4779_v26 = vmul.f32 0.2, %v4715_v25  ;;  %8878 = vmatmul.msk.f32.gmra.mxu3 %vm443_vm1, %v4174_v44  ;;  %8781 = vmatmul.msk.f32.gmra.mxu0 %vm443_vm1, %v2956_v55  ;;  %v4307_v36 = vpop.f32.mrf.mxu1  ;;  %v5046_v55 = vsel %vm1149_vm2, %v5044_v51, %v5045_v7  ;;  %v4370_v44 = vadd.f32 %v4304_v57, %v4062_v20 }
 0x4a3   : > { %v5050_v57 = vrot.slane %v4973_v39, 1 }
 0x4a4   : > { %v4811_v19 = vsel %vm4747_vm5, %v4715_v25, %v4779_v26  ;;  %v4975_v25 = vld [vmem:[#allocation3 + $0x70] ss:$2 sm:$0x3] }
 0x4a5   : > { %4912 = vst.msk [vmem:[#allocation3 + $0xa9] sm:$0xff] %vm4831_vm4, %v4811_v19  ;;  %v4610_v46 = vpop.f32.mrf.mxu3  ;;  %8846 = vmatmul.msk.f32.gmra.mxu2 %vm443_vm1, %v2966_v22  ;;  %8889 = vmatmul.msk.f32.vlgmr.msra.gmra.mxu1 %vm4831_vm4, %v4957_v59  ;;  %v5051_v3 = vrot.slane %v4975_v25, 1  ;;  %v4981_v19 = vld [vmem:[#allocation3 + $0x90] ss:$2 sm:$0xff] }
 0x4a6   : > { %v4680_v15 = vadd.f32 %v4610_v46, %v4522_v32 }
 0x4a7   : > { %v3999_v40 = vpop.f32.mrf.mxu0  ;;  %v5052_v7 = vsel %vm1149_vm2, %v5050_v57, %v5051_v3 }
 0x4a8   : > { %v4716_v29 = vadd.f32 %v10846_v31, %v4680_v15  ;;  %v4455_v41 = vpop.f32.mrf.mxu2  ;;  %v4063_v48 = vadd.f32 %v3999_v40, %v10650_v5  ;;  %v4983_v15 = vld [vmem:[#allocation3 + $0xa0] ss:$2 sm:$0x3] }
 0x4a9   : > { %v4523_v17 = vadd.f32 %v4455_v41, %v4369_v0 }
 0x4aa   : > { %vm4748_vm6 = vcmp.ge.f32.partialorder %v4716_v29, 0.0  ;;  %v4780_v54 = vmul.f32 0.2, %v4716_v29  ;;  %8879 = vmatmul.msk.f32.gmra.mxu3 %vm443_vm1, %v4544_v21  ;;  %8881 = vmatmul.msk.f32.vlgmr.msra.gmra.mxu0 %vm4831_vm4, %v5046_v55  ;;  %v4310_v53 = vpop.f32.mrf.mxu1  ;;  %v4371_v60 = vadd.f32 %v4307_v36, %v4063_v48  ;;  %v5053_v36 = vrot.slane %v4981_v19, 1 }
 0x4ac   : > { %v4812_v58 = vsel %vm4748_vm6, %v4716_v29, %v4780_v54  ;;  %v5054_v29 = vrot.slane %v4983_v15, 1 }
 0x4ad   : > { %4913 = vst.msk [vmem:[#allocation3 + $0xb1] sm:$0xff] %vm4831_vm4, %v4812_v58  ;;  %v4613_v63 = vpop.f32.mrf.mxu3  ;;  %8847 = vmatmul.msk.f32.gmra.mxu2 %vm443_vm1, %v2968_v62  ;;  %8890 = vmatmul.msk.f32.gmra.mxu1 %vm4831_vm4, %v4965_v49 }
 0x4ae   : > { %v4681_v30 = vadd.f32 %v4613_v63, %v4523_v17  ;;  %v5055_v17 = vsel %vm1149_vm2, %v5053_v36, %v5054_v29 }
 0x4af   : > { %v4002_v52 = vpop.f32.mrf.mxu0 }
 0x4b0   : > { %v4717_v4 = vadd.f32 %v10846_v31, %v4681_v30  ;;  %v4458_v28 = vpop.f32.mrf.mxu2  ;;  %v4064_v40 = vadd.f32 %v4002_v52, %v10658_v18 }
 0x4b1   : > { %v4524_v61 = vadd.f32 %v4458_v28, %v4370_v44 }
 0x4b2   : > { %vm4749_vm7 = vcmp.ge.f32.partialorder %v4717_v4, 0.0  ;;  %v4781_v22 = vmul.f32 0.2, %v4717_v4  ;;  %8880 = vmatmul.msk.f32.gmra.mxu3 %vm443_vm1, %v4546_v1  ;;  %8882 = vmatmul.msk.f32.gmra.mxu0 %vm4831_vm4, %v5049_v8  ;;  %v4313_v62 = vpop.f32.mrf.mxu1 }
 0x4b4   : > { %v4813_v33 = vsel %vm4749_vm7, %v4717_v4, %v4781_v22 }
 0x4b5   : > { %4915 = vst.msk [vmem:[#allocation3 + $0xc1] sm:$0xff] %vm4831_vm4, %v4813_v33  ;;  %v4616_v59 = vpop.f32.mrf.mxu3  ;;  %8897 = vmatmul.msk.f32.vlgmr.msra.gmra.mxu2 %vm4831_vm4, %v4965_v49  ;;  %8891 = vmatmul.msk.f32.gmra.mxu1 %vm4831_vm4, %v4973_v39  ;;  %v4372_v49 = vadd.f32 %v4310_v53, %v4064_v40 }
 0x4b6   : > { %v4682_v26 = vadd.f32 %v4616_v59, %v4524_v61 }
 0x4b7   : > { %v4005_v32 = vpop.f32.mrf.mxu0 }
 0x4b8   : > { %v4718_v6 = vadd.f32 %v10846_v31, %v4682_v26  ;;  %v4461_v51 = vpop.f32.mrf.mxu2  ;;  %v4065_v20 = vadd.f32 %v4005_v32, %v10666_v45 }
 0x4b9   : > { %v4525_v13 = vadd.f32 %v4461_v51, %v4371_v60 }
 0x4ba   : > { %vm4750_vm1 = vcmp.ge.f32.partialorder %v4718_v6, 0.0  ;;  %v4782_v5 = vmul.f32 0.2, %v4718_v6  ;;  %8905 = vmatmul.msk.f32.vlgmr.msra.gmra.mxu3 %vm4831_vm4, %v5049_v8  ;;  %8883 = vmatmul.msk.f32.gmra.mxu0 %vm4831_vm4, %v5052_v7  ;;  %v4316_v46 = vpop.f32.mrf.mxu1  ;;  %v4373_v44 = vadd.f32 %v4313_v62, %v4065_v20 }
 0x4bc   : > { %v4814_v21 = vsel %vm4750_vm1, %v4718_v6, %v4782_v5 }
 0x4bd   : > { %4916 = vst.msk [vmem:[#allocation3 + $0xc9] sm:$0xff] %vm4831_vm4, %v4814_v21  ;;  %v4619_v55 = vpop.f32.mrf.mxu3  ;;  %8898 = vmatmul.msk.f32.gmra.mxu2 %vm4831_vm4, %v4973_v39  ;;  %8892 = vmatmul.msk.f32.gmra.mxu1 %vm4831_vm4, %v4981_v19 }
 0x4be   : > { %v4683_v0 = vadd.f32 %v4619_v55, %v4525_v13 }
 0x4bf   : > { %v4008_v41 = vpop.f32.mrf.mxu0 }
 0x4c0   : > { %v4719_v56 = vadd.f32 %v10846_v31, %v4683_v0  ;;  %v4464_v54 = vpop.f32.mrf.mxu2  ;;  %v4066_v25 = vadd.f32 %v4008_v41, %v10674_v50 }
 0x4c1   : > { %v4526_v18 = vadd.f32 %v4464_v54, %v4372_v49 }
 0x4c2   : > { %vm4751_vm8 = vcmp.ge.f32.partialorder %v4719_v56, 0.0  ;;  %v4783_v14 = vmul.f32 0.2, %v4719_v56  ;;  %8906 = vmatmul.msk.f32.gmra.mxu3 %vm4831_vm4, %v5052_v7  ;;  %8884 = vmatmul.msk.f32.gmra.mxu0 %vm4831_vm4, %v5055_v17  ;;  %v4319_v11 = vpop.f32.mrf.mxu1  ;;  %v4374_v57 = vadd.f32 %v4316_v46, %v4066_v25 }
 0x4c4   : > { %v4815_v58 = vsel %vm4751_vm8, %v4719_v56, %v4783_v14  ;;  %v4989_v63 = vld [vmem:[#allocation3 + $0xc0] ss:$2 sm:$0xff]  ;;  %v4991_v16 = vld [vmem:[#allocation3 + $0xd0] ss:$2 sm:$0x3] }
 0x4c5   : > { %4918 = vst.msk [vmem:[#allocation3 + $0xd9] sm:$0xff] %vm4831_vm4, %v4815_v58  ;;  %v4622_v27 = vpop.f32.mrf.mxu3  ;;  %8899 = vmatmul.msk.f32.gmra.mxu2 %vm4831_vm4, %v4981_v19  ;;  %v5056_v53 = vrot.slane %v4989_v63, 1  ;;  %8893 = vmatmul.msk.f32.gmra.mxu1 %vm4831_vm4, %v4989_v63  ;;  %v5057_v30 = vrot.slane %v4991_v16, 1 }
 0x4c6   : > { %v4684_v1 = vadd.f32 %v4622_v27, %v4526_v18 }
 0x4c7   : > { %v4011_v52 = vpop.f32.mrf.mxu0  ;;  %v5058_v8 = vsel %vm1149_vm2, %v5056_v53, %v5057_v30 }
 0x4c8   : > { %v4720_v4 = vadd.f32 %v10846_v31, %v4684_v1  ;;  %v4467_v28 = vpop.f32.mrf.mxu2  ;;  %v4067_v60 = vadd.f32 %v4011_v52, %v10682_v42 }
 0x4c9   : > { %v4527_v39 = vadd.f32 %v4467_v28, %v4373_v44 }
 0x4ca   : > { %vm4752_vm9 = vcmp.ge.f32.partialorder %v4720_v4, 0.0  ;;  %v4784_v45 = vmul.f32 0.2, %v4720_v4  ;;  %8907 = vmatmul.msk.f32.gmra.mxu3 %vm4831_vm4, %v5055_v17  ;;  %8885 = vmatmul.msk.f32.gmra.mxu0 %vm4831_vm4, %v5058_v8  ;;  %v4322_v22 = vpop.f32.mrf.mxu1  ;;  %v4375_v13 = vadd.f32 %v4319_v11, %v4067_v60 }
 0x4cc   : > { %v4816_v61 = vsel %vm4752_vm9, %v4720_v4, %v4784_v45 }
 0x4cd   : > { %4919 = vst.msk [vmem:[#allocation3 + $0xe1] sm:$0xff] %vm4831_vm4, %v4816_v61  ;;  %v4625_v33 = vpop.f32.mrf.mxu3  ;;  %8900 = vmatmul.msk.f32.gmra.mxu2 %vm4831_vm4, %v4989_v63 }
 0x4ce   : > { %v4685_v62 = vadd.f32 %v4625_v33, %v4527_v39 }
 0x4cf   : > { %v4014_v48 = vpop.f32.mrf.mxu0 }
 0x4d0   : > { %v4721_v59 = vadd.f32 %v10846_v31, %v4685_v62  ;;  %v4470_v3 = vpop.f32.mrf.mxu2  ;;  %v4068_v55 = vadd.f32 %v4014_v48, %v10690_v34 }
 0x4d1   : > { %v4528_v32 = vadd.f32 %v4470_v3, %v4374_v57 }
 0x4d2   : > { %vm4753_vm10 = vcmp.ge.f32.partialorder %v4721_v59, 0.0  ;;  %v4785_v26 = vmul.f32 0.2, %v4721_v59  ;;  %8908 = vmatmul.msk.f32.gmra.mxu3 %vm4831_vm4, %v5058_v8  ;;  %v4325_v51 = vpop.f32.mrf.mxu1  ;;  %v4376_v56 = vadd.f32 %v4322_v22, %v4068_v55 }
 0x4d4   : > { %v4817_v6 = vsel %vm4753_vm10, %v4721_v59, %v4785_v26  ;;  %vm6340_vm10 = vcmask 125952  }
 0x4d5   : > { %4921 = vst.msk [vmem:[#allocation3 + $0xf1] sm:$0xff] %vm4831_vm4, %v4817_v6  ;;  %v4628_v50 = vpop.f32.mrf.mxu3 }
 0x4d6   : > { %v4686_v7 = vadd.f32 %v4628_v50, %v4528_v32  ;;  %v4955_v32 = vld [vmem:[%s12224_s3 + $0x70] sm:$0xff]  ;;  %v11118_v50 = vld [vmem:[%s12223_s2] ss:$0 sm:$0xff] }
 0x4d7   : > { %v4017_v19 = vpop.f32.mrf.mxu0  ;;  %5532 = vmatpush.msrb.mxu3 %v4955_v32 }
 0x4d8   : > { %v4722_v5 = vadd.f32 %v10846_v31, %v4686_v7  ;;  %v4473_v15 = vpop.f32.mrf.mxu2  ;;  %v4069_v18 = vadd.f32 %v4017_v19, %v10698_v12 }
 0x4d9   : > { %v4529_v21 = vadd.f32 %v4473_v15, %v4375_v13 }
 0x4da   : > { %vm4754_vm11 = vcmp.ge.f32.partialorder %v4722_v5, 0.0  ;;  %v4786_v46 = vmul.f32 0.2, %v4722_v5  ;;  %v4328_v29 = vpop.f32.mrf.mxu1  ;;  %v4377_v12 = vadd.f32 %v4325_v51, %v4069_v18 }
 0x4dc   : > { %v4818_v40 = vsel %vm4754_vm11, %v4722_v5, %v4786_v46 }
 0x4dd   : > { %4922 = vst.msk [vmem:[#allocation3 + $0xf9] sm:$0xff] %vm4831_vm4, %v4818_v40  ;;  %v4631_v36 = vpop.f32.mrf.mxu3 }
 0x4de   : > { %v4687_v42 = vadd.f32 %v4631_v36, %v4529_v21 }
 0x4df   : > { %v4020_v0 = vpop.f32.mrf.mxu0 }
 0x4e0   : > { %v4723_v41 = vadd.f32 %v10846_v31, %v4687_v42  ;;  %v4476_v49 = vpop.f32.mrf.mxu2  ;;  %v4070_v8 = vadd.f32 %v4020_v0, %v10718_v10  ;;  %v4953_v10 = vld [vmem:[%s12224_s3 + $0x60] sm:$0xff] }
 0x4e1   : > { %v4530_v17 = vadd.f32 %v4476_v49, %v4376_v56  ;;  %5477 = vmatpush.msrb.mxu2 %v4953_v10 }
 0x4e2   : > { %vm4755_vm12 = vcmp.ge.f32.partialorder %v4723_v41, 0.0  ;;  %v4787_v54 = vmul.f32 0.2, %v4723_v41  ;;  %v4331_v52 = vpop.f32.mrf.mxu1  ;;  %v4378_v25 = vadd.f32 %v4328_v29, %v4070_v8 }
 0x4e4   : > { %v4819_v14 = vsel %vm4755_vm12, %v4723_v41, %v4787_v54  ;;  %v4997_v11 = vld [vmem:[#allocation3 + $0xf0] ss:$2 sm:$0xff]  ;;  %v4999_v58 = vld [vmem:[#allocation3 + $0x100] ss:$2 sm:$0x3] }
 0x4e5   : > { %4924 = vst.msk [vmem:[#allocation3 + $0x109] sm:$0xff] %vm4831_vm4, %v4819_v14  ;;  %v4634_v34 = vpop.f32.mrf.mxu3  ;;  %v5059_v20 = vrot.slane %v4997_v11, 1  ;;  %8894 = vmatmul.msk.f32.gmra.mxu1 %vm4831_vm4, %v4997_v11  ;;  %8901 = vmatmul.msk.f32.gmra.mxu2 %vm4831_vm4, %v4997_v11  ;;  %v5060_v63 = vrot.slane %v4999_v58, 1 }
 0x4e6   : > { %v4688_v16 = vadd.f32 %v4634_v34, %v4530_v17 }
 0x4e7   : > { %v5061_v27 = vsel %vm1149_vm2, %v5059_v20, %v5060_v63  ;;  %v4023_v53 = vpop.f32.mrf.mxu0 }
 0x4e8   : > { %v4724_v30 = vadd.f32 %v10846_v31, %v4688_v16  ;;  %8886 = vmatmul.msk.f32.gmra.mxu0 %vm4831_vm4, %v5061_v27  ;;  %8909 = vmatmul.msk.f32.gmra.mxu3 %vm4831_vm4, %v5061_v27  ;;  %v4479_v1 = vpop.f32.mrf.mxu2  ;;  %v4071_v3 = vadd.f32 %v4023_v53, %v10726_v9  ;;  %v4947_v9 = vld [vmem:[%s12224_s3 + $0x30] sm:$0xff] }
 0x4e9   : > { %v4531_v44 = vadd.f32 %v4479_v1, %v4377_v12  ;;  %5425 = vmatpush.msrb.mxu1 %v4947_v9 }
 0x4ea   : > { %vm4756_vm13 = vcmp.ge.f32.partialorder %v4724_v30, 0.0  ;;  %v4788_v4 = vmul.f32 0.2, %v4724_v30  ;;  %v4334_v59 = vpop.f32.mrf.mxu1  ;;  %v4379_v7 = vadd.f32 %v4331_v52, %v4071_v3 }
 0x4ec   : > { %v4820_v28 = vsel %vm4756_vm13, %v4724_v30, %v4788_v4 }
 0x4ed   : > { %4925 = vst.msk [vmem:[#allocation3 + $0x111] sm:$0xff] %vm4831_vm4, %v4820_v28  ;;  %v4637_v45 = vpop.f32.mrf.mxu3 }
 0x4ee   : > { %v4689_v39 = vadd.f32 %v4637_v45, %v4531_v44 }
 0x4ef   : > { %v4026_v22 = vpop.f32.mrf.mxu0 }
 0x4f0   : > { %v4725_v61 = vadd.f32 %v10846_v31, %v4689_v39  ;;  %v4482_v33 = vpop.f32.mrf.mxu2  ;;  %v4945_v31 = vld [vmem:[%s12224_s3 + $0x20] sm:$0xff]  ;;  %v4072_v46 = vadd.f32 %v4026_v22, %v10734_v24 }
 0x4f1   : > { %v4532_v48 = vadd.f32 %v4482_v33, %v4378_v25  ;;  %5328 = vmatpush.msrb.mxu0 %v4945_v31 }
 0x4f2   : > { %vm4757_vm14 = vcmp.ge.f32.partialorder %v4725_v61, 0.0  ;;  %v4789_v62 = vmul.f32 0.2, %v4725_v61  ;;  %v4337_v40 = vpop.f32.mrf.mxu1  ;;  %v4380_v42 = vadd.f32 %v4334_v59, %v4072_v46 }
 0x4f4   : > { %v4821_v57 = vsel %vm4757_vm14, %v4725_v61, %v4789_v62 }
 0x4f5   : > { %4927 = vst.msk [vmem:[#allocation3 + $0x121] sm:$0xff] %vm4831_vm4, %v4821_v57  ;;  %v4640_v26 = vpop.f32.mrf.mxu3 }
 0x4f6   : > { %v4690_v6 = vadd.f32 %v4640_v26, %v4532_v48 }
 0x4f7   : > { %v4029_v60 = vpop.f32.mrf.mxu0 }
 0x4f8   : > { %v4726_v51 = vadd.f32 %v11118_v50, %v4690_v6  ;;  %v4485_v19 = vpop.f32.mrf.mxu2  ;;  %v4073_v54 = vadd.f32 %v4029_v60, %v10742_v47 }
 0x4f9   : > { %v4533_v13 = vadd.f32 %v4485_v19, %v4379_v7 }
 0x4fa   : > { %vm4758_vm15 = vcmp.ge.f32.partialorder %v4726_v51, 0.0  ;;  %v4790_v5 = vmul.f32 0.2, %v4726_v51  ;;  %v4340_v34 = vpop.f32.mrf.mxu1  ;;  %v4381_v47 = vadd.f32 %v4337_v40, %v4073_v54 }
 0x4fc   : > { %v4822_v15 = vsel %vm4758_vm15, %v4726_v51, %v4790_v5 }
 0x4fd   : > { %4928 = vst.msk [vmem:[#allocation3 + $0x129] sm:$0xff] %vm4831_vm4, %v4822_v15  ;;  %v4643_v21 = vpop.f32.mrf.mxu3 }
 0x4fe   : > { %v4691_v55 = vadd.f32 %v4643_v21, %v4533_v13  ;;  %v4961_v13 = vld [vmem:[#allocation3 + $0x18] ss:$2 sm:$0xff] }
 0x4ff   : > { %v4032_v0 = vpop.f32.mrf.mxu0  ;;  %v5370_v54 = vrot.slane %v4961_v13, 1 }
 0x500   : > { %v4727_v36 = vadd.f32 %v11118_v50, %v4691_v55  ;;  %v4488_v29 = vpop.f32.mrf.mxu2  ;;  %v4074_v1 = vadd.f32 %v4032_v0, %v10750_v23 }
 0x501   : > { %v4534_v56 = vadd.f32 %v4488_v29, %v4380_v42  ;;  %v4963_v29 = vld [vmem:[#allocation3 + $0x28] ss:$2 sm:$0x3] }
 0x502   : > { %vm4759_vm0 = vcmp.ge.f32.partialorder %v4727_v36, 0.0  ;;  %v4791_v41 = vmul.f32 0.2, %v4727_v36  ;;  %v4382_v28 = vadd.f32 %v4340_v34, %v4074_v1  ;;  %v4343_v45 = vpop.f32.mrf.mxu1 }
 0x504   : > { %v4823_v49 = vsel %vm4759_vm0, %v4727_v36, %v4791_v41  ;;  %v5005_v17 = vld [vmem:[#allocation3 + $0x120] ss:$2 sm:$0xff]  ;;  %v5007_v14 = vld [vmem:[#allocation3 + $0x130] ss:$2 sm:$0x3] }
 0x505   : > { %4930 = vst.msk [vmem:[#allocation3 + $0x139] sm:$0xff] %vm4831_vm4, %v4823_v49  ;;  %v4646_v24 = vpop.f32.mrf.mxu3  ;;  %v5062_v18 = vrot.slane %v5005_v17, 1  ;;  %8895 = vmatmul.msk.f32.gmra.mxu1 %vm4831_vm4, %v5005_v17  ;;  %8902 = vmatmul.msk.f32.gmra.mxu2 %vm4831_vm4, %v5005_v17  ;;  %v5063_v11 = vrot.slane %v5007_v14, 1  ;;  %v5371_v17 = vrot.slane %v4963_v29, 1 }
 0x506   : > { %v4692_v58 = vadd.f32 %v4646_v24, %v4534_v56 }
 0x507   : > { %v5064_v20 = vsel %vm1149_vm2, %v5062_v18, %v5063_v11  ;;  %v4035_v30 = vpop.f32.mrf.mxu0  ;;  %v5372_v34 = vsel %vm1149_vm2, %v5370_v54, %v5371_v17 }
 0x508   : > { %v4728_v63 = vadd.f32 %v11118_v50, %v4692_v58  ;;  %8887 = vmatmul.msk.f32.gmra.mxu0 %vm4831_vm4, %v5064_v20  ;;  %8910 = vmatmul.msk.f32.gmra.mxu3 %vm4831_vm4, %v5064_v20  ;;  %v4491_v16 = vpop.f32.mrf.mxu2  ;;  %v4075_v25 = vadd.f32 %v4035_v30, %v10758_v35 }
 0x509   : > { %v4535_v53 = vadd.f32 %v4491_v16, %v4381_v47  ;;  %v4971_v47 = vld [vmem:[#allocation3 + $0x58] ss:$2 sm:$0x3] }
 0x50a   : > { %vm4760_vm3 = vcmp.ge.f32.partialorder %v4728_v63, 0.0  ;;  %v4792_v27 = vmul.f32 0.2, %v4728_v63  ;;  %v4383_v59 = vadd.f32 %v4343_v45, %v4075_v25  ;;  %v4346_v10 = vpop.f32.mrf.mxu1  ;;  %v4977_v25 = vld [vmem:[#allocation3 + $0x78] ss:$2 sm:$0xff] }
 0x50c   : > { %v4824_v12 = vsel %vm4760_vm3, %v4728_v63, %v4792_v27  ;;  %v4969_v63 = vld [vmem:[#allocation3 + $0x48] ss:$2 sm:$0xff]  ;;  %v4950_v27 = vld [vmem:[%s12224_s3 + $0x48] sm:$0xff] }
 0x50d   : > { %4931 = vst.msk [vmem:[#allocation3 + $0x141] sm:$0xff] %vm4831_vm4, %v4824_v12  ;;  %v4649_v52 = vpop.f32.mrf.mxu3  ;;  %5826 = vmatpush.msra.mxu2 %v4950_v27  ;;  %v5373_v1 = vrot.slane %v4969_v63, 1  ;;  %v5577_v27 = vld [vmem:[#allocation3 + $0x41] ss:$2 sm:$0x3] }
 0x50e   : > { %v4693_v4 = vadd.f32 %v4649_v52, %v4535_v53  ;;  %v5374_v52 = vrot.slane %v4971_v47, 1 }
 0x50f   : > { %v4038_v62 = vpop.f32.mrf.mxu0 }
 0x510   : > { %v4729_v44 = vadd.f32 %v11118_v50, %v4693_v4  ;;  %v4494_v8 = vpop.f32.mrf.mxu2  ;;  %v4076_v32 = vadd.f32 %v4038_v62, %v10770_v38  ;;  %v4942_v4 = vld [vmem:[%s12224_s3 + $0x8] sm:$0xff] }
 0x511   : > { %v4536_v22 = vadd.f32 %v4494_v8, %v4382_v28  ;;  %5677 = vmatpush.msra.mxu0 %v4942_v4  ;;  %v4944_v28 = vld [vmem:[%s12224_s3 + $0x18] sm:$0xff] }
 0x512   : > { %vm4761_vm5 = vcmp.ge.f32.partialorder %v4729_v44, 0.0  ;;  %v4793_v39 = vmul.f32 0.2, %v4729_v44  ;;  %v4384_v51 = vadd.f32 %v4346_v10, %v4076_v32  ;;  %v4349_v38 = vpop.f32.mrf.mxu1  ;;  %5774 = vmatpush.msra.mxu1 %v4944_v28  ;;  %v4985_v10 = vld [vmem:[#allocation3 + $0xa8] ss:$2 sm:$0xff] }
 0x513   : > { %v5379_v32 = vrot.slane %v4985_v10, 1  ;;  %v4948_v4 = vld [vmem:[%s12224_s3 + $0x38] sm:$0xff]  ;;  %v5583_v28 = vld [vmem:[#allocation3 + $0x61] ss:$2 sm:$0xff] }
 0x514   : > { %v4825_v61 = vsel %vm4761_vm5, %v4729_v44, %v4793_v39  ;;  %v4952_v44 = vld [vmem:[%s12224_s3 + $0x58] sm:$0xff]  ;;  %v5011_v29 = vld [vmem:[#allocation3 + $0x148] ss:$2 sm:$0x3] }
 0x515   : > { %4933 = vst.msk [vmem:[#allocation3 + $0x151] sm:$0xff] %vm4831_vm4, %v4825_v61  ;;  %v4652_v33 = vpop.f32.mrf.mxu3  ;;  %5881 = vmatpush.msra.mxu3 %v4952_v44 }
 0x516   : > { %v4694_v23 = vadd.f32 %v4652_v33, %v4536_v22  ;;  %v5375_v22 = vsel %vm1149_vm2, %v5373_v1, %v5374_v52  ;;  %v4979_v33 = vld [vmem:[#allocation3 + $0x88] ss:$2 sm:$0x3]  ;;  %v4946_v1 = vld [vmem:[%s12224_s3 + $0x28] sm:$0xff]  ;;  %v4956_v52 = vld [vmem:[%s12224_s3 + $0x78] sm:$0xff] }
 0x517   : > { %v4041_v9 = vpop.f32.mrf.mxu0 }
 0x518   : > { %v4730_v48 = vadd.f32 %v11118_v50, %v4694_v23  ;;  %v4497_v57 = vpop.f32.mrf.mxu2  ;;  %v4077_v46 = vadd.f32 %v4041_v9, %v10797_v37 }
 0x519   : > { %v4537_v26 = vadd.f32 %v4497_v57, %v4383_v59  ;;  %v5377_v59 = vrot.slane %v4979_v33, 1  ;;  %v5591_v33 = vld [vmem:[#allocation3 + $0x91] ss:$2 sm:$0xff] }
 0x51a   : > { %vm4762_vm6 = vcmp.ge.f32.partialorder %v4730_v48, 0.0  ;;  %v4794_v3 = vmul.f32 0.2, %v4730_v48  ;;  %v4385_v37 = vadd.f32 %v4349_v38, %v4077_v46  ;;  %v4352_v53 = vpop.f32.mrf.mxu1 }
 0x51c   : > { %v4826_v31 = vsel %vm4762_vm6, %v4730_v48, %v4794_v3  ;;  %v5376_v48 = vrot.slane %v4977_v25, 1 }
 0x51d   : > { %4934 = vst.msk [vmem:[#allocation3 + $0x159] sm:$0xff] %vm4831_vm4, %v4826_v31  ;;  %v4655_v6 = vpop.f32.mrf.mxu3  ;;  %v4987_v31 = vld [vmem:[#allocation3 + $0xb8] ss:$2 sm:$0x3] }
 0x51e   : > { %v4695_v35 = vadd.f32 %v4655_v6, %v4537_v26  ;;  %v5378_v26 = vsel %vm1149_vm2, %v5376_v48, %v5377_v59  ;;  %v5380_v6 = vrot.slane %v4987_v31, 1  ;;  %v5027_v48 = vld [vmem:[#allocation3 + $0x1a8] ss:$2 sm:$0x3] }
 0x51f   : > { %v4044_v14 = vpop.f32.mrf.mxu0 }
 0x520   : > { %v4731_v60 = vadd.f32 %v11118_v50, %v4695_v35  ;;  %v4500_v7 = vpop.f32.mrf.mxu2  ;;  %v4078_v58 = vadd.f32 %v4044_v14, %v10824_v43  ;;  %v5381_v9 = vsel %vm1149_vm2, %v5379_v32, %v5380_v6 }
 0x521   : > { %v4538_v5 = vadd.f32 %v4500_v7, %v4384_v51 }
 0x522   : > { %vm4763_vm7 = vcmp.ge.f32.partialorder %v4731_v60, 0.0  ;;  %v4795_v19 = vmul.f32 0.2, %v4731_v60  ;;  %v4386_v43 = vadd.f32 %v4352_v53, %v4078_v58  ;;  %v11197_v14 = vpop.f32.mrf.mxu1  ;;  %v4954_v53 = vld [vmem:[%s12224_s3 + $0x68] sm:$0xff] }
 0x524   : > { %v4827_v15 = vsel %vm4763_vm7, %v4731_v60, %v4795_v19  ;;  %v5013_v21 = vld [vmem:[#allocation3 + $0x150] ss:$2 sm:$0xff]  ;;  %v5015_v40 = vld [vmem:[#allocation3 + $0x160] ss:$2 sm:$0x3] }
 0x525   : > { %4936 = vst.msk [vmem:[#allocation3 + $0x169] sm:$0xff] %vm4831_vm4, %v4827_v15  ;;  %v4658_v55 = vpop.f32.mrf.mxu3  ;;  %v5065_v36 = vrot.slane %v5013_v21, 1  ;;  %8896 = vmatmul.msk.f32.gmra.mxu1 %vm4831_vm4, %v5013_v21  ;;  %8903 = vmatmul.msk.f32.gmra.mxu2 %vm4831_vm4, %v5013_v21  ;;  %v5066_v42 = vrot.slane %v5015_v40, 1  ;;  %v4995_v19 = vld [vmem:[#allocation3 + $0xe8] ss:$2 sm:$0x3] }
 0x526   : > { %v4696_v0 = vadd.f32 %v4658_v55, %v4538_v5  ;;  %v5383_v15 = vrot.slane %v4995_v19, 1  ;;  %v5001_v21 = vld [vmem:[#allocation3 + $0x108] ss:$2 sm:$0xff]  ;;  %v5003_v40 = vld [vmem:[#allocation3 + $0x118] ss:$2 sm:$0x3] }
 0x527   : > { %v5067_v41 = vsel %vm1149_vm2, %v5065_v36, %v5066_v42  ;;  %v5385_v38 = vrot.slane %v5001_v21, 1  ;;  %v5386_v55 = vrot.slane %v5003_v40, 1  ;;  %v5009_v42 = vld [vmem:[#allocation3 + $0x138] ss:$2 sm:$0xff]  ;;  %v11200_v58 = vpop.f32.mrf.mxu0 }
 0x528   : > { %v4732_v56 = vadd.f32 %v11118_v50, %v4696_v0  ;;  %8888 = vmatmul.msk.f32.gmra.mxu0 %vm4831_vm4, %v5067_v41  ;;  %8911 = vmatmul.msk.f32.gmra.mxu3 %vm4831_vm4, %v5067_v41  ;;  %v4503_v49 = vpop.f32.mrf.mxu2  ;;  %v5388_v0 = vrot.slane %v5009_v42, 1  ;;  %v5389_v41 = vrot.slane %v5011_v29, 1  ;;  %v5615_v29 = vld [vmem:[#allocation3 + $0x121] ss:$2 sm:$0xff] }
 0x529   : > { %v4539_v18 = vadd.f32 %v4503_v49, %v4385_v37  ;;  %v5387_v36 = vsel %vm1149_vm2, %v5385_v38, %v5386_v55 }
 0x52a   : > { %vm4764_vm1 = vcmp.ge.f32.partialorder %v4732_v56, 0.0  ;;  %v4796_v24 = vmul.f32 0.2, %v4732_v56  ;;  %v11207_v47 = vpop.f32.mrf.mxu1 }
 0x52c   : > { %v4828_v11 = vsel %vm4764_vm1, %v4732_v56, %v4796_v24  ;;  %v5390_v56 = vsel %vm1149_vm2, %v5388_v0, %v5389_v41  ;;  %v5567_v24 = vld [vmem:[#allocation3 + $0x1] ss:$2 sm:$0xff]  ;;  %v5617_v0 = vld [vmem:[#allocation3 + $0x131] ss:$2 sm:$0x3] }
 0x52d   : > { %4937 = vst.msk [vmem:[#allocation3 + $0x171] sm:$0xff] %vm4831_vm4, %v4828_v11  ;;  %v4661_v20 = vpop.f32.mrf.mxu3  ;;  %8921 = vmatmul.msk.f32.vlgmr.msrb.gmra.mxu1 %vm4831_vm4, %v5372_v34  ;;  %v5719_v34 = vrot.slane %v5567_v24, 1 }
 0x52e   : > { %v4697_v16 = vadd.f32 %v4661_v20, %v4539_v18  ;;  %v5569_v18 = vld [vmem:[#allocation3 + $0x11] ss:$2 sm:$0x3]  ;;  %6051 = vmatpush.msrb.mxu1 %v4948_v4 }
 0x52f   : > { %v5720_v20 = vrot.slane %v5569_v18, 1  ;;  %v5625_v18 = vld [vmem:[#allocation3 + $0x161] ss:$2 sm:$0x3] }
 0x530   : > { %v4733_v30 = vadd.f32 %v11118_v50, %v4697_v16  ;;  %8913 = vmatmul.msk.f32.vlgmr.msrb.gmra.mxu0 %vm4831_vm4, %v4961_v13  ;;  %v4506_v12 = vpop.f32.mrf.mxu2  ;;  %v5575_v16 = vld [vmem:[#allocation3 + $0x31] ss:$2 sm:$0xff] }
 0x531   : > { %v4540_v45 = vadd.f32 %v4506_v12, %v4386_v43  ;;  %v5722_v43 = vrot.slane %v5575_v16, 1  ;;  %v5723_v12 = vrot.slane %v5577_v27, 1  ;;  %5954 = vmatpush.msrb.mxu0 %v4946_v1 }
 0x532   : > { %vm4765_vm8 = vcmp.ge.f32.partialorder %v4733_v30, 0.0  ;;  %v4797_v8 = vmul.f32 0.2, %v4733_v30 }
 0x533   : > { %v5724_v44 = vsel %vm1149_vm2, %v5722_v43, %v5723_v12  ;;  %v5571_v43 = vld [vmem:[#allocation3 + $0x19] ss:$2 sm:$0xff]  ;;  %v5573_v12 = vld [vmem:[#allocation3 + $0x29] ss:$2 sm:$0x3] }
 0x534   : > { %v4829_v39 = vsel %vm4765_vm8, %v4733_v30, %v4797_v8  ;;  %v5017_v37 = vld [vmem:[#allocation3 + $0x168] ss:$2 sm:$0xff]  ;;  %v5019_v49 = vld [vmem:[#allocation3 + $0x178] ss:$2 sm:$0x3]  ;;  %v11214_v30 = vpop.f32.mrf.mxu0  ;;  %v5997_v4 = vrot.slane %v5573_v12, 1 }
 0x535   : > { %4939 = vst.msk [vmem:[#allocation3 + $0x181] sm:$0xff] %vm4831_vm4, %v4829_v39  ;;  %v4664_v61 = vpop.f32.mrf.mxu3  ;;  %8922 = vmatmul.msk.f32.gmra.mxu1 %vm4831_vm4, %v5375_v22  ;;  %v5391_v54 = vrot.slane %v5017_v37, 1  ;;  %v5392_v17 = vrot.slane %v5019_v49, 1  ;;  %v5585_v8 = vld [vmem:[#allocation3 + $0x71] ss:$2 sm:$0x3] }
 0x536   : > { %v4698_v62 = vadd.f32 %v4664_v61, %v4540_v45  ;;  %v11230_v45 = vpop.f32.mrf.mxu1  ;;  %v5725_v39 = vrot.slane %v5583_v28, 1  ;;  %vm7246_vm8 = vcmask 259072  }
 0x537   : > { %v5393_v11 = vsel %vm1149_vm2, %v5391_v54, %v5392_v17 }
 0x538   : > { %v4734_v23 = vadd.f32 %v11118_v50, %v4698_v62  ;;  %8914 = vmatmul.msk.f32.gmra.mxu0 %vm4831_vm4, %v4969_v63  ;;  %v4993_v50 = vld [vmem:[#allocation3 + $0xd8] ss:$2 sm:$0xff]  ;;  %v5593_v62 = vld [vmem:[#allocation3 + $0xa1] ss:$2 sm:$0x3] }
 0x539   : > { %v5382_v13 = vrot.slane %v4993_v50, 1 }
 0x53a   : > { %vm4766_vm9 = vcmp.ge.f32.partialorder %v4734_v23, 0.0  ;;  %v4798_v57 = vmul.f32 0.2, %v4734_v23 }
 0x53b   : > { %v5384_v46 = vsel %vm1149_vm2, %v5382_v13, %v5383_v15  ;;  %v5607_v15 = vld [vmem:[#allocation3 + $0xf1] ss:$2 sm:$0xff] }
 0x53c   : > { %v4830_v3 = vsel %vm4766_vm9, %v4734_v23, %v4798_v57  ;;  %v11234_v61 = vpop.f32.mrf.mxu0  ;;  %v5025_v23 = vld [vmem:[#allocation3 + $0x198] ss:$2 sm:$0xff]  ;;  %v5728_v57 = vrot.slane %v5591_v33, 1  ;;  %vm7183_vm9 = vcmask 261120  }
 0x53d   : > { %4940 = vst.msk [vmem:[#allocation3 + $0x189] sm:$0xff] %vm4831_vm4, %v4830_v3  ;;  %8923 = vmatmul.msk.f32.gmra.mxu1 %vm4831_vm4, %v5378_v26  ;;  %v5729_v3 = vrot.slane %v5593_v62, 1 }
 0x53e   : > { %v11239_v59 = vpop.f32.mrf.mxu1 }
 0x53f   : > { %v5730_v32 = vsel %vm1149_vm2, %v5728_v57, %v5729_v3 }
 0x540   : > { %8915 = vmatmul.msk.f32.gmra.mxu0 %vm4831_vm4, %v4977_v25 }
 0x544   : > { %v5021_v35 = vld [vmem:[#allocation3 + $0x180] ss:$2 sm:$0xff]  ;;  %v5023_v60 = vld [vmem:[#allocation3 + $0x190] ss:$2 sm:$0x3]  ;;  %v11243_v31 = vpop.f32.mrf.mxu0 }
 0x545   : > { %8904 = vmatmul.msk.f32.gmra.mxu2 %vm4831_vm4, %v5021_v35  ;;  %v5235_v51 = vrot.slane %v5021_v35, 1  ;;  %8924 = vmatmul.msk.f32.gmra.mxu1 %vm4831_vm4, %v5381_v9  ;;  %v5236_v7 = vrot.slane %v5023_v60, 1  ;;  %v5601_v35 = vld [vmem:[#allocation3 + $0xd1] ss:$2 sm:$0x3] }
 0x546   : > { %v5732_v60 = vrot.slane %v5601_v35, 1 }
 0x547   : > { %v5237_v5 = vsel %vm1149_vm2, %v5235_v51, %v5236_v7  ;;  %v11251_v51 = vpop.f32.mrf.mxu2  ;;  %v11253_v7 = vpop.f32.mrf.mxu1 }
 0x548   : > { %8912 = vmatmul.msk.f32.gmra.mxu3 %vm4831_vm4, %v5237_v5  ;;  %8916 = vmatmul.msk.f32.gmra.mxu0 %vm4831_vm4, %v4985_v10  ;;  %v11256_v5 = vpop.f32.mrf.mxu3 }
 0x54c   : > { %v11258_v13 = vpop.f32.mrf.mxu0 }
 0x54d   : > { %8925 = vmatmul.msk.f32.gmra.mxu1 %vm4831_vm4, %v5384_v46  ;;  %8929 = vmatmul.msk.f32.vlgmr.msrb.gmra.mxu2 %vm4831_vm4, %v4969_v63  ;;  %v5721_v63 = vsel %vm1149_vm2, %v5719_v34, %v5720_v20  ;;  %v5741_v20 = vrot.slane %v5625_v18, 1 }
 0x54e   : > { %6103 = vmatpush.msrb.mxu2 %v4954_v53 }
 0x54f   : > { %v11266_v55 = vpop.f32.mrf.mxu2 }
 0x550   : > { %8917 = vmatmul.msk.f32.gmra.mxu0 %vm4831_vm4, %v4993_v50  ;;  %8937 = vmatmul.msk.f32.vlgmr.msrb.gmra.mxu3 %vm4831_vm4, %v5375_v22  ;;  %v5726_v22 = vrot.slane %v5585_v8, 1  ;;  %v11273_v41 = vpop.f32.mrf.mxu3 }
 0x551   : > { %6158 = vmatpush.msrb.mxu3 %v4956_v52  ;;  %v5996_v52 = vrot.slane %v5571_v43, 1 }
 0x553   : > { %v5998_v8 = vsel %vm1149_vm2, %v5996_v52, %v5997_v4 }
 0x555   : > { %8926 = vmatmul.msk.f32.gmra.mxu1 %vm4831_vm4, %v5387_v36  ;;  %8930 = vmatmul.msk.f32.gmra.mxu2 %vm4831_vm4, %v4977_v25  ;;  %v5727_v25 = vsel %vm1149_vm2, %v5725_v39, %v5726_v22  ;;  %v5579_v22 = vld [vmem:[#allocation3 + $0x49] ss:$2 sm:$0xff] }
 0x556   : > { %v5999_v62 = vrot.slane %v5579_v22, 1 }
 0x558   : > { %8918 = vmatmul.msk.f32.gmra.mxu0 %vm4831_vm4, %v5001_v21  ;;  %8938 = vmatmul.msk.f32.gmra.mxu3 %vm4831_vm4, %v5378_v26  ;;  %v5512_v26 = vrot.slane %v5025_v23, 1 }
 0x55d   : > { %8927 = vmatmul.msk.f32.gmra.mxu1 %vm4831_vm4, %v5390_v56  ;;  %8931 = vmatmul.msk.f32.gmra.mxu2 %vm4831_vm4, %v4985_v10  ;;  %v5513_v10 = vrot.slane %v5027_v48, 1 }
 0x55f   : > { %v5514_v6 = vsel %vm1149_vm2, %v5512_v26, %v5513_v10  ;;  %v5587_v10 = vld [vmem:[#allocation3 + $0x79] ss:$2 sm:$0xff] }
 0x560   : > { %8919 = vmatmul.msk.f32.gmra.mxu0 %vm4831_vm4, %v5009_v42  ;;  %8939 = vmatmul.msk.f32.gmra.mxu3 %vm4831_vm4, %v5381_v9 }
 0x562   : > { %v11264_v38 = vpop.f32.mrf.mxu1 }
 0x565   : > { %8928 = vmatmul.msk.f32.gmra.mxu1 %vm4831_vm4, %v5393_v11  ;;  %8932 = vmatmul.msk.f32.gmra.mxu2 %vm4831_vm4, %v4993_v50  ;;  %v5599_v50 = vld [vmem:[#allocation3 + $0xc1] ss:$2 sm:$0xff] }
 0x566   : > { %v5731_v9 = vrot.slane %v5599_v50, 1 }
 0x568   : > { %8920 = vmatmul.msk.f32.gmra.mxu0 %vm4831_vm4, %v5017_v37  ;;  %8940 = vmatmul.msk.f32.gmra.mxu3 %vm4831_vm4, %v5384_v46  ;;  %v5733_v19 = vsel %vm1149_vm2, %v5731_v9, %v5732_v60  ;;  %v5609_v46 = vld [vmem:[#allocation3 + $0x101] ss:$2 sm:$0x3] }
 0x569   : > { %v5735_v40 = vrot.slane %v5609_v46, 1 }
 0x56d   : > { %8933 = vmatmul.msk.f32.gmra.mxu2 %vm4831_vm4, %v5001_v21  ;;  %8953 = vmatmul.msk.f32.vlgmr.msra.gmra.mxu1 %vm4831_vm4, %v5721_v63  ;;  %v5734_v21 = vrot.slane %v5607_v15, 1  ;;  %v11288_v63 = vpop.f32.mrf.mxu3 }
 0x570   : > { %8941 = vmatmul.msk.f32.gmra.mxu3 %vm4831_vm4, %v5387_v36  ;;  %8945 = vmatmul.msk.f32.vlgmr.msra.gmra.mxu0 %vm4831_vm4, %v5567_v24  ;;  %v5736_v36 = vsel %vm1149_vm2, %v5734_v21, %v5735_v40  ;;  %v5623_v24 = vld [vmem:[#allocation3 + $0x151] ss:$2 sm:$0xff] }
 0x571   : > { %v5740_v34 = vrot.slane %v5623_v24, 1  ;;  %v5595_v21 = vld [vmem:[#allocation3 + $0xa9] ss:$2 sm:$0xff] }
 0x573   : > { %v5742_v27 = vsel %vm1149_vm2, %v5740_v34, %v5741_v20 }
 0x575   : > { %8934 = vmatmul.msk.f32.gmra.mxu2 %vm4831_vm4, %v5009_v42  ;;  %8954 = vmatmul.msk.f32.gmra.mxu1 %vm4831_vm4, %v5724_v44  ;;  %v11269_v42 = vpop.f32.mrf.mxu0 }
 0x578   : > { %8942 = vmatmul.msk.f32.gmra.mxu3 %vm4831_vm4, %v5390_v56  ;;  %8946 = vmatmul.msk.f32.gmra.mxu0 %vm4831_vm4, %v5575_v16  ;;  %v5737_v56 = vrot.slane %v5615_v29, 1 }
 0x57d   : > { %8935 = vmatmul.msk.f32.gmra.mxu2 %vm4831_vm4, %v5017_v37  ;;  %8955 = vmatmul.msk.f32.gmra.mxu1 %vm4831_vm4, %v5727_v25  ;;  %v5738_v37 = vrot.slane %v5617_v0, 1  ;;  %v6005_v0 = vrot.slane %v5595_v21, 1 }
 0x57f   : > { %v5739_v54 = vsel %vm1149_vm2, %v5737_v56, %v5738_v37  ;;  %v5633_v56 = vld [vmem:[#allocation3 + $0x191] ss:$2 sm:$0x3] }
 0x580   : > { %8943 = vmatmul.msk.f32.gmra.mxu3 %vm4831_vm4, %v5393_v11  ;;  %8947 = vmatmul.msk.f32.gmra.mxu0 %vm4831_vm4, %v5583_v28  ;;  %v11284_v11 = vpop.f32.mrf.mxu2  ;;  %v5862_v34 = vrot.slane %v5633_v56, 1 }
 0x582   : > { %v11277_v49 = vpop.f32.mrf.mxu1 }
 0x585   : > { %8936 = vmatmul.msk.f32.gmra.mxu2 %vm4831_vm4, %v5025_v23  ;;  %8956 = vmatmul.msk.f32.gmra.mxu1 %vm4831_vm4, %v5730_v32  ;;  %v11280_v17 = vpop.f32.mrf.mxu0 }
 0x588   : > { %8944 = vmatmul.msk.f32.gmra.mxu3 %vm4831_vm4, %v5514_v6  ;;  %8948 = vmatmul.msk.f32.gmra.mxu0 %vm4831_vm4, %v5591_v33  ;;  %v11295_v1 = vpop.f32.mrf.mxu2 }
 0x58d   : > { %8957 = vmatmul.msk.f32.gmra.mxu1 %vm4831_vm4, %v5733_v19  ;;  %8961 = vmatmul.msk.f32.vlgmr.msra.gmra.mxu2 %vm4831_vm4, %v5575_v16 }
 0x590   : > { %8949 = vmatmul.msk.f32.gmra.mxu0 %vm4831_vm4, %v5599_v50  ;;  %8969 = vmatmul.msk.f32.vlgmr.msra.gmra.mxu3 %vm4831_vm4, %v5724_v44 }
 0x595   : > { %8958 = vmatmul.msk.f32.gmra.mxu1 %vm4831_vm4, %v5736_v36  ;;  %8962 = vmatmul.msk.f32.gmra.mxu2 %vm4831_vm4, %v5583_v28  ;;  %v11301_v28 = vpop.f32.mrf.mxu3 }
 0x598   : > { %8950 = vmatmul.msk.f32.gmra.mxu0 %vm4831_vm4, %v5607_v15  ;;  %8970 = vmatmul.msk.f32.gmra.mxu3 %vm4831_vm4, %v5727_v25  ;;  %v5581_v25 = vld [vmem:[#allocation3 + $0x59] ss:$2 sm:$0x3] }
 0x599   : > { %v6000_v23 = vrot.slane %v5581_v25, 1 }
 0x59b   : > { %v6001_v3 = vsel %vm1149_vm2, %v5999_v62, %v6000_v23 }
 0x59d   : > { %8959 = vmatmul.msk.f32.gmra.mxu1 %vm4831_vm4, %v5739_v54  ;;  %8963 = vmatmul.msk.f32.gmra.mxu2 %vm4831_vm4, %v5591_v33  ;;  %v11308_v33 = vpop.f32.mrf.mxu2  ;;  %v11314_v57 = vpop.f32.mrf.mxu3 }
 0x5a0   : > { %8951 = vmatmul.msk.f32.gmra.mxu0 %vm4831_vm4, %v5615_v29  ;;  %8971 = vmatmul.msk.f32.gmra.mxu3 %vm4831_vm4, %v5730_v32  ;;  %v5589_v32 = vld [vmem:[#allocation3 + $0x89] ss:$2 sm:$0x3] }
 0x5a1   : > { %v6003_v35 = vrot.slane %v5589_v32, 1 }
 0x5a2   : > { %v11290_v16 = vpop.f32.mrf.mxu1 }
 0x5a5   : > { %v5122_v53 = vpop.f32.mrf.mxu0  ;;  %8960 = vmatmul.msk.f32.gmra.mxu1 %vm4831_vm4, %v5742_v27  ;;  %8964 = vmatmul.msk.f32.gmra.mxu2 %vm4831_vm4, %v5599_v50  ;;  %v11321_v6 = vpop.f32.mrf.mxu2  ;;  %v6002_v50 = vrot.slane %v5587_v10, 1 }
 0x5a6   : > { %v11327_v60 = vpop.f32.mrf.mxu3  ;;  %v5180_v12 = vadd.f32 %v11290_v16, %v5122_v53  ;;  %v5611_v16 = vld [vmem:[#allocation3 + $0x109] ss:$2 sm:$0xff]  ;;  %v5613_v53 = vld [vmem:[#allocation3 + $0x119] ss:$2 sm:$0x3] }
 0x5a8   : > { %8952 = vmatmul.msk.f32.gmra.mxu0 %vm4831_vm4, %v5623_v24  ;;  %8972 = vmatmul.msk.f32.gmra.mxu3 %vm4831_vm4, %v5733_v19  ;;  %v6004_v19 = vsel %vm1149_vm2, %v6002_v50, %v6003_v35 }
 0x5aa   : > { %v11299_v44 = vpop.f32.mrf.mxu1 }
 0x5ad   : > { %v11304_v39 = vpop.f32.mrf.mxu0  ;;  %8965 = vmatmul.msk.f32.gmra.mxu2 %vm4831_vm4, %v5607_v15  ;;  %8985 = vmatmul.msk.f32.vlgmr.msrb.gmra.mxu1 %vm4831_vm4, %v5998_v8  ;;  %v5597_v15 = vld [vmem:[#allocation3 + $0xb9] ss:$2 sm:$0x3] }
 0x5ae   : > { %v6006_v40 = vrot.slane %v5597_v15, 1 }
 0x5b0   : > { %8973 = vmatmul.msk.f32.gmra.mxu3 %vm4831_vm4, %v5736_v36  ;;  %8977 = vmatmul.msk.f32.vlgmr.msrb.gmra.mxu0 %vm4831_vm4, %v5571_v43  ;;  %v11334_v36 = vpop.f32.mrf.mxu2  ;;  %v5605_v43 = vld [vmem:[#allocation3 + $0xe9] ss:$2 sm:$0x3] }
 0x5b1   : > { %v6009_v25 = vrot.slane %v5605_v43, 1 }
 0x5b2   : > { %v11312_v48 = vpop.f32.mrf.mxu1 }
 0x5b5   : > { %v11317_v26 = vpop.f32.mrf.mxu0  ;;  %8966 = vmatmul.msk.f32.gmra.mxu2 %vm4831_vm4, %v5615_v29  ;;  %8986 = vmatmul.msk.f32.gmra.mxu1 %vm4831_vm4, %v6001_v3  ;;  %v5631_v29 = vld [vmem:[#allocation3 + $0x181] ss:$2 sm:$0xff] }
 0x5b6   : > { %v5861_v18 = vrot.slane %v5631_v29, 1 }
 0x5b8   : > { %8974 = vmatmul.msk.f32.gmra.mxu3 %vm4831_vm4, %v5739_v54  ;;  %8978 = vmatmul.msk.f32.gmra.mxu0 %vm4831_vm4, %v5579_v22  ;;  %v11340_v54 = vpop.f32.mrf.mxu3  ;;  %v5863_v52 = vsel %vm1149_vm2, %v5861_v18, %v5862_v34 }
 0x5ba   : > { %v11325_v9 = vpop.f32.mrf.mxu1 }
 0x5bd   : > { %v11330_v46 = vpop.f32.mrf.mxu0  ;;  %8967 = vmatmul.msk.f32.gmra.mxu2 %vm4831_vm4, %v5623_v24  ;;  %8987 = vmatmul.msk.f32.gmra.mxu1 %vm4831_vm4, %v6004_v19  ;;  %v6007_v24 = vsel %vm1149_vm2, %v6005_v0, %v6006_v40  ;;  %v6012_v0 = vrot.slane %v5613_v53, 1  ;;  %v5629_v53 = vld [vmem:[#allocation3 + $0x179] ss:$2 sm:$0x3] }
 0x5c0   : > { %8975 = vmatmul.msk.f32.gmra.mxu3 %vm4831_vm4, %v5742_v27  ;;  %8979 = vmatmul.msk.f32.gmra.mxu0 %vm4831_vm4, %v5587_v10  ;;  %v5603_v27 = vld [vmem:[#allocation3 + $0xd9] ss:$2 sm:$0xff] }
 0x5c1   : > { %v6008_v8 = vrot.slane %v5603_v27, 1 }
 0x5c2   : > { %v11338_v37 = vpop.f32.mrf.mxu1 }
 0x5c3   : > { %v6010_v35 = vsel %vm1149_vm2, %v6008_v8, %v6009_v25 }
 0x5c5   : > { %v11343_v20 = vpop.f32.mrf.mxu0  ;;  %8968 = vmatmul.msk.f32.gmra.mxu2 %vm4831_vm4, %v5631_v29  ;;  %8988 = vmatmul.msk.f32.gmra.mxu1 %vm4831_vm4, %v6007_v24  ;;  %v6011_v29 = vrot.slane %v5611_v16, 1 }
 0x5c7   : > { %v6013_v34 = vsel %vm1149_vm2, %v6011_v29, %v6012_v0  ;;  %v6018_v0 = vrot.slane %v5629_v53, 1 }
 0x5c8   : > { %v5223_v4 = vpop.f32.mrf.mxu2  ;;  %8976 = vmatmul.msk.f32.gmra.mxu3 %vm4831_vm4, %v5863_v52  ;;  %8980 = vmatmul.msk.f32.gmra.mxu0 %vm4831_vm4, %v5595_v21 }
 0x5c9   : > { %v5233_v62 = vadd.f32 %v5223_v4, %v5180_v12  ;;  %v5621_v12 = vld [vmem:[#allocation3 + $0x149] ss:$2 sm:$0x3] }
 0x5ca   : > { %v11351_v23 = vpop.f32.mrf.mxu1  ;;  %v6015_v4 = vrot.slane %v5621_v12, 1 }
 0x5cb   : > { %v5278_v32 = vpop.f32.mrf.mxu3 }
 0x5cc   : > { %v11353_v50 = vadd.f32 %v5278_v32, %v5233_v62 }
 0x5cd   : > { %v11356_v15 = vpop.f32.mrf.mxu0  ;;  %8989 = vmatmul.msk.f32.gmra.mxu1 %vm4831_vm4, %v6010_v35  ;;  %8993 = vmatmul.msk.f32.vlgmr.msrb.gmra.mxu2 %vm4831_vm4, %v5579_v22  ;;  %v5619_v22 = vld [vmem:[#allocation3 + $0x139] ss:$2 sm:$0xff] }
 0x5ce   : > { %12238 = vst [vmem:[#allocation7_spill] sm:$0xff] %v11353_v50 }
 0x5d0   : > { %v11360_v40 = vpop.f32.mrf.mxu2  ;;  %8981 = vmatmul.msk.f32.gmra.mxu0 %vm4831_vm4, %v5603_v27  ;;  %9001 = vmatmul.msk.f32.vlgmr.msrb.gmra.mxu3 %vm4831_vm4, %v6001_v3  ;;  %v6014_v3 = vrot.slane %v5619_v22, 1 }
 0x5d2   : > { %v11364_v56 = vpop.f32.mrf.mxu1  ;;  %v6016_v62 = vsel %vm1149_vm2, %v6014_v3, %v6015_v4 }
 0x5d3   : > { %v11366_v18 = vpop.f32.mrf.mxu3 }
 0x5d5   : > { %v11369_v43 = vpop.f32.mrf.mxu0  ;;  %8990 = vmatmul.msk.f32.gmra.mxu1 %vm4831_vm4, %v6013_v34  ;;  %8994 = vmatmul.msk.f32.gmra.mxu2 %vm4831_vm4, %v5587_v10  ;;  %v5627_v10 = vld [vmem:[#allocation3 + $0x169] ss:$2 sm:$0xff] }
 0x5d8   : > { %v11373_v52 = vpop.f32.mrf.mxu2  ;;  %8982 = vmatmul.msk.f32.gmra.mxu0 %vm4831_vm4, %v5611_v16  ;;  %9002 = vmatmul.msk.f32.gmra.mxu3 %vm4831_vm4, %v6004_v19  ;;  %v6017_v19 = vrot.slane %v5627_v10, 1 }
 0x5da   : > { %v11379_v25 = vpop.f32.mrf.mxu1  ;;  %v6019_v3 = vsel %vm1149_vm2, %v6017_v19, %v6018_v0 }
 0x5db   : > { %v11377_v8 = vpop.f32.mrf.mxu3  ;;  %12239 = vst [vmem:[#allocation8_spill] sm:$0xff] %v11379_v25 }
 0x5dd   : > { %v11382_v32 = vpop.f32.mrf.mxu0  ;;  %8991 = vmatmul.msk.f32.gmra.mxu1 %vm4831_vm4, %v6016_v62  ;;  %8995 = vmatmul.msk.f32.gmra.mxu2 %vm4831_vm4, %v5595_v21 }
 0x5e0   : > { %v11386_v29 = vpop.f32.mrf.mxu2  ;;  %8983 = vmatmul.msk.f32.gmra.mxu0 %vm4831_vm4, %v5619_v22  ;;  %9003 = vmatmul.msk.f32.gmra.mxu3 %vm4831_vm4, %v6007_v24 }
 0x5e2   : > { %v11397_v21 = vpop.f32.mrf.mxu1 }
 0x5e3   : > { %v11390_v12 = vpop.f32.mrf.mxu3  ;;  %12241 = vst [vmem:[#allocation10_spill] sm:$0xff] %v11397_v21 }
 0x5e5   : > { %v11393_v4 = vpop.f32.mrf.mxu0  ;;  %8992 = vmatmul.msk.f32.gmra.mxu1 %vm4831_vm4, %v6019_v3  ;;  %8996 = vmatmul.msk.f32.gmra.mxu2 %vm4831_vm4, %v5603_v27 }
 0x5e6   : > { %12240 = vst [vmem:[#allocation9_spill] sm:$0xff] %v11393_v4 }
 0x5e8   : > { %v11399_v2 = vpop.f32.mrf.mxu2  ;;  %8984 = vmatmul.msk.f32.gmra.mxu0 %vm4831_vm4, %v5627_v10  ;;  %9004 = vmatmul.msk.f32.gmra.mxu3 %vm4831_vm4, %v6010_v35 }
 0x5ea   : > { %v11408_v19 = vpop.f32.mrf.mxu1 }
 0x5eb   : > { %v11403_v24 = vpop.f32.mrf.mxu3  ;;  %12243 = vst [vmem:[#allocation12_spill] sm:$0xff] %v11408_v19  ;;  %v5635_v19 = vld [vmem:[#allocation3 + $0x199] ss:$2 sm:$0xff] }
 0x5ec   : > { %12242 = vst [vmem:[#allocation11_spill] sm:$0xff] %v11403_v24 }
 0x5ed   : > { %v11405_v53 = vpop.f32.mrf.mxu0  ;;  %8997 = vmatmul.msk.f32.gmra.mxu2 %vm4831_vm4, %v5611_v16 }
 0x5f0   : > { %v11410_v0 = vpop.f32.mrf.mxu2  ;;  %9005 = vmatmul.msk.f32.gmra.mxu3 %vm4831_vm4, %v6013_v34  ;;  %v5637_v34 = vld [vmem:[#allocation3 + $0x1a9] ss:$2 sm:$0x3] }
 0x5f2   : > { %v11421_v35 = vpop.f32.mrf.mxu1 }
 0x5f3   : > { %v11413_v27 = vpop.f32.mrf.mxu3  ;;  %12246 = vst [vmem:[#allocation15_spill] sm:$0xff] %v11421_v35 }
 0x5f4   : > { %12244 = vst [vmem:[#allocation13_spill] sm:$0xff] %v11413_v27  ;;  %v6138_v27 = vrot.slane %v5635_v19, 1 }
 0x5f5   : > { %v11415_v21 = vpop.f32.mrf.mxu0  ;;  %8998 = vmatmul.msk.f32.gmra.mxu2 %vm4831_vm4, %v5619_v22  ;;  %v6139_v22 = vrot.slane %v5637_v34, 1 }
 0x5f8   : > { %v11418_v4 = vpop.f32.mrf.mxu2  ;;  %9006 = vmatmul.msk.f32.gmra.mxu3 %vm4831_vm4, %v6016_v62  ;;  %v6140_v62 = vsel %vm1149_vm2, %v6138_v27, %v6139_v22  ;;  %vm6204_vm2 = vcmask 130048  }
 0x5f9   : > { %12245 = vst [vmem:[#allocation14_spill] sm:$0xff] %v11418_v4 }
 0x5fa   : > { %v11433_v4 = vpop.f32.mrf.mxu1 }
 0x5fb   : > { %v11423_v50 = vpop.f32.mrf.mxu3  ;;  %12250 = vst [vmem:[#allocation19_spill] sm:$0xff] %v11433_v4 }
 0x5fc   : > { %12247 = vst [vmem:[#allocation16_spill] sm:$0xff] %v11423_v50 }
 0x5fd   : > { %8999 = vmatmul.msk.f32.gmra.mxu2 %vm4831_vm4, %v5627_v10  ;;  %v11426_v16 = vpop.f32.mrf.mxu0 }
 0x600   : > { %v11428_v25 = vpop.f32.mrf.mxu2  ;;  %9007 = vmatmul.msk.f32.gmra.mxu3 %vm4831_vm4, %v6019_v3 }
 0x601   : > { %12248 = vst [vmem:[#allocation17_spill] sm:$0xff] %v11428_v25 }
 0x602   : > { %v11444_v25 = vpop.f32.mrf.mxu1 }
 0x603   : > { %v11431_v24 = vpop.f32.mrf.mxu3  ;;  %12253 = vst [vmem:[#allocation22_spill] sm:$0xff] %v11444_v25 }
 0x604   : > { %12249 = vst [vmem:[#allocation18_spill] sm:$0xff] %v11431_v24 }
 0x605   : > { %9000 = vmatmul.msk.f32.gmra.mxu2 %vm4831_vm4, %v5635_v19  ;;  %v11437_v50 = vpop.f32.mrf.mxu0 }
 0x608   : > { %v11439_v10 = vpop.f32.mrf.mxu2  ;;  %9008 = vmatmul.msk.f32.gmra.mxu3 %vm4831_vm4, %v6140_v62 }
 0x609   : > { %12251 = vst [vmem:[#allocation20_spill] sm:$0xff] %v11439_v10 }
 0x60a   : > { %v11452_v4 = vpop.f32.mrf.mxu1 }
 0x60b   : > { %v11442_v35 = vpop.f32.mrf.mxu3  ;;  %12257 = vst [vmem:[#allocation26_spill] sm:$0xff] %v11452_v4 }
 0x60c   : > { %12252 = vst [vmem:[#allocation21_spill] sm:$0xff] %v11442_v35 }
 0x60d   : > { %v11448_v34 = vpop.f32.mrf.mxu0 }
 0x60e   : > { %12255 = vst [vmem:[#allocation24_spill] sm:$0xff] %v11448_v34 }
 0x610   : > { %v11446_v3 = vpop.f32.mrf.mxu2 }
 0x611   : > { %12254 = vst [vmem:[#allocation23_spill] sm:$0xff] %v11446_v3 }
 0x612   : > { %v11462_v62 = vpop.f32.mrf.mxu1 }
 0x613   : > { %v11450_v24 = vpop.f32.mrf.mxu3  ;;  %12261 = vst [vmem:[#allocation30_spill] sm:$0xff] %v11462_v62  ;;  %v12271_v62 = vmov 0.0  }
 0x614   : > { %12256 = vst [vmem:[#allocation25_spill] sm:$0xff] %v11450_v24 }
 0x615   : > { %v11458_v22 = vpop.f32.mrf.mxu0  ;;  %6339 = vst.msk [vmem:[#allocation4] sm:$0xff] %vm6204_vm2, %v12271_v62 }
 0x616   : > { %12260 = vst [vmem:[#allocation29_spill] sm:$0xff] %v11458_v22 }
 0x617   : > { %6342 = vst.msk [vmem:[#allocation4 + $0x10] sm:$0xff] %vm6204_vm2, %v12271_v62 }
 0x618   : > { %v11454_v19 = vpop.f32.mrf.mxu2  ;;  %6344 = vst.msk [vmem:[#allocation4 + $0x20] sm:$0xff] %vm6204_vm2, %v12271_v62 }
 0x619   : > { %12258 = vst [vmem:[#allocation27_spill] sm:$0xff] %v11454_v19 }
 0x61a   : > { %v11472_v24 = vpop.f32.mrf.mxu1  ;;  %6346 = vst.msk [vmem:[#allocation4 + $0x30] sm:$0xff] %vm6204_vm2, %v12271_v62 }
 0x61b   : > { %v11456_v27 = vpop.f32.mrf.mxu3  ;;  %12266 = vst [vmem:[#allocation35_spill] sm:$0xff] %v11472_v24 }
 0x61c   : > { %12259 = vst [vmem:[#allocation28_spill] sm:$0xff] %v11456_v27 }
 0x61d   : > { %v11466_v25 = vpop.f32.mrf.mxu0  ;;  %6348 = vst.msk [vmem:[#allocation4 + $0x40] sm:$0xff] %vm6204_vm2, %v12271_v62 }
 0x61e   : > { %12263 = vst [vmem:[#allocation32_spill] sm:$0xff] %v11466_v25 }
 0x61f   : > { %6350 = vst.msk [vmem:[#allocation4 + $0x50] sm:$0xff] %vm6204_vm2, %v12271_v62 }
 0x620   : > { %v11460_v10 = vpop.f32.mrf.mxu2  ;;  %6352 = vst.msk [vmem:[#allocation4 + $0x60] sm:$0xff] %vm6204_vm2, %v12271_v62 }
 0x621   : > { %6354 = vst.msk [vmem:[#allocation4 + $0x70] sm:$0xff] %vm6204_vm2, %v12271_v62 }
 0x622   : > { %v11480_v22 = vpop.f32.mrf.mxu1  ;;  %6356 = vst.msk [vmem:[#allocation4 + $0x80] sm:$0xff] %vm6204_vm2, %v12271_v62 }
 0x623   : > { %v11464_v35 = vpop.f32.mrf.mxu3  ;;  %12270 = vst [vmem:[#allocation39_spill] sm:$0xff] %v11480_v22 }
 0x624   : > { %12262 = vst [vmem:[#allocation31_spill] sm:$0xff] %v11464_v35 }
 0x625   : > { %v11474_v4 = vpop.f32.mrf.mxu0  ;;  %6358 = vst.msk [vmem:[#allocation4 + $0x90] sm:$0xff] %vm6204_vm2, %v12271_v62  ;;  %v5165_v62 = vadd.f32 %v11230_v45, %v11234_v61 }
 0x626   : > { %12267 = vst [vmem:[#allocation36_spill] sm:$0xff] %v11474_v4 }
 0x628   : > { %v11468_v3 = vpop.f32.mrf.mxu2 }
 0x629   : > { %12264 = vst [vmem:[#allocation33_spill] sm:$0xff] %v11468_v3 }
 0x62a   : > { %v11506_v22 = vpop.f32.mrf.mxu1 }
 0x62b   : > { %v11470_v34 = vpop.f32.mrf.mxu3  ;;  %12275 = vst [vmem:[#allocation43_spill] sm:$0xff] %v11506_v22  ;;  %v5159_v22 = vadd.f32 %v11197_v14, %v11200_v58 }
 0x62c   : > { %12265 = vst [vmem:[#allocation34_spill] sm:$0xff] %v11470_v34 }
 0x62d   : > { %v11490_v24 = vpop.f32.mrf.mxu0 }
 0x62e   : > { %12273 = vst [vmem:[#allocation41_spill] sm:$0xff] %v11490_v24 }
 0x630   : > { %v11476_v19 = vpop.f32.mrf.mxu2 }
 0x631   : > { %12268 = vst [vmem:[#allocation37_spill] sm:$0xff] %v11476_v19 }
 0x632   : > { %v11518_v24 = vpop.f32.mrf.mxu1 }
 0x633   : > { %v11478_v27 = vpop.f32.mrf.mxu3  ;;  %12279 = vst [vmem:[#allocation47_spill] sm:$0xff] %v11518_v24 }
 0x634   : > { %12269 = vst [vmem:[#allocation38_spill] sm:$0xff] %v11478_v27 }
 0x638   : > { %v11484_v35 = vpop.f32.mrf.mxu2 }
 0x639   : > { %12272 = vst [vmem:[#allocation40_spill] sm:$0xff] %v11484_v35  ;;  %v11514_v35 = vpop.f32.mrf.mxu0 }
 0x63a   : > { %v11539_v14 = vpop.f32.mrf.mxu1 }
 0x63b   : > { %v11494_v4 = vpop.f32.mrf.mxu3 }
 0x63c   : > { %12274 = vst [vmem:[#allocation42_spill] sm:$0xff] %v11494_v4 }
 0x640   : > { %v11508_v27 = vpop.f32.mrf.mxu2 }
 0x641   : > { %12276 = vst [vmem:[#allocation44_spill] sm:$0xff] %v11508_v27  ;;  %v11522_v25 = vpop.f32.mrf.mxu0  ;;  %v5162_v27 = vadd.f32 %v11207_v47, %v11214_v30  ;;  %v5171_v47 = vadd.f32 %v11253_v7, %v11258_v13 }
 0x642   : > { %12281 = vst [vmem:[#allocation49_spill] sm:$0xff] %v11522_v25  ;;  %v5228_v25 = vadd.f32 %v11284_v11, %v5165_v62  ;;  %v12285_v62 = vld [vmem:[#allocation13_spill] sm:$0xff] }
 0x643   : > { %v11512_v4 = vpop.f32.mrf.mxu3 }
 0x644   : > { %12277 = vst [vmem:[#allocation45_spill] sm:$0xff] %v11512_v4  ;;  %v5227_v4 = vadd.f32 %v11266_v55, %v5162_v27  ;;  %v5283_v61 = vadd.f32 %v11288_v63, %v5228_v25  ;;  %v5177_v63 = vadd.f32 %v11277_v49, %v11280_v17  ;;  %v11572_v17 = vpop.f32.mrf.mxu1 }
 0x646   : > { %v5282_v58 = vadd.f32 %v11273_v41, %v5227_v4 }
 0x648   : > { %v11516_v34 = vpop.f32.mrf.mxu2 }
 0x649   : > { %12278 = vst [vmem:[#allocation46_spill] sm:$0xff] %v11516_v34  ;;  %v5226_v34 = vadd.f32 %v11251_v51, %v5159_v22  ;;  %v5174_v51 = vadd.f32 %v11264_v38, %v11269_v42  ;;  %v11551_v55 = vpop.f32.mrf.mxu0  ;;  %v12284_v22 = vld [vmem:[#allocation8_spill] sm:$0xff] }
 0x64b   : > { %v11520_v19 = vpop.f32.mrf.mxu3  ;;  %v5281_v45 = vadd.f32 %v11256_v5, %v5226_v34  ;;  %v5231_v13 = vadd.f32 %v11321_v6, %v5174_v51  ;;  %v5356_v5 = vadd.f32 %v11330_v46, %v5283_v61  ;;  %v12288_v61 = vld [vmem:[#allocation12_spill] sm:$0xff] }
 0x64c   : > { %12280 = vst [vmem:[#allocation48_spill] sm:$0xff] %v11520_v19  ;;  %v5168_v19 = vadd.f32 %v11239_v59, %v11243_v31  ;;  %v5230_v59 = vadd.f32 %v11308_v33, %v5171_v47  ;;  %v5355_v31 = vadd.f32 %v11317_v26, %v5282_v58  ;;  %v5232_v26 = vadd.f32 %v11334_v36, %v5177_v63  ;;  %v12286_v47 = vld [vmem:[#allocation15_spill] sm:$0xff]  ;;  %v12289_v51 = vld [vmem:[#allocation16_spill] sm:$0xff] }
 0x64d   : > { %v5354_v41 = vadd.f32 %v11304_v39, %v5281_v45  ;;  %v5453_v49 = vadd.f32 %v11325_v9, %v5356_v5  ;;  %v12287_v45 = vld [vmem:[#allocation17_spill] sm:$0xff]  ;;  %v12293_v63 = vld [vmem:[#allocation7_spill] sm:$0xff] }
 0x64e   : > { %v5229_v30 = vadd.f32 %v11295_v1, %v5168_v19  ;;  %v5285_v42 = vadd.f32 %v11314_v57, %v5230_v59  ;;  %v5452_v33 = vadd.f32 %v11312_v48, %v5355_v31  ;;  %v12290_v31 = vld [vmem:[#allocation24_spill] sm:$0xff] }
 0x64f   : > { %v5451_v39 = vadd.f32 %v11299_v44, %v5354_v41  ;;  %v5505_v48 = vadd.f32 %v11386_v29, %v5453_v49  ;;  %v5287_v44 = vadd.f32 %v11340_v54, %v5232_v26 }
 0x650   : > { %v11528_v3 = vpop.f32.mrf.mxu2  ;;  %v5284_v7 = vadd.f32 %v11301_v28, %v5229_v30  ;;  %v5286_v28 = vadd.f32 %v11327_v60, %v5231_v13  ;;  %v5358_v6 = vadd.f32 %v11356_v15, %v5285_v42  ;;  %v5504_v46 = vadd.f32 %v11373_v52, %v5452_v33  ;;  %v6065_v30 = vpop.f32.mrf.mxu1  ;;  %v12292_v13 = vld [vmem:[#allocation19_spill] sm:$0xff]  ;;  %v12294_v42 = vld [vmem:[#allocation9_spill] sm:$0xff] }
 0x651   : > { %v5503_v57 = vadd.f32 %v11360_v40, %v5451_v39  ;;  %v5968_v52 = vpop.f32.mrf.mxu0  ;;  %v5360_v40 = vadd.f32 %v11382_v32, %v5287_v44  ;;  %v5560_v29 = vadd.f32 %v11390_v12, %v5505_v48  ;;  %v12296_v39 = vld [vmem:[#allocation29_spill] sm:$0xff] }
 0x652   : > { %v5357_v1 = vadd.f32 %v11343_v20, %v5284_v7  ;;  %v5359_v20 = vadd.f32 %v11369_v43, %v5286_v28  ;;  %v5559_v60 = vadd.f32 %v11377_v8, %v5504_v46  ;;  %v5455_v9 = vadd.f32 %v11351_v23, %v5358_v6  ;;  %v12283_v23 = vld [vmem:[#allocation14_spill] sm:$0xff]  ;;  %v12291_v7 = vld [vmem:[#allocation27_spill] sm:$0xff] }
 0x653   : > { %v11534_v24 = vpop.f32.mrf.mxu3  ;;  %v5558_v4 = vadd.f32 %v11366_v18, %v5503_v57  ;;  %v5705_v18 = vadd.f32 %v11426_v16, %v5560_v29  ;;  %v5457_v32 = vadd.f32 %v12284_v22, %v5360_v40  ;;  %v12297_v46 = vld [vmem:[#allocation22_spill] sm:$0xff] }
 0x654   : > { %v5454_v36 = vadd.f32 %v11338_v37, %v5357_v1  ;;  %v5507_v37 = vadd.f32 %v11410_v0, %v5455_v9  ;;  %v5704_v34 = vadd.f32 %v11415_v21, %v5559_v60  ;;  %v5456_v54 = vadd.f32 %v11364_v56, %v5359_v20  ;;  %v12298_v20 = vld [vmem:[#allocation18_spill] sm:$0xff]  ;;  %v12300_v60 = vld [vmem:[#allocation33_spill] sm:$0xff] }
 0x655   : > { %v5703_v8 = vadd.f32 %v11405_v53, %v5558_v4  ;;  %v5509_v56 = vadd.f32 %v12287_v45, %v5457_v32  ;;  %v5802_v5 = vadd.f32 %v12292_v13, %v5705_v18  ;;  %v5361_v1 = vadd.f32 %v12294_v42, %v12293_v63  ;;  %v12301_v9 = vld [vmem:[#allocation26_spill] sm:$0xff]  ;;  %v12316_v42 = vld [vmem:[#allocation21_spill] sm:$0xff] }
 0x656   : > { %v5506_v15 = vadd.f32 %v11399_v2, %v5454_v36  ;;  %v12282_v2 = vld [vmem:[#allocation11_spill] sm:$0xff]  ;;  %v5508_v27 = vadd.f32 %v12283_v23, %v5456_v54  ;;  %v5562_v58 = vadd.f32 %v12285_v62, %v5507_v37  ;;  %v5801_v0 = vadd.f32 %v12286_v47, %v5704_v34  ;;  %v12299_v36 = vld [vmem:[#allocation28_spill] sm:$0xff]  ;;  %v12302_v40 = vld [vmem:[#allocation10_spill] sm:$0xff] }
 0x657   : > { %v5800_v53 = vadd.f32 %v12288_v61, %v5703_v8  ;;  %v5854_v6 = vadd.f32 %v11460_v10, %v5802_v5  ;;  %v5564_v48 = vadd.f32 %v12298_v20, %v5509_v56  ;;  %v5458_v29 = vadd.f32 %v12302_v40, %v5361_v1  ;;  %v12303_v37 = vld [vmem:[#allocation25_spill] sm:$0xff]  ;;  %v12304_v54 = vld [vmem:[#allocation32_spill] sm:$0xff]  ;;  %v12307_v18 = vld [vmem:[#allocation30_spill] sm:$0xff] }
 0x658   : > { %v11553_v11 = vpop.f32.mrf.mxu2  ;;  %v5561_v19 = vadd.f32 %v12282_v2, %v5506_v15  ;;  %v5563_v59 = vadd.f32 %v12289_v51, %v5508_v27  ;;  %v5707_v41 = vadd.f32 %v12290_v31, %v5562_v58  ;;  %v5853_v16 = vadd.f32 %v12291_v7, %v5801_v0  ;;  %v12305_v2 = vld [vmem:[#allocation31_spill] sm:$0xff]  ;;  %v12306_v10 = vld [vmem:[#allocation37_spill] sm:$0xff]  ;;  %v12308_v62 = vld [vmem:[#allocation20_spill] sm:$0xff] }
 0x659   : > { %v5971_v57 = vpop.f32.mrf.mxu0  ;;  %v5709_v8 = vadd.f32 %v12304_v54, %v5564_v48  ;;  %v5510_v58 = vadd.f32 %v12308_v62, %v5458_v29  ;;  %v12310_v0 = vld [vmem:[#allocation34_spill] sm:$0xff]  ;;  %v12311_v56 = vld [vmem:[#allocation40_spill] sm:$0xff]  ;;  %v12313_v31 = vld [vmem:[#allocation35_spill] sm:$0xff] }
 0x65a   : > { %v5706_v12 = vadd.f32 %v11437_v50, %v5561_v19  ;;  %v12295_v50 = vld [vmem:[#allocation23_spill] sm:$0xff]  ;;  %v5708_v28 = vadd.f32 %v12296_v39, %v5563_v59  ;;  %v5908_v44 = vadd.f32 %v12299_v36, %v5853_v16  ;;  %v5804_v4 = vadd.f32 %v12301_v9, %v5707_v41  ;;  %v6068_v59 = vpop.f32.mrf.mxu1  ;;  %v12314_v16 = vld [vmem:[#allocation38_spill] sm:$0xff]  ;;  %v12321_v29 = vld [vmem:[#allocation45_spill] sm:$0xff] }
 0x65b   : > { %v11561_v38 = vpop.f32.mrf.mxu3  ;;  %v5852_v33 = vadd.f32 %v12295_v50, %v5800_v53  ;;  %v5909_v19 = vadd.f32 %v12305_v2, %v5854_v6  ;;  %v12312_v53 = vld [vmem:[#allocation49_spill] sm:$0xff]  ;;  %v5806_v41 = vadd.f32 %v12313_v31, %v5709_v8  ;;  %v12315_v5 = vld [vmem:[#allocation47_spill] sm:$0xff]  ;;  %v5565_v1 = vadd.f32 %v12316_v42, %v5510_v58  ;;  %v12317_v50 = vld [vmem:[#allocation44_spill] sm:$0xff] }
 0x65c   : > { %v5803_v49 = vadd.f32 %v12297_v46, %v5706_v12  ;;  %v5856_v23 = vadd.f32 %v12306_v10, %v5804_v4  ;;  %v5981_v27 = vadd.f32 %v11514_v35, %v5908_v44  ;;  %v5805_v22 = vadd.f32 %v12307_v18, %v5708_v28  ;;  %v12309_v12 = vld [vmem:[#allocation41_spill] sm:$0xff]  ;;  %v12318_v39 = vld [vmem:[#allocation43_spill] sm:$0xff]  ;;  %v12319_v6 = vld [vmem:[#allocation42_spill] sm:$0xff] }
 0x65d   : > { %v5907_v34 = vadd.f32 %v12303_v37, %v5852_v33  ;;  %v5982_v51 = vadd.f32 %v12312_v53, %v5909_v19  ;;  %v5858_v33 = vadd.f32 %v12317_v50, %v5806_v41  ;;  %v12320_v44 = vld [vmem:[#allocation36_spill] sm:$0xff] }
 0x65e   : > { %v5855_v15 = vadd.f32 %v12300_v60, %v5803_v49  ;;  %v5857_v61 = vadd.f32 %v12311_v56, %v5805_v22  ;;  %v5911_v13 = vadd.f32 %v12314_v16, %v5856_v23  ;;  %v6078_v63 = vadd.f32 %v12315_v5, %v5981_v27  ;;  %v12323_v23 = vld [vmem:[#allocation46_spill] sm:$0xff] }
 0x65f   : > { %v5980_v47 = vadd.f32 %v12309_v12, %v5907_v34  ;;  %v6079_v36 = vadd.f32 %v11539_v14, %v5982_v51  ;;  %v5710_v60 = vadd.f32 %v12320_v44, %v5565_v1  ;;  %v5913_v37 = vadd.f32 %v12321_v29, %v5858_v33 }
 0x660   : > { %v11578_v25 = vpop.f32.mrf.mxu2  ;;  %v5910_v45 = vadd.f32 %v12310_v0, %v5855_v15  ;;  %v5912_v46 = vadd.f32 %v12319_v6, %v5857_v61  ;;  %v5984_v49 = vadd.f32 %v5968_v52, %v5911_v13  ;;  %v6130_v20 = vadd.f32 %v11553_v11, %v6078_v63  ;;  %v12322_v11 = vld [vmem:[#allocation39_spill] sm:$0xff] }
 0x661   : > { %v6077_v28 = vadd.f32 %v12318_v39, %v5980_v47  ;;  %v5974_v48 = vpop.f32.mrf.mxu0  ;;  %v6131_v9 = vadd.f32 %v11578_v25, %v6079_v36  ;;  %v5807_v8 = vadd.f32 %v12322_v11, %v5710_v60  ;;  %v12324_v47 = vld [vmem:[#allocation48_spill] sm:$0xff]  ;;  %v9154_v51 = vmov 64.0  }
 0x662   : > { %v5983_v35 = vadd.f32 %v11551_v55, %v5910_v45  ;;  %v5985_v15 = vadd.f32 %v5971_v57, %v5912_v46  ;;  %v6185_v34 = vadd.f32 %v11561_v38, %v6130_v20  ;;  %v6081_v54 = vadd.f32 %v6065_v30, %v5984_v49  ;;  %v6071_v25 = vpop.f32.mrf.mxu1 }
 0x663   : > { %v11586_v43 = vpop.f32.mrf.mxu3  ;;  %v6129_v55 = vadd.f32 %v11528_v3, %v6077_v28  ;;  %v5986_v2 = vadd.f32 %v5974_v48, %v5913_v37  ;;  %v9129_v3 = vld [vmem:[%s12225_s4] ss:$0 sm:$0xff]  ;;  %v5859_v27 = vadd.f32 %v12323_v23, %v5807_v8  ;;  %9136 = vrcp.f32 %v9154_v51 }
 0x664   : > { %v6080_v4 = vadd.f32 %v11572_v17, %v5983_v35  ;;  %v6186_v17 = vadd.f32 %v11586_v43, %v6131_v9  ;;  %v6082_v10 = vadd.f32 %v6068_v59, %v5985_v15  ;;  %v6197_v38 = vadd.f32 %v9129_v3, %v6185_v34 }
 0x665   : > { %v6184_v19 = vadd.f32 %v11534_v24, %v6129_v55  ;;  %v6083_v18 = vadd.f32 %v6071_v25, %v5986_v2  ;;  %v5914_v0 = vadd.f32 %v12324_v47, %v5859_v27 }
 0x666   : > { %v6198_v62 = vadd.f32 %v9129_v3, %v6186_v17  ;;  %v6206_v56 = vsel %vm6204_vm2, %v6197_v38, 0.0 }
 0x667   : > { %v6196_v22 = vadd.f32 %v9129_v3, %v6184_v19 }
 0x668   : > { %v6114_v21 = vpop.f32.mrf.mxu2  ;;  %v6208_v59 = vsel %vm6204_vm2, %v6198_v62, 0.0 }
 0x669   : > { %v6132_v52 = vadd.f32 %v6114_v21, %v6080_v4  ;;  %v5977_v58 = vpop.f32.mrf.mxu0  ;;  %v9137_v33 = vpop.eup %9136 }
 0x66a   : > { %v6227_v36 = vmul.f32 64.0, %v9137_v33  ;;  %vm6231_vm4 = vweird.f32 %v9137_v33 }
 0x66b   : > { %v6169_v26 = vpop.f32.mrf.mxu3 }
 0x66c   : > { %v6187_v21 = vadd.f32 %v6169_v26, %v6132_v52  ;;  %v6205_v26 = vsel %vm6204_vm2, %v6196_v22, 0.0  ;;  %v6228_v9 = vsub.f32 1.0, %v6227_v36 }
 0x66d   : > { %v6207_v16 = vadd.f32 %v6206_v56, %v6205_v26 }
 0x66e   : > { %v6199_v61 = vadd.f32 %v9129_v3, %v6187_v21  ;;  %v6229_v29 = vmul.f32 %v9137_v33, %v6228_v9 }
 0x66f   : > { %v6209_v5 = vadd.f32 %v6208_v59, %v6207_v16 }
 0x670   : > { %v6117_v32 = vpop.f32.mrf.mxu2  ;;  %v6210_v13 = vsel %vm6204_vm2, %v6199_v61, 0.0  ;;  %v6230_v52 = vadd.f32 %v9137_v33, %v6229_v29 }
 0x671   : > { %v6133_v57 = vadd.f32 %v6117_v32, %v6081_v54  ;;  %v5987_v32 = vadd.f32 %v5977_v58, %v5914_v0  ;;  %v6211_v39 = vadd.f32 %v6210_v13, %v6209_v5 }
 0x672   : > { %v6232_v8 = vsel %vm6231_vm4, %v9137_v33, %v6230_v52  ;;  %v12325_v33 = vmov 0.0  }
 0x673   : > { %v6172_v7 = vpop.f32.mrf.mxu3  ;;  %6341 = vst.msk [vmem:[#allocation4 + $0x8] sm:$0xf] %vm6340_vm10, %v12325_v33 }
 0x674   : > { %v6188_v12 = vadd.f32 %v6172_v7, %v6133_v57  ;;  %v6074_v7 = vpop.f32.mrf.mxu1  ;;  %6343 = vst.msk [vmem:[#allocation4 + $0x18] sm:$0xf] %vm6340_vm10, %v12325_v33 }
 0x675   : > { %v6084_v63 = vadd.f32 %v6074_v7, %v5987_v32  ;;  %6345 = vst.msk [vmem:[#allocation4 + $0x28] sm:$0xf] %vm6340_vm10, %v12325_v33 }
 0x676   : > { %v6200_v31 = vadd.f32 %v9129_v3, %v6188_v12  ;;  %6347 = vst.msk [vmem:[#allocation4 + $0x38] sm:$0xf] %vm6340_vm10, %v12325_v33 }
 0x677   : > { %6349 = vst.msk [vmem:[#allocation4 + $0x48] sm:$0xf] %vm6340_vm10, %v12325_v33 }
 0x678   : > { %v6120_v40 = vpop.f32.mrf.mxu2  ;;  %v6212_v42 = vsel %vm6204_vm2, %v6200_v31, 0.0  ;;  %6351 = vst.msk [vmem:[#allocation4 + $0x58] sm:$0xf] %vm6340_vm10, %v12325_v33 }
 0x679   : > { %v6134_v30 = vadd.f32 %v6120_v40, %v6082_v10  ;;  %v6213_v46 = vadd.f32 %v6212_v42, %v6211_v39  ;;  %6353 = vst.msk [vmem:[#allocation4 + $0x68] sm:$0xf] %vm6340_vm10, %v12325_v33 }
 0x67a   : > { %6355 = vst.msk [vmem:[#allocation4 + $0x78] sm:$0xf] %vm6340_vm10, %v12325_v33 }
 0x67b   : > { %v6175_v14 = vpop.f32.mrf.mxu3  ;;  %6357 = vst.msk [vmem:[#allocation4 + $0x88] sm:$0xf] %vm6340_vm10, %v12325_v33 }
 0x67c   : > { %v6189_v43 = vadd.f32 %v6175_v14, %v6134_v30  ;;  %6359 = vst.msk [vmem:[#allocation4 + $0x98] sm:$0xf] %vm6340_vm10, %v12325_v33 }
 0x67d   : > { %7247 = vst.msk [vmem:[#allocation5] sm:$0x3f] %vm7246_vm8, %v12325_v33 }
 0x67e   : > { %v6201_v35 = vadd.f32 %v9129_v3, %v6189_v43  ;;  %7248 = vst.msk [vmem:[#allocation5 + $0x8] sm:$0x3f] %vm7246_vm8, %v12325_v33 }
 0x67f   : > { %7249 = vst.msk [vmem:[#allocation5 + $0x10] sm:$0x3f] %vm7246_vm8, %v12325_v33 }
 0x680   : > { %v6123_v24 = vpop.f32.mrf.mxu2  ;;  %v6214_v6 = vsel %vm6204_vm2, %v6201_v35, 0.0  ;;  %7250 = vst.msk [vmem:[#allocation5 + $0x18] sm:$0x3f] %vm7246_vm8, %v12325_v33 }
 0x681   : > { %v6135_v45 = vadd.f32 %v6123_v24, %v6083_v18  ;;  %v6215_v44 = vadd.f32 %v6214_v6, %v6213_v46  ;;  %v11702_v6 = vld [vmem:[#allocation4] ss:$2 sm:$0x3f]  ;;  %7251 = vst.msk [vmem:[#allocation5 + $0x20] sm:$0x3f] %vm7246_vm8, %v12325_v33 }
 0x682   : > { %7252 = vst.msk [vmem:[#allocation5 + $0x28] sm:$0x3f] %vm7246_vm8, %v12325_v33 }
 0x683   : > { %v6178_v53 = vpop.f32.mrf.mxu3 }
 0x684   : > { %v6190_v41 = vadd.f32 %v6178_v53, %v6135_v45 }
 0x686   : > { %v6202_v1 = vadd.f32 %v9129_v3, %v6190_v41 }
 0x688   : > { %v6126_v50 = vpop.f32.mrf.mxu2  ;;  %v6216_v20 = vsel %vm6204_vm2, %v6202_v1, 0.0 }
 0x689   : > { %v6136_v28 = vadd.f32 %v6126_v50, %v6084_v63  ;;  %v6217_v55 = vadd.f32 %v6216_v20, %v6215_v44  ;;  %v9009_v20 = vrot.slane %v11702_v6, 9  ;;  %v9130_v44 = vld [vmem:[%s12226_s5] ss:$0 sm:$0xff] }
 0x68b   : > { %v6181_v49 = vpop.f32.mrf.mxu3  ;;  %6457 = vst [vmem:[#allocation1] ss:$2 sm:$0xff] %v9009_v20 }
 0x68c   : > { %v6191_v48 = vadd.f32 %v6181_v49, %v6136_v28 }
 0x68e   : > { %v6203_v60 = vadd.f32 %v9129_v3, %v6191_v48 }
 0x690   : > { %v6218_v15 = vsel %vm6204_vm2, %v6203_v60, 0.0 }
 0x691   : > { %v6219_v4 = vadd.f32 %v6218_v15, %v6217_v55 }
 0x693   : > { %v6220_v40 = vrot.slane %v6219_v4, 4 }
 0x695   : > { %v6221_v37 = vadd.f32 %v6220_v40, %v6219_v4  ;;  %v9131_v40 = vld [vmem:[%s12227_s6] ss:$0 sm:$0xff] }
 0x697   : > { %v6222_v34 = vrot.slane %v6221_v37, 2 }
 0x699   : > { %v6223_v54 = vadd.f32 %v6222_v34, %v6221_v37 }
 0x69b   : > { %v6224_v11 = vrot.slane %v6223_v54, 1 }
 0x69d   : > { %v6225_v2 = vadd.f32 %v6224_v11, %v6223_v54 }
 0x69f   : > { %v6233_v14 = vmul.f32 %v6232_v8, %v6225_v2 }
 0x6a1   : > { %v11660_v19 = vsub.f32 %v6196_v22, %v6233_v14  ;;  %v11662_v25 = vsub.f32 %v6197_v38, %v6233_v14  ;;  %v11664_v3 = vsub.f32 %v6198_v62, %v6233_v14  ;;  %v11666_v17 = vsub.f32 %v6199_v61, %v6233_v14 }
 0x6a2   : > { %v11668_v57 = vsub.f32 %v6200_v31, %v6233_v14  ;;  %v11676_v21 = vsub.f32 %v6201_v35, %v6233_v14  ;;  %v6240_v62 = vsub.f32 %v6202_v1, %v6233_v14  ;;  %v6241_v47 = vsub.f32 %v6203_v60, %v6233_v14 }
 0x6a3   : > { %v6242_v10 = vmul.f32 %v11660_v19, %v11660_v19  ;;  %v6243_v23 = vmul.f32 %v11662_v25, %v11662_v25  ;;  %v6244_v27 = vmul.f32 %v11664_v3, %v11664_v3  ;;  %v6245_v38 = vmul.f32 %v11666_v17, %v11666_v17 }
 0x6a4   : > { %v6246_v58 = vmul.f32 %v11668_v57, %v11668_v57  ;;  %v6247_v0 = vmul.f32 %v11676_v21, %v11676_v21  ;;  %v6248_v61 = vmul.f32 %v6240_v62, %v6240_v62  ;;  %v6249_v53 = vmul.f32 %v6241_v47, %v6241_v47 }
 0x6a5   : > { %v6250_v30 = vsel %vm6204_vm2, %v6242_v10, 0.0  ;;  %v6251_v18 = vsel %vm6204_vm2, %v6243_v23, 0.0  ;;  %v6253_v12 = vsel %vm6204_vm2, %v6244_v27, 0.0  ;;  %v6255_v45 = vsel %vm6204_vm2, %v6245_v38, 0.0 }
 0x6a6   : > { %v6252_v22 = vadd.f32 %v6251_v18, %v6250_v30  ;;  %v6257_v43 = vsel %vm6204_vm2, %v6246_v58, 0.0  ;;  %v6259_v51 = vsel %vm6204_vm2, %v6247_v0, 0.0  ;;  %v6261_v59 = vsel %vm6204_vm2, %v6248_v61, 0.0 }
 0x6a7   : > { %v6263_v41 = vsel %vm6204_vm2, %v6249_v53, 0.0 }
 0x6a8   : > { %v6254_v24 = vadd.f32 %v6253_v12, %v6252_v22 }
 0x6aa   : > { %v6256_v56 = vadd.f32 %v6255_v45, %v6254_v24 }
 0x6ac   : > { %v6258_v32 = vadd.f32 %v6257_v43, %v6256_v56 }
 0x6ae   : > { %v6260_v26 = vadd.f32 %v6259_v51, %v6258_v32  ;;  %v6385_v51 = vld [vmem:[%s12228_s7 + $0x28] sm:$0xff] }
 0x6af   : > { %6484 = vmatpush.msra.mxu0 %v6385_v51 }
 0x6b0   : > { %v6262_v31 = vadd.f32 %v6261_v59, %v6260_v26 }
 0x6b2   : > { %v6264_v16 = vadd.f32 %v6263_v41, %v6262_v31  ;;  %v6384_v31 = vld [vmem:[%s12228_s7 + $0x20] sm:$0xff] }
 0x6b3   : > { %6485 = vmatpush.msra.mxu0 %v6384_v31  ;;  %v6402_v31 = vld [vmem:[%s12228_s7 + $0xb0] sm:$0xff] }
 0x6b4   : > { %v6265_v7 = vrot.slane %v6264_v16, 4 }
 0x6b6   : > { %v6266_v13 = vadd.f32 %v6265_v7, %v6264_v16 }
 0x6b8   : > { %v6267_v35 = vrot.slane %v6266_v13, 2 }
 0x6ba   : > { %v6268_v5 = vadd.f32 %v6267_v35, %v6266_v13  ;;  %v6381_v13 = vld [vmem:[%s12228_s7 + $0x8] sm:$0xff] }
 0x6bb   : > { %6520 = vmatpush.msra.mxu1 %v6381_v13  ;;  %v6391_v13 = vld [vmem:[%s12228_s7 + $0x58] sm:$0xff] }
 0x6bc   : > { %v6269_v63 = vrot.slane %v6268_v5, 1 }
 0x6be   : > { %v6270_v42 = vadd.f32 %v6269_v63, %v6268_v5  ;;  %v6380_v63 = vld [vmem:[%s12228_s7] sm:$0xff] }
 0x6bf   : > { %6521 = vmatpush.msra.mxu1 %v6380_v63 }
 0x6c0   : > { %v6271_v1 = vmul.f32 %v6270_v42, %v6232_v8 }
 0x6c2   : > { %v6272_v50 = vadd.f32 1e-05, %v6271_v1 }
 0x6c4   : > { %9138 = vrsqrt.f32 %v6272_v50  ;;  %vm6279_vm12 = vweird.f32 %v6272_v50 }
 0x6ca   : > { %v9139_v39 = vpop.eup %9138 }
 0x6cb   : > { %v6274_v28 = vmul.f32 %v9139_v39, %v6272_v50  ;;  %vm6280_vm11 = vweird.f32 %v9139_v39  ;;  %v6397_v50 = vld [vmem:[%s12228_s7 + $0x88] sm:$0xff] }
 0x6cc   : > { %vm6281_vm13 = vmor %vm6279_vm12, %vm6280_vm11  ;;  %6557 = vmatpush.msra.mxu2 %v6397_v50  ;;  %vm7254_vm12 = vcmask 257024  }
 0x6cd   : > { %v6275_v46 = vmul.f32 %v9139_v39, %v6274_v28 }
 0x6cf   : > { %v6276_v49 = vmul.f32 0.5, %v6275_v46 }
 0x6d1   : > { %v6277_v48 = vsub.f32 1.5, %v6276_v49  ;;  %v6400_v49 = vld [vmem:[%s12228_s7 + $0xa0] sm:$0xff] }
 0x6d3   : > { %v6278_v36 = vmul.f32 %v9139_v39, %v6277_v48 }
 0x6d5   : > { %v6282_v60 = vsel %vm6281_vm13, %v9139_v39, %v6278_v36  ;;  %v6396_v39 = vld [vmem:[%s12228_s7 + $0x80] sm:$0xff]  ;;  %v6389_v36 = vld [vmem:[%s12228_s7 + $0x48] sm:$0xff] }
 0x6d6   : > { %v6283_v55 = vmul.f32 %v6282_v60, %v11660_v19  ;;  %v6284_v15 = vmul.f32 %v6282_v60, %v11662_v25  ;;  %v6285_v9 = vmul.f32 %v6282_v60, %v11664_v3  ;;  %v6286_v4 = vmul.f32 %v6282_v60, %v11666_v17  ;;  %6558 = vmatpush.msra.mxu2 %v6396_v39  ;;  %v6394_v39 = vld [vmem:[%s12228_s7 + $0x70] sm:$0xff] }
 0x6d7   : > { %v6287_v29 = vmul.f32 %v6282_v60, %v11668_v57  ;;  %v6288_v37 = vmul.f32 %v6282_v60, %v11676_v21  ;;  %v6289_v34 = vmul.f32 %v6282_v60, %v6240_v62  ;;  %v6290_v52 = vmul.f32 %v6282_v60, %v6241_v47  ;;  %6642 = vmatpush.msrb.mxu0 %v6389_v36  ;;  %v6388_v60 = vld [vmem:[%s12228_s7 + $0x40] sm:$0xff] }
 0x6d8   : > { %v6295_v54 = vmul.f32 %v9130_v44, %v6283_v55  ;;  %v6296_v11 = vmul.f32 %v9130_v44, %v6284_v15  ;;  %v6297_v8 = vmul.f32 %v9130_v44, %v6285_v9  ;;  %v6298_v2 = vmul.f32 %v9130_v44, %v6286_v4  ;;  %v6393_v9 = vld [vmem:[%s12228_s7 + $0x68] sm:$0xff]  ;;  %v6392_v4 = vld [vmem:[%s12228_s7 + $0x60] sm:$0xff] }
 0x6d9   : > { %v6299_v14 = vmul.f32 %v9130_v44, %v6287_v29  ;;  %v6300_v19 = vmul.f32 %v9130_v44, %v6288_v37  ;;  %v6301_v25 = vmul.f32 %v9130_v44, %v6289_v34  ;;  %v6302_v3 = vmul.f32 %v9130_v44, %v6290_v52  ;;  %6643 = vmatpush.msrb.mxu0 %v6388_v60 }
 0x6da   : > { %v6307_v10 = vadd.f32 %v9131_v40, %v6295_v54  ;;  %v6308_v17 = vadd.f32 %v9131_v40, %v6296_v11  ;;  %v6309_v23 = vadd.f32 %v9131_v40, %v6297_v8  ;;  %v6310_v27 = vadd.f32 %v9131_v40, %v6298_v2  ;;  %6700 = vmatpush.msrb.mxu1 %v6393_v9  ;;  %v6405_v11 = vld [vmem:[%s12228_s7 + $0xc8] sm:$0xff]  ;;  %v6404_v8 = vld [vmem:[%s12228_s7 + $0xc0] sm:$0xff]  ;;  %v6410_v9 = vld [vmem:[%s12228_s7 + $0xf0] sm:$0xff] }
 0x6db   : > { %v6311_v38 = vadd.f32 %v9131_v40, %v6299_v14  ;;  %v6312_v30 = vadd.f32 %v9131_v40, %v6300_v19  ;;  %v6313_v18 = vadd.f32 %v9131_v40, %v6301_v25  ;;  %v6314_v57 = vadd.f32 %v9131_v40, %v6302_v3  ;;  %6739 = vmatpush.msrb.mxu2 %v6405_v11  ;;  %v6812_v11 = vld [vmem:[#allocation4 + $0x91] ss:$2 sm:$0x3f] }
 0x6dc   : > { %vm6315_vm14 = vcmp.ge.f32.partialorder %v6307_v10, 0.0  ;;  %vm6316_vm15 = vcmp.ge.f32.partialorder %v6308_v17, 0.0  ;;  %vm6317_vm0 = vcmp.ge.f32.partialorder %v6309_v23, 0.0  ;;  %vm6318_vm3 = vcmp.ge.f32.partialorder %v6310_v27, 0.0  ;;  %6701 = vmatpush.msrb.mxu1 %v6392_v4 }
 0x6dd   : > { %vm6319_vm5 = vcmp.ge.f32.partialorder %v6311_v38, 0.0  ;;  %v6323_v21 = vmul.f32 0.2, %v6307_v10  ;;  %v6324_v22 = vmul.f32 0.2, %v6308_v17  ;;  %vm6320_vm6 = vcmp.ge.f32.partialorder %v6312_v30, 0.0  ;;  %6740 = vmatpush.msrb.mxu2 %v6404_v8 }
 0x6de   : > { %v6325_v62 = vmul.f32 0.2, %v6309_v23  ;;  %v6326_v58 = vmul.f32 0.2, %v6310_v27  ;;  %v6327_v12 = vmul.f32 0.2, %v6311_v38 }
 0x6df   : > { %v6328_v24 = vmul.f32 0.2, %v6312_v30  ;;  %v6329_v47 = vmul.f32 0.2, %v6313_v18  ;;  %v6331_v0 = vsel %vm6315_vm14, %v6307_v10, %v6323_v21  ;;  %v6332_v45 = vsel %vm6316_vm15, %v6308_v17, %v6324_v22  ;;  %v6409_v17 = vld [vmem:[%s12228_s7 + $0xe8] sm:$0xff] }
 0x6e0   : > { %vm6321_vm7 = vcmp.ge.f32.partialorder %v6313_v18, 0.0  ;;  %v6330_v56 = vmul.f32 0.2, %v6314_v57  ;;  %v6333_v61 = vsel %vm6317_vm0, %v6309_v23, %v6325_v62  ;;  %v6334_v43 = vsel %vm6318_vm3, %v6310_v27, %v6326_v58  ;;  %6365 = vst.msk [vmem:[#allocation4 + $0x11] sm:$0xff] %vm6204_vm2, %v6331_v0  ;;  %v6408_v23 = vld [vmem:[%s12228_s7 + $0xe0] sm:$0xff]  ;;  %v6387_v62 = vld [vmem:[%s12228_s7 + $0x38] sm:$0xff] }
 0x6e1   : > { %vm6322_vm1 = vcmp.ge.f32.partialorder %v6314_v57, 0.0  ;;  %v6335_v32 = vsel %vm6319_vm5, %v6311_v38, %v6327_v12  ;;  %6367 = vst.msk [vmem:[#allocation4 + $0x21] sm:$0xff] %vm6204_vm2, %v6332_v45  ;;  %v6336_v53 = vsel %vm6320_vm6, %v6312_v30, %v6328_v24  ;;  %v6337_v26 = vsel %vm6321_vm7, %v6313_v18, %v6329_v47  ;;  %v6430_v38 = vld [vmem:[#allocation4 + $0x90] ss:$2 sm:$0x3f]  ;;  %v6386_v12 = vld [vmem:[%s12228_s7 + $0x30] sm:$0xff] }
 0x6e2   : > { %6369 = vst.msk [vmem:[#allocation4 + $0x31] sm:$0xff] %vm6204_vm2, %v6333_v61  ;;  %v6338_v59 = vsel %vm6322_vm1, %v6314_v57, %v6330_v56  ;;  %v6383_v30 = vld [vmem:[%s12228_s7 + $0x18] sm:$0xff]  ;;  %v6382_v57 = vld [vmem:[%s12228_s7 + $0x10] sm:$0xff]  ;;  %v9041_v22 = vrot.slane %v6430_v38, 9  ;;  %v9077_v33 = vrot.slane %v6812_v11, 9  ;;  %vm7257_vm15 = vcmask 261124  }
 0x6e3   : > { %6371 = vst.msk [vmem:[#allocation4 + $0x41] sm:$0xff] %vm6204_vm2, %v6334_v43  ;;  %v6794_v24 = vld [vmem:[#allocation4 + $0x1] ss:$2 sm:$0x3f]  ;;  %v6399_v45 = vld [vmem:[%s12228_s7 + $0x98] sm:$0xff]  ;;  %vm8285_vm0 = vcmask 7168  }
 0x6e4   : > { %6373 = vst.msk [vmem:[#allocation4 + $0x51] sm:$0xff] %vm6204_vm2, %v6335_v32  ;;  %v6398_v56 = vld [vmem:[%s12228_s7 + $0x90] sm:$0xff]  ;;  %vm8287_vm3 = vcmask 0  }
 0x6e5   : > { %6375 = vst.msk [vmem:[#allocation4 + $0x61] sm:$0xff] %vm6204_vm2, %v6336_v53  ;;  %v9047_v53 = vrot.slane %v6794_v24, 9 }
 0x6e6   : > { %6377 = vst.msk [vmem:[#allocation4 + $0x71] sm:$0xff] %vm6204_vm2, %v6337_v26 }
 0x6e7   : > { %6379 = vst.msk [vmem:[#allocation4 + $0x81] sm:$0xff] %vm6204_vm2, %v6338_v59  ;;  %v6414_v40 = vld [vmem:[#allocation4 + $0x10] ss:$2 sm:$0x3f] }
 0x6e8   : > { %v6416_v41 = vld [vmem:[#allocation4 + $0x20] ss:$2 sm:$0x3f]  ;;  %v9029_v2 = vrot.slane %v6414_v40, 9  ;;  %v6403_v59 = vld [vmem:[%s12228_s7 + $0xb8] sm:$0xff] }
 0x6e9   : > { %v9011_v16 = vrot.slane %v6416_v41, 9  ;;  %v6418_v37 = vld [vmem:[#allocation4 + $0x30] ss:$2 sm:$0x3f] }
 0x6ea   : > { %v6420_v7 = vld [vmem:[#allocation4 + $0x40] ss:$2 sm:$0x3f]  ;;  %v9031_v19 = vrot.slane %v6418_v37, 9 }
 0x6eb   : > { %v9013_v35 = vrot.slane %v6420_v7, 9  ;;  %6459 = vst [vmem:[#allocation1 + $0x1] ss:$2 sm:$0xff] %v9011_v16  ;;  %v6422_v34 = vld [vmem:[#allocation4 + $0x50] ss:$2 sm:$0x3f] }
 0x6ec   : > { %v6424_v5 = vld [vmem:[#allocation4 + $0x60] ss:$2 sm:$0x3f]  ;;  %v9033_v25 = vrot.slane %v6422_v34, 9 }
 0x6ed   : > { %v9015_v42 = vrot.slane %v6424_v5, 9  ;;  %6461 = vst [vmem:[#allocation1 + $0x10] ss:$2 sm:$0xff] %v9013_v35  ;;  %v6426_v54 = vld [vmem:[#allocation4 + $0x70] ss:$2 sm:$0x3f] }
 0x6ee   : > { %v6428_v48 = vld [vmem:[#allocation4 + $0x80] ss:$2 sm:$0x3f]  ;;  %v9035_v10 = vrot.slane %v6426_v54, 9 }
 0x6ef   : > { %6463 = vst [vmem:[#allocation1 + $0x11] ss:$2 sm:$0xff] %v9015_v42  ;;  %v9023_v15 = vrot.slane %v6428_v48, 9  ;;  %v6798_v47 = vld [vmem:[#allocation4 + $0x21] ss:$2 sm:$0x3f] }
 0x6f0   : > { %v6802_v43 = vld [vmem:[#allocation4 + $0x41] ss:$2 sm:$0x3f]  ;;  %v9049_v51 = vrot.slane %v6798_v47, 9 }
 0x6f1   : > { %v6806_v32 = vld [vmem:[#allocation4 + $0x61] ss:$2 sm:$0x3f]  ;;  %v6800_v36 = vld [vmem:[#allocation4 + $0x31] ss:$2 sm:$0x3f] }
 0x6f2   : > { %v6464_v1 = vld.sshfl [vmem:[#allocation1] sm:$0xff pattern:$0x75316420] }
 0x6f3   : > { %6493 = vst [vmem:[#allocation1] ss:$2 sm:$0xff] %v11702_v6  ;;  %9017 = vmatmul.msk.f32.vlgmr.msra.gmra.mxu0 %vm6204_vm2, %v6464_v1  ;;  %v6401_v6 = vld [vmem:[%s12228_s7 + $0xa8] sm:$0xff]  ;;  %v6395_v1 = vld [vmem:[%s12228_s7 + $0x78] sm:$0xff] }
 0x6f4   : > { %6495 = vst [vmem:[#allocation1 + $0x1] ss:$2 sm:$0xff] %v6416_v41  ;;  %6600 = vmatpush.msra.mxu3 %v6401_v6  ;;  %6844 = vmatpush.msra.mxu0 %v6383_v30 }
 0x6f6   : > { %v6465_v28 = vld.sshfl [vmem:[#allocation1 + $0x10] sm:$0xff pattern:$0x75316420]  ;;  %6601 = vmatpush.msra.mxu3 %v6400_v49  ;;  %6845 = vmatpush.msra.mxu0 %v6382_v57  ;;  %v6796_v49 = vld [vmem:[#allocation4 + $0x11] ss:$2 sm:$0x3f] }
 0x6f7   : > { %6497 = vst [vmem:[#allocation1 + $0x10] ss:$2 sm:$0xff] %v6420_v7  ;;  %v9065_v4 = vrot.slane %v6796_v49, 9 }
 0x6f8   : > { %6499 = vst [vmem:[#allocation1 + $0x11] ss:$2 sm:$0xff] %v6424_v5  ;;  %6782 = vmatpush.msrb.mxu3 %v6409_v17 }
 0x6fa   : > { %6783 = vmatpush.msrb.mxu3 %v6408_v23 }
 0x6fb   : > { %v6500_v46 = vld.sshfl [vmem:[#allocation1] sm:$0xff pattern:$0x75316420]  ;;  %9018 = vmatmul.msk.f32.gmra.mxu0 %vm6204_vm2, %v6465_v28 }
 0x6fc   : > { %6530 = vst [vmem:[#allocation1] ss:$2 sm:$0xff] %v6416_v41  ;;  %9019 = vmatmul.msk.f32.vlgmr.msra.gmra.mxu1 %vm6204_vm2, %v6500_v46  ;;  %v9051_v41 = vrot.slane %v6802_v43, 9  ;;  %v6407_v46 = vld [vmem:[%s12228_s7 + $0xd8] sm:$0xff] }
 0x6fd   : > { %6532 = vst [vmem:[#allocation1 + $0x1] ss:$2 sm:$0xff] %v6420_v7  ;;  %6902 = vmatpush.msra.mxu1 %v6387_v62  ;;  %v9053_v7 = vrot.slane %v6806_v32, 9 }
 0x6ff   : > { %v6501_v20 = vld.sshfl [vmem:[#allocation1 + $0x10] sm:$0xff pattern:$0x75316420]  ;;  %6903 = vmatpush.msra.mxu1 %v6386_v12 }
 0x700   : > { %6534 = vst [vmem:[#allocation1 + $0x10] ss:$2 sm:$0xff] %v6424_v5  ;;  %v6390_v5 = vld [vmem:[%s12228_s7 + $0x50] sm:$0xff] }
 0x701   : > { %6536 = vst [vmem:[#allocation1 + $0x11] ss:$2 sm:$0xff] %v6428_v48 }
 0x704   : > { %v6537_v44 = vld.sshfl [vmem:[#allocation1] sm:$0xff pattern:$0x75316420]  ;;  %9020 = vmatmul.msk.f32.gmra.mxu1 %vm6204_vm2, %v6501_v20  ;;  %v6406_v20 = vld [vmem:[%s12228_s7 + $0xd0] sm:$0xff] }
 0x705   : > { %6573 = vst [vmem:[#allocation1] ss:$2 sm:$0xff] %v9011_v16  ;;  %9021 = vmatmul.msk.f32.vlgmr.msra.gmra.mxu2 %vm6204_vm2, %v6537_v44  ;;  %v6804_v44 = vld [vmem:[#allocation4 + $0x51] ss:$2 sm:$0x3f] }
 0x706   : > { %6575 = vst [vmem:[#allocation1 + $0x1] ss:$2 sm:$0xff] %v9013_v35  ;;  %6941 = vmatpush.msra.mxu2 %v6399_v45 }
 0x708   : > { %v6538_v55 = vld.sshfl [vmem:[#allocation1 + $0x10] sm:$0xff pattern:$0x75316420]  ;;  %6942 = vmatpush.msra.mxu2 %v6398_v56 }
 0x709   : > { %6577 = vst [vmem:[#allocation1 + $0x10] ss:$2 sm:$0xff] %v9015_v42  ;;  %v6810_v42 = vld [vmem:[#allocation4 + $0x81] ss:$2 sm:$0x3f] }
 0x70a   : > { %6579 = vst [vmem:[#allocation1 + $0x11] ss:$2 sm:$0xff] %v9023_v15  ;;  %v9059_v6 = vrot.slane %v6810_v42, 9  ;;  %v6411_v15 = vld [vmem:[%s12228_s7 + $0xf8] sm:$0xff] }
 0x70d   : > { %v6580_v29 = vld.sshfl [vmem:[#allocation1] sm:$0xff pattern:$0x75316420]  ;;  %9022 = vmatmul.msk.f32.gmra.mxu2 %vm6204_vm2, %v6538_v55 }
 0x70e   : > { %6615 = vst [vmem:[#allocation1] ss:$2 sm:$0xff] %v6414_v40  ;;  %9025 = vmatmul.msk.f32.vlgmr.msra.gmra.mxu3 %vm6204_vm2, %v6580_v29  ;;  %v6808_v55 = vld [vmem:[#allocation4 + $0x71] ss:$2 sm:$0x3f]  ;;  %v9067_v40 = vrot.slane %v6800_v36, 9 }
 0x70f   : > { %6617 = vst [vmem:[#allocation1 + $0x1] ss:$2 sm:$0xff] %v6418_v37  ;;  %6984 = vmatpush.msra.mxu3 %v6403_v59 }
 0x711   : > { %v6581_v52 = vld.sshfl [vmem:[#allocation1 + $0x10] sm:$0xff pattern:$0x75316420]  ;;  %6985 = vmatpush.msra.mxu3 %v6402_v31 }
 0x712   : > { %6619 = vst [vmem:[#allocation1 + $0x10] ss:$2 sm:$0xff] %v6422_v34 }
 0x713   : > { %6621 = vst [vmem:[#allocation1 + $0x11] ss:$2 sm:$0xff] %v6426_v54 }
 0x716   : > { %v6622_v14 = vld.sshfl [vmem:[#allocation1] sm:$0xff pattern:$0x75316420]  ;;  %9026 = vmatmul.msk.f32.gmra.mxu3 %vm6204_vm2, %v6581_v52  ;;  %v9071_v52 = vrot.slane %v6808_v55, 9 }
 0x717   : > { %6673 = vst [vmem:[#allocation1] ss:$2 sm:$0xff] %v9029_v2  ;;  %9027 = vmatmul.msk.f32.vlgmr.msrb.gmra.mxu0 %vm6204_vm2, %v6622_v14 }
 0x718   : > { %6675 = vst [vmem:[#allocation1 + $0x1] ss:$2 sm:$0xff] %v9031_v19  ;;  %7026 = vmatpush.msrb.mxu0 %v6391_v13 }
 0x71a   : > { %v6623_v3 = vld.sshfl [vmem:[#allocation1 + $0x10] sm:$0xff pattern:$0x75316420]  ;;  %7027 = vmatpush.msrb.mxu0 %v6390_v5 }
 0x71b   : > { %6677 = vst [vmem:[#allocation1 + $0x10] ss:$2 sm:$0xff] %v9033_v25 }
 0x71c   : > { %6679 = vst [vmem:[#allocation1 + $0x11] ss:$2 sm:$0xff] %v9035_v10 }
 0x71f   : > { %v6680_v27 = vld.sshfl [vmem:[#allocation1] sm:$0xff pattern:$0x75316420]  ;;  %9028 = vmatmul.msk.f32.gmra.mxu0 %vm6204_vm2, %v6623_v3 }
 0x720   : > { %6712 = vst [vmem:[#allocation1] ss:$2 sm:$0xff] %v6418_v37  ;;  %9037 = vmatmul.msk.f32.vlgmr.msrb.gmra.mxu1 %vm6204_vm2, %v6680_v27  ;;  %v9069_v37 = vrot.slane %v6804_v44, 9 }
 0x721   : > { %6714 = vst [vmem:[#allocation1 + $0x1] ss:$2 sm:$0xff] %v6422_v34  ;;  %7084 = vmatpush.msrb.mxu1 %v6395_v1 }
 0x723   : > { %v6681_v18 = vld.sshfl [vmem:[#allocation1 + $0x10] sm:$0xff pattern:$0x75316420]  ;;  %7085 = vmatpush.msrb.mxu1 %v6394_v39 }
 0x724   : > { %6716 = vst [vmem:[#allocation1 + $0x10] ss:$2 sm:$0xff] %v6426_v54 }
 0x725   : > { %6718 = vst [vmem:[#allocation1 + $0x11] ss:$2 sm:$0xff] %v6430_v38 }
 0x728   : > { %9038 = vmatmul.msk.f32.gmra.mxu1 %vm6204_vm2, %v6681_v18  ;;  %v6719_v21 = vld.sshfl [vmem:[#allocation1] sm:$0xff pattern:$0x75316420] }
 0x729   : > { %9039 = vmatmul.msk.f32.vlgmr.msrb.gmra.mxu2 %vm6204_vm2, %v6719_v21  ;;  %6755 = vst [vmem:[#allocation1] ss:$2 sm:$0xff] %v9031_v19  ;;  %v11864_v19 = vld [vmem:[#allocation5] sm:$0x3f] }
 0x72a   : > { %6757 = vst [vmem:[#allocation1 + $0x1] ss:$2 sm:$0xff] %v9033_v25  ;;  %7123 = vmatpush.msrb.mxu2 %v6407_v46 }
 0x72c   : > { %v6720_v58 = vld.sshfl [vmem:[#allocation1 + $0x10] sm:$0xff pattern:$0x75316420]  ;;  %7124 = vmatpush.msrb.mxu2 %v6406_v20 }
 0x72d   : > { %6759 = vst [vmem:[#allocation1 + $0x10] ss:$2 sm:$0xff] %v9035_v10 }
 0x72e   : > { %6761 = vst [vmem:[#allocation1 + $0x11] ss:$2 sm:$0xff] %v9041_v22 }
 0x731   : > { %9040 = vmatmul.msk.f32.gmra.mxu2 %vm6204_vm2, %v6720_v58  ;;  %v6762_v0 = vld.sshfl [vmem:[#allocation1] sm:$0xff pattern:$0x75316420] }
 0x732   : > { %9043 = vmatmul.msk.f32.vlgmr.msrb.gmra.mxu3 %vm6204_vm2, %v6762_v0  ;;  %6819 = vst [vmem:[#allocation1 + $0x1] ss:$2 sm:$0xff] %v6798_v47 }
 0x733   : > { %6817 = vst [vmem:[#allocation1] ss:$2 sm:$0xff] %v6794_v24  ;;  %7166 = vmatpush.msrb.mxu3 %v6411_v15 }
 0x735   : > { %v6763_v61 = vld.sshfl [vmem:[#allocation1 + $0x10] sm:$0xff pattern:$0x75316420]  ;;  %7167 = vmatpush.msrb.mxu3 %v6410_v9 }
 0x736   : > { %6821 = vst [vmem:[#allocation1 + $0x10] ss:$2 sm:$0xff] %v6802_v43 }
 0x737   : > { %6823 = vst [vmem:[#allocation1 + $0x11] ss:$2 sm:$0xff] %v6806_v32 }
 0x73a   : > { %9044 = vmatmul.msk.f32.gmra.mxu3 %vm6204_vm2, %v6763_v61  ;;  %v6824_v26 = vld.sshfl [vmem:[#allocation1] sm:$0xff pattern:$0x75316420] }
 0x73b   : > { %9045 = vmatmul.msk.f32.vlgmr.msra.gmra.mxu0 %vm6204_vm2, %v6824_v26  ;;  %6875 = vst [vmem:[#allocation1] ss:$2 sm:$0xff] %v9047_v53 }
 0x73c   : > { %6877 = vst [vmem:[#allocation1 + $0x1] ss:$2 sm:$0xff] %v9049_v51 }
 0x73e   : > { %v6825_v16 = vld.sshfl [vmem:[#allocation1 + $0x10] sm:$0xff pattern:$0x75316420] }
 0x73f   : > { %6879 = vst [vmem:[#allocation1 + $0x10] ss:$2 sm:$0xff] %v9051_v41 }
 0x740   : > { %6881 = vst [vmem:[#allocation1 + $0x11] ss:$2 sm:$0xff] %v9053_v7 }
 0x743   : > { %9046 = vmatmul.msk.f32.gmra.mxu0 %vm6204_vm2, %v6825_v16  ;;  %v6882_v35 = vld.sshfl [vmem:[#allocation1] sm:$0xff pattern:$0x75316420] }
 0x744   : > { %9055 = vmatmul.msk.f32.vlgmr.msra.gmra.mxu1 %vm6204_vm2, %v6882_v35  ;;  %6914 = vst [vmem:[#allocation1] ss:$2 sm:$0xff] %v6798_v47 }
 0x745   : > { %6916 = vst [vmem:[#allocation1 + $0x1] ss:$2 sm:$0xff] %v6802_v43 }
 0x747   : > { %v6883_v63 = vld.sshfl [vmem:[#allocation1 + $0x10] sm:$0xff pattern:$0x75316420] }
 0x748   : > { %6918 = vst [vmem:[#allocation1 + $0x10] ss:$2 sm:$0xff] %v6806_v32 }
 0x749   : > { %6920 = vst [vmem:[#allocation1 + $0x11] ss:$2 sm:$0xff] %v6810_v42 }
 0x74c   : > { %9056 = vmatmul.msk.f32.gmra.mxu1 %vm6204_vm2, %v6883_v63  ;;  %v6921_v50 = vld.sshfl [vmem:[#allocation1] sm:$0xff pattern:$0x75316420] }
 0x74d   : > { %9057 = vmatmul.msk.f32.vlgmr.msra.gmra.mxu2 %vm6204_vm2, %v6921_v50  ;;  %6957 = vst [vmem:[#allocation1] ss:$2 sm:$0xff] %v9049_v51 }
 0x74e   : > { %6959 = vst [vmem:[#allocation1 + $0x1] ss:$2 sm:$0xff] %v9051_v41 }
 0x750   : > { %v6922_v28 = vld.sshfl [vmem:[#allocation1 + $0x10] sm:$0xff pattern:$0x75316420] }
 0x751   : > { %6961 = vst [vmem:[#allocation1 + $0x10] ss:$2 sm:$0xff] %v9053_v7 }
 0x752   : > { %6963 = vst [vmem:[#allocation1 + $0x11] ss:$2 sm:$0xff] %v9059_v6 }
 0x755   : > { %9058 = vmatmul.msk.f32.gmra.mxu2 %vm6204_vm2, %v6922_v28  ;;  %v6964_v48 = vld.sshfl [vmem:[#allocation1] sm:$0xff pattern:$0x75316420] }
 0x756   : > { %9061 = vmatmul.msk.f32.vlgmr.msra.gmra.mxu3 %vm6204_vm2, %v6964_v48  ;;  %6999 = vst [vmem:[#allocation1] ss:$2 sm:$0xff] %v6796_v49 }
 0x757   : > { %7001 = vst [vmem:[#allocation1 + $0x1] ss:$2 sm:$0xff] %v6800_v36 }
 0x759   : > { %v6965_v60 = vld.sshfl [vmem:[#allocation1 + $0x10] sm:$0xff pattern:$0x75316420] }
 0x75a   : > { %7003 = vst [vmem:[#allocation1 + $0x10] ss:$2 sm:$0xff] %v6804_v44 }
 0x75b   : > { %7005 = vst [vmem:[#allocation1 + $0x11] ss:$2 sm:$0xff] %v6808_v55 }
 0x75e   : > { %9062 = vmatmul.msk.f32.gmra.mxu3 %vm6204_vm2, %v6965_v60  ;;  %v7006_v29 = vld.sshfl [vmem:[#allocation1] sm:$0xff pattern:$0x75316420] }
 0x75f   : > { %9063 = vmatmul.msk.f32.vlgmr.msrb.gmra.mxu0 %vm6204_vm2, %v7006_v29  ;;  %7057 = vst [vmem:[#allocation1] ss:$2 sm:$0xff] %v9065_v4 }
 0x760   : > { %7059 = vst [vmem:[#allocation1 + $0x1] ss:$2 sm:$0xff] %v9067_v40 }
 0x762   : > { %v7007_v34 = vld.sshfl [vmem:[#allocation1 + $0x10] sm:$0xff pattern:$0x75316420] }
 0x763   : > { %7061 = vst [vmem:[#allocation1 + $0x10] ss:$2 sm:$0xff] %v9069_v37 }
 0x764   : > { %7063 = vst [vmem:[#allocation1 + $0x11] ss:$2 sm:$0xff] %v9071_v52 }
 0x767   : > { %9064 = vmatmul.msk.f32.gmra.mxu0 %vm6204_vm2, %v7007_v34  ;;  %v7064_v54 = vld.sshfl [vmem:[#allocation1] sm:$0xff pattern:$0x75316420] }
 0x768   : > { %9073 = vmatmul.msk.f32.vlgmr.msrb.gmra.mxu1 %vm6204_vm2, %v7064_v54  ;;  %7096 = vst [vmem:[#allocation1] ss:$2 sm:$0xff] %v6800_v36 }
 0x769   : > { %7098 = vst [vmem:[#allocation1 + $0x1] ss:$2 sm:$0xff] %v6804_v44 }
 0x76b   : > { %v7065_v8 = vld.sshfl [vmem:[#allocation1 + $0x10] sm:$0xff pattern:$0x75316420] }
 0x76c   : > { %7100 = vst [vmem:[#allocation1 + $0x10] ss:$2 sm:$0xff] %v6808_v55 }
 0x76d   : > { %7102 = vst [vmem:[#allocation1 + $0x11] ss:$2 sm:$0xff] %v6812_v11 }
 0x770   : > { %9074 = vmatmul.msk.f32.gmra.mxu1 %vm6204_vm2, %v7065_v8  ;;  %v7103_v2 = vld.sshfl [vmem:[#allocation1] sm:$0xff pattern:$0x75316420]  ;;  %v6487_v10 = vpop.f32.mrf.mxu0 }
 0x771   : > { %9075 = vmatmul.msk.f32.vlgmr.msrb.gmra.mxu2 %vm6204_vm2, %v7103_v2  ;;  %7139 = vst [vmem:[#allocation1] ss:$2 sm:$0xff] %v9067_v40 }
 0x772   : > { %7141 = vst [vmem:[#allocation1 + $0x1] ss:$2 sm:$0xff] %v9069_v37  ;;  %v9155_v37 = vmov 16.0  }
 0x773   : > { %9140 = vrcp.f32 %v9155_v37 }
 0x774   : > { %v7104_v14 = vld.sshfl [vmem:[#allocation1 + $0x10] sm:$0xff pattern:$0x75316420] }
 0x775   : > { %7143 = vst [vmem:[#allocation1 + $0x10] ss:$2 sm:$0xff] %v9071_v52 }
 0x776   : > { %7145 = vst [vmem:[#allocation1 + $0x11] ss:$2 sm:$0xff] %v9077_v33 }
 0x778   : > { %v6490_v27 = vpop.f32.mrf.mxu0 }
 0x779   : > { %9076 = vmatmul.msk.f32.gmra.mxu2 %vm6204_vm2, %v7104_v14  ;;  %v7146_v25 = vld.sshfl [vmem:[#allocation1] sm:$0xff pattern:$0x75316420]  ;;  %v6523_v17 = vpop.f32.mrf.mxu1 }
 0x77a   : > { %9079 = vmatmul.msk.f32.vlgmr.msrb.gmra.mxu3 %vm6204_vm2, %v7146_v25  ;;  %7342 = vst [vmem:[#allocation1] sm:$0xff] %v11864_v19  ;;  %v6524_v0 = vadd.f32 %v6523_v17, %v6487_v10  ;;  %v9132_v14 = vld [vmem:[%s12229_s8] ss:$0 sm:$0xff]  ;;  %v9141_v25 = vpop.eup %9140 }
 0x77d   : > { %v7147_v3 = vld.sshfl [vmem:[#allocation1 + $0x10] sm:$0xff pattern:$0x75316420] }
 0x781   : > { %v6526_v30 = vpop.f32.mrf.mxu1 }
 0x782   : > { %9080 = vmatmul.msk.f32.gmra.mxu3 %vm6204_vm2, %v7147_v3  ;;  %v6527_v32 = vadd.f32 %v6526_v30, %v6490_v27  ;;  %v7194_v27 = vmul.f32 16.0, %v9141_v25  ;;  %vm7198_vm2 = vweird.f32 %v9141_v25 }
 0x788   : > { %v6560_v23 = vpop.f32.mrf.mxu2 }
 0x789   : > { %v6566_v56 = vadd.f32 %v6560_v23, %v6524_v0 }
 0x790   : > { %v6563_v18 = vpop.f32.mrf.mxu2 }
 0x791   : > { %v6603_v38 = vpop.f32.mrf.mxu3  ;;  %v6567_v26 = vadd.f32 %v6563_v18, %v6527_v32 }
 0x792   : > { %v6609_v53 = vadd.f32 %v6603_v38, %v6566_v56 }
 0x794   : > { %v6645_v57 = vpop.f32.mrf.mxu0 }
 0x795   : > { %v6651_v59 = vadd.f32 %v6645_v57, %v6609_v53  ;;  %v7195_v57 = vsub.f32 1.0, %v7194_v27  ;;  %v7265_v27 = vld [vmem:[%s12232_s11 + $0x10] sm:$0xff] }
 0x799   : > { %v6606_v21 = vpop.f32.mrf.mxu3 }
 0x79a   : > { %v6610_v31 = vadd.f32 %v6606_v21, %v6567_v26 }
 0x79c   : > { %v6648_v58 = vpop.f32.mrf.mxu0 }
 0x79d   : > { %v6703_v22 = vpop.f32.mrf.mxu1  ;;  %v6652_v13 = vadd.f32 %v6648_v58, %v6610_v31 }
 0x79e   : > { %v6709_v41 = vadd.f32 %v6703_v22, %v6651_v59 }
 0x7a5   : > { %v6706_v24 = vpop.f32.mrf.mxu1 }
 0x7a6   : > { %v6710_v63 = vadd.f32 %v6706_v24, %v6652_v13 }
 0x7ac   : > { %v6742_v62 = vpop.f32.mrf.mxu2 }
 0x7ad   : > { %v6748_v35 = vadd.f32 %v6742_v62, %v6709_v41  ;;  %v7196_v62 = vmul.f32 %v9141_v25, %v7195_v57 }
 0x7af   : > { %v7197_v24 = vadd.f32 %v9141_v25, %v7196_v62  ;;  %v7336_v62 = vrot.slane %v11864_v19, 1 }
 0x7b4   : > { %v6745_v47 = vpop.f32.mrf.mxu2 }
 0x7b5   : > { %v6785_v12 = vpop.f32.mrf.mxu3  ;;  %v6749_v50 = vadd.f32 %v6745_v47, %v6710_v63 }
 0x7b6   : > { %v6791_v42 = vadd.f32 %v6785_v12, %v6748_v35 }
 0x7b8   : > { %v6847_v45 = vpop.f32.mrf.mxu0 }
 0x7b9   : > { %v6853_v39 = vadd.f32 %v6847_v45, %v6791_v42  ;;  %v7199_v45 = vsel %vm7198_vm2, %v9141_v25, %v7197_v24  ;;  %v7274_v24 = vld [vmem:[%s12232_s11 + $0x58] sm:$0xff] }
 0x7ba   : > { %7496 = vmatpush.msra.mxu2 %v7274_v24 }
 0x7bd   : > { %v6788_v61 = vpop.f32.mrf.mxu3 }
 0x7be   : > { %v6792_v28 = vadd.f32 %v6788_v61, %v6749_v50 }
 0x7c0   : > { %v6850_v16 = vpop.f32.mrf.mxu0 }
 0x7c1   : > { %v6905_v43 = vpop.f32.mrf.mxu1  ;;  %v6854_v48 = vadd.f32 %v6850_v16, %v6792_v28 }
 0x7c2   : > { %v6911_v46 = vadd.f32 %v6905_v43, %v6853_v39 }
 0x7c9   : > { %v6908_v5 = vpop.f32.mrf.mxu1 }
 0x7ca   : > { %v6912_v60 = vadd.f32 %v6908_v5, %v6854_v48 }
 0x7d0   : > { %v6944_v51 = vpop.f32.mrf.mxu2 }
 0x7d1   : > { %v6950_v36 = vadd.f32 %v6944_v51, %v6911_v46 }
 0x7d8   : > { %v6947_v1 = vpop.f32.mrf.mxu2 }
 0x7d9   : > { %v6987_v7 = vpop.f32.mrf.mxu3  ;;  %v6951_v15 = vadd.f32 %v6947_v1, %v6912_v60 }
 0x7da   : > { %v6993_v55 = vadd.f32 %v6987_v7, %v6950_v36 }
 0x7dc   : > { %v7029_v6 = vpop.f32.mrf.mxu0 }
 0x7dd   : > { %v7035_v9 = vadd.f32 %v7029_v6, %v6993_v55 }
 0x7e1   : > { %v6990_v49 = vpop.f32.mrf.mxu3 }
 0x7e2   : > { %v6994_v4 = vadd.f32 %v6990_v49, %v6951_v15  ;;  %v9133_v49 = vld [vmem:[%s12230_s9] ss:$0 sm:$0xff] }
 0x7e4   : > { %v7032_v40 = vpop.f32.mrf.mxu0 }
 0x7e5   : > { %v7087_v20 = vpop.f32.mrf.mxu1  ;;  %v7036_v54 = vadd.f32 %v7032_v40, %v6994_v4  ;;  %v7270_v4 = vld [vmem:[%s12232_s11 + $0x38] sm:$0xff]  ;;  %v7269_v40 = vld [vmem:[%s12232_s11 + $0x30] sm:$0xff] }
 0x7e6   : > { %v7093_v34 = vadd.f32 %v7087_v20, %v7035_v9  ;;  %7391 = vmatpush.msra.mxu0 %v7270_v4 }
 0x7e8   : > { %7392 = vmatpush.msra.mxu0 %v7269_v40 }
 0x7ed   : > { %v7090_v52 = vpop.f32.mrf.mxu1 }
 0x7ee   : > { %v7094_v2 = vadd.f32 %v7090_v52, %v7036_v54 }
 0x7f4   : > { %v7126_v44 = vpop.f32.mrf.mxu2 }
 0x7f5   : > { %v7132_v11 = vadd.f32 %v7126_v44, %v7093_v34  ;;  %v9134_v44 = vld [vmem:[%s12231_s10] ss:$0 sm:$0xff]  ;;  %v7268_v34 = vld [vmem:[%s12232_s11 + $0x28] sm:$0xff] }
 0x7f6   : > { %7393 = vmatpush.msra.mxu0 %v7268_v34 }
 0x7fc   : > { %v7129_v8 = vpop.f32.mrf.mxu2 }
 0x7fd   : > { %v7169_v29 = vpop.f32.mrf.mxu3  ;;  %v7133_v3 = vadd.f32 %v7129_v8, %v7094_v2  ;;  %v7344_v8 = vld [vmem:[#allocation1 + $0x1] ss:$9 sm:$0xff] }
 0x7fe   : > { %v7175_v33 = vadd.f32 %v7169_v29, %v7132_v11  ;;  %v7267_v11 = vld [vmem:[%s12232_s11 + $0x20] sm:$0xff] }
 0x7ff   : > { %7394 = vmatpush.msra.mxu0 %v7267_v11  ;;  %v7346_v2 = vld [vmem:[#allocation1 + $0x2] ss:$9 sm:$0xff] }
 0x800   : > { %v7181_v17 = vadd.f32 %v9132_v14, %v7175_v33  ;;  %v7348_v33 = vld [vmem:[#allocation1 + $0x3] ss:$9 sm:$0xff] }
 0x801   : > { %v7284_v11 = vld [vmem:[%s12232_s11 + $0xa8] sm:$0xff] }
 0x802   : > { %v7184_v30 = vsel %vm7183_vm9, %v7181_v17, 0.0 }
 0x805   : > { %v7172_v10 = vpop.f32.mrf.mxu3 }
 0x806   : > { %v7176_v23 = vadd.f32 %v7172_v10, %v7133_v3 }
 0x808   : > { %v7182_v38 = vadd.f32 %v9132_v14, %v7176_v23  ;;  %v7266_v23 = vld [vmem:[%s12232_s11 + $0x18] sm:$0xff] }
 0x809   : > { %7436 = vmatpush.msra.mxu1 %v7266_v23 }
 0x80a   : > { %v7185_v18 = vsel %vm7183_vm9, %v7182_v38, 0.0 }
 0x80b   : > { %v7186_v21 = vadd.f32 %v7185_v18, %v7184_v30  ;;  %7437 = vmatpush.msra.mxu1 %v7265_v27  ;;  %v7263_v30 = vld [vmem:[%s12232_s11] sm:$0xff]  ;;  %v7290_v27 = vld [vmem:[%s12232_s11 + $0xd8] sm:$0xff] }
 0x80d   : > { %v7187_v22 = vrot.slane %v7186_v21, 4 }
 0x80f   : > { %v7188_v58 = vadd.f32 %v7187_v22, %v7186_v21 }
 0x811   : > { %v7189_v12 = vrot.slane %v7188_v58, 2 }
 0x813   : > { %v7190_v47 = vadd.f32 %v7189_v12, %v7188_v58  ;;  %v7337_v58 = vrot.slane %v11864_v19, 2 }
 0x815   : > { %v7191_v0 = vrot.slane %v7190_v47, 1 }
 0x817   : > { %v7192_v56 = vadd.f32 %v7191_v0, %v7190_v47  ;;  %v7273_v47 = vld [vmem:[%s12232_s11 + $0x50] sm:$0xff]  ;;  %v7272_v0 = vld [vmem:[%s12232_s11 + $0x48] sm:$0xff] }
 0x818   : > { %7497 = vmatpush.msra.mxu2 %v7273_v47 }
 0x819   : > { %v7200_v61 = vmul.f32 %v7199_v45, %v7192_v56 }
 0x81a   : > { %7498 = vmatpush.msra.mxu2 %v7272_v0 }
 0x81b   : > { %v7201_v43 = vsub.f32 %v7181_v17, %v7200_v61  ;;  %v7202_v32 = vsub.f32 %v7182_v38, %v7200_v61  ;;  %v7264_v38 = vld [vmem:[%s12232_s11 + $0x8] sm:$0xff]  ;;  %v7271_v61 = vld [vmem:[%s12232_s11 + $0x40] sm:$0xff] }
 0x81c   : > { %7438 = vmatpush.msra.mxu1 %v7264_v38  ;;  %7499 = vmatpush.msra.mxu2 %v7271_v61  ;;  %v7294_v61 = vld [vmem:[%s12232_s11 + $0xf8] sm:$0xff] }
 0x81d   : > { %v7203_v53 = vmul.f32 %v7201_v43, %v7201_v43  ;;  %v7204_v51 = vmul.f32 %v7202_v32, %v7202_v32 }
 0x81e   : > { %7439 = vmatpush.msra.mxu1 %v7263_v30  ;;  %7732 = vmatpush.msrb.mxu2 %v7290_v27 }
 0x81f   : > { %v7205_v26 = vsel %vm7183_vm9, %v7203_v53, 0.0  ;;  %v7206_v59 = vsel %vm7183_vm9, %v7204_v51, 0.0 }
 0x820   : > { %v7207_v31 = vadd.f32 %v7206_v59, %v7205_v26 }
 0x822   : > { %v7208_v41 = vrot.slane %v7207_v31, 4 }
 0x824   : > { %v7209_v16 = vadd.f32 %v7208_v41, %v7207_v31 }
 0x826   : > { %v7210_v7 = vrot.slane %v7209_v16, 2 }
 0x828   : > { %v7211_v13 = vadd.f32 %v7210_v7, %v7209_v16 }
 0x82a   : > { %v7212_v35 = vrot.slane %v7211_v13, 1 }
 0x82c   : > { %v7213_v5 = vadd.f32 %v7212_v35, %v7211_v13  ;;  %v7278_v13 = vld [vmem:[%s12232_s11 + $0x78] sm:$0xff]  ;;  %v7277_v35 = vld [vmem:[%s12232_s11 + $0x70] sm:$0xff] }
 0x82d   : > { %7558 = vmatpush.msra.mxu3 %v7278_v13  ;;  %v7291_v13 = vld [vmem:[%s12232_s11 + $0xe0] sm:$0xff] }
 0x82e   : > { %v7214_v63 = vmul.f32 %v7213_v5, %v7199_v45  ;;  %v7276_v5 = vld [vmem:[%s12232_s11 + $0x68] sm:$0xff] }
 0x82f   : > { %7559 = vmatpush.msra.mxu3 %v7277_v35 }
 0x830   : > { %v7215_v42 = vadd.f32 1e-05, %v7214_v63 }
 0x831   : > { %7560 = vmatpush.msra.mxu3 %v7276_v5 }
 0x832   : > { %9142 = vrsqrt.f32 %v7215_v42  ;;  %vm7222_vm10 = vweird.f32 %v7215_v42 }
 0x838   : > { %v9143_v1 = vpop.eup %9142 }
 0x839   : > { %v7217_v50 = vmul.f32 %v9143_v1, %v7215_v42  ;;  %vm7223_vm4 = vweird.f32 %v9143_v1 }
 0x83a   : > { %vm7224_vm11 = vmor %vm7222_vm10, %vm7223_vm4 }
 0x83b   : > { %v7218_v39 = vmul.f32 %v9143_v1, %v7217_v50  ;;  %v7275_v50 = vld [vmem:[%s12232_s11 + $0x60] sm:$0xff] }
 0x83c   : > { %7561 = vmatpush.msra.mxu3 %v7275_v50 }
 0x83d   : > { %v7219_v28 = vmul.f32 0.5, %v7218_v39 }
 0x83e   : > { %7794 = vmatpush.msrb.mxu3 %v7294_v61 }
 0x83f   : > { %v7220_v6 = vsub.f32 1.5, %v7219_v28 }
 0x841   : > { %v7221_v46 = vmul.f32 %v9143_v1, %v7220_v6 }
 0x843   : > { %v7225_v20 = vsel %vm7224_vm11, %v9143_v1, %v7221_v46 }
 0x844   : > { %v7226_v48 = vmul.f32 %v7225_v20, %v7201_v43  ;;  %v7227_v36 = vmul.f32 %v7225_v20, %v7202_v32 }
 0x846   : > { %v7232_v60 = vmul.f32 %v9133_v49, %v7226_v48  ;;  %v7233_v55 = vmul.f32 %v9133_v49, %v7227_v36 }
 0x848   : > { %v7238_v15 = vadd.f32 %v9134_v44, %v7232_v60  ;;  %v7239_v9 = vadd.f32 %v9134_v44, %v7233_v55  ;;  %v7282_v44 = vld [vmem:[%s12232_s11 + $0x98] sm:$0xff]  ;;  %v7280_v60 = vld [vmem:[%s12232_s11 + $0x88] sm:$0xff]  ;;  %v7279_v55 = vld [vmem:[%s12232_s11 + $0x80] sm:$0xff] }
 0x849   : > { %7608 = vmatpush.msrb.mxu0 %v7282_v44 }
 0x84a   : > { %vm7240_vm13 = vcmp.ge.f32.partialorder %v7238_v15, 0.0  ;;  %vm7241_vm14 = vcmp.ge.f32.partialorder %v7239_v9, 0.0  ;;  %v7242_v29 = vmul.f32 0.2, %v7238_v15  ;;  %v7243_v37 = vmul.f32 0.2, %v7239_v9 }
 0x84c   : > { %v7244_v52 = vsel %vm7240_vm13, %v7238_v15, %v7242_v29  ;;  %v7245_v54 = vsel %vm7241_vm14, %v7239_v9, %v7243_v37  ;;  %v7286_v29 = vld [vmem:[%s12232_s11 + $0xb8] sm:$0xff]  ;;  %v7285_v37 = vld [vmem:[%s12232_s11 + $0xb0] sm:$0xff] }
 0x84d   : > { %7255 = vst.msk [vmem:[#allocation5 + $0x9] sm:$0xf] %vm7254_vm12, %v7244_v52  ;;  %7670 = vmatpush.msrb.mxu1 %v7286_v29 }
 0x84e   : > { %7258 = vst.msk [vmem:[#allocation5 + $0xd] sm:$0xf0] %vm7257_vm15, %v7244_v52 }
 0x84f   : > { %7260 = vst.msk [vmem:[#allocation5 + $0x19] sm:$0xf] %vm7254_vm12, %v7245_v54  ;;  %7671 = vmatpush.msrb.mxu1 %v7285_v37 }
 0x850   : > { %7262 = vst.msk [vmem:[#allocation5 + $0x1d] sm:$0xf0] %vm7257_vm15, %v7245_v54 }
 0x851   : > { %7672 = vmatpush.msrb.mxu1 %v7284_v11 }
 0x854   : > { %v11897_v14 = vld [vmem:[#allocation5 + $0x8] sm:$0x3f] }
 0x855   : > { %7349 = vst [vmem:[#allocation1] sm:$0xff] %v11897_v14  ;;  %v11900_v25 = vld [vmem:[#allocation5 + $0x10] sm:$0x3f]  ;;  %v7338_v45 = vrot.slane %v11897_v14, 1  ;;  %v7339_v56 = vrot.slane %v11897_v14, 2 }
 0x856   : > { %v11938_v43 = vrot.slane %v11900_v25, 1  ;;  %v11945_v32 = vrot.slane %v11900_v25, 2  ;;  %v11993_v52 = vld [vmem:[#allocation5 + $0x18] sm:$0x3f] }
 0x857   : > { %v12000_v54 = vrot.slane %v11993_v52, 1 }
 0x85c   : > { %v7350_v3 = vld [vmem:[#allocation1 + $0x1] ss:$9 sm:$0xff]  ;;  %v7352_v17 = vld [vmem:[#allocation1 + $0x3] ss:$9 sm:$0xff] }
 0x85d   : > { %v7351_v10 = vld [vmem:[#allocation1 + $0x2] ss:$9 sm:$0xff] }
 0x85e   : > { %7353 = vst [vmem:[#allocation1] sm:$0xff] %v11900_v25 }
 0x85f   : > { %7357 = vst [vmem:[#allocation1] ss:$9 sm:$0xff] %v7344_v8  ;;  %v7283_v8 = vld [vmem:[%s12232_s11 + $0xa0] sm:$0xff] }
 0x860   : > { %7365 = vst [vmem:[#allocation1 + $0x4] ss:$9 sm:$0xff] %v7351_v10  ;;  %7673 = vmatpush.msrb.mxu1 %v7283_v8 }
 0x861   : > { %7367 = vst [vmem:[#allocation1 + $0x5] ss:$9 sm:$0xff] %v7352_v17 }
 0x865   : > { %v7354_v18 = vld [vmem:[#allocation1 + $0x1] ss:$9 sm:$0xff]  ;;  %v7356_v21 = vld [vmem:[#allocation1 + $0x3] ss:$9 sm:$0xff] }
 0x866   : > { %v7355_v57 = vld [vmem:[#allocation1 + $0x2] ss:$9 sm:$0xff]  ;;  %7359 = vst [vmem:[#allocation1 + $0x1] ss:$9 sm:$0xff] %v7346_v2  ;;  %v12012_v2 = vrot.slane %v11993_v52, 2 }
 0x867   : > { %7361 = vst [vmem:[#allocation1 + $0x2] ss:$9 sm:$0xff] %v7348_v33 }
 0x868   : > { %7363 = vst [vmem:[#allocation1 + $0x3] ss:$9 sm:$0xff] %v7350_v3 }
 0x869   : > { %7369 = vst [vmem:[#allocation1 + $0x6] ss:$9 sm:$0xff] %v7354_v18 }
 0x86a   : > { %7371 = vst [vmem:[#allocation1 + $0x7] ss:$9 sm:$0xff] %v7355_v57 }
 0x871   : > { %v7372_v22 = vld [vmem:[#allocation1] sm:$0xff] }
 0x872   : > { %9081 = vmatmul.msk.f32.vlgmr.msra.gmra.mxu0 %vm7183_vm9, %v7372_v22  ;;  %7373 = vst [vmem:[#allocation1] ss:$9 sm:$0xff] %v7356_v21 }
 0x879   : > { %v7374_v12 = vld [vmem:[#allocation1] sm:$0xff] }
 0x87a   : > { %9082 = vmatmul.msk.f32.gmra.mxu0 %vm7183_vm9, %v7374_v12  ;;  %7402 = vst [vmem:[#allocation1] ss:$9 sm:$0xff] %v11864_v19  ;;  %v7287_v12 = vld [vmem:[%s12232_s11 + $0xc0] sm:$0xff] }
 0x87b   : > { %7404 = vst [vmem:[#allocation1 + $0x1] ss:$9 sm:$0xff] %v7336_v62  ;;  %v7289_v62 = vld [vmem:[%s12232_s11 + $0xd0] sm:$0xff] }
 0x87c   : > { %7406 = vst [vmem:[#allocation1 + $0x2] ss:$9 sm:$0xff] %v7337_v58  ;;  %v7288_v58 = vld [vmem:[%s12232_s11 + $0xc8] sm:$0xff]  ;;  %7733 = vmatpush.msrb.mxu2 %v7289_v62 }
 0x87d   : > { %7408 = vst [vmem:[#allocation1 + $0x3] ss:$9 sm:$0xff] %v11897_v14 }
 0x87e   : > { %7410 = vst [vmem:[#allocation1 + $0x4] ss:$9 sm:$0xff] %v7338_v45  ;;  %7734 = vmatpush.msrb.mxu2 %v7288_v58 }
 0x87f   : > { %7412 = vst [vmem:[#allocation1 + $0x5] ss:$9 sm:$0xff] %v7339_v56 }
 0x880   : > { %7414 = vst [vmem:[#allocation1 + $0x6] ss:$9 sm:$0xff] %v11900_v25  ;;  %7735 = vmatpush.msrb.mxu2 %v7287_v12 }
 0x881   : > { %7416 = vst [vmem:[#allocation1 + $0x7] ss:$9 sm:$0xff] %v11938_v43 }
 0x888   : > { %v7417_v53 = vld [vmem:[#allocation1] sm:$0xff] }
 0x889   : > { %9083 = vmatmul.msk.f32.vlgmr.msra.gmra.mxu1 %vm7183_vm9, %v7417_v53  ;;  %7418 = vst [vmem:[#allocation1] ss:$9 sm:$0xff] %v11945_v32 }
 0x890   : > { %v7419_v51 = vld [vmem:[#allocation1] sm:$0xff] }
 0x891   : > { %9084 = vmatmul.msk.f32.gmra.mxu1 %vm7183_vm9, %v7419_v51  ;;  %7447 = vst [vmem:[#allocation1] sm:$0xff] %v11864_v19 }
 0x898   : > { %v7449_v26 = vld [vmem:[#allocation1 + $0x2] ss:$9 sm:$0xff]  ;;  %v7453_v31 = vld [vmem:[#allocation1 + $0x4] ss:$9 sm:$0xff] }
 0x899   : > { %v7451_v59 = vld [vmem:[#allocation1 + $0x3] ss:$9 sm:$0xff] }
 0x89a   : > { %7454 = vst [vmem:[#allocation1] sm:$0xff] %v11897_v14 }
 0x8a1   : > { %v7455_v41 = vld [vmem:[#allocation1 + $0x2] ss:$9 sm:$0xff]  ;;  %v7457_v7 = vld [vmem:[#allocation1 + $0x4] ss:$9 sm:$0xff] }
 0x8a2   : > { %v7456_v16 = vld [vmem:[#allocation1 + $0x3] ss:$9 sm:$0xff] }
 0x8a3   : > { %7458 = vst [vmem:[#allocation1] sm:$0xff] %v11900_v25 }
 0x8a4   : > { %7462 = vst [vmem:[#allocation1] ss:$9 sm:$0xff] %v7449_v26 }
 0x8a5   : > { %7464 = vst [vmem:[#allocation1 + $0x1] ss:$9 sm:$0xff] %v7451_v59 }
 0x8a6   : > { %7472 = vst [vmem:[#allocation1 + $0x5] ss:$9 sm:$0xff] %v7457_v7  ;;  %v7292_v7 = vld [vmem:[%s12232_s11 + $0xe8] sm:$0xff] }
 0x8aa   : > { %v7459_v63 = vld [vmem:[#allocation1 + $0x2] ss:$9 sm:$0xff]  ;;  %v7461_v1 = vld [vmem:[#allocation1 + $0x4] ss:$9 sm:$0xff] }
 0x8ab   : > { %v7460_v42 = vld [vmem:[#allocation1 + $0x3] ss:$9 sm:$0xff]  ;;  %7466 = vst [vmem:[#allocation1 + $0x2] ss:$9 sm:$0xff] %v7453_v31 }
 0x8ac   : > { %7468 = vst [vmem:[#allocation1 + $0x3] ss:$9 sm:$0xff] %v7455_v41 }
 0x8ad   : > { %7470 = vst [vmem:[#allocation1 + $0x4] ss:$9 sm:$0xff] %v7456_v16  ;;  %v7293_v16 = vld [vmem:[%s12232_s11 + $0xf0] sm:$0xff] }
 0x8ae   : > { %7474 = vst [vmem:[#allocation1 + $0x6] ss:$9 sm:$0xff] %v7459_v63  ;;  %7795 = vmatpush.msrb.mxu3 %v7293_v16 }
 0x8af   : > { %7476 = vst [vmem:[#allocation1 + $0x7] ss:$9 sm:$0xff] %v7460_v42 }
 0x8b0   : > { %7796 = vmatpush.msrb.mxu3 %v7292_v7 }
 0x8b2   : > { %7797 = vmatpush.msrb.mxu3 %v7291_v13 }
 0x8b6   : > { %v7477_v39 = vld [vmem:[#allocation1] sm:$0xff] }
 0x8b7   : > { %9085 = vmatmul.msk.f32.vlgmr.msra.gmra.mxu2 %vm7183_vm9, %v7477_v39  ;;  %7478 = vst [vmem:[#allocation1] ss:$9 sm:$0xff] %v7461_v1 }
 0x8be   : > { %v7479_v28 = vld [vmem:[#allocation1] sm:$0xff] }
 0x8bf   : > { %9086 = vmatmul.msk.f32.gmra.mxu2 %vm7183_vm9, %v7479_v28  ;;  %7509 = vst [vmem:[#allocation1] sm:$0xff] %v11864_v19  ;;  %v7281_v19 = vld [vmem:[%s12232_s11 + $0x90] sm:$0xff] }
 0x8c0   : > { %7609 = vmatpush.msrb.mxu0 %v7281_v19  ;;  %v7302_v19 = vld [vmem:[%s12232_s11 + $0x138] sm:$0xff] }
 0x8c1   : > { %7906 = vmatpush.msra.mxu1 %v7302_v19 }
 0x8c2   : > { %7610 = vmatpush.msrb.mxu0 %v7280_v60  ;;  %v7301_v60 = vld [vmem:[%s12232_s11 + $0x130] sm:$0xff] }
 0x8c3   : > { %7907 = vmatpush.msra.mxu1 %v7301_v60 }
 0x8c4   : > { %7611 = vmatpush.msrb.mxu0 %v7279_v55 }
 0x8c6   : > { %v7511_v6 = vld [vmem:[#allocation1 + $0x3] ss:$9 sm:$0xff]  ;;  %v7515_v49 = vld [vmem:[#allocation1 + $0x5] ss:$9 sm:$0xff] }
 0x8c7   : > { %v7513_v46 = vld [vmem:[#allocation1 + $0x4] ss:$9 sm:$0xff] }
 0x8c8   : > { %7516 = vst [vmem:[#allocation1] sm:$0xff] %v11897_v14 }
 0x8cf   : > { %v7517_v20 = vld [vmem:[#allocation1 + $0x3] ss:$9 sm:$0xff]  ;;  %v7519_v36 = vld [vmem:[#allocation1 + $0x5] ss:$9 sm:$0xff] }
 0x8d0   : > { %v7518_v48 = vld [vmem:[#allocation1 + $0x4] ss:$9 sm:$0xff] }
 0x8d1   : > { %7520 = vst [vmem:[#allocation1] sm:$0xff] %v11900_v25 }
 0x8d2   : > { %7524 = vst [vmem:[#allocation1] ss:$9 sm:$0xff] %v7511_v6  ;;  %v7298_v6 = vld [vmem:[%s12232_s11 + $0x118] sm:$0xff] }
 0x8d3   : > { %7526 = vst [vmem:[#allocation1 + $0x1] ss:$9 sm:$0xff] %v7513_v46  ;;  %7844 = vmatpush.msra.mxu0 %v7298_v6  ;;  %v7296_v46 = vld [vmem:[%s12232_s11 + $0x108] sm:$0xff] }
 0x8d4   : > { %7528 = vst [vmem:[#allocation1 + $0x2] ss:$9 sm:$0xff] %v7515_v49  ;;  %v7295_v49 = vld [vmem:[%s12232_s11 + $0x100] sm:$0xff] }
 0x8d8   : > { %v7521_v15 = vld [vmem:[#allocation1 + $0x3] ss:$9 sm:$0xff]  ;;  %v7523_v4 = vld [vmem:[#allocation1 + $0x5] ss:$9 sm:$0xff] }
 0x8d9   : > { %v7522_v9 = vld [vmem:[#allocation1 + $0x4] ss:$9 sm:$0xff]  ;;  %7530 = vst [vmem:[#allocation1 + $0x3] ss:$9 sm:$0xff] %v7517_v20 }
 0x8da   : > { %7532 = vst [vmem:[#allocation1 + $0x4] ss:$9 sm:$0xff] %v7518_v48 }
 0x8db   : > { %7534 = vst [vmem:[#allocation1 + $0x5] ss:$9 sm:$0xff] %v7519_v36 }
 0x8dc   : > { %7536 = vst [vmem:[#allocation1 + $0x6] ss:$9 sm:$0xff] %v7521_v15  ;;  %v12076_v15 = vld [vmem:[#allocation5 + $0x20] sm:$0x3f] }
 0x8dd   : > { %7538 = vst [vmem:[#allocation1 + $0x7] ss:$9 sm:$0xff] %v7522_v9  ;;  %v7808_v9 = vrot.slane %v12076_v15, 1 }
 0x8e4   : > { %v7539_v40 = vld [vmem:[#allocation1] sm:$0xff] }
 0x8e5   : > { %9087 = vmatmul.msk.f32.vlgmr.msra.gmra.mxu3 %vm7183_vm9, %v7539_v40  ;;  %7540 = vst [vmem:[#allocation1] ss:$9 sm:$0xff] %v7523_v4  ;;  %v7300_v4 = vld [vmem:[%s12232_s11 + $0x128] sm:$0xff] }
 0x8e6   : > { %7908 = vmatpush.msra.mxu1 %v7300_v4  ;;  %v7322_v4 = vld [vmem:[%s12232_s11 + $0x1d8] sm:$0xff] }
 0x8ec   : > { %v7541_v34 = vld [vmem:[#allocation1] sm:$0xff] }
 0x8ed   : > { %9088 = vmatmul.msk.f32.gmra.mxu3 %vm7183_vm9, %v7541_v34  ;;  %7574 = vst [vmem:[#allocation1] ss:$9 sm:$0xff] %v11897_v14 }
 0x8ee   : > { %7576 = vst [vmem:[#allocation1 + $0x1] ss:$9 sm:$0xff] %v7338_v45 }
 0x8ef   : > { %7578 = vst [vmem:[#allocation1 + $0x2] ss:$9 sm:$0xff] %v7339_v56 }
 0x8f0   : > { %7580 = vst [vmem:[#allocation1 + $0x3] ss:$9 sm:$0xff] %v11900_v25 }
 0x8f1   : > { %7582 = vst [vmem:[#allocation1 + $0x4] ss:$9 sm:$0xff] %v11938_v43 }
 0x8f2   : > { %7584 = vst [vmem:[#allocation1 + $0x5] ss:$9 sm:$0xff] %v11945_v32 }
 0x8f3   : > { %7586 = vst [vmem:[#allocation1 + $0x6] ss:$9 sm:$0xff] %v11993_v52 }
 0x8f4   : > { %7588 = vst [vmem:[#allocation1 + $0x7] ss:$9 sm:$0xff] %v12000_v54 }
 0x8fb   : > { %v7589_v33 = vld [vmem:[#allocation1] sm:$0xff] }
 0x8fc   : > { %9089 = vmatmul.msk.f32.vlgmr.msrb.gmra.mxu0 %vm7183_vm9, %v7589_v33  ;;  %7590 = vst [vmem:[#allocation1] ss:$9 sm:$0xff] %v12012_v2 }
 0x903   : > { %v7591_v3 = vld [vmem:[#allocation1] sm:$0xff] }
 0x904   : > { %9090 = vmatmul.msk.f32.gmra.mxu0 %vm7183_vm9, %v7591_v3  ;;  %7621 = vst [vmem:[#allocation1] sm:$0xff] %v11897_v14 }
 0x90b   : > { %v7623_v10 = vld [vmem:[#allocation1 + $0x1] ss:$9 sm:$0xff]  ;;  %v7627_v23 = vld [vmem:[#allocation1 + $0x3] ss:$9 sm:$0xff] }
 0x90c   : > { %v7625_v17 = vld [vmem:[#allocation1 + $0x2] ss:$9 sm:$0xff] }
 0x90d   : > { %7628 = vst [vmem:[#allocation1] sm:$0xff] %v11900_v25 }
 0x914   : > { %v7629_v38 = vld [vmem:[#allocation1 + $0x1] ss:$9 sm:$0xff]  ;;  %v7631_v18 = vld [vmem:[#allocation1 + $0x3] ss:$9 sm:$0xff] }
 0x915   : > { %v7630_v30 = vld [vmem:[#allocation1 + $0x2] ss:$9 sm:$0xff] }
 0x916   : > { %7632 = vst [vmem:[#allocation1] sm:$0xff] %v11993_v52 }
 0x917   : > { %7636 = vst [vmem:[#allocation1] ss:$9 sm:$0xff] %v7623_v10 }
 0x918   : > { %7644 = vst [vmem:[#allocation1 + $0x4] ss:$9 sm:$0xff] %v7630_v30  ;;  %v7305_v30 = vld [vmem:[%s12232_s11 + $0x150] sm:$0xff] }
 0x919   : > { %7646 = vst [vmem:[#allocation1 + $0x5] ss:$9 sm:$0xff] %v7631_v18  ;;  %v7304_v18 = vld [vmem:[%s12232_s11 + $0x148] sm:$0xff] }
 0x91d   : > { %v7633_v57 = vld [vmem:[#allocation1 + $0x1] ss:$9 sm:$0xff]  ;;  %v7635_v22 = vld [vmem:[#allocation1 + $0x3] ss:$9 sm:$0xff] }
 0x91e   : > { %v7634_v21 = vld [vmem:[#allocation1 + $0x2] ss:$9 sm:$0xff]  ;;  %7638 = vst [vmem:[#allocation1 + $0x1] ss:$9 sm:$0xff] %v7625_v17 }
 0x91f   : > { %7640 = vst [vmem:[#allocation1 + $0x2] ss:$9 sm:$0xff] %v7627_v23 }
 0x920   : > { %7642 = vst [vmem:[#allocation1 + $0x3] ss:$9 sm:$0xff] %v7629_v38  ;;  %v7306_v38 = vld [vmem:[%s12232_s11 + $0x158] sm:$0xff] }
 0x921   : > { %7648 = vst [vmem:[#allocation1 + $0x6] ss:$9 sm:$0xff] %v7633_v57  ;;  %7968 = vmatpush.msra.mxu2 %v7306_v38 }
 0x922   : > { %7650 = vst [vmem:[#allocation1 + $0x7] ss:$9 sm:$0xff] %v7634_v21  ;;  %v7303_v21 = vld [vmem:[%s12232_s11 + $0x140] sm:$0xff] }
 0x923   : > { %7969 = vmatpush.msra.mxu2 %v7305_v30 }
 0x925   : > { %7970 = vmatpush.msra.mxu2 %v7304_v18 }
 0x927   : > { %7971 = vmatpush.msra.mxu2 %v7303_v21 }
 0x929   : > { %v7651_v24 = vld [vmem:[#allocation1] sm:$0xff] }
 0x92a   : > { %9091 = vmatmul.msk.f32.vlgmr.msrb.gmra.mxu1 %vm7183_vm9, %v7651_v24  ;;  %7652 = vst [vmem:[#allocation1] ss:$9 sm:$0xff] %v7635_v22 }
 0x931   : > { %v7653_v47 = vld [vmem:[#allocation1] sm:$0xff] }
 0x932   : > { %9092 = vmatmul.msk.f32.gmra.mxu1 %vm7183_vm9, %v7653_v47  ;;  %7683 = vst [vmem:[#allocation1] sm:$0xff] %v11897_v14 }
 0x939   : > { %v7685_v0 = vld [vmem:[#allocation1 + $0x2] ss:$9 sm:$0xff]  ;;  %v7689_v56 = vld [vmem:[#allocation1 + $0x4] ss:$9 sm:$0xff] }
 0x93a   : > { %v7687_v45 = vld [vmem:[#allocation1 + $0x3] ss:$9 sm:$0xff] }
 0x93b   : > { %7690 = vst [vmem:[#allocation1] sm:$0xff] %v11900_v25 }
 0x942   : > { %v7691_v53 = vld [vmem:[#allocation1 + $0x2] ss:$9 sm:$0xff]  ;;  %v7693_v26 = vld [vmem:[#allocation1 + $0x4] ss:$9 sm:$0xff] }
 0x943   : > { %v7692_v51 = vld [vmem:[#allocation1 + $0x3] ss:$9 sm:$0xff] }
 0x944   : > { %7694 = vst [vmem:[#allocation1] sm:$0xff] %v11993_v52 }
 0x945   : > { %7698 = vst [vmem:[#allocation1] ss:$9 sm:$0xff] %v7685_v0 }
 0x946   : > { %7700 = vst [vmem:[#allocation1 + $0x1] ss:$9 sm:$0xff] %v7687_v45 }
 0x947   : > { %7708 = vst [vmem:[#allocation1 + $0x5] ss:$9 sm:$0xff] %v7693_v26  ;;  %v7308_v26 = vld [vmem:[%s12232_s11 + $0x168] sm:$0xff] }
 0x94b   : > { %v7695_v59 = vld [vmem:[#allocation1 + $0x2] ss:$9 sm:$0xff]  ;;  %v7697_v41 = vld [vmem:[#allocation1 + $0x4] ss:$9 sm:$0xff] }
 0x94c   : > { %v7696_v31 = vld [vmem:[#allocation1 + $0x3] ss:$9 sm:$0xff]  ;;  %7702 = vst [vmem:[#allocation1 + $0x2] ss:$9 sm:$0xff] %v7689_v56 }
 0x94d   : > { %7704 = vst [vmem:[#allocation1 + $0x3] ss:$9 sm:$0xff] %v7691_v53  ;;  %v7310_v53 = vld [vmem:[%s12232_s11 + $0x178] sm:$0xff] }
 0x94e   : > { %7706 = vst [vmem:[#allocation1 + $0x4] ss:$9 sm:$0xff] %v7692_v51  ;;  %v7309_v51 = vld [vmem:[%s12232_s11 + $0x170] sm:$0xff]  ;;  %8030 = vmatpush.msra.mxu3 %v7310_v53 }
 0x94f   : > { %7710 = vst [vmem:[#allocation1 + $0x6] ss:$9 sm:$0xff] %v7695_v59 }
 0x950   : > { %7712 = vst [vmem:[#allocation1 + $0x7] ss:$9 sm:$0xff] %v7696_v31  ;;  %8031 = vmatpush.msra.mxu3 %v7309_v51  ;;  %v7307_v31 = vld [vmem:[%s12232_s11 + $0x160] sm:$0xff] }
 0x952   : > { %8032 = vmatpush.msra.mxu3 %v7308_v26 }
 0x954   : > { %8033 = vmatpush.msra.mxu3 %v7307_v31 }
 0x957   : > { %v7713_v35 = vld [vmem:[#allocation1] sm:$0xff] }
 0x958   : > { %9093 = vmatmul.msk.f32.vlgmr.msrb.gmra.mxu2 %vm7183_vm9, %v7713_v35  ;;  %7714 = vst [vmem:[#allocation1] ss:$9 sm:$0xff] %v7697_v41 }
 0x959   : > { %8204 = vmatpush.msrb.mxu2 %v7322_v4 }
 0x95f   : > { %v7715_v5 = vld [vmem:[#allocation1] sm:$0xff] }
 0x960   : > { %9094 = vmatmul.msk.f32.gmra.mxu2 %vm7183_vm9, %v7715_v5  ;;  %7745 = vst [vmem:[#allocation1] sm:$0xff] %v11897_v14  ;;  %v7297_v14 = vld [vmem:[%s12232_s11 + $0x110] sm:$0xff] }
 0x961   : > { %7845 = vmatpush.msra.mxu0 %v7297_v14 }
 0x963   : > { %7846 = vmatpush.msra.mxu0 %v7296_v46  ;;  %v12149_v46 = vld [vmem:[#allocation5 + $0x28] sm:$0x3f] }
 0x965   : > { %7847 = vmatpush.msra.mxu0 %v7295_v49  ;;  %v8044_v49 = vrot.slane %v12149_v46, 1 }
 0x967   : > { %v7747_v63 = vld [vmem:[#allocation1 + $0x3] ss:$9 sm:$0xff]  ;;  %v7751_v1 = vld [vmem:[#allocation1 + $0x5] ss:$9 sm:$0xff] }
 0x968   : > { %v7749_v42 = vld [vmem:[#allocation1 + $0x4] ss:$9 sm:$0xff] }
 0x969   : > { %7752 = vst [vmem:[#allocation1] sm:$0xff] %v11900_v25 }
 0x970   : > { %v7753_v50 = vld [vmem:[#allocation1 + $0x3] ss:$9 sm:$0xff]  ;;  %v7755_v28 = vld [vmem:[#allocation1 + $0x5] ss:$9 sm:$0xff] }
 0x971   : > { %v7754_v39 = vld [vmem:[#allocation1 + $0x4] ss:$9 sm:$0xff] }
 0x972   : > { %7756 = vst [vmem:[#allocation1] sm:$0xff] %v11993_v52 }
 0x973   : > { %7760 = vst [vmem:[#allocation1] ss:$9 sm:$0xff] %v7747_v63  ;;  %v7313_v63 = vld [vmem:[%s12232_s11 + $0x190] sm:$0xff] }
 0x974   : > { %7762 = vst [vmem:[#allocation1 + $0x1] ss:$9 sm:$0xff] %v7749_v42  ;;  %v7312_v42 = vld [vmem:[%s12232_s11 + $0x188] sm:$0xff] }
 0x975   : > { %7764 = vst [vmem:[#allocation1 + $0x2] ss:$9 sm:$0xff] %v7751_v1  ;;  %v7311_v1 = vld [vmem:[%s12232_s11 + $0x180] sm:$0xff] }
 0x979   : > { %v7757_v20 = vld [vmem:[#allocation1 + $0x3] ss:$9 sm:$0xff]  ;;  %v7759_v36 = vld [vmem:[#allocation1 + $0x5] ss:$9 sm:$0xff] }
 0x97a   : > { %v7758_v48 = vld [vmem:[#allocation1 + $0x4] ss:$9 sm:$0xff]  ;;  %7766 = vst [vmem:[#allocation1 + $0x3] ss:$9 sm:$0xff] %v7753_v50 }
 0x97b   : > { %7768 = vst [vmem:[#allocation1 + $0x4] ss:$9 sm:$0xff] %v7754_v39 }
 0x97c   : > { %7770 = vst [vmem:[#allocation1 + $0x5] ss:$9 sm:$0xff] %v7755_v28 }
 0x97d   : > { %7772 = vst [vmem:[#allocation1 + $0x6] ss:$9 sm:$0xff] %v7757_v20  ;;  %v8045_v20 = vrot.slane %v12149_v46, 2 }
 0x97e   : > { %7774 = vst [vmem:[#allocation1 + $0x7] ss:$9 sm:$0xff] %v7758_v48 }
 0x985   : > { %v7775_v44 = vld [vmem:[#allocation1] sm:$0xff] }
 0x986   : > { %9095 = vmatmul.msk.f32.vlgmr.msrb.gmra.mxu3 %vm7183_vm9, %v7775_v44  ;;  %7776 = vst [vmem:[#allocation1] ss:$9 sm:$0xff] %v7759_v36  ;;  %v7316_v36 = vld [vmem:[%s12232_s11 + $0x1a8] sm:$0xff]  ;;  %v7315_v44 = vld [vmem:[%s12232_s11 + $0x1a0] sm:$0xff] }
 0x98d   : > { %v7777_v55 = vld [vmem:[#allocation1] sm:$0xff] }
 0x98e   : > { %9096 = vmatmul.msk.f32.gmra.mxu3 %vm7183_vm9, %v7777_v55  ;;  %7810 = vst [vmem:[#allocation1] ss:$9 sm:$0xff] %v11900_v25 }
 0x98f   : > { %7812 = vst [vmem:[#allocation1 + $0x1] ss:$9 sm:$0xff] %v11938_v43  ;;  %v7299_v43 = vld [vmem:[%s12232_s11 + $0x120] sm:$0xff] }
 0x990   : > { %7814 = vst [vmem:[#allocation1 + $0x2] ss:$9 sm:$0xff] %v11945_v32  ;;  %7909 = vmatpush.msra.mxu1 %v7299_v43  ;;  %v7809_v32 = vrot.slane %v12076_v15, 2 }
 0x991   : > { %7816 = vst [vmem:[#allocation1 + $0x3] ss:$9 sm:$0xff] %v11993_v52 }
 0x992   : > { %7818 = vst [vmem:[#allocation1 + $0x4] ss:$9 sm:$0xff] %v12000_v54 }
 0x993   : > { %7820 = vst [vmem:[#allocation1 + $0x5] ss:$9 sm:$0xff] %v12012_v2 }
 0x994   : > { %7822 = vst [vmem:[#allocation1 + $0x6] ss:$9 sm:$0xff] %v12076_v15 }
 0x995   : > { %7824 = vst [vmem:[#allocation1 + $0x7] ss:$9 sm:$0xff] %v7808_v9 }
 0x99c   : > { %v7825_v40 = vld [vmem:[#allocation1] sm:$0xff] }
 0x99d   : > { %9097 = vmatmul.msk.f32.vlgmr.msra.gmra.mxu0 %vm7183_vm9, %v7825_v40  ;;  %7826 = vst [vmem:[#allocation1] ss:$9 sm:$0xff] %v7809_v32 }
 0x9a4   : > { %v7827_v29 = vld [vmem:[#allocation1] sm:$0xff] }
 0x9a5   : > { %9098 = vmatmul.msk.f32.gmra.mxu0 %vm7183_vm9, %v7827_v29  ;;  %7857 = vst [vmem:[#allocation1] sm:$0xff] %v11900_v25 }
 0x9ac   : > { %v7859_v37 = vld [vmem:[#allocation1 + $0x1] ss:$9 sm:$0xff]  ;;  %v7863_v11 = vld [vmem:[#allocation1 + $0x3] ss:$9 sm:$0xff] }
 0x9ad   : > { %v7861_v34 = vld [vmem:[#allocation1 + $0x2] ss:$9 sm:$0xff] }
 0x9ae   : > { %7864 = vst [vmem:[#allocation1] sm:$0xff] %v11993_v52 }
 0x9b5   : > { %v7865_v8 = vld [vmem:[#allocation1 + $0x1] ss:$9 sm:$0xff]  ;;  %v7867_v3 = vld [vmem:[#allocation1 + $0x3] ss:$9 sm:$0xff] }
 0x9b6   : > { %v7866_v33 = vld [vmem:[#allocation1 + $0x2] ss:$9 sm:$0xff] }
 0x9b7   : > { %7868 = vst [vmem:[#allocation1] sm:$0xff] %v12076_v15 }
 0x9b8   : > { %7872 = vst [vmem:[#allocation1] ss:$9 sm:$0xff] %v7859_v37 }
 0x9b9   : > { %7880 = vst [vmem:[#allocation1 + $0x4] ss:$9 sm:$0xff] %v7866_v33  ;;  %v7319_v33 = vld [vmem:[%s12232_s11 + $0x1c0] sm:$0xff] }
 0x9ba   : > { %7882 = vst [vmem:[#allocation1 + $0x5] ss:$9 sm:$0xff] %v7867_v3 }
 0x9be   : > { %v7869_v10 = vld [vmem:[#allocation1 + $0x1] ss:$9 sm:$0xff]  ;;  %v7871_v23 = vld [vmem:[#allocation1 + $0x3] ss:$9 sm:$0xff] }
 0x9bf   : > { %v7870_v17 = vld [vmem:[#allocation1 + $0x2] ss:$9 sm:$0xff]  ;;  %7874 = vst [vmem:[#allocation1 + $0x1] ss:$9 sm:$0xff] %v7861_v34 }
 0x9c0   : > { %7876 = vst [vmem:[#allocation1 + $0x2] ss:$9 sm:$0xff] %v7863_v11  ;;  %v7321_v11 = vld [vmem:[%s12232_s11 + $0x1d0] sm:$0xff] }
 0x9c1   : > { %7878 = vst [vmem:[#allocation1 + $0x3] ss:$9 sm:$0xff] %v7865_v8  ;;  %v7320_v8 = vld [vmem:[%s12232_s11 + $0x1c8] sm:$0xff]  ;;  %8205 = vmatpush.msrb.mxu2 %v7321_v11 }
 0x9c2   : > { %7884 = vst [vmem:[#allocation1 + $0x6] ss:$9 sm:$0xff] %v7869_v10 }
 0x9c3   : > { %7886 = vst [vmem:[#allocation1 + $0x7] ss:$9 sm:$0xff] %v7870_v17  ;;  %8206 = vmatpush.msrb.mxu2 %v7320_v8 }
 0x9c5   : > { %8207 = vmatpush.msrb.mxu2 %v7319_v33 }
 0x9ca   : > { %v7887_v27 = vld [vmem:[#allocation1] sm:$0xff] }
 0x9cb   : > { %7888 = vst [vmem:[#allocation1] ss:$9 sm:$0xff] %v7871_v23  ;;  %9099 = vmatmul.msk.f32.vlgmr.msra.gmra.mxu1 %vm7183_vm9, %v7887_v27 }
 0x9d2   : > { %v7889_v57 = vld [vmem:[#allocation1] sm:$0xff] }
 0x9d3   : > { %7919 = vst [vmem:[#allocation1] sm:$0xff] %v11900_v25  ;;  %9100 = vmatmul.msk.f32.gmra.mxu1 %vm7183_vm9, %v7889_v57 }
 0x9da   : > { %v7921_v22 = vld [vmem:[#allocation1 + $0x2] ss:$9 sm:$0xff]  ;;  %v7925_v58 = vld [vmem:[#allocation1 + $0x4] ss:$9 sm:$0xff] }
 0x9db   : > { %v7923_v62 = vld [vmem:[#allocation1 + $0x3] ss:$9 sm:$0xff] }
 0x9dc   : > { %7926 = vst [vmem:[#allocation1] sm:$0xff] %v11993_v52 }
 0x9e3   : > { %v7927_v12 = vld [vmem:[#allocation1 + $0x2] ss:$9 sm:$0xff]  ;;  %v7929_v47 = vld [vmem:[#allocation1 + $0x4] ss:$9 sm:$0xff] }
 0x9e4   : > { %v7928_v24 = vld [vmem:[#allocation1 + $0x3] ss:$9 sm:$0xff] }
 0x9e5   : > { %7930 = vst [vmem:[#allocation1] sm:$0xff] %v12076_v15 }
 0x9e6   : > { %7934 = vst [vmem:[#allocation1] ss:$9 sm:$0xff] %v7921_v22 }
 0x9e7   : > { %7936 = vst [vmem:[#allocation1 + $0x1] ss:$9 sm:$0xff] %v7923_v62 }
 0x9e8   : > { %7944 = vst [vmem:[#allocation1 + $0x5] ss:$9 sm:$0xff] %v7929_v47  ;;  %v7323_v47 = vld [vmem:[%s12232_s11 + $0x1e0] sm:$0xff] }
 0x9ec   : > { %v7931_v0 = vld [vmem:[#allocation1 + $0x2] ss:$9 sm:$0xff]  ;;  %v7933_v56 = vld [vmem:[#allocation1 + $0x4] ss:$9 sm:$0xff] }
 0x9ed   : > { %v7932_v45 = vld [vmem:[#allocation1 + $0x3] ss:$9 sm:$0xff]  ;;  %7938 = vst [vmem:[#allocation1 + $0x2] ss:$9 sm:$0xff] %v7925_v58 }
 0x9ee   : > { %7940 = vst [vmem:[#allocation1 + $0x3] ss:$9 sm:$0xff] %v7927_v12  ;;  %v7326_v58 = vld [vmem:[%s12232_s11 + $0x1f8] sm:$0xff]  ;;  %v7325_v12 = vld [vmem:[%s12232_s11 + $0x1f0] sm:$0xff] }
 0x9ef   : > { %7942 = vst [vmem:[#allocation1 + $0x4] ss:$9 sm:$0xff] %v7928_v24  ;;  %8266 = vmatpush.msrb.mxu3 %v7326_v58  ;;  %v7324_v24 = vld [vmem:[%s12232_s11 + $0x1e8] sm:$0xff] }
 0x9f0   : > { %7946 = vst [vmem:[#allocation1 + $0x6] ss:$9 sm:$0xff] %v7931_v0 }
 0x9f1   : > { %7948 = vst [vmem:[#allocation1 + $0x7] ss:$9 sm:$0xff] %v7932_v45  ;;  %8267 = vmatpush.msrb.mxu3 %v7325_v12 }
 0x9f3   : > { %8268 = vmatpush.msrb.mxu3 %v7324_v24 }
 0x9f5   : > { %8269 = vmatpush.msrb.mxu3 %v7323_v47  ;;  %v9135_v47 = vld [vmem:[#allocation6] ss:$0 sm:$0xff] }
 0x9f8   : > { %v7949_v61 = vld [vmem:[#allocation1] sm:$0xff] }
 0x9f9   : > { %7950 = vst [vmem:[#allocation1] ss:$9 sm:$0xff] %v7933_v56  ;;  %9101 = vmatmul.msk.f32.vlgmr.msra.gmra.mxu2 %vm7183_vm9, %v7949_v61 }
 0xa00   : > { %v7951_v59 = vld [vmem:[#allocation1] sm:$0xff] }
 0xa01   : > { %7981 = vst [vmem:[#allocation1] sm:$0xff] %v11900_v25  ;;  %9102 = vmatmul.msk.f32.gmra.mxu2 %vm7183_vm9, %v7951_v59  ;;  %v7314_v25 = vld [vmem:[%s12232_s11 + $0x198] sm:$0xff] }
 0xa02   : > { %8080 = vmatpush.msrb.mxu0 %v7314_v25 }
 0xa04   : > { %8081 = vmatpush.msrb.mxu0 %v7313_v63 }
 0xa06   : > { %8082 = vmatpush.msrb.mxu0 %v7312_v42 }
 0xa08   : > { %v7983_v41 = vld [vmem:[#allocation1 + $0x3] ss:$9 sm:$0xff]  ;;  %v7987_v7 = vld [vmem:[#allocation1 + $0x5] ss:$9 sm:$0xff]  ;;  %8083 = vmatpush.msrb.mxu0 %v7311_v1 }
 0xa09   : > { %v7985_v16 = vld [vmem:[#allocation1 + $0x4] ss:$9 sm:$0xff] }
 0xa0a   : > { %7988 = vst [vmem:[#allocation1] sm:$0xff] %v11993_v52 }
 0xa11   : > { %v7989_v13 = vld [vmem:[#allocation1 + $0x3] ss:$9 sm:$0xff]  ;;  %v7991_v5 = vld [vmem:[#allocation1 + $0x5] ss:$9 sm:$0xff] }
 0xa12   : > { %v7990_v35 = vld [vmem:[#allocation1 + $0x4] ss:$9 sm:$0xff] }
 0xa13   : > { %7992 = vst [vmem:[#allocation1] sm:$0xff] %v12076_v15 }
 0xa14   : > { %7996 = vst [vmem:[#allocation1] ss:$9 sm:$0xff] %v7983_v41 }
 0xa15   : > { %7998 = vst [vmem:[#allocation1 + $0x1] ss:$9 sm:$0xff] %v7985_v16  ;;  %v7396_v16 = vpop.f32.mrf.mxu0 }
 0xa16   : > { %8000 = vst [vmem:[#allocation1 + $0x2] ss:$9 sm:$0xff] %v7987_v7  ;;  %v7441_v7 = vpop.f32.mrf.mxu1 }
 0xa1a   : > { %v7993_v50 = vld [vmem:[#allocation1 + $0x3] ss:$9 sm:$0xff]  ;;  %v7995_v28 = vld [vmem:[#allocation1 + $0x5] ss:$9 sm:$0xff] }
 0xa1b   : > { %v7994_v39 = vld [vmem:[#allocation1 + $0x4] ss:$9 sm:$0xff]  ;;  %8008 = vst [vmem:[#allocation1 + $0x6] ss:$9 sm:$0xff] %v7993_v50 }
 0xa1c   : > { %8002 = vst [vmem:[#allocation1 + $0x3] ss:$9 sm:$0xff] %v7989_v13  ;;  %v7501_v13 = vpop.f32.mrf.mxu2 }
 0xa1d   : > { %8004 = vst [vmem:[#allocation1 + $0x4] ss:$9 sm:$0xff] %v7990_v35  ;;  %v7399_v35 = vpop.f32.mrf.mxu0 }
 0xa1e   : > { %8006 = vst [vmem:[#allocation1 + $0x5] ss:$9 sm:$0xff] %v7991_v5  ;;  %v7563_v5 = vpop.f32.mrf.mxu3  ;;  %v7444_v25 = vpop.f32.mrf.mxu1 }
 0xa1f   : > { %8010 = vst [vmem:[#allocation1 + $0x7] ss:$9 sm:$0xff] %v7994_v39 }
 0xa24   : > { %v7504_v63 = vpop.f32.mrf.mxu2 }
 0xa25   : > { %v7613_v42 = vpop.f32.mrf.mxu0 }
 0xa26   : > { %v8011_v6 = vld [vmem:[#allocation1] sm:$0xff]  ;;  %v7566_v1 = vpop.f32.mrf.mxu3  ;;  %v7675_v50 = vpop.f32.mrf.mxu1 }
 0xa27   : > { %9103 = vmatmul.msk.f32.vlgmr.msra.gmra.mxu3 %vm7183_vm9, %v8011_v6  ;;  %8012 = vst [vmem:[#allocation1] ss:$9 sm:$0xff] %v7995_v28 }
 0xa2c   : > { %v7737_v39 = vpop.f32.mrf.mxu2 }
 0xa2d   : > { %v7616_v28 = vpop.f32.mrf.mxu0 }
 0xa2e   : > { %v8013_v14 = vld [vmem:[#allocation1] sm:$0xff]  ;;  %v7799_v6 = vpop.f32.mrf.mxu3 }
 0xa2f   : > { %9104 = vmatmul.msk.f32.gmra.mxu3 %vm7183_vm9, %v8013_v14  ;;  %8046 = vst [vmem:[#allocation1] ss:$9 sm:$0xff] %v11993_v52  ;;  %v7678_v14 = vpop.f32.mrf.mxu1 }
 0xa30   : > { %8048 = vst [vmem:[#allocation1 + $0x1] ss:$9 sm:$0xff] %v12000_v54  ;;  %v7318_v54 = vld [vmem:[%s12232_s11 + $0x1b8] sm:$0xff] }
 0xa31   : > { %8050 = vst [vmem:[#allocation1 + $0x2] ss:$9 sm:$0xff] %v12012_v2  ;;  %v7317_v2 = vld [vmem:[%s12232_s11 + $0x1b0] sm:$0xff]  ;;  %8142 = vmatpush.msrb.mxu1 %v7318_v54 }
 0xa32   : > { %8052 = vst [vmem:[#allocation1 + $0x3] ss:$9 sm:$0xff] %v12076_v15 }
 0xa33   : > { %8054 = vst [vmem:[#allocation1 + $0x4] ss:$9 sm:$0xff] %v7808_v9  ;;  %8143 = vmatpush.msrb.mxu1 %v7317_v2 }
 0xa34   : > { %8056 = vst [vmem:[#allocation1 + $0x5] ss:$9 sm:$0xff] %v7809_v32 }
 0xa35   : > { %8058 = vst [vmem:[#allocation1 + $0x6] ss:$9 sm:$0xff] %v12149_v46  ;;  %8144 = vmatpush.msrb.mxu1 %v7316_v36 }
 0xa36   : > { %8060 = vst [vmem:[#allocation1 + $0x7] ss:$9 sm:$0xff] %v8044_v49  ;;  %v7849_v49 = vpop.f32.mrf.mxu0 }
 0xa37   : > { %8145 = vmatpush.msrb.mxu1 %v7315_v44 }
 0xa3d   : > { %v8061_v48 = vld [vmem:[#allocation1] sm:$0xff] }
 0xa3e   : > { %8062 = vst [vmem:[#allocation1] ss:$9 sm:$0xff] %v8045_v20  ;;  %9105 = vmatmul.msk.f32.vlgmr.msrb.gmra.mxu0 %vm7183_vm9, %v8061_v48  ;;  %v7442_v20 = vadd.f32 %v7441_v7, %v7396_v16  ;;  %v7802_v48 = vpop.f32.mrf.mxu3 }
 0xa40   : > { %v7507_v2 = vadd.f32 %v7501_v13, %v7442_v20 }
 0xa42   : > { %v7569_v44 = vadd.f32 %v7563_v5, %v7507_v2 }
 0xa45   : > { %v8063_v19 = vld [vmem:[#allocation1] sm:$0xff] }
 0xa46   : > { %8093 = vst [vmem:[#allocation1] sm:$0xff] %v11993_v52  ;;  %9106 = vmatmul.msk.f32.gmra.mxu0 %vm7183_vm9, %v8063_v19  ;;  %v7619_v19 = vadd.f32 %v7613_v42, %v7569_v44 }
 0xa48   : > { %v7911_v54 = vpop.f32.mrf.mxu1 }
 0xa4d   : > { %v8095_v60 = vld [vmem:[#allocation1 + $0x1] ss:$9 sm:$0xff]  ;;  %v8099_v9 = vld [vmem:[#allocation1 + $0x3] ss:$9 sm:$0xff] }
 0xa4e   : > { %v8097_v55 = vld [vmem:[#allocation1 + $0x2] ss:$9 sm:$0xff] }
 0xa4f   : > { %8100 = vst [vmem:[#allocation1] sm:$0xff] %v12076_v15 }
 0xa56   : > { %v8101_v43 = vld [vmem:[#allocation1 + $0x1] ss:$9 sm:$0xff]  ;;  %v8103_v40 = vld [vmem:[#allocation1 + $0x3] ss:$9 sm:$0xff] }
 0xa57   : > { %v8102_v32 = vld [vmem:[#allocation1 + $0x2] ss:$9 sm:$0xff] }
 0xa58   : > { %8104 = vst [vmem:[#allocation1] sm:$0xff] %v12149_v46 }
 0xa59   : > { %8108 = vst [vmem:[#allocation1] ss:$9 sm:$0xff] %v8095_v60  ;;  %v7445_v60 = vadd.f32 %v7444_v25, %v7399_v35 }
 0xa5a   : > { %8116 = vst [vmem:[#allocation1 + $0x4] ss:$9 sm:$0xff] %v8102_v32 }
 0xa5b   : > { %8118 = vst [vmem:[#allocation1 + $0x5] ss:$9 sm:$0xff] %v8103_v40  ;;  %v7914_v40 = vpop.f32.mrf.mxu1 }
 0xa5f   : > { %v8106_v29 = vld [vmem:[#allocation1 + $0x2] ss:$9 sm:$0xff] }
 0xa60   : > { %v8105_v37 = vld [vmem:[#allocation1 + $0x1] ss:$9 sm:$0xff]  ;;  %8112 = vst [vmem:[#allocation1 + $0x2] ss:$9 sm:$0xff] %v8099_v9  ;;  %v8107_v34 = vld [vmem:[#allocation1 + $0x3] ss:$9 sm:$0xff]  ;;  %v7852_v9 = vpop.f32.mrf.mxu0 }
 0xa61   : > { %8122 = vst [vmem:[#allocation1 + $0x7] ss:$9 sm:$0xff] %v8106_v29 }
 0xa62   : > { %8110 = vst [vmem:[#allocation1 + $0x1] ss:$9 sm:$0xff] %v8097_v55  ;;  %v7681_v55 = vadd.f32 %v7675_v50, %v7619_v19 }
 0xa63   : > { %8114 = vst [vmem:[#allocation1 + $0x3] ss:$9 sm:$0xff] %v8101_v43  ;;  %v7508_v43 = vadd.f32 %v7504_v63, %v7445_v60 }
 0xa64   : > { %8120 = vst [vmem:[#allocation1 + $0x6] ss:$9 sm:$0xff] %v8105_v37  ;;  %v7743_v32 = vadd.f32 %v7737_v39, %v7681_v55 }
 0xa65   : > { %v7570_v29 = vadd.f32 %v7566_v1, %v7508_v43 }
 0xa66   : > { %v7805_v37 = vadd.f32 %v7799_v6, %v7743_v32 }
 0xa67   : > { %v7620_v11 = vadd.f32 %v7616_v28, %v7570_v29 }
 0xa68   : > { %v7855_v8 = vadd.f32 %v7849_v49, %v7805_v37 }
 0xa69   : > { %v7682_v33 = vadd.f32 %v7678_v14, %v7620_v11 }
 0xa6b   : > { %v8123_v3 = vld [vmem:[#allocation1] sm:$0xff] }
 0xa6c   : > { %9107 = vmatmul.msk.f32.vlgmr.msrb.gmra.mxu1 %vm7183_vm9, %v8123_v3  ;;  %8124 = vst [vmem:[#allocation1] ss:$9 sm:$0xff] %v8107_v34  ;;  %v7917_v3 = vadd.f32 %v7911_v54, %v7855_v8 }
 0xa73   : > { %v8125_v10 = vld [vmem:[#allocation1] sm:$0xff] }
 0xa74   : > { %9108 = vmatmul.msk.f32.gmra.mxu1 %vm7183_vm9, %v8125_v10  ;;  %8155 = vst [vmem:[#allocation1] sm:$0xff] %v11993_v52 }
 0xa7b   : > { %v8157_v17 = vld [vmem:[#allocation1 + $0x2] ss:$9 sm:$0xff]  ;;  %v8161_v27 = vld [vmem:[#allocation1 + $0x4] ss:$9 sm:$0xff] }
 0xa7c   : > { %v8159_v23 = vld [vmem:[#allocation1 + $0x3] ss:$9 sm:$0xff] }
 0xa7d   : > { %8162 = vst [vmem:[#allocation1] sm:$0xff] %v12076_v15 }
 0xa84   : > { %v8163_v38 = vld [vmem:[#allocation1 + $0x2] ss:$9 sm:$0xff]  ;;  %v8165_v18 = vld [vmem:[#allocation1 + $0x4] ss:$9 sm:$0xff] }
 0xa85   : > { %v8164_v30 = vld [vmem:[#allocation1 + $0x3] ss:$9 sm:$0xff] }
 0xa86   : > { %8166 = vst [vmem:[#allocation1] sm:$0xff] %v12149_v46 }
 0xa87   : > { %8170 = vst [vmem:[#allocation1] ss:$9 sm:$0xff] %v8157_v17 }
 0xa88   : > { %8172 = vst [vmem:[#allocation1 + $0x1] ss:$9 sm:$0xff] %v8159_v23 }
 0xa89   : > { %8180 = vst [vmem:[#allocation1 + $0x5] ss:$9 sm:$0xff] %v8165_v18 }
 0xa8d   : > { %v8167_v57 = vld [vmem:[#allocation1 + $0x2] ss:$9 sm:$0xff]  ;;  %v8169_v22 = vld [vmem:[#allocation1 + $0x4] ss:$9 sm:$0xff] }
 0xa8e   : > { %v8168_v21 = vld [vmem:[#allocation1 + $0x3] ss:$9 sm:$0xff]  ;;  %8174 = vst [vmem:[#allocation1 + $0x2] ss:$9 sm:$0xff] %v8161_v27 }
 0xa8f   : > { %8176 = vst [vmem:[#allocation1 + $0x3] ss:$9 sm:$0xff] %v8163_v38 }
 0xa90   : > { %8178 = vst [vmem:[#allocation1 + $0x4] ss:$9 sm:$0xff] %v8164_v30 }
 0xa91   : > { %8182 = vst [vmem:[#allocation1 + $0x6] ss:$9 sm:$0xff] %v8167_v57 }
 0xa92   : > { %8184 = vst [vmem:[#allocation1 + $0x7] ss:$9 sm:$0xff] %v8168_v21 }
 0xa99   : > { %v8185_v62 = vld [vmem:[#allocation1] sm:$0xff] }
 0xa9a   : > { %8186 = vst [vmem:[#allocation1] ss:$9 sm:$0xff] %v8169_v22  ;;  %9109 = vmatmul.msk.f32.vlgmr.msrb.gmra.mxu2 %vm7183_vm9, %v8185_v62 }
 0xaa1   : > { %v8187_v0 = vld [vmem:[#allocation1] sm:$0xff] }
 0xaa2   : > { %8217 = vst [vmem:[#allocation1] sm:$0xff] %v11993_v52  ;;  %9110 = vmatmul.msk.f32.gmra.mxu2 %vm7183_vm9, %v8187_v0 }
 0xaa9   : > { %v8219_v45 = vld [vmem:[#allocation1 + $0x3] ss:$9 sm:$0xff]  ;;  %v8223_v61 = vld [vmem:[#allocation1 + $0x5] ss:$9 sm:$0xff] }
 0xaaa   : > { %v8221_v56 = vld [vmem:[#allocation1 + $0x4] ss:$9 sm:$0xff]  ;;  %v8035_v4 = vpop.f32.mrf.mxu3 }
 0xaab   : > { %8224 = vst [vmem:[#allocation1] sm:$0xff] %v12076_v15 }
 0xab2   : > { %v8225_v53 = vld [vmem:[#allocation1 + $0x3] ss:$9 sm:$0xff]  ;;  %v8227_v26 = vld [vmem:[#allocation1 + $0x5] ss:$9 sm:$0xff]  ;;  %v8038_v27 = vpop.f32.mrf.mxu3 }
 0xab3   : > { %v8226_v51 = vld [vmem:[#allocation1 + $0x4] ss:$9 sm:$0xff] }
 0xab4   : > { %8228 = vst [vmem:[#allocation1] sm:$0xff] %v12149_v46  ;;  %v7740_v46 = vpop.f32.mrf.mxu2 }
 0xab5   : > { %8232 = vst [vmem:[#allocation1] ss:$9 sm:$0xff] %v8219_v45  ;;  %v7744_v17 = vadd.f32 %v7740_v46, %v7682_v33 }
 0xab6   : > { %8234 = vst [vmem:[#allocation1 + $0x1] ss:$9 sm:$0xff] %v8221_v56 }
 0xab7   : > { %8236 = vst [vmem:[#allocation1 + $0x2] ss:$9 sm:$0xff] %v8223_v61  ;;  %v7806_v30 = vadd.f32 %v7802_v48, %v7744_v17 }
 0xab9   : > { %v7856_v21 = vadd.f32 %v7852_v9, %v7806_v30 }
 0xabb   : > { %v8231_v59 = vld [vmem:[#allocation1 + $0x5] ss:$9 sm:$0xff]  ;;  %v8229_v31 = vld [vmem:[#allocation1 + $0x3] ss:$9 sm:$0xff]  ;;  %v8085_v10 = vpop.f32.mrf.mxu0  ;;  %v7918_v62 = vadd.f32 %v7914_v40, %v7856_v21 }
 0xabc   : > { %v8230_v41 = vld [vmem:[#allocation1 + $0x4] ss:$9 sm:$0xff]  ;;  %8242 = vst [vmem:[#allocation1 + $0x5] ss:$9 sm:$0xff] %v8227_v26  ;;  %v7973_v36 = vpop.f32.mrf.mxu2 }
 0xabd   : > { %8238 = vst [vmem:[#allocation1 + $0x3] ss:$9 sm:$0xff] %v8225_v53  ;;  %v7979_v23 = vadd.f32 %v7973_v36, %v7917_v3 }
 0xabe   : > { %8240 = vst [vmem:[#allocation1 + $0x4] ss:$9 sm:$0xff] %v8226_v51 }
 0xabf   : > { %8244 = vst [vmem:[#allocation1 + $0x6] ss:$9 sm:$0xff] %v8229_v31  ;;  %v8041_v18 = vadd.f32 %v8035_v4, %v7979_v23 }
 0xac0   : > { %8246 = vst [vmem:[#allocation1 + $0x7] ss:$9 sm:$0xff] %v8230_v41 }
 0xac1   : > { %v8091_v22 = vadd.f32 %v8085_v10, %v8041_v18 }
 0xac3   : > { %v8088_v0 = vpop.f32.mrf.mxu0 }
 0xac4   : > { %v7976_v34 = vpop.f32.mrf.mxu2 }
 0xac5   : > { %v7980_v12 = vadd.f32 %v7976_v34, %v7918_v62 }
 0xac7   : > { %v8247_v52 = vld [vmem:[#allocation1] sm:$0xff]  ;;  %v8042_v56 = vadd.f32 %v8038_v27, %v7980_v12 }
 0xac8   : > { %9111 = vmatmul.msk.f32.vlgmr.msrb.gmra.mxu3 %vm7183_vm9, %v8247_v52  ;;  %8248 = vst [vmem:[#allocation1] ss:$9 sm:$0xff] %v8231_v59 }
 0xac9   : > { %v8092_v51 = vadd.f32 %v8088_v0, %v8042_v56 }
 0xacf   : > { %v8249_v15 = vld [vmem:[#allocation1] sm:$0xff] }
 0xad0   : > { %9112 = vmatmul.msk.f32.gmra.mxu3 %vm7183_vm9, %v8249_v15 }
 0xae9   : > { %v8147_v38 = vpop.f32.mrf.mxu1 }
 0xaea   : > { %v8153_v58 = vadd.f32 %v8147_v38, %v8091_v22 }
 0xaf1   : > { %v8150_v53 = vpop.f32.mrf.mxu1 }
 0xaf2   : > { %v8154_v31 = vadd.f32 %v8150_v53, %v8092_v51 }
 0xb1d   : > { %v8209_v57 = vpop.f32.mrf.mxu2 }
 0xb1e   : > { %v8215_v24 = vadd.f32 %v8209_v57, %v8153_v58 }
 0xb25   : > { %v8212_v59 = vpop.f32.mrf.mxu2 }
 0xb26   : > { %v8216_v41 = vadd.f32 %v8212_v59, %v8154_v31 }
 0xb4b   : > { %v8271_v45 = vpop.f32.mrf.mxu3 }
 0xb4c   : > { %v8277_v61 = vadd.f32 %v8271_v45, %v8215_v24 }
 0xb4e   : > { %v8283_v26 = vadd.f32 %v9135_v47, %v8277_v61 }
 0xb50   : > { %8286 = vst.msk [vmem:[%s442_s18] sm:$0xff] %vm8285_vm0, %v8283_v26 }
 0xb53   : > { %v8274_v52 = vpop.f32.mrf.mxu3 }
 0xb54   : > { %v8278_v15 = vadd.f32 %v8274_v52, %v8216_v41 }
 0xb56   : > { %v8284_v16 = vadd.f32 %v9135_v47, %v8278_v15 }
 0xb58   : > { %8288 = vst.msk [vmem:[%s442_s18 + $0x8] sm:$0x1] %vm8287_vm3, %v8284_v16 }
 0xb59 PF: > { %s25_s27 = sadd.s32 1, %s9151_s27  }
 0xb5a   : > { %p22_p4 = scmp.ge.s32.totalorder %s25_s27, 4  }
 0xb5c   :  { %24 = sbr.rel (!%p22_p4) target bundleno = 3 (0x3), region = 620 }

</bundles_post_ra>
